<compile_context>
chip_gen: v7x
topology: tpu7x:2x2x1
jax: 0.10.0
libtpu: 0.0.40
codegen_flags: <defaults>
</compile_context>

<pallas_src>
import functools

import jax
import jax.numpy as jnp
from jax import lax
from jax.experimental import pallas as pl
from jax.experimental.pallas import tpu as pltpu


# ---------------------------------------------------------------------------
# Parameter folding (Conv bias + BatchNorm3d eval-mode -> scaled weight, shift)
# ---------------------------------------------------------------------------

def _fold_bn(w, b, g, be, mu, var, eps=1e-5):
    """torch Conv3d weight (Cout,Cin,3,3,3) -> (3,3,3,Cin,Cout) bf16 (BN scale
    folded in) plus a f32 per-channel shift."""
    scale = g / jnp.sqrt(var + eps)                              # (Cout,)
    wt = jnp.transpose(w, (2, 3, 4, 1, 0))                       # (3,3,3,Cin,Cout)
    wt = (wt * scale[None, None, None, None, :]).astype(jnp.bfloat16)
    shift = ((b - mu) * scale + be).astype(jnp.float32)          # (Cout,)
    return wt, shift


# ---------------------------------------------------------------------------
# Fused Down3d forward (Pallas)
# ---------------------------------------------------------------------------

def down3d_forward(x_ncdhw, params, *, dilation=1, eps=1e-5):
    """Down3d.forward: MaxPool3d(2) -> (Conv3d+BN+ReLU) x 2.  x: NCDHW."""
    n, cin, d, h, w = x_ncdhw.shape
    cmid = params["w1"].shape[0]
    cout = params["w2"].shape[0]
    dil = int(dilation)
    assert d % 2 == 0 and h % 2 == 0 and w % 2 == 0, "MaxPool3d(2) needs even dims"
    do, ho, wo = d // 2, h // 2, w // 2

    # padded geometry of the two convs ('same', kernel 3, dilation dil / 1)
    dp1, hp1, wp1 = do + 2 * dil, ho + 2 * dil, wo + 2 * dil
    dp2, hp2, wp2 = do + 2, ho + 2, wo + 2
    r1, r2 = dp1 * hp1 * wp1, dp2 * hp2 * wp2
    po1 = (do - 1) * hp1 * wp1 + (ho - 1) * wp1 + wo   # rows of conv1 "flat plane" output
    po2 = (do - 1) * hp2 * wp2 + (ho - 1) * wp2 + wo

    # fold bias + BN(eval) into weights / shifts (trace-time, tiny)
    w1f, s1 = _fold_bn(params["w1"], params["b1"], params["g1"], params["be1"],
                       params["m1"], params["v1"], eps)
    w2f, s2 = _fold_bn(params["w2"], params["b2"], params["g2"], params["be2"],
                       params["m2"], params["v2"], eps)
    w1f = w1f.reshape(27, cin, cmid)
    w2f = w2f.reshape(27, cmid, cout)
    s1 = s1.reshape(1, cmid)
    s2 = s2.reshape(1, cout)

    # Boundary layout pass NCDHW -> NDHWC, plus a *free* contiguous reshape that
    # puts each W-pair on adjacent lane groups for the in-kernel max-pool.
    x = jnp.transpose(x_ncdhw, (0, 2, 3, 4, 1)).reshape(n, d, h, wo, 2 * cin)
    out_dtype = x.dtype

    def kernel(x_ref, w1_ref, s1_ref, w2_ref, s2_ref, o_ref, xp1, xp2):
        # ---------------- fused MaxPool3d(2) (all in VMEM) ----------------
        v = x_ref[0]                                    # (D, H, Wo, 2*Cin)
        vw = jnp.maximum(v[..., :cin], v[..., cin:])    # pool W   -> (D, H, Wo, Cin)
        t6 = vw.reshape(do, 2, ho, 2, wo, cin)          # free leading-dim split
        td = jnp.maximum(t6[:, 0], t6[:, 1])            # pool D   -> (Do, Ho, 2, Wo, Cin)
        pooled = jnp.maximum(td[:, :, 0], td[:, :, 1])  # pool H   -> (Do, Ho, Wo, Cin)

        # ---------------- shared conv block (27 tap matmuls on MXU) --------
        # One covering VMEM load + one bf16 cast per (kd, kh); the 3 kw taps
        # are in-register slices of that slab (3x fewer loads/casts than a
        # per-tap load, exact same values fed to the MXU).
        def conv_block(src_ref, w_ref, sh_ref, hp, wp, dd, po, co):
            shift = sh_ref[...]                          # (1, co)
            acc = jnp.zeros((po, co), jnp.float32)
            cover = po + 2 * dd                          # kw window span
            for kd in range(3):
                for kh in range(3):
                    base = dd * (kd * hp * wp + kh * wp)
                    slab = src_ref[base:base + cover, :].astype(jnp.bfloat16)
                    for kw in range(3):
                        t = kd * 9 + kh * 3 + kw
                        rows = slab[kw * dd:kw * dd + po, :]
                        acc = acc + jnp.dot(rows, w_ref[t],
                                            preferred_element_type=jnp.float32)
            # fused (folded) BN shift + ReLU; garbage rows never get read back
            return jnp.maximum(acc + shift, 0.0)

        # ---------------- conv1: deposit pooled act into padded flat scratch
        xp1[...] = jnp.zeros(xp1.shape, xp1.dtype)
        for dd_ in range(do):
            for hh_ in range(ho):
                dst = (dd_ + dil) * hp1 * wp1 + (hh_ + dil) * wp1 + dil
                xp1[dst:dst + wo, :] = pooled[dd_, hh_]

        y1 = conv_block(xp1, w1_ref, s1_ref, hp1, wp1, dil, po1, cmid)  # (PO1, Cmid) f32

        # ---------------- conv2: deposit conv1 output (valid rows only) ----
        xp2[...] = jnp.zeros(xp2.shape, xp2.dtype)
        for dd_ in range(do):
            for hh_ in range(ho):
                src = dd_ * hp1 * wp1 + hh_ * wp1
                dst = (dd_ + 1) * hp2 * wp2 + (hh_ + 1) * wp2 + 1
                xp2[dst:dst + wo, :] = y1[src:src + wo, :]

        y2 = conv_block(xp2, w2_ref, s2_ref, hp2, wp2, 1, po2, cout)    # (PO2, Cout) f32

        # ---------------- write valid rows to the output block -------------
        for dd_ in range(do):
            for hh_ in range(ho):
                src = dd_ * hp2 * wp2 + hh_ * wp2
                o_ref[0, dd_, hh_, :, :] = y2[src:src + wo, :].astype(o_ref.dtype)

    out = pl.pallas_call(
        kernel,
        out_shape=jax.ShapeDtypeStruct((n, do, ho, wo, cout), out_dtype),
        grid=(n,),
        in_specs=[
            pl.BlockSpec((1, d, h, wo, 2 * cin), lambda i: (i, 0, 0, 0, 0)),
            pl.BlockSpec((27, cin, cmid), lambda i: (0, 0, 0)),
            pl.BlockSpec((1, cmid), lambda i: (0, 0)),
            pl.BlockSpec((27, cmid, cout), lambda i: (0, 0, 0)),
            pl.BlockSpec((1, cout), lambda i: (0, 0)),
        ],
        out_specs=pl.BlockSpec((1, do, ho, wo, cout), lambda i: (i, 0, 0, 0, 0)),
        scratch_shapes=[
            pltpu.VMEM((r1, cin), jnp.float32),   # conv1 zero-padded flat input
            pltpu.VMEM((r2, cmid), jnp.float32),  # conv2 zero-padded flat input
        ],
        compiler_params=pltpu.CompilerParams(
            dimension_semantics=("parallel",)),
    )(x, w1f, s1, w2f, s2)

    return jnp.transpose(out, (0, 4, 1, 2, 3))          # NDHWC -> NCDHW


# ---------------------------------------------------------------------------
# Pure-JAX references (sanity checks)
# ---------------------------------------------------------------------------

def _ref_down3d(x_ncdhw, params, *, dilation=1, eps=1e-5, quantized=False):
    """quantized=True mirrors the kernel's intentional bf16 matmul operands."""
    x = jnp.transpose(x_ncdhw, (0, 2, 3, 4, 1))
    x = lax.reduce_window(x, -jnp.inf, lax.max,
                          (1, 2, 2, 2, 1), (1, 2, 2, 2, 1), "VALID")

    def block(xin, wt, b, g, be, mu, var, dil):
        if quantized:
            wq, shift = _fold_bn(wt, b, g, be, mu, var, eps)
            xq = xin.astype(jnp.bfloat16).astype(jnp.float32)
            y = lax.conv_general_dilated(
                xq, wq.astype(jnp.float32), (1, 1, 1), "SAME",
                rhs_dilation=(dil, dil, dil),
                dimension_numbers=("NDHWC", "DHWIO", "NDHWC"),
                precision=lax.Precision.HIGHEST)
            y = y + shift
        else:
            wk = jnp.transpose(wt, (2, 3, 4, 1, 0))
            y = lax.conv_general_dilated(
                xin, wk, (1, 1, 1), "SAME",
                rhs_dilation=(dil, dil, dil),
                dimension_numbers=("NDHWC", "DHWIO", "NDHWC"),
                precision=lax.Precision.HIGHEST)
            y = y + b
            y = (y - mu) / jnp.sqrt(var + eps) * g + be
        return jnp.maximum(y, 0.0)

    x = block(x, params["w1"], params["b1"], params["g1"], params["be1"],
              params["m1"], params["v1"], dilation)
    x = block(x, params["w2"], params["b2"], params["g2"], params["be2"],
              params["m2"], params["v2"], 1)
    return jnp.transpose(x, (0, 4, 1, 2, 3))


# ---------------------------------------------------------------------------
# Deterministic params + main
# ---------------------------------------------------------------------------

def _init_params(key, in_channels, out_channels):
    mid = out_channels
    ks = jax.random.split(key, 8)
    return {
        "w1": 0.1 * jax.random.normal(ks[0], (mid, in_channels, 3, 3, 3), jnp.float32),
        "b1": 0.1 * jax.random.normal(ks[1], (mid,), jnp.float32),
        "g1": 1.0 + 0.1 * jax.random.normal(ks[2], (mid,), jnp.float32),
        "be1": 0.1 * jax.random.normal(ks[3], (mid,), jnp.float32),
        "m1": 0.05 * jax.random.normal(ks[2], (mid,), jnp.float32),
        "v1": 1.0 + 0.1 * jax.random.uniform(ks[3], (mid,), jnp.float32),
        "w2": 0.1 * jax.random.normal(ks[4], (out_channels, mid, 3, 3, 3), jnp.float32),
        "b2": 0.1 * jax.random.normal(ks[5], (out_channels,), jnp.float32),
        "g2": 1.0 + 0.1 * jax.random.normal(ks[6], (out_channels,), jnp.float32),
        "be2": 0.1 * jax.random.normal(ks[7], (out_channels,), jnp.float32),
        "m2": 0.05 * jax.random.normal(ks[6], (out_channels,), jnp.float32),
        "v2": 1.0 + 0.1 * jax.random.uniform(ks[7], (out_channels,), jnp.float32),
    }


if __name__ == "__main__":
    key = jax.random.PRNGKey(0)
    kx, kp = jax.random.split(key)

    N, Cin, D, H, W = 2, 4, 8, 8, 8        # NCDHW, even spatial dims for MaxPool3d(2)
    Cout = 8
    x = jax.random.normal(kx, (N, Cin, D, H, W), jnp.float32)
    params = _init_params(kp, Cin, Cout)

    fwd = jax.jit(functools.partial(down3d_forward, dilation=1))
    out = jax.block_until_ready(fwd(x, params))
    assert out.shape == (N, Cout, D // 2, H // 2, W // 2), out.shape

    # Tight check vs a reference applying the same intentional bf16 quantization
    # of the matmul operands (validates pooling / padding / tap indexing exactly).
    ref_q = jax.block_until_ready(_ref_down3d(x, params, dilation=1, quantized=True))
    err_q = float(jnp.max(jnp.abs(out - ref_q)))
    assert jnp.allclose(out, ref_q, atol=1e-3, rtol=1e-3), f"quantized-ref max err {err_q}"

    # Loose check vs the pure-f32 PyTorch-equivalent reference (bf16 operand tolerance).
    ref_f = jax.block_until_ready(_ref_down3d(x, params, dilation=1, quantized=False))
    err_f = float(jnp.max(jnp.abs(out - ref_f)))
    assert jnp.allclose(out, ref_f, atol=1e-1, rtol=1e-1), f"f32-ref max err {err_f}"

    print("KERNEL_OK")
</pallas_src>

<mosaic_0001>
module attributes {stable_mosaic.version = 11 : i64} {
  func.func @kernel(%arg0: i32, %arg1: memref<1x8x8x4x8xf32, #tpu.memory_space<vmem>>, %arg2: memref<27x4x8xbf16, #tpu.memory_space<vmem>>, %arg3: memref<1x8xf32, #tpu.memory_space<vmem>>, %arg4: memref<27x8x8xbf16, #tpu.memory_space<vmem>>, %arg5: memref<1x8xf32, #tpu.memory_space<vmem>>, %arg6: memref<1x4x4x4x8xf32, #tpu.memory_space<vmem>>, %arg7: memref<216x4xf32, #tpu.memory_space<vmem>>, %arg8: memref<216x8xf32, #tpu.memory_space<vmem>>) attributes {dimension_semantics = [#tpu.dimension_semantics<parallel>], iteration_bounds = array<i64: 2>, scalar_prefetch = 0 : i64, scratch_operands = 2 : i64, tpu.core_type = #tpu.core_type<tc>, window_params = [{transform_indices = @transform_0, window_bounds = array<i64: 1, 8, 8, 4, 8>}, {pipeline_mode = #tpu.pipeline_mode<synchronous>, transform_indices = @transform_1, window_bounds = array<i64: 27, 4, 8>}, {pipeline_mode = #tpu.pipeline_mode<synchronous>, transform_indices = @transform_2, window_bounds = array<i64: 1, 8>}, {pipeline_mode = #tpu.pipeline_mode<synchronous>, transform_indices = @transform_3, window_bounds = array<i64: 27, 8, 8>}, {pipeline_mode = #tpu.pipeline_mode<synchronous>, transform_indices = @transform_4, window_bounds = array<i64: 1, 8>}, {transform_indices = @transform_5, window_bounds = array<i64: 1, 4, 4, 4, 8>}]} {
    %c0 = arith.constant 0 : index
    %c0_0 = arith.constant 0 : index
    %c0_1 = arith.constant 0 : index
    %c0_2 = arith.constant 0 : index
    %c0_3 = arith.constant 0 : index
    %0 = vector.load %arg1[%c0, %c0_0, %c0_1, %c0_2, %c0_3] : memref<1x8x8x4x8xf32, #tpu.memory_space<vmem>>, vector<1x8x8x4x8xf32>
    %1 = vector.shape_cast %0 : vector<1x8x8x4x8xf32> to vector<8x8x4x8xf32>
    %2 = vector.extract_strided_slice %1 {offsets = [0, 0, 0, 0], sizes = [8, 8, 4, 4], strides = [1, 1, 1, 1]} : vector<8x8x4x8xf32> to vector<8x8x4x4xf32>
    %3 = vector.extract_strided_slice %1 {offsets = [0, 0, 0, 4], sizes = [8, 8, 4, 4], strides = [1, 1, 1, 1]} : vector<8x8x4x8xf32> to vector<8x8x4x4xf32>
    %4 = arith.maximumf %2, %3 : vector<8x8x4x4xf32>
    %5 = vector.shape_cast %4 : vector<8x8x4x4xf32> to vector<4x2x4x2x4x4xf32>
    %6 = vector.extract_strided_slice %5 {offsets = [0, 0, 0, 0, 0, 0], sizes = [4, 1, 4, 2, 4, 4], strides = [1, 1, 1, 1, 1, 1]} : vector<4x2x4x2x4x4xf32> to vector<4x1x4x2x4x4xf32>
    %7 = vector.shape_cast %6 : vector<4x1x4x2x4x4xf32> to vector<4x4x2x4x4xf32>
    %8 = vector.extract_strided_slice %5 {offsets = [0, 1, 0, 0, 0, 0], sizes = [4, 1, 4, 2, 4, 4], strides = [1, 1, 1, 1, 1, 1]} : vector<4x2x4x2x4x4xf32> to vector<4x1x4x2x4x4xf32>
    %9 = vector.shape_cast %8 : vector<4x1x4x2x4x4xf32> to vector<4x4x2x4x4xf32>
    %10 = arith.maximumf %7, %9 : vector<4x4x2x4x4xf32>
    %11 = vector.extract_strided_slice %10 {offsets = [0, 0, 0, 0, 0], sizes = [4, 4, 1, 4, 4], strides = [1, 1, 1, 1, 1]} : vector<4x4x2x4x4xf32> to vector<4x4x1x4x4xf32>
    %12 = vector.shape_cast %11 : vector<4x4x1x4x4xf32> to vector<4x4x4x4xf32>
    %13 = vector.extract_strided_slice %10 {offsets = [0, 0, 1, 0, 0], sizes = [4, 4, 1, 4, 4], strides = [1, 1, 1, 1, 1]} : vector<4x4x2x4x4xf32> to vector<4x4x1x4x4xf32>
    %14 = vector.shape_cast %13 : vector<4x4x1x4x4xf32> to vector<4x4x4x4xf32>
    %15 = arith.maximumf %12, %14 : vector<4x4x4x4xf32>
    %cst = arith.constant 0.000000e+00 : f32
    %16 = vector.broadcast %cst : f32 to vector<216x4xf32>
    %c0_4 = arith.constant 0 : index
    %c0_5 = arith.constant 0 : index
    %17 = vector.load %arg7[%c0_4, %c0_5] : memref<216x4xf32, #tpu.memory_space<vmem>>, vector<216x4xf32>
    tpu.vector_store %arg7[%c0_4, %c0_5], %16 {strides = array<i32>} : memref<216x4xf32, #tpu.memory_space<vmem>>, vector<216x4xf32>,
    %18 = vector.extract_strided_slice %15 {offsets = [0, 0, 0, 0], sizes = [1, 1, 4, 4], strides = [1, 1, 1, 1]} : vector<4x4x4x4xf32> to vector<1x1x4x4xf32>
    %19 = vector.shape_cast %18 : vector<1x1x4x4xf32> to vector<4x4xf32>
    %c43 = arith.constant 43 : index
    %c0_6 = arith.constant 0 : index
    %20 = vector.load %arg7[%c43, %c0_6] : memref<216x4xf32, #tpu.memory_space<vmem>>, vector<4x4xf32>
    tpu.vector_store %arg7[%c43, %c0_6], %19 {strides = array<i32>} : memref<216x4xf32, #tpu.memory_space<vmem>>, vector<4x4xf32>,
    %21 = vector.extract_strided_slice %15 {offsets = [0, 1, 0, 0], sizes = [1, 1, 4, 4], strides = [1, 1, 1, 1]} : vector<4x4x4x4xf32> to vector<1x1x4x4xf32>
    %22 = vector.shape_cast %21 : vector<1x1x4x4xf32> to vector<4x4xf32>
    %c49 = arith.constant 49 : index
    %c0_7 = arith.constant 0 : index
    %23 = vector.load %arg7[%c49, %c0_7] : memref<216x4xf32, #tpu.memory_space<vmem>>, vector<4x4xf32>
    tpu.vector_store %arg7[%c49, %c0_7], %22 {strides = array<i32>} : memref<216x4xf32, #tpu.memory_space<vmem>>, vector<4x4xf32>,
    %24 = vector.extract_strided_slice %15 {offsets = [0, 2, 0, 0], sizes = [1, 1, 4, 4], strides = [1, 1, 1, 1]} : vector<4x4x4x4xf32> to vector<1x1x4x4xf32>
    %25 = vector.shape_cast %24 : vector<1x1x4x4xf32> to vector<4x4xf32>
    %c55 = arith.constant 55 : index
    %c0_8 = arith.constant 0 : index
    %26 = vector.load %arg7[%c55, %c0_8] : memref<216x4xf32, #tpu.memory_space<vmem>>, vector<4x4xf32>
    tpu.vector_store %arg7[%c55, %c0_8], %25 {strides = array<i32>} : memref<216x4xf32, #tpu.memory_space<vmem>>, vector<4x4xf32>,
    %27 = vector.extract_strided_slice %15 {offsets = [0, 3, 0, 0], sizes = [1, 1, 4, 4], strides = [1, 1, 1, 1]} : vector<4x4x4x4xf32> to vector<1x1x4x4xf32>
    %28 = vector.shape_cast %27 : vector<1x1x4x4xf32> to vector<4x4xf32>
    %c61 = arith.constant 61 : index
    %c0_9 = arith.constant 0 : index
    %29 = vector.load %arg7[%c61, %c0_9] : memref<216x4xf32, #tpu.memory_space<vmem>>, vector<4x4xf32>
    tpu.vector_store %arg7[%c61, %c0_9], %28 {strides = array<i32>} : memref<216x4xf32, #tpu.memory_space<vmem>>, vector<4x4xf32>,
    %30 = vector.extract_strided_slice %15 {offsets = [1, 0, 0, 0], sizes = [1, 1, 4, 4], strides = [1, 1, 1, 1]} : vector<4x4x4x4xf32> to vector<1x1x4x4xf32>
    %31 = vector.shape_cast %30 : vector<1x1x4x4xf32> to vector<4x4xf32>
    %c79 = arith.constant 79 : index
    %c0_10 = arith.constant 0 : index
    %32 = vector.load %arg7[%c79, %c0_10] : memref<216x4xf32, #tpu.memory_space<vmem>>, vector<4x4xf32>
    tpu.vector_store %arg7[%c79, %c0_10], %31 {strides = array<i32>} : memref<216x4xf32, #tpu.memory_space<vmem>>, vector<4x4xf32>,
    %33 = vector.extract_strided_slice %15 {offsets = [1, 1, 0, 0], sizes = [1, 1, 4, 4], strides = [1, 1, 1, 1]} : vector<4x4x4x4xf32> to vector<1x1x4x4xf32>
    %34 = vector.shape_cast %33 : vector<1x1x4x4xf32> to vector<4x4xf32>
    %c85 = arith.constant 85 : index
    %c0_11 = arith.constant 0 : index
    %35 = vector.load %arg7[%c85, %c0_11] : memref<216x4xf32, #tpu.memory_space<vmem>>, vector<4x4xf32>
    tpu.vector_store %arg7[%c85, %c0_11], %34 {strides = array<i32>} : memref<216x4xf32, #tpu.memory_space<vmem>>, vector<4x4xf32>,
    %36 = vector.extract_strided_slice %15 {offsets = [1, 2, 0, 0], sizes = [1, 1, 4, 4], strides = [1, 1, 1, 1]} : vector<4x4x4x4xf32> to vector<1x1x4x4xf32>
    %37 = vector.shape_cast %36 : vector<1x1x4x4xf32> to vector<4x4xf32>
    %c91 = arith.constant 91 : index
    %c0_12 = arith.constant 0 : index
    %38 = vector.load %arg7[%c91, %c0_12] : memref<216x4xf32, #tpu.memory_space<vmem>>, vector<4x4xf32>
    tpu.vector_store %arg7[%c91, %c0_12], %37 {strides = array<i32>} : memref<216x4xf32, #tpu.memory_space<vmem>>, vector<4x4xf32>,
    %39 = vector.extract_strided_slice %15 {offsets = [1, 3, 0, 0], sizes = [1, 1, 4, 4], strides = [1, 1, 1, 1]} : vector<4x4x4x4xf32> to vector<1x1x4x4xf32>
    %40 = vector.shape_cast %39 : vector<1x1x4x4xf32> to vector<4x4xf32>
    %c97 = arith.constant 97 : index
    %c0_13 = arith.constant 0 : index
    %41 = vector.load %arg7[%c97, %c0_13] : memref<216x4xf32, #tpu.memory_space<vmem>>, vector<4x4xf32>
    tpu.vector_store %arg7[%c97, %c0_13], %40 {strides = array<i32>} : memref<216x4xf32, #tpu.memory_space<vmem>>, vector<4x4xf32>,
    %42 = vector.extract_strided_slice %15 {offsets = [2, 0, 0, 0], sizes = [1, 1, 4, 4], strides = [1, 1, 1, 1]} : vector<4x4x4x4xf32> to vector<1x1x4x4xf32>
    %43 = vector.shape_cast %42 : vector<1x1x4x4xf32> to vector<4x4xf32>
    %c115 = arith.constant 115 : index
    %c0_14 = arith.constant 0 : index
    %44 = vector.load %arg7[%c115, %c0_14] : memref<216x4xf32, #tpu.memory_space<vmem>>, vector<4x4xf32>
    tpu.vector_store %arg7[%c115, %c0_14], %43 {strides = array<i32>} : memref<216x4xf32, #tpu.memory_space<vmem>>, vector<4x4xf32>,
    %45 = vector.extract_strided_slice %15 {offsets = [2, 1, 0, 0], sizes = [1, 1, 4, 4], strides = [1, 1, 1, 1]} : vector<4x4x4x4xf32> to vector<1x1x4x4xf32>
    %46 = vector.shape_cast %45 : vector<1x1x4x4xf32> to vector<4x4xf32>
    %c121 = arith.constant 121 : index
    %c0_15 = arith.constant 0 : index
    %47 = vector.load %arg7[%c121, %c0_15] : memref<216x4xf32, #tpu.memory_space<vmem>>, vector<4x4xf32>
    tpu.vector_store %arg7[%c121, %c0_15], %46 {strides = array<i32>} : memref<216x4xf32, #tpu.memory_space<vmem>>, vector<4x4xf32>,
    %48 = vector.extract_strided_slice %15 {offsets = [2, 2, 0, 0], sizes = [1, 1, 4, 4], strides = [1, 1, 1, 1]} : vector<4x4x4x4xf32> to vector<1x1x4x4xf32>
    %49 = vector.shape_cast %48 : vector<1x1x4x4xf32> to vector<4x4xf32>
    %c127 = arith.constant 127 : index
    %c0_16 = arith.constant 0 : index
    %50 = vector.load %arg7[%c127, %c0_16] : memref<216x4xf32, #tpu.memory_space<vmem>>, vector<4x4xf32>
    tpu.vector_store %arg7[%c127, %c0_16], %49 {strides = array<i32>} : memref<216x4xf32, #tpu.memory_space<vmem>>, vector<4x4xf32>,
    %51 = vector.extract_strided_slice %15 {offsets = [2, 3, 0, 0], sizes = [1, 1, 4, 4], strides = [1, 1, 1, 1]} : vector<4x4x4x4xf32> to vector<1x1x4x4xf32>
    %52 = vector.shape_cast %51 : vector<1x1x4x4xf32> to vector<4x4xf32>
    %c133 = arith.constant 133 : index
    %c0_17 = arith.constant 0 : index
    %53 = vector.load %arg7[%c133, %c0_17] : memref<216x4xf32, #tpu.memory_space<vmem>>, vector<4x4xf32>
    tpu.vector_store %arg7[%c133, %c0_17], %52 {strides = array<i32>} : memref<216x4xf32, #tpu.memory_space<vmem>>, vector<4x4xf32>,
    %54 = vector.extract_strided_slice %15 {offsets = [3, 0, 0, 0], sizes = [1, 1, 4, 4], strides = [1, 1, 1, 1]} : vector<4x4x4x4xf32> to vector<1x1x4x4xf32>
    %55 = vector.shape_cast %54 : vector<1x1x4x4xf32> to vector<4x4xf32>
    %c151 = arith.constant 151 : index
    %c0_18 = arith.constant 0 : index
    %56 = vector.load %arg7[%c151, %c0_18] : memref<216x4xf32, #tpu.memory_space<vmem>>, vector<4x4xf32>
    tpu.vector_store %arg7[%c151, %c0_18], %55 {strides = array<i32>} : memref<216x4xf32, #tpu.memory_space<vmem>>, vector<4x4xf32>,
    %57 = vector.extract_strided_slice %15 {offsets = [3, 1, 0, 0], sizes = [1, 1, 4, 4], strides = [1, 1, 1, 1]} : vector<4x4x4x4xf32> to vector<1x1x4x4xf32>
    %58 = vector.shape_cast %57 : vector<1x1x4x4xf32> to vector<4x4xf32>
    %c157 = arith.constant 157 : index
    %c0_19 = arith.constant 0 : index
    %59 = vector.load %arg7[%c157, %c0_19] : memref<216x4xf32, #tpu.memory_space<vmem>>, vector<4x4xf32>
    tpu.vector_store %arg7[%c157, %c0_19], %58 {strides = array<i32>} : memref<216x4xf32, #tpu.memory_space<vmem>>, vector<4x4xf32>,
    %60 = vector.extract_strided_slice %15 {offsets = [3, 2, 0, 0], sizes = [1, 1, 4, 4], strides = [1, 1, 1, 1]} : vector<4x4x4x4xf32> to vector<1x1x4x4xf32>
    %61 = vector.shape_cast %60 : vector<1x1x4x4xf32> to vector<4x4xf32>
    %c163 = arith.constant 163 : index
    %c0_20 = arith.constant 0 : index
    %62 = vector.load %arg7[%c163, %c0_20] : memref<216x4xf32, #tpu.memory_space<vmem>>, vector<4x4xf32>
    tpu.vector_store %arg7[%c163, %c0_20], %61 {strides = array<i32>} : memref<216x4xf32, #tpu.memory_space<vmem>>, vector<4x4xf32>,
    %63 = vector.extract_strided_slice %15 {offsets = [3, 3, 0, 0], sizes = [1, 1, 4, 4], strides = [1, 1, 1, 1]} : vector<4x4x4x4xf32> to vector<1x1x4x4xf32>
    %64 = vector.shape_cast %63 : vector<1x1x4x4xf32> to vector<4x4xf32>
    %c169 = arith.constant 169 : index
    %c0_21 = arith.constant 0 : index
    %65 = vector.load %arg7[%c169, %c0_21] : memref<216x4xf32, #tpu.memory_space<vmem>>, vector<4x4xf32>
    tpu.vector_store %arg7[%c169, %c0_21], %64 {strides = array<i32>} : memref<216x4xf32, #tpu.memory_space<vmem>>, vector<4x4xf32>,
    %c0_22 = arith.constant 0 : index
    %c0_23 = arith.constant 0 : index
    %66 = vector.load %arg3[%c0_22, %c0_23] : memref<1x8xf32, #tpu.memory_space<vmem>>, vector<1x8xf32>
    %cst_24 = arith.constant 0.000000e+00 : f32
    %67 = vector.broadcast %cst_24 : f32 to vector<130x8xf32>
    %c0_25 = arith.constant 0 : index
    %c0_26 = arith.constant 0 : index
    %68 = vector.load %arg7[%c0_25, %c0_26] : memref<216x4xf32, #tpu.memory_space<vmem>>, vector<132x4xf32>
    %69 = arith.truncf %68 : vector<132x4xf32> to vector<132x4xbf16>
    %70 = vector.extract_strided_slice %69 {offsets = [0, 0], sizes = [130, 4], strides = [1, 1]} : vector<132x4xbf16> to vector<130x4xbf16>
    %c0_27 = arith.constant 0 : index
    %c0_28 = arith.constant 0 : index
    %c0_29 = arith.constant 0 : index
    %71 = vector.load %arg2[%c0_27, %c0_28, %c0_29] : memref<27x4x8xbf16, #tpu.memory_space<vmem>>, vector<1x4x8xbf16>
    %72 = vector.shape_cast %71 : vector<1x4x8xbf16> to vector<4x8xbf16>
    %cst_30 = arith.constant dense<0.000000e+00> : vector<130x8xf32>
    %73 = tpu.matmul %70, %72, %cst_30 {dimension_numbers = #tpu.dot_dimension_numbers<[1], [0], [0], [1], [0, 0, 1, 1], [], []>} : vector<130x4xbf16>, vector<4x8xbf16>, vector<130x8xf32> -> vector<130x8xf32>
    %74 = arith.addf %67, %73 : vector<130x8xf32>
    %75 = vector.extract_strided_slice %69 {offsets = [1, 0], sizes = [130, 4], strides = [1, 1]} : vector<132x4xbf16> to vector<130x4xbf16>
    %c1 = arith.constant 1 : index
    %c0_31 = arith.constant 0 : index
    %c0_32 = arith.constant 0 : index
    %76 = vector.load %arg2[%c1, %c0_31, %c0_32] : memref<27x4x8xbf16, #tpu.memory_space<vmem>>, vector<1x4x8xbf16>
    %77 = vector.shape_cast %76 : vector<1x4x8xbf16> to vector<4x8xbf16>
    %cst_33 = arith.constant dense<0.000000e+00> : vector<130x8xf32>
    %78 = tpu.matmul %75, %77, %cst_33 {dimension_numbers = #tpu.dot_dimension_numbers<[1], [0], [0], [1], [0, 0, 1, 1], [], []>} : vector<130x4xbf16>, vector<4x8xbf16>, vector<130x8xf32> -> vector<130x8xf32>
    %79 = arith.addf %74, %78 : vector<130x8xf32>
    %80 = vector.extract_strided_slice %69 {offsets = [2, 0], sizes = [130, 4], strides = [1, 1]} : vector<132x4xbf16> to vector<130x4xbf16>
    %c2 = arith.constant 2 : index
    %c0_34 = arith.constant 0 : index
    %c0_35 = arith.constant 0 : index
    %81 = vector.load %arg2[%c2, %c0_34, %c0_35] : memref<27x4x8xbf16, #tpu.memory_space<vmem>>, vector<1x4x8xbf16>
    %82 = vector.shape_cast %81 : vector<1x4x8xbf16> to vector<4x8xbf16>
    %cst_36 = arith.constant dense<0.000000e+00> : vector<130x8xf32>
    %83 = tpu.matmul %80, %82, %cst_36 {dimension_numbers = #tpu.dot_dimension_numbers<[1], [0], [0], [1], [0, 0, 1, 1], [], []>} : vector<130x4xbf16>, vector<4x8xbf16>, vector<130x8xf32> -> vector<130x8xf32>
    %84 = arith.addf %79, %83 : vector<130x8xf32>
    %c6 = arith.constant 6 : index
    %c0_37 = arith.constant 0 : index
    %85 = vector.load %arg7[%c6, %c0_37] : memref<216x4xf32, #tpu.memory_space<vmem>>, vector<132x4xf32>
    %86 = arith.truncf %85 : vector<132x4xf32> to vector<132x4xbf16>
    %87 = vector.extract_strided_slice %86 {offsets = [0, 0], sizes = [130, 4], strides = [1, 1]} : vector<132x4xbf16> to vector<130x4xbf16>
    %c3 = arith.constant 3 : index
    %c0_38 = arith.constant 0 : index
    %c0_39 = arith.constant 0 : index
    %88 = vector.load %arg2[%c3, %c0_38, %c0_39] : memref<27x4x8xbf16, #tpu.memory_space<vmem>>, vector<1x4x8xbf16>
    %89 = vector.shape_cast %88 : vector<1x4x8xbf16> to vector<4x8xbf16>
    %cst_40 = arith.constant dense<0.000000e+00> : vector<130x8xf32>
    %90 = tpu.matmul %87, %89, %cst_40 {dimension_numbers = #tpu.dot_dimension_numbers<[1], [0], [0], [1], [0, 0, 1, 1], [], []>} : vector<130x4xbf16>, vector<4x8xbf16>, vector<130x8xf32> -> vector<130x8xf32>
    %91 = arith.addf %84, %90 : vector<130x8xf32>
    %92 = vector.extract_strided_slice %86 {offsets = [1, 0], sizes = [130, 4], strides = [1, 1]} : vector<132x4xbf16> to vector<130x4xbf16>
    %c4 = arith.constant 4 : index
    %c0_41 = arith.constant 0 : index
    %c0_42 = arith.constant 0 : index
    %93 = vector.load %arg2[%c4, %c0_41, %c0_42] : memref<27x4x8xbf16, #tpu.memory_space<vmem>>, vector<1x4x8xbf16>
    %94 = vector.shape_cast %93 : vector<1x4x8xbf16> to vector<4x8xbf16>
    %cst_43 = arith.constant dense<0.000000e+00> : vector<130x8xf32>
    %95 = tpu.matmul %92, %94, %cst_43 {dimension_numbers = #tpu.dot_dimension_numbers<[1], [0], [0], [1], [0, 0, 1, 1], [], []>} : vector<130x4xbf16>, vector<4x8xbf16>, vector<130x8xf32> -> vector<130x8xf32>
    %96 = arith.addf %91, %95 : vector<130x8xf32>
    %97 = vector.extract_strided_slice %86 {offsets = [2, 0], sizes = [130, 4], strides = [1, 1]} : vector<132x4xbf16> to vector<130x4xbf16>
    %c5 = arith.constant 5 : index
    %c0_44 = arith.constant 0 : index
    %c0_45 = arith.constant 0 : index
    %98 = vector.load %arg2[%c5, %c0_44, %c0_45] : memref<27x4x8xbf16, #tpu.memory_space<vmem>>, vector<1x4x8xbf16>
    %99 = vector.shape_cast %98 : vector<1x4x8xbf16> to vector<4x8xbf16>
    %cst_46 = arith.constant dense<0.000000e+00> : vector<130x8xf32>
    %100 = tpu.matmul %97, %99, %cst_46 {dimension_numbers = #tpu.dot_dimension_numbers<[1], [0], [0], [1], [0, 0, 1, 1], [], []>} : vector<130x4xbf16>, vector<4x8xbf16>, vector<130x8xf32> -> vector<130x8xf32>
    %101 = arith.addf %96, %100 : vector<130x8xf32>
    %c12 = arith.constant 12 : index
    %c0_47 = arith.constant 0 : index
    %102 = vector.load %arg7[%c12, %c0_47] : memref<216x4xf32, #tpu.memory_space<vmem>>, vector<132x4xf32>
    %103 = arith.truncf %102 : vector<132x4xf32> to vector<132x4xbf16>
    %104 = vector.extract_strided_slice %103 {offsets = [0, 0], sizes = [130, 4], strides = [1, 1]} : vector<132x4xbf16> to vector<130x4xbf16>
    %c6_48 = arith.constant 6 : index
    %c0_49 = arith.constant 0 : index
    %c0_50 = arith.constant 0 : index
    %105 = vector.load %arg2[%c6_48, %c0_49, %c0_50] : memref<27x4x8xbf16, #tpu.memory_space<vmem>>, vector<1x4x8xbf16>
    %106 = vector.shape_cast %105 : vector<1x4x8xbf16> to vector<4x8xbf16>
    %cst_51 = arith.constant dense<0.000000e+00> : vector<130x8xf32>
    %107 = tpu.matmul %104, %106, %cst_51 {dimension_numbers = #tpu.dot_dimension_numbers<[1], [0], [0], [1], [0, 0, 1, 1], [], []>} : vector<130x4xbf16>, vector<4x8xbf16>, vector<130x8xf32> -> vector<130x8xf32>
    %108 = arith.addf %101, %107 : vector<130x8xf32>
    %109 = vector.extract_strided_slice %103 {offsets = [1, 0], sizes = [130, 4], strides = [1, 1]} : vector<132x4xbf16> to vector<130x4xbf16>
    %c7 = arith.constant 7 : index
    %c0_52 = arith.constant 0 : index
    %c0_53 = arith.constant 0 : index
    %110 = vector.load %arg2[%c7, %c0_52, %c0_53] : memref<27x4x8xbf16, #tpu.memory_space<vmem>>, vector<1x4x8xbf16>
    %111 = vector.shape_cast %110 : vector<1x4x8xbf16> to vector<4x8xbf16>
    %cst_54 = arith.constant dense<0.000000e+00> : vector<130x8xf32>
    %112 = tpu.matmul %109, %111, %cst_54 {dimension_numbers = #tpu.dot_dimension_numbers<[1], [0], [0], [1], [0, 0, 1, 1], [], []>} : vector<130x4xbf16>, vector<4x8xbf16>, vector<130x8xf32> -> vector<130x8xf32>
    %113 = arith.addf %108, %112 : vector<130x8xf32>
    %114 = vector.extract_strided_slice %103 {offsets = [2, 0], sizes = [130, 4], strides = [1, 1]} : vector<132x4xbf16> to vector<130x4xbf16>
    %c8 = arith.constant 8 : index
    %c0_55 = arith.constant 0 : index
    %c0_56 = arith.constant 0 : index
    %115 = vector.load %arg2[%c8, %c0_55, %c0_56] : memref<27x4x8xbf16, #tpu.memory_space<vmem>>, vector<1x4x8xbf16>
    %116 = vector.shape_cast %115 : vector<1x4x8xbf16> to vector<4x8xbf16>
    %cst_57 = arith.constant dense<0.000000e+00> : vector<130x8xf32>
    %117 = tpu.matmul %114, %116, %cst_57 {dimension_numbers = #tpu.dot_dimension_numbers<[1], [0], [0], [1], [0, 0, 1, 1], [], []>} : vector<130x4xbf16>, vector<4x8xbf16>, vector<130x8xf32> -> vector<130x8xf32>
    %118 = arith.addf %113, %117 : vector<130x8xf32>
    %c36 = arith.constant 36 : index
    %c0_58 = arith.constant 0 : index
    %119 = vector.load %arg7[%c36, %c0_58] : memref<216x4xf32, #tpu.memory_space<vmem>>, vector<132x4xf32>
    %120 = arith.truncf %119 : vector<132x4xf32> to vector<132x4xbf16>
    %121 = vector.extract_strided_slice %120 {offsets = [0, 0], sizes = [130, 4], strides = [1, 1]} : vector<132x4xbf16> to vector<130x4xbf16>
    %c9 = arith.constant 9 : index
    %c0_59 = arith.constant 0 : index
    %c0_60 = arith.constant 0 : index
    %122 = vector.load %arg2[%c9, %c0_59, %c0_60] : memref<27x4x8xbf16, #tpu.memory_space<vmem>>, vector<1x4x8xbf16>
    %123 = vector.shape_cast %122 : vector<1x4x8xbf16> to vector<4x8xbf16>
    %cst_61 = arith.constant dense<0.000000e+00> : vector<130x8xf32>
    %124 = tpu.matmul %121, %123, %cst_61 {dimension_numbers = #tpu.dot_dimension_numbers<[1], [0], [0], [1], [0, 0, 1, 1], [], []>} : vector<130x4xbf16>, vector<4x8xbf16>, vector<130x8xf32> -> vector<130x8xf32>
    %125 = arith.addf %118, %124 : vector<130x8xf32>
    %126 = vector.extract_strided_slice %120 {offsets = [1, 0], sizes = [130, 4], strides = [1, 1]} : vector<132x4xbf16> to vector<130x4xbf16>
    %c10 = arith.constant 10 : index
    %c0_62 = arith.constant 0 : index
    %c0_63 = arith.constant 0 : index
    %127 = vector.load %arg2[%c10, %c0_62, %c0_63] : memref<27x4x8xbf16, #tpu.memory_space<vmem>>, vector<1x4x8xbf16>
    %128 = vector.shape_cast %127 : vector<1x4x8xbf16> to vector<4x8xbf16>
    %cst_64 = arith.constant dense<0.000000e+00> : vector<130x8xf32>
    %129 = tpu.matmul %126, %128, %cst_64 {dimension_numbers = #tpu.dot_dimension_numbers<[1], [0], [0], [1], [0, 0, 1, 1], [], []>} : vector<130x4xbf16>, vector<4x8xbf16>, vector<130x8xf32> -> vector<130x8xf32>
    %130 = arith.addf %125, %129 : vector<130x8xf32>
    %131 = vector.extract_strided_slice %120 {offsets = [2, 0], sizes = [130, 4], strides = [1, 1]} : vector<132x4xbf16> to vector<130x4xbf16>
    %c11 = arith.constant 11 : index
    %c0_65 = arith.constant 0 : index
    %c0_66 = arith.constant 0 : index
    %132 = vector.load %arg2[%c11, %c0_65, %c0_66] : memref<27x4x8xbf16, #tpu.memory_space<vmem>>, vector<1x4x8xbf16>
    %133 = vector.shape_cast %132 : vector<1x4x8xbf16> to vector<4x8xbf16>
    %cst_67 = arith.constant dense<0.000000e+00> : vector<130x8xf32>
    %134 = tpu.matmul %131, %133, %cst_67 {dimension_numbers = #tpu.dot_dimension_numbers<[1], [0], [0], [1], [0, 0, 1, 1], [], []>} : vector<130x4xbf16>, vector<4x8xbf16>, vector<130x8xf32> -> vector<130x8xf32>
    %135 = arith.addf %130, %134 : vector<130x8xf32>
    %c42 = arith.constant 42 : index
    %c0_68 = arith.constant 0 : index
    %136 = vector.load %arg7[%c42, %c0_68] : memref<216x4xf32, #tpu.memory_space<vmem>>, vector<132x4xf32>
    %137 = arith.truncf %136 : vector<132x4xf32> to vector<132x4xbf16>
    %138 = vector.extract_strided_slice %137 {offsets = [0, 0], sizes = [130, 4], strides = [1, 1]} : vector<132x4xbf16> to vector<130x4xbf16>
    %c12_69 = arith.constant 12 : index
    %c0_70 = arith.constant 0 : index
    %c0_71 = arith.constant 0 : index
    %139 = vector.load %arg2[%c12_69, %c0_70, %c0_71] : memref<27x4x8xbf16, #tpu.memory_space<vmem>>, vector<1x4x8xbf16>
    %140 = vector.shape_cast %139 : vector<1x4x8xbf16> to vector<4x8xbf16>
    %cst_72 = arith.constant dense<0.000000e+00> : vector<130x8xf32>
    %141 = tpu.matmul %138, %140, %cst_72 {dimension_numbers = #tpu.dot_dimension_numbers<[1], [0], [0], [1], [0, 0, 1, 1], [], []>} : vector<130x4xbf16>, vector<4x8xbf16>, vector<130x8xf32> -> vector<130x8xf32>
    %142 = arith.addf %135, %141 : vector<130x8xf32>
    %143 = vector.extract_strided_slice %137 {offsets = [1, 0], sizes = [130, 4], strides = [1, 1]} : vector<132x4xbf16> to vector<130x4xbf16>
    %c13 = arith.constant 13 : index
    %c0_73 = arith.constant 0 : index
    %c0_74 = arith.constant 0 : index
    %144 = vector.load %arg2[%c13, %c0_73, %c0_74] : memref<27x4x8xbf16, #tpu.memory_space<vmem>>, vector<1x4x8xbf16>
    %145 = vector.shape_cast %144 : vector<1x4x8xbf16> to vector<4x8xbf16>
    %cst_75 = arith.constant dense<0.000000e+00> : vector<130x8xf32>
    %146 = tpu.matmul %143, %145, %cst_75 {dimension_numbers = #tpu.dot_dimension_numbers<[1], [0], [0], [1], [0, 0, 1, 1], [], []>} : vector<130x4xbf16>, vector<4x8xbf16>, vector<130x8xf32> -> vector<130x8xf32>
    %147 = arith.addf %142, %146 : vector<130x8xf32>
    %148 = vector.extract_strided_slice %137 {offsets = [2, 0], sizes = [130, 4], strides = [1, 1]} : vector<132x4xbf16> to vector<130x4xbf16>
    %c14 = arith.constant 14 : index
    %c0_76 = arith.constant 0 : index
    %c0_77 = arith.constant 0 : index
    %149 = vector.load %arg2[%c14, %c0_76, %c0_77] : memref<27x4x8xbf16, #tpu.memory_space<vmem>>, vector<1x4x8xbf16>
    %150 = vector.shape_cast %149 : vector<1x4x8xbf16> to vector<4x8xbf16>
    %cst_78 = arith.constant dense<0.000000e+00> : vector<130x8xf32>
    %151 = tpu.matmul %148, %150, %cst_78 {dimension_numbers = #tpu.dot_dimension_numbers<[1], [0], [0], [1], [0, 0, 1, 1], [], []>} : vector<130x4xbf16>, vector<4x8xbf16>, vector<130x8xf32> -> vector<130x8xf32>
    %152 = arith.addf %147, %151 : vector<130x8xf32>
    %c48 = arith.constant 48 : index
    %c0_79 = arith.constant 0 : index
    %153 = vector.load %arg7[%c48, %c0_79] : memref<216x4xf32, #tpu.memory_space<vmem>>, vector<132x4xf32>
    %154 = arith.truncf %153 : vector<132x4xf32> to vector<132x4xbf16>
    %155 = vector.extract_strided_slice %154 {offsets = [0, 0], sizes = [130, 4], strides = [1, 1]} : vector<132x4xbf16> to vector<130x4xbf16>
    %c15 = arith.constant 15 : index
    %c0_80 = arith.constant 0 : index
    %c0_81 = arith.constant 0 : index
    %156 = vector.load %arg2[%c15, %c0_80, %c0_81] : memref<27x4x8xbf16, #tpu.memory_space<vmem>>, vector<1x4x8xbf16>
    %157 = vector.shape_cast %156 : vector<1x4x8xbf16> to vector<4x8xbf16>
    %cst_82 = arith.constant dense<0.000000e+00> : vector<130x8xf32>
    %158 = tpu.matmul %155, %157, %cst_82 {dimension_numbers = #tpu.dot_dimension_numbers<[1], [0], [0], [1], [0, 0, 1, 1], [], []>} : vector<130x4xbf16>, vector<4x8xbf16>, vector<130x8xf32> -> vector<130x8xf32>
    %159 = arith.addf %152, %158 : vector<130x8xf32>
    %160 = vector.extract_strided_slice %154 {offsets = [1, 0], sizes = [130, 4], strides = [1, 1]} : vector<132x4xbf16> to vector<130x4xbf16>
    %c16 = arith.constant 16 : index
    %c0_83 = arith.constant 0 : index
    %c0_84 = arith.constant 0 : index
    %161 = vector.load %arg2[%c16, %c0_83, %c0_84] : memref<27x4x8xbf16, #tpu.memory_space<vmem>>, vector<1x4x8xbf16>
    %162 = vector.shape_cast %161 : vector<1x4x8xbf16> to vector<4x8xbf16>
    %cst_85 = arith.constant dense<0.000000e+00> : vector<130x8xf32>
    %163 = tpu.matmul %160, %162, %cst_85 {dimension_numbers = #tpu.dot_dimension_numbers<[1], [0], [0], [1], [0, 0, 1, 1], [], []>} : vector<130x4xbf16>, vector<4x8xbf16>, vector<130x8xf32> -> vector<130x8xf32>
    %164 = arith.addf %159, %163 : vector<130x8xf32>
    %165 = vector.extract_strided_slice %154 {offsets = [2, 0], sizes = [130, 4], strides = [1, 1]} : vector<132x4xbf16> to vector<130x4xbf16>
    %c17 = arith.constant 17 : index
    %c0_86 = arith.constant 0 : index
    %c0_87 = arith.constant 0 : index
    %166 = vector.load %arg2[%c17, %c0_86, %c0_87] : memref<27x4x8xbf16, #tpu.memory_space<vmem>>, vector<1x4x8xbf16>
    %167 = vector.shape_cast %166 : vector<1x4x8xbf16> to vector<4x8xbf16>
    %cst_88 = arith.constant dense<0.000000e+00> : vector<130x8xf32>
    %168 = tpu.matmul %165, %167, %cst_88 {dimension_numbers = #tpu.dot_dimension_numbers<[1], [0], [0], [1], [0, 0, 1, 1], [], []>} : vector<130x4xbf16>, vector<4x8xbf16>, vector<130x8xf32> -> vector<130x8xf32>
    %169 = arith.addf %164, %168 : vector<130x8xf32>
    %c72 = arith.constant 72 : index
    %c0_89 = arith.constant 0 : index
    %170 = vector.load %arg7[%c72, %c0_89] : memref<216x4xf32, #tpu.memory_space<vmem>>, vector<132x4xf32>
    %171 = arith.truncf %170 : vector<132x4xf32> to vector<132x4xbf16>
    %172 = vector.extract_strided_slice %171 {offsets = [0, 0], sizes = [130, 4], strides = [1, 1]} : vector<132x4xbf16> to vector<130x4xbf16>
    %c18 = arith.constant 18 : index
    %c0_90 = arith.constant 0 : index
    %c0_91 = arith.constant 0 : index
    %173 = vector.load %arg2[%c18, %c0_90, %c0_91] : memref<27x4x8xbf16, #tpu.memory_space<vmem>>, vector<1x4x8xbf16>
    %174 = vector.shape_cast %173 : vector<1x4x8xbf16> to vector<4x8xbf16>
    %cst_92 = arith.constant dense<0.000000e+00> : vector<130x8xf32>
    %175 = tpu.matmul %172, %174, %cst_92 {dimension_numbers = #tpu.dot_dimension_numbers<[1], [0], [0], [1], [0, 0, 1, 1], [], []>} : vector<130x4xbf16>, vector<4x8xbf16>, vector<130x8xf32> -> vector<130x8xf32>
    %176 = arith.addf %169, %175 : vector<130x8xf32>
    %177 = vector.extract_strided_slice %171 {offsets = [1, 0], sizes = [130, 4], strides = [1, 1]} : vector<132x4xbf16> to vector<130x4xbf16>
    %c19 = arith.constant 19 : index
    %c0_93 = arith.constant 0 : index
    %c0_94 = arith.constant 0 : index
    %178 = vector.load %arg2[%c19, %c0_93, %c0_94] : memref<27x4x8xbf16, #tpu.memory_space<vmem>>, vector<1x4x8xbf16>
    %179 = vector.shape_cast %178 : vector<1x4x8xbf16> to vector<4x8xbf16>
    %cst_95 = arith.constant dense<0.000000e+00> : vector<130x8xf32>
    %180 = tpu.matmul %177, %179, %cst_95 {dimension_numbers = #tpu.dot_dimension_numbers<[1], [0], [0], [1], [0, 0, 1, 1], [], []>} : vector<130x4xbf16>, vector<4x8xbf16>, vector<130x8xf32> -> vector<130x8xf32>
    %181 = arith.addf %176, %180 : vector<130x8xf32>
    %182 = vector.extract_strided_slice %171 {offsets = [2, 0], sizes = [130, 4], strides = [1, 1]} : vector<132x4xbf16> to vector<130x4xbf16>
    %c20 = arith.constant 20 : index
    %c0_96 = arith.constant 0 : index
    %c0_97 = arith.constant 0 : index
    %183 = vector.load %arg2[%c20, %c0_96, %c0_97] : memref<27x4x8xbf16, #tpu.memory_space<vmem>>, vector<1x4x8xbf16>
    %184 = vector.shape_cast %183 : vector<1x4x8xbf16> to vector<4x8xbf16>
    %cst_98 = arith.constant dense<0.000000e+00> : vector<130x8xf32>
    %185 = tpu.matmul %182, %184, %cst_98 {dimension_numbers = #tpu.dot_dimension_numbers<[1], [0], [0], [1], [0, 0, 1, 1], [], []>} : vector<130x4xbf16>, vector<4x8xbf16>, vector<130x8xf32> -> vector<130x8xf32>
    %186 = arith.addf %181, %185 : vector<130x8xf32>
    %c78 = arith.constant 78 : index
    %c0_99 = arith.constant 0 : index
    %187 = vector.load %arg7[%c78, %c0_99] : memref<216x4xf32, #tpu.memory_space<vmem>>, vector<132x4xf32>
    %188 = arith.truncf %187 : vector<132x4xf32> to vector<132x4xbf16>
    %189 = vector.extract_strided_slice %188 {offsets = [0, 0], sizes = [130, 4], strides = [1, 1]} : vector<132x4xbf16> to vector<130x4xbf16>
    %c21 = arith.constant 21 : index
    %c0_100 = arith.constant 0 : index
    %c0_101 = arith.constant 0 : index
    %190 = vector.load %arg2[%c21, %c0_100, %c0_101] : memref<27x4x8xbf16, #tpu.memory_space<vmem>>, vector<1x4x8xbf16>
    %191 = vector.shape_cast %190 : vector<1x4x8xbf16> to vector<4x8xbf16>
    %cst_102 = arith.constant dense<0.000000e+00> : vector<130x8xf32>
    %192 = tpu.matmul %189, %191, %cst_102 {dimension_numbers = #tpu.dot_dimension_numbers<[1], [0], [0], [1], [0, 0, 1, 1], [], []>} : vector<130x4xbf16>, vector<4x8xbf16>, vector<130x8xf32> -> vector<130x8xf32>
    %193 = arith.addf %186, %192 : vector<130x8xf32>
    %194 = vector.extract_strided_slice %188 {offsets = [1, 0], sizes = [130, 4], strides = [1, 1]} : vector<132x4xbf16> to vector<130x4xbf16>
    %c22 = arith.constant 22 : index
    %c0_103 = arith.constant 0 : index
    %c0_104 = arith.constant 0 : index
    %195 = vector.load %arg2[%c22, %c0_103, %c0_104] : memref<27x4x8xbf16, #tpu.memory_space<vmem>>, vector<1x4x8xbf16>
    %196 = vector.shape_cast %195 : vector<1x4x8xbf16> to vector<4x8xbf16>
    %cst_105 = arith.constant dense<0.000000e+00> : vector<130x8xf32>
    %197 = tpu.matmul %194, %196, %cst_105 {dimension_numbers = #tpu.dot_dimension_numbers<[1], [0], [0], [1], [0, 0, 1, 1], [], []>} : vector<130x4xbf16>, vector<4x8xbf16>, vector<130x8xf32> -> vector<130x8xf32>
    %198 = arith.addf %193, %197 : vector<130x8xf32>
    %199 = vector.extract_strided_slice %188 {offsets = [2, 0], sizes = [130, 4], strides = [1, 1]} : vector<132x4xbf16> to vector<130x4xbf16>
    %c23 = arith.constant 23 : index
    %c0_106 = arith.constant 0 : index
    %c0_107 = arith.constant 0 : index
    %200 = vector.load %arg2[%c23, %c0_106, %c0_107] : memref<27x4x8xbf16, #tpu.memory_space<vmem>>, vector<1x4x8xbf16>
    %201 = vector.shape_cast %200 : vector<1x4x8xbf16> to vector<4x8xbf16>
    %cst_108 = arith.constant dense<0.000000e+00> : vector<130x8xf32>
    %202 = tpu.matmul %199, %201, %cst_108 {dimension_numbers = #tpu.dot_dimension_numbers<[1], [0], [0], [1], [0, 0, 1, 1], [], []>} : vector<130x4xbf16>, vector<4x8xbf16>, vector<130x8xf32> -> vector<130x8xf32>
    %203 = arith.addf %198, %202 : vector<130x8xf32>
    %c84 = arith.constant 84 : index
    %c0_109 = arith.constant 0 : index
    %204 = vector.load %arg7[%c84, %c0_109] : memref<216x4xf32, #tpu.memory_space<vmem>>, vector<132x4xf32>
    %205 = arith.truncf %204 : vector<132x4xf32> to vector<132x4xbf16>
    %206 = vector.extract_strided_slice %205 {offsets = [0, 0], sizes = [130, 4], strides = [1, 1]} : vector<132x4xbf16> to vector<130x4xbf16>
    %c24 = arith.constant 24 : index
    %c0_110 = arith.constant 0 : index
    %c0_111 = arith.constant 0 : index
    %207 = vector.load %arg2[%c24, %c0_110, %c0_111] : memref<27x4x8xbf16, #tpu.memory_space<vmem>>, vector<1x4x8xbf16>
    %208 = vector.shape_cast %207 : vector<1x4x8xbf16> to vector<4x8xbf16>
    %cst_112 = arith.constant dense<0.000000e+00> : vector<130x8xf32>
    %209 = tpu.matmul %206, %208, %cst_112 {dimension_numbers = #tpu.dot_dimension_numbers<[1], [0], [0], [1], [0, 0, 1, 1], [], []>} : vector<130x4xbf16>, vector<4x8xbf16>, vector<130x8xf32> -> vector<130x8xf32>
    %210 = arith.addf %203, %209 : vector<130x8xf32>
    %211 = vector.extract_strided_slice %205 {offsets = [1, 0], sizes = [130, 4], strides = [1, 1]} : vector<132x4xbf16> to vector<130x4xbf16>
    %c25 = arith.constant 25 : index
    %c0_113 = arith.constant 0 : index
    %c0_114 = arith.constant 0 : index
    %212 = vector.load %arg2[%c25, %c0_113, %c0_114] : memref<27x4x8xbf16, #tpu.memory_space<vmem>>, vector<1x4x8xbf16>
    %213 = vector.shape_cast %212 : vector<1x4x8xbf16> to vector<4x8xbf16>
    %cst_115 = arith.constant dense<0.000000e+00> : vector<130x8xf32>
    %214 = tpu.matmul %211, %213, %cst_115 {dimension_numbers = #tpu.dot_dimension_numbers<[1], [0], [0], [1], [0, 0, 1, 1], [], []>} : vector<130x4xbf16>, vector<4x8xbf16>, vector<130x8xf32> -> vector<130x8xf32>
    %215 = arith.addf %210, %214 : vector<130x8xf32>
    %216 = vector.extract_strided_slice %205 {offsets = [2, 0], sizes = [130, 4], strides = [1, 1]} : vector<132x4xbf16> to vector<130x4xbf16>
    %c26 = arith.constant 26 : index
    %c0_116 = arith.constant 0 : index
    %c0_117 = arith.constant 0 : index
    %217 = vector.load %arg2[%c26, %c0_116, %c0_117] : memref<27x4x8xbf16, #tpu.memory_space<vmem>>, vector<1x4x8xbf16>
    %218 = vector.shape_cast %217 : vector<1x4x8xbf16> to vector<4x8xbf16>
    %cst_118 = arith.constant dense<0.000000e+00> : vector<130x8xf32>
    %219 = tpu.matmul %216, %218, %cst_118 {dimension_numbers = #tpu.dot_dimension_numbers<[1], [0], [0], [1], [0, 0, 1, 1], [], []>} : vector<130x4xbf16>, vector<4x8xbf16>, vector<130x8xf32> -> vector<130x8xf32>
    %220 = arith.addf %215, %219 : vector<130x8xf32>
    %221 = vector.broadcast %66 : vector<1x8xf32> to vector<130x8xf32>
    %222 = arith.addf %220, %221 : vector<130x8xf32>
    %cst_119 = arith.constant 0.000000e+00 : f32
    %223 = vector.broadcast %cst_119 : f32 to vector<130x8xf32>
    %224 = arith.maximumf %222, %223 : vector<130x8xf32>
    %cst_120 = arith.constant 0.000000e+00 : f32
    %225 = vector.broadcast %cst_120 : f32 to vector<216x8xf32>
    %c0_121 = arith.constant 0 : index
    %c0_122 = arith.constant 0 : index
    %226 = vector.load %arg8[%c0_121, %c0_122] : memref<216x8xf32, #tpu.memory_space<vmem>>, vector<216x8xf32>
    tpu.vector_store %arg8[%c0_121, %c0_122], %225 {strides = array<i32>} : memref<216x8xf32, #tpu.memory_space<vmem>>, vector<216x8xf32>,
    %227 = vector.extract_strided_slice %224 {offsets = [0, 0], sizes = [4, 8], strides = [1, 1]} : vector<130x8xf32> to vector<4x8xf32>
    %c43_123 = arith.constant 43 : index
    %c0_124 = arith.constant 0 : index
    %228 = vector.load %arg8[%c43_123, %c0_124] : memref<216x8xf32, #tpu.memory_space<vmem>>, vector<4x8xf32>
    tpu.vector_store %arg8[%c43_123, %c0_124], %227 {strides = array<i32>} : memref<216x8xf32, #tpu.memory_space<vmem>>, vector<4x8xf32>,
    %229 = vector.extract_strided_slice %224 {offsets = [6, 0], sizes = [4, 8], strides = [1, 1]} : vector<130x8xf32> to vector<4x8xf32>
    %c49_125 = arith.constant 49 : index
    %c0_126 = arith.constant 0 : index
    %230 = vector.load %arg8[%c49_125, %c0_126] : memref<216x8xf32, #tpu.memory_space<vmem>>, vector<4x8xf32>
    tpu.vector_store %arg8[%c49_125, %c0_126], %229 {strides = array<i32>} : memref<216x8xf32, #tpu.memory_space<vmem>>, vector<4x8xf32>,
    %231 = vector.extract_strided_slice %224 {offsets = [12, 0], sizes = [4, 8], strides = [1, 1]} : vector<130x8xf32> to vector<4x8xf32>
    %c55_127 = arith.constant 55 : index
    %c0_128 = arith.constant 0 : index
    %232 = vector.load %arg8[%c55_127, %c0_128] : memref<216x8xf32, #tpu.memory_space<vmem>>, vector<4x8xf32>
    tpu.vector_store %arg8[%c55_127, %c0_128], %231 {strides = array<i32>} : memref<216x8xf32, #tpu.memory_space<vmem>>, vector<4x8xf32>,
    %233 = vector.extract_strided_slice %224 {offsets = [18, 0], sizes = [4, 8], strides = [1, 1]} : vector<130x8xf32> to vector<4x8xf32>
    %c61_129 = arith.constant 61 : index
    %c0_130 = arith.constant 0 : index
    %234 = vector.load %arg8[%c61_129, %c0_130] : memref<216x8xf32, #tpu.memory_space<vmem>>, vector<4x8xf32>
    tpu.vector_store %arg8[%c61_129, %c0_130], %233 {strides = array<i32>} : memref<216x8xf32, #tpu.memory_space<vmem>>, vector<4x8xf32>,
    %235 = vector.extract_strided_slice %224 {offsets = [36, 0], sizes = [4, 8], strides = [1, 1]} : vector<130x8xf32> to vector<4x8xf32>
    %c79_131 = arith.constant 79 : index
    %c0_132 = arith.constant 0 : index
    %236 = vector.load %arg8[%c79_131, %c0_132] : memref<216x8xf32, #tpu.memory_space<vmem>>, vector<4x8xf32>
    tpu.vector_store %arg8[%c79_131, %c0_132], %235 {strides = array<i32>} : memref<216x8xf32, #tpu.memory_space<vmem>>, vector<4x8xf32>,
    %237 = vector.extract_strided_slice %224 {offsets = [42, 0], sizes = [4, 8], strides = [1, 1]} : vector<130x8xf32> to vector<4x8xf32>
    %c85_133 = arith.constant 85 : index
    %c0_134 = arith.constant 0 : index
    %238 = vector.load %arg8[%c85_133, %c0_134] : memref<216x8xf32, #tpu.memory_space<vmem>>, vector<4x8xf32>
    tpu.vector_store %arg8[%c85_133, %c0_134], %237 {strides = array<i32>} : memref<216x8xf32, #tpu.memory_space<vmem>>, vector<4x8xf32>,
    %239 = vector.extract_strided_slice %224 {offsets = [48, 0], sizes = [4, 8], strides = [1, 1]} : vector<130x8xf32> to vector<4x8xf32>
    %c91_135 = arith.constant 91 : index
    %c0_136 = arith.constant 0 : index
    %240 = vector.load %arg8[%c91_135, %c0_136] : memref<216x8xf32, #tpu.memory_space<vmem>>, vector<4x8xf32>
    tpu.vector_store %arg8[%c91_135, %c0_136], %239 {strides = array<i32>} : memref<216x8xf32, #tpu.memory_space<vmem>>, vector<4x8xf32>,
    %241 = vector.extract_strided_slice %224 {offsets = [54, 0], sizes = [4, 8], strides = [1, 1]} : vector<130x8xf32> to vector<4x8xf32>
    %c97_137 = arith.constant 97 : index
    %c0_138 = arith.constant 0 : index
    %242 = vector.load %arg8[%c97_137, %c0_138] : memref<216x8xf32, #tpu.memory_space<vmem>>, vector<4x8xf32>
    tpu.vector_store %arg8[%c97_137, %c0_138], %241 {strides = array<i32>} : memref<216x8xf32, #tpu.memory_space<vmem>>, vector<4x8xf32>,
    %243 = vector.extract_strided_slice %224 {offsets = [72, 0], sizes = [4, 8], strides = [1, 1]} : vector<130x8xf32> to vector<4x8xf32>
    %c115_139 = arith.constant 115 : index
    %c0_140 = arith.constant 0 : index
    %244 = vector.load %arg8[%c115_139, %c0_140] : memref<216x8xf32, #tpu.memory_space<vmem>>, vector<4x8xf32>
    tpu.vector_store %arg8[%c115_139, %c0_140], %243 {strides = array<i32>} : memref<216x8xf32, #tpu.memory_space<vmem>>, vector<4x8xf32>,
    %245 = vector.extract_strided_slice %224 {offsets = [78, 0], sizes = [4, 8], strides = [1, 1]} : vector<130x8xf32> to vector<4x8xf32>
    %c121_141 = arith.constant 121 : index
    %c0_142 = arith.constant 0 : index
    %246 = vector.load %arg8[%c121_141, %c0_142] : memref<216x8xf32, #tpu.memory_space<vmem>>, vector<4x8xf32>
    tpu.vector_store %arg8[%c121_141, %c0_142], %245 {strides = array<i32>} : memref<216x8xf32, #tpu.memory_space<vmem>>, vector<4x8xf32>,
    %247 = vector.extract_strided_slice %224 {offsets = [84, 0], sizes = [4, 8], strides = [1, 1]} : vector<130x8xf32> to vector<4x8xf32>
    %c127_143 = arith.constant 127 : index
    %c0_144 = arith.constant 0 : index
    %248 = vector.load %arg8[%c127_143, %c0_144] : memref<216x8xf32, #tpu.memory_space<vmem>>, vector<4x8xf32>
    tpu.vector_store %arg8[%c127_143, %c0_144], %247 {strides = array<i32>} : memref<216x8xf32, #tpu.memory_space<vmem>>, vector<4x8xf32>,
    %249 = vector.extract_strided_slice %224 {offsets = [90, 0], sizes = [4, 8], strides = [1, 1]} : vector<130x8xf32> to vector<4x8xf32>
    %c133_145 = arith.constant 133 : index
    %c0_146 = arith.constant 0 : index
    %250 = vector.load %arg8[%c133_145, %c0_146] : memref<216x8xf32, #tpu.memory_space<vmem>>, vector<4x8xf32>
    tpu.vector_store %arg8[%c133_145, %c0_146], %249 {strides = array<i32>} : memref<216x8xf32, #tpu.memory_space<vmem>>, vector<4x8xf32>,
    %251 = vector.extract_strided_slice %224 {offsets = [108, 0], sizes = [4, 8], strides = [1, 1]} : vector<130x8xf32> to vector<4x8xf32>
    %c151_147 = arith.constant 151 : index
    %c0_148 = arith.constant 0 : index
    %252 = vector.load %arg8[%c151_147, %c0_148] : memref<216x8xf32, #tpu.memory_space<vmem>>, vector<4x8xf32>
    tpu.vector_store %arg8[%c151_147, %c0_148], %251 {strides = array<i32>} : memref<216x8xf32, #tpu.memory_space<vmem>>, vector<4x8xf32>,
    %253 = vector.extract_strided_slice %224 {offsets = [114, 0], sizes = [4, 8], strides = [1, 1]} : vector<130x8xf32> to vector<4x8xf32>
    %c157_149 = arith.constant 157 : index
    %c0_150 = arith.constant 0 : index
    %254 = vector.load %arg8[%c157_149, %c0_150] : memref<216x8xf32, #tpu.memory_space<vmem>>, vector<4x8xf32>
    tpu.vector_store %arg8[%c157_149, %c0_150], %253 {strides = array<i32>} : memref<216x8xf32, #tpu.memory_space<vmem>>, vector<4x8xf32>,
    %255 = vector.extract_strided_slice %224 {offsets = [120, 0], sizes = [4, 8], strides = [1, 1]} : vector<130x8xf32> to vector<4x8xf32>
    %c163_151 = arith.constant 163 : index
    %c0_152 = arith.constant 0 : index
    %256 = vector.load %arg8[%c163_151, %c0_152] : memref<216x8xf32, #tpu.memory_space<vmem>>, vector<4x8xf32>
    tpu.vector_store %arg8[%c163_151, %c0_152], %255 {strides = array<i32>} : memref<216x8xf32, #tpu.memory_space<vmem>>, vector<4x8xf32>,
    %257 = vector.extract_strided_slice %224 {offsets = [126, 0], sizes = [4, 8], strides = [1, 1]} : vector<130x8xf32> to vector<4x8xf32>
    %c169_153 = arith.constant 169 : index
    %c0_154 = arith.constant 0 : index
    %258 = vector.load %arg8[%c169_153, %c0_154] : memref<216x8xf32, #tpu.memory_space<vmem>>, vector<4x8xf32>
    tpu.vector_store %arg8[%c169_153, %c0_154], %257 {strides = array<i32>} : memref<216x8xf32, #tpu.memory_space<vmem>>, vector<4x8xf32>,
    %c0_155 = arith.constant 0 : index
    %c0_156 = arith.constant 0 : index
    %259 = vector.load %arg5[%c0_155, %c0_156] : memref<1x8xf32, #tpu.memory_space<vmem>>, vector<1x8xf32>
    %cst_157 = arith.constant 0.000000e+00 : f32
    %260 = vector.broadcast %cst_157 : f32 to vector<130x8xf32>
    %c0_158 = arith.constant 0 : index
    %c0_159 = arith.constant 0 : index
    %261 = vector.load %arg8[%c0_158, %c0_159] : memref<216x8xf32, #tpu.memory_space<vmem>>, vector<132x8xf32>
    %262 = arith.truncf %261 : vector<132x8xf32> to vector<132x8xbf16>
    %263 = vector.extract_strided_slice %262 {offsets = [0, 0], sizes = [130, 8], strides = [1, 1]} : vector<132x8xbf16> to vector<130x8xbf16>
    %c0_160 = arith.constant 0 : index
    %c0_161 = arith.constant 0 : index
    %c0_162 = arith.constant 0 : index
    %264 = vector.load %arg4[%c0_160, %c0_161, %c0_162] : memref<27x8x8xbf16, #tpu.memory_space<vmem>>, vector<1x8x8xbf16>
    %265 = vector.shape_cast %264 : vector<1x8x8xbf16> to vector<8x8xbf16>
    %cst_163 = arith.constant dense<0.000000e+00> : vector<130x8xf32>
    %266 = tpu.matmul %263, %265, %cst_163 {dimension_numbers = #tpu.dot_dimension_numbers<[1], [0], [0], [1], [0, 0, 1, 1], [], []>} : vector<130x8xbf16>, vector<8x8xbf16>, vector<130x8xf32> -> vector<130x8xf32>
    %267 = arith.addf %260, %266 : vector<130x8xf32>
    %268 = vector.extract_strided_slice %262 {offsets = [1, 0], sizes = [130, 8], strides = [1, 1]} : vector<132x8xbf16> to vector<130x8xbf16>
    %c1_164 = arith.constant 1 : index
    %c0_165 = arith.constant 0 : index
    %c0_166 = arith.constant 0 : index
    %269 = vector.load %arg4[%c1_164, %c0_165, %c0_166] : memref<27x8x8xbf16, #tpu.memory_space<vmem>>, vector<1x8x8xbf16>
    %270 = vector.shape_cast %269 : vector<1x8x8xbf16> to vector<8x8xbf16>
    %cst_167 = arith.constant dense<0.000000e+00> : vector<130x8xf32>
    %271 = tpu.matmul %268, %270, %cst_167 {dimension_numbers = #tpu.dot_dimension_numbers<[1], [0], [0], [1], [0, 0, 1, 1], [], []>} : vector<130x8xbf16>, vector<8x8xbf16>, vector<130x8xf32> -> vector<130x8xf32>
    %272 = arith.addf %267, %271 : vector<130x8xf32>
    %273 = vector.extract_strided_slice %262 {offsets = [2, 0], sizes = [130, 8], strides = [1, 1]} : vector<132x8xbf16> to vector<130x8xbf16>
    %c2_168 = arith.constant 2 : index
    %c0_169 = arith.constant 0 : index
    %c0_170 = arith.constant 0 : index
    %274 = vector.load %arg4[%c2_168, %c0_169, %c0_170] : memref<27x8x8xbf16, #tpu.memory_space<vmem>>, vector<1x8x8xbf16>
    %275 = vector.shape_cast %274 : vector<1x8x8xbf16> to vector<8x8xbf16>
    %cst_171 = arith.constant dense<0.000000e+00> : vector<130x8xf32>
    %276 = tpu.matmul %273, %275, %cst_171 {dimension_numbers = #tpu.dot_dimension_numbers<[1], [0], [0], [1], [0, 0, 1, 1], [], []>} : vector<130x8xbf16>, vector<8x8xbf16>, vector<130x8xf32> -> vector<130x8xf32>
    %277 = arith.addf %272, %276 : vector<130x8xf32>
    %c6_172 = arith.constant 6 : index
    %c0_173 = arith.constant 0 : index
    %278 = vector.load %arg8[%c6_172, %c0_173] : memref<216x8xf32, #tpu.memory_space<vmem>>, vector<132x8xf32>
    %279 = arith.truncf %278 : vector<132x8xf32> to vector<132x8xbf16>
    %280 = vector.extract_strided_slice %279 {offsets = [0, 0], sizes = [130, 8], strides = [1, 1]} : vector<132x8xbf16> to vector<130x8xbf16>
    %c3_174 = arith.constant 3 : index
    %c0_175 = arith.constant 0 : index
    %c0_176 = arith.constant 0 : index
    %281 = vector.load %arg4[%c3_174, %c0_175, %c0_176] : memref<27x8x8xbf16, #tpu.memory_space<vmem>>, vector<1x8x8xbf16>
    %282 = vector.shape_cast %281 : vector<1x8x8xbf16> to vector<8x8xbf16>
    %cst_177 = arith.constant dense<0.000000e+00> : vector<130x8xf32>
    %283 = tpu.matmul %280, %282, %cst_177 {dimension_numbers = #tpu.dot_dimension_numbers<[1], [0], [0], [1], [0, 0, 1, 1], [], []>} : vector<130x8xbf16>, vector<8x8xbf16>, vector<130x8xf32> -> vector<130x8xf32>
    %284 = arith.addf %277, %283 : vector<130x8xf32>
    %285 = vector.extract_strided_slice %279 {offsets = [1, 0], sizes = [130, 8], strides = [1, 1]} : vector<132x8xbf16> to vector<130x8xbf16>
    %c4_178 = arith.constant 4 : index
    %c0_179 = arith.constant 0 : index
    %c0_180 = arith.constant 0 : index
    %286 = vector.load %arg4[%c4_178, %c0_179, %c0_180] : memref<27x8x8xbf16, #tpu.memory_space<vmem>>, vector<1x8x8xbf16>
    %287 = vector.shape_cast %286 : vector<1x8x8xbf16> to vector<8x8xbf16>
    %cst_181 = arith.constant dense<0.000000e+00> : vector<130x8xf32>
    %288 = tpu.matmul %285, %287, %cst_181 {dimension_numbers = #tpu.dot_dimension_numbers<[1], [0], [0], [1], [0, 0, 1, 1], [], []>} : vector<130x8xbf16>, vector<8x8xbf16>, vector<130x8xf32> -> vector<130x8xf32>
    %289 = arith.addf %284, %288 : vector<130x8xf32>
    %290 = vector.extract_strided_slice %279 {offsets = [2, 0], sizes = [130, 8], strides = [1, 1]} : vector<132x8xbf16> to vector<130x8xbf16>
    %c5_182 = arith.constant 5 : index
    %c0_183 = arith.constant 0 : index
    %c0_184 = arith.constant 0 : index
    %291 = vector.load %arg4[%c5_182, %c0_183, %c0_184] : memref<27x8x8xbf16, #tpu.memory_space<vmem>>, vector<1x8x8xbf16>
    %292 = vector.shape_cast %291 : vector<1x8x8xbf16> to vector<8x8xbf16>
    %cst_185 = arith.constant dense<0.000000e+00> : vector<130x8xf32>
    %293 = tpu.matmul %290, %292, %cst_185 {dimension_numbers = #tpu.dot_dimension_numbers<[1], [0], [0], [1], [0, 0, 1, 1], [], []>} : vector<130x8xbf16>, vector<8x8xbf16>, vector<130x8xf32> -> vector<130x8xf32>
    %294 = arith.addf %289, %293 : vector<130x8xf32>
    %c12_186 = arith.constant 12 : index
    %c0_187 = arith.constant 0 : index
    %295 = vector.load %arg8[%c12_186, %c0_187] : memref<216x8xf32, #tpu.memory_space<vmem>>, vector<132x8xf32>
    %296 = arith.truncf %295 : vector<132x8xf32> to vector<132x8xbf16>
    %297 = vector.extract_strided_slice %296 {offsets = [0, 0], sizes = [130, 8], strides = [1, 1]} : vector<132x8xbf16> to vector<130x8xbf16>
    %c6_188 = arith.constant 6 : index
    %c0_189 = arith.constant 0 : index
    %c0_190 = arith.constant 0 : index
    %298 = vector.load %arg4[%c6_188, %c0_189, %c0_190] : memref<27x8x8xbf16, #tpu.memory_space<vmem>>, vector<1x8x8xbf16>
    %299 = vector.shape_cast %298 : vector<1x8x8xbf16> to vector<8x8xbf16>
    %cst_191 = arith.constant dense<0.000000e+00> : vector<130x8xf32>
    %300 = tpu.matmul %297, %299, %cst_191 {dimension_numbers = #tpu.dot_dimension_numbers<[1], [0], [0], [1], [0, 0, 1, 1], [], []>} : vector<130x8xbf16>, vector<8x8xbf16>, vector<130x8xf32> -> vector<130x8xf32>
    %301 = arith.addf %294, %300 : vector<130x8xf32>
    %302 = vector.extract_strided_slice %296 {offsets = [1, 0], sizes = [130, 8], strides = [1, 1]} : vector<132x8xbf16> to vector<130x8xbf16>
    %c7_192 = arith.constant 7 : index
    %c0_193 = arith.constant 0 : index
    %c0_194 = arith.constant 0 : index
    %303 = vector.load %arg4[%c7_192, %c0_193, %c0_194] : memref<27x8x8xbf16, #tpu.memory_space<vmem>>, vector<1x8x8xbf16>
    %304 = vector.shape_cast %303 : vector<1x8x8xbf16> to vector<8x8xbf16>
    %cst_195 = arith.constant dense<0.000000e+00> : vector<130x8xf32>
    %305 = tpu.matmul %302, %304, %cst_195 {dimension_numbers = #tpu.dot_dimension_numbers<[1], [0], [0], [1], [0, 0, 1, 1], [], []>} : vector<130x8xbf16>, vector<8x8xbf16>, vector<130x8xf32> -> vector<130x8xf32>
    %306 = arith.addf %301, %305 : vector<130x8xf32>
    %307 = vector.extract_strided_slice %296 {offsets = [2, 0], sizes = [130, 8], strides = [1, 1]} : vector<132x8xbf16> to vector<130x8xbf16>
    %c8_196 = arith.constant 8 : index
    %c0_197 = arith.constant 0 : index
    %c0_198 = arith.constant 0 : index
    %308 = vector.load %arg4[%c8_196, %c0_197, %c0_198] : memref<27x8x8xbf16, #tpu.memory_space<vmem>>, vector<1x8x8xbf16>
    %309 = vector.shape_cast %308 : vector<1x8x8xbf16> to vector<8x8xbf16>
    %cst_199 = arith.constant dense<0.000000e+00> : vector<130x8xf32>
    %310 = tpu.matmul %307, %309, %cst_199 {dimension_numbers = #tpu.dot_dimension_numbers<[1], [0], [0], [1], [0, 0, 1, 1], [], []>} : vector<130x8xbf16>, vector<8x8xbf16>, vector<130x8xf32> -> vector<130x8xf32>
    %311 = arith.addf %306, %310 : vector<130x8xf32>
    %c36_200 = arith.constant 36 : index
    %c0_201 = arith.constant 0 : index
    %312 = vector.load %arg8[%c36_200, %c0_201] : memref<216x8xf32, #tpu.memory_space<vmem>>, vector<132x8xf32>
    %313 = arith.truncf %312 : vector<132x8xf32> to vector<132x8xbf16>
    %314 = vector.extract_strided_slice %313 {offsets = [0, 0], sizes = [130, 8], strides = [1, 1]} : vector<132x8xbf16> to vector<130x8xbf16>
    %c9_202 = arith.constant 9 : index
    %c0_203 = arith.constant 0 : index
    %c0_204 = arith.constant 0 : index
    %315 = vector.load %arg4[%c9_202, %c0_203, %c0_204] : memref<27x8x8xbf16, #tpu.memory_space<vmem>>, vector<1x8x8xbf16>
    %316 = vector.shape_cast %315 : vector<1x8x8xbf16> to vector<8x8xbf16>
    %cst_205 = arith.constant dense<0.000000e+00> : vector<130x8xf32>
    %317 = tpu.matmul %314, %316, %cst_205 {dimension_numbers = #tpu.dot_dimension_numbers<[1], [0], [0], [1], [0, 0, 1, 1], [], []>} : vector<130x8xbf16>, vector<8x8xbf16>, vector<130x8xf32> -> vector<130x8xf32>
    %318 = arith.addf %311, %317 : vector<130x8xf32>
    %319 = vector.extract_strided_slice %313 {offsets = [1, 0], sizes = [130, 8], strides = [1, 1]} : vector<132x8xbf16> to vector<130x8xbf16>
    %c10_206 = arith.constant 10 : index
    %c0_207 = arith.constant 0 : index
    %c0_208 = arith.constant 0 : index
    %320 = vector.load %arg4[%c10_206, %c0_207, %c0_208] : memref<27x8x8xbf16, #tpu.memory_space<vmem>>, vector<1x8x8xbf16>
    %321 = vector.shape_cast %320 : vector<1x8x8xbf16> to vector<8x8xbf16>
    %cst_209 = arith.constant dense<0.000000e+00> : vector<130x8xf32>
    %322 = tpu.matmul %319, %321, %cst_209 {dimension_numbers = #tpu.dot_dimension_numbers<[1], [0], [0], [1], [0, 0, 1, 1], [], []>} : vector<130x8xbf16>, vector<8x8xbf16>, vector<130x8xf32> -> vector<130x8xf32>
    %323 = arith.addf %318, %322 : vector<130x8xf32>
    %324 = vector.extract_strided_slice %313 {offsets = [2, 0], sizes = [130, 8], strides = [1, 1]} : vector<132x8xbf16> to vector<130x8xbf16>
    %c11_210 = arith.constant 11 : index
    %c0_211 = arith.constant 0 : index
    %c0_212 = arith.constant 0 : index
    %325 = vector.load %arg4[%c11_210, %c0_211, %c0_212] : memref<27x8x8xbf16, #tpu.memory_space<vmem>>, vector<1x8x8xbf16>
    %326 = vector.shape_cast %325 : vector<1x8x8xbf16> to vector<8x8xbf16>
    %cst_213 = arith.constant dense<0.000000e+00> : vector<130x8xf32>
    %327 = tpu.matmul %324, %326, %cst_213 {dimension_numbers = #tpu.dot_dimension_numbers<[1], [0], [0], [1], [0, 0, 1, 1], [], []>} : vector<130x8xbf16>, vector<8x8xbf16>, vector<130x8xf32> -> vector<130x8xf32>
    %328 = arith.addf %323, %327 : vector<130x8xf32>
    %c42_214 = arith.constant 42 : index
    %c0_215 = arith.constant 0 : index
    %329 = vector.load %arg8[%c42_214, %c0_215] : memref<216x8xf32, #tpu.memory_space<vmem>>, vector<132x8xf32>
    %330 = arith.truncf %329 : vector<132x8xf32> to vector<132x8xbf16>
    %331 = vector.extract_strided_slice %330 {offsets = [0, 0], sizes = [130, 8], strides = [1, 1]} : vector<132x8xbf16> to vector<130x8xbf16>
    %c12_216 = arith.constant 12 : index
    %c0_217 = arith.constant 0 : index
    %c0_218 = arith.constant 0 : index
    %332 = vector.load %arg4[%c12_216, %c0_217, %c0_218] : memref<27x8x8xbf16, #tpu.memory_space<vmem>>, vector<1x8x8xbf16>
    %333 = vector.shape_cast %332 : vector<1x8x8xbf16> to vector<8x8xbf16>
    %cst_219 = arith.constant dense<0.000000e+00> : vector<130x8xf32>
    %334 = tpu.matmul %331, %333, %cst_219 {dimension_numbers = #tpu.dot_dimension_numbers<[1], [0], [0], [1], [0, 0, 1, 1], [], []>} : vector<130x8xbf16>, vector<8x8xbf16>, vector<130x8xf32> -> vector<130x8xf32>
    %335 = arith.addf %328, %334 : vector<130x8xf32>
    %336 = vector.extract_strided_slice %330 {offsets = [1, 0], sizes = [130, 8], strides = [1, 1]} : vector<132x8xbf16> to vector<130x8xbf16>
    %c13_220 = arith.constant 13 : index
    %c0_221 = arith.constant 0 : index
    %c0_222 = arith.constant 0 : index
    %337 = vector.load %arg4[%c13_220, %c0_221, %c0_222] : memref<27x8x8xbf16, #tpu.memory_space<vmem>>, vector<1x8x8xbf16>
    %338 = vector.shape_cast %337 : vector<1x8x8xbf16> to vector<8x8xbf16>
    %cst_223 = arith.constant dense<0.000000e+00> : vector<130x8xf32>
    %339 = tpu.matmul %336, %338, %cst_223 {dimension_numbers = #tpu.dot_dimension_numbers<[1], [0], [0], [1], [0, 0, 1, 1], [], []>} : vector<130x8xbf16>, vector<8x8xbf16>, vector<130x8xf32> -> vector<130x8xf32>
    %340 = arith.addf %335, %339 : vector<130x8xf32>
    %341 = vector.extract_strided_slice %330 {offsets = [2, 0], sizes = [130, 8], strides = [1, 1]} : vector<132x8xbf16> to vector<130x8xbf16>
    %c14_224 = arith.constant 14 : index
    %c0_225 = arith.constant 0 : index
    %c0_226 = arith.constant 0 : index
    %342 = vector.load %arg4[%c14_224, %c0_225, %c0_226] : memref<27x8x8xbf16, #tpu.memory_space<vmem>>, vector<1x8x8xbf16>
    %343 = vector.shape_cast %342 : vector<1x8x8xbf16> to vector<8x8xbf16>
    %cst_227 = arith.constant dense<0.000000e+00> : vector<130x8xf32>
    %344 = tpu.matmul %341, %343, %cst_227 {dimension_numbers = #tpu.dot_dimension_numbers<[1], [0], [0], [1], [0, 0, 1, 1], [], []>} : vector<130x8xbf16>, vector<8x8xbf16>, vector<130x8xf32> -> vector<130x8xf32>
    %345 = arith.addf %340, %344 : vector<130x8xf32>
    %c48_228 = arith.constant 48 : index
    %c0_229 = arith.constant 0 : index
    %346 = vector.load %arg8[%c48_228, %c0_229] : memref<216x8xf32, #tpu.memory_space<vmem>>, vector<132x8xf32>
    %347 = arith.truncf %346 : vector<132x8xf32> to vector<132x8xbf16>
    %348 = vector.extract_strided_slice %347 {offsets = [0, 0], sizes = [130, 8], strides = [1, 1]} : vector<132x8xbf16> to vector<130x8xbf16>
    %c15_230 = arith.constant 15 : index
    %c0_231 = arith.constant 0 : index
    %c0_232 = arith.constant 0 : index
    %349 = vector.load %arg4[%c15_230, %c0_231, %c0_232] : memref<27x8x8xbf16, #tpu.memory_space<vmem>>, vector<1x8x8xbf16>
    %350 = vector.shape_cast %349 : vector<1x8x8xbf16> to vector<8x8xbf16>
    %cst_233 = arith.constant dense<0.000000e+00> : vector<130x8xf32>
    %351 = tpu.matmul %348, %350, %cst_233 {dimension_numbers = #tpu.dot_dimension_numbers<[1], [0], [0], [1], [0, 0, 1, 1], [], []>} : vector<130x8xbf16>, vector<8x8xbf16>, vector<130x8xf32> -> vector<130x8xf32>
    %352 = arith.addf %345, %351 : vector<130x8xf32>
    %353 = vector.extract_strided_slice %347 {offsets = [1, 0], sizes = [130, 8], strides = [1, 1]} : vector<132x8xbf16> to vector<130x8xbf16>
    %c16_234 = arith.constant 16 : index
    %c0_235 = arith.constant 0 : index
    %c0_236 = arith.constant 0 : index
    %354 = vector.load %arg4[%c16_234, %c0_235, %c0_236] : memref<27x8x8xbf16, #tpu.memory_space<vmem>>, vector<1x8x8xbf16>
    %355 = vector.shape_cast %354 : vector<1x8x8xbf16> to vector<8x8xbf16>
    %cst_237 = arith.constant dense<0.000000e+00> : vector<130x8xf32>
    %356 = tpu.matmul %353, %355, %cst_237 {dimension_numbers = #tpu.dot_dimension_numbers<[1], [0], [0], [1], [0, 0, 1, 1], [], []>} : vector<130x8xbf16>, vector<8x8xbf16>, vector<130x8xf32> -> vector<130x8xf32>
    %357 = arith.addf %352, %356 : vector<130x8xf32>
    %358 = vector.extract_strided_slice %347 {offsets = [2, 0], sizes = [130, 8], strides = [1, 1]} : vector<132x8xbf16> to vector<130x8xbf16>
    %c17_238 = arith.constant 17 : index
    %c0_239 = arith.constant 0 : index
    %c0_240 = arith.constant 0 : index
    %359 = vector.load %arg4[%c17_238, %c0_239, %c0_240] : memref<27x8x8xbf16, #tpu.memory_space<vmem>>, vector<1x8x8xbf16>
    %360 = vector.shape_cast %359 : vector<1x8x8xbf16> to vector<8x8xbf16>
    %cst_241 = arith.constant dense<0.000000e+00> : vector<130x8xf32>
    %361 = tpu.matmul %358, %360, %cst_241 {dimension_numbers = #tpu.dot_dimension_numbers<[1], [0], [0], [1], [0, 0, 1, 1], [], []>} : vector<130x8xbf16>, vector<8x8xbf16>, vector<130x8xf32> -> vector<130x8xf32>
    %362 = arith.addf %357, %361 : vector<130x8xf32>
    %c72_242 = arith.constant 72 : index
    %c0_243 = arith.constant 0 : index
    %363 = vector.load %arg8[%c72_242, %c0_243] : memref<216x8xf32, #tpu.memory_space<vmem>>, vector<132x8xf32>
    %364 = arith.truncf %363 : vector<132x8xf32> to vector<132x8xbf16>
    %365 = vector.extract_strided_slice %364 {offsets = [0, 0], sizes = [130, 8], strides = [1, 1]} : vector<132x8xbf16> to vector<130x8xbf16>
    %c18_244 = arith.constant 18 : index
    %c0_245 = arith.constant 0 : index
    %c0_246 = arith.constant 0 : index
    %366 = vector.load %arg4[%c18_244, %c0_245, %c0_246] : memref<27x8x8xbf16, #tpu.memory_space<vmem>>, vector<1x8x8xbf16>
    %367 = vector.shape_cast %366 : vector<1x8x8xbf16> to vector<8x8xbf16>
    %cst_247 = arith.constant dense<0.000000e+00> : vector<130x8xf32>
    %368 = tpu.matmul %365, %367, %cst_247 {dimension_numbers = #tpu.dot_dimension_numbers<[1], [0], [0], [1], [0, 0, 1, 1], [], []>} : vector<130x8xbf16>, vector<8x8xbf16>, vector<130x8xf32> -> vector<130x8xf32>
    %369 = arith.addf %362, %368 : vector<130x8xf32>
    %370 = vector.extract_strided_slice %364 {offsets = [1, 0], sizes = [130, 8], strides = [1, 1]} : vector<132x8xbf16> to vector<130x8xbf16>
    %c19_248 = arith.constant 19 : index
    %c0_249 = arith.constant 0 : index
    %c0_250 = arith.constant 0 : index
    %371 = vector.load %arg4[%c19_248, %c0_249, %c0_250] : memref<27x8x8xbf16, #tpu.memory_space<vmem>>, vector<1x8x8xbf16>
    %372 = vector.shape_cast %371 : vector<1x8x8xbf16> to vector<8x8xbf16>
    %cst_251 = arith.constant dense<0.000000e+00> : vector<130x8xf32>
    %373 = tpu.matmul %370, %372, %cst_251 {dimension_numbers = #tpu.dot_dimension_numbers<[1], [0], [0], [1], [0, 0, 1, 1], [], []>} : vector<130x8xbf16>, vector<8x8xbf16>, vector<130x8xf32> -> vector<130x8xf32>
    %374 = arith.addf %369, %373 : vector<130x8xf32>
    %375 = vector.extract_strided_slice %364 {offsets = [2, 0], sizes = [130, 8], strides = [1, 1]} : vector<132x8xbf16> to vector<130x8xbf16>
    %c20_252 = arith.constant 20 : index
    %c0_253 = arith.constant 0 : index
    %c0_254 = arith.constant 0 : index
    %376 = vector.load %arg4[%c20_252, %c0_253, %c0_254] : memref<27x8x8xbf16, #tpu.memory_space<vmem>>, vector<1x8x8xbf16>
    %377 = vector.shape_cast %376 : vector<1x8x8xbf16> to vector<8x8xbf16>
    %cst_255 = arith.constant dense<0.000000e+00> : vector<130x8xf32>
    %378 = tpu.matmul %375, %377, %cst_255 {dimension_numbers = #tpu.dot_dimension_numbers<[1], [0], [0], [1], [0, 0, 1, 1], [], []>} : vector<130x8xbf16>, vector<8x8xbf16>, vector<130x8xf32> -> vector<130x8xf32>
    %379 = arith.addf %374, %378 : vector<130x8xf32>
    %c78_256 = arith.constant 78 : index
    %c0_257 = arith.constant 0 : index
    %380 = vector.load %arg8[%c78_256, %c0_257] : memref<216x8xf32, #tpu.memory_space<vmem>>, vector<132x8xf32>
    %381 = arith.truncf %380 : vector<132x8xf32> to vector<132x8xbf16>
    %382 = vector.extract_strided_slice %381 {offsets = [0, 0], sizes = [130, 8], strides = [1, 1]} : vector<132x8xbf16> to vector<130x8xbf16>
    %c21_258 = arith.constant 21 : index
    %c0_259 = arith.constant 0 : index
    %c0_260 = arith.constant 0 : index
    %383 = vector.load %arg4[%c21_258, %c0_259, %c0_260] : memref<27x8x8xbf16, #tpu.memory_space<vmem>>, vector<1x8x8xbf16>
    %384 = vector.shape_cast %383 : vector<1x8x8xbf16> to vector<8x8xbf16>
    %cst_261 = arith.constant dense<0.000000e+00> : vector<130x8xf32>
    %385 = tpu.matmul %382, %384, %cst_261 {dimension_numbers = #tpu.dot_dimension_numbers<[1], [0], [0], [1], [0, 0, 1, 1], [], []>} : vector<130x8xbf16>, vector<8x8xbf16>, vector<130x8xf32> -> vector<130x8xf32>
    %386 = arith.addf %379, %385 : vector<130x8xf32>
    %387 = vector.extract_strided_slice %381 {offsets = [1, 0], sizes = [130, 8], strides = [1, 1]} : vector<132x8xbf16> to vector<130x8xbf16>
    %c22_262 = arith.constant 22 : index
    %c0_263 = arith.constant 0 : index
    %c0_264 = arith.constant 0 : index
    %388 = vector.load %arg4[%c22_262, %c0_263, %c0_264] : memref<27x8x8xbf16, #tpu.memory_space<vmem>>, vector<1x8x8xbf16>
    %389 = vector.shape_cast %388 : vector<1x8x8xbf16> to vector<8x8xbf16>
    %cst_265 = arith.constant dense<0.000000e+00> : vector<130x8xf32>
    %390 = tpu.matmul %387, %389, %cst_265 {dimension_numbers = #tpu.dot_dimension_numbers<[1], [0], [0], [1], [0, 0, 1, 1], [], []>} : vector<130x8xbf16>, vector<8x8xbf16>, vector<130x8xf32> -> vector<130x8xf32>
    %391 = arith.addf %386, %390 : vector<130x8xf32>
    %392 = vector.extract_strided_slice %381 {offsets = [2, 0], sizes = [130, 8], strides = [1, 1]} : vector<132x8xbf16> to vector<130x8xbf16>
    %c23_266 = arith.constant 23 : index
    %c0_267 = arith.constant 0 : index
    %c0_268 = arith.constant 0 : index
    %393 = vector.load %arg4[%c23_266, %c0_267, %c0_268] : memref<27x8x8xbf16, #tpu.memory_space<vmem>>, vector<1x8x8xbf16>
    %394 = vector.shape_cast %393 : vector<1x8x8xbf16> to vector<8x8xbf16>
    %cst_269 = arith.constant dense<0.000000e+00> : vector<130x8xf32>
    %395 = tpu.matmul %392, %394, %cst_269 {dimension_numbers = #tpu.dot_dimension_numbers<[1], [0], [0], [1], [0, 0, 1, 1], [], []>} : vector<130x8xbf16>, vector<8x8xbf16>, vector<130x8xf32> -> vector<130x8xf32>
    %396 = arith.addf %391, %395 : vector<130x8xf32>
    %c84_270 = arith.constant 84 : index
    %c0_271 = arith.constant 0 : index
    %397 = vector.load %arg8[%c84_270, %c0_271] : memref<216x8xf32, #tpu.memory_space<vmem>>, vector<132x8xf32>
    %398 = arith.truncf %397 : vector<132x8xf32> to vector<132x8xbf16>
    %399 = vector.extract_strided_slice %398 {offsets = [0, 0], sizes = [130, 8], strides = [1, 1]} : vector<132x8xbf16> to vector<130x8xbf16>
    %c24_272 = arith.constant 24 : index
    %c0_273 = arith.constant 0 : index
    %c0_274 = arith.constant 0 : index
    %400 = vector.load %arg4[%c24_272, %c0_273, %c0_274] : memref<27x8x8xbf16, #tpu.memory_space<vmem>>, vector<1x8x8xbf16>
    %401 = vector.shape_cast %400 : vector<1x8x8xbf16> to vector<8x8xbf16>
    %cst_275 = arith.constant dense<0.000000e+00> : vector<130x8xf32>
    %402 = tpu.matmul %399, %401, %cst_275 {dimension_numbers = #tpu.dot_dimension_numbers<[1], [0], [0], [1], [0, 0, 1, 1], [], []>} : vector<130x8xbf16>, vector<8x8xbf16>, vector<130x8xf32> -> vector<130x8xf32>
    %403 = arith.addf %396, %402 : vector<130x8xf32>
    %404 = vector.extract_strided_slice %398 {offsets = [1, 0], sizes = [130, 8], strides = [1, 1]} : vector<132x8xbf16> to vector<130x8xbf16>
    %c25_276 = arith.constant 25 : index
    %c0_277 = arith.constant 0 : index
    %c0_278 = arith.constant 0 : index
    %405 = vector.load %arg4[%c25_276, %c0_277, %c0_278] : memref<27x8x8xbf16, #tpu.memory_space<vmem>>, vector<1x8x8xbf16>
    %406 = vector.shape_cast %405 : vector<1x8x8xbf16> to vector<8x8xbf16>
    %cst_279 = arith.constant dense<0.000000e+00> : vector<130x8xf32>
    %407 = tpu.matmul %404, %406, %cst_279 {dimension_numbers = #tpu.dot_dimension_numbers<[1], [0], [0], [1], [0, 0, 1, 1], [], []>} : vector<130x8xbf16>, vector<8x8xbf16>, vector<130x8xf32> -> vector<130x8xf32>
    %408 = arith.addf %403, %407 : vector<130x8xf32>
    %409 = vector.extract_strided_slice %398 {offsets = [2, 0], sizes = [130, 8], strides = [1, 1]} : vector<132x8xbf16> to vector<130x8xbf16>
    %c26_280 = arith.constant 26 : index
    %c0_281 = arith.constant 0 : index
    %c0_282 = arith.constant 0 : index
    %410 = vector.load %arg4[%c26_280, %c0_281, %c0_282] : memref<27x8x8xbf16, #tpu.memory_space<vmem>>, vector<1x8x8xbf16>
    %411 = vector.shape_cast %410 : vector<1x8x8xbf16> to vector<8x8xbf16>
    %cst_283 = arith.constant dense<0.000000e+00> : vector<130x8xf32>
    %412 = tpu.matmul %409, %411, %cst_283 {dimension_numbers = #tpu.dot_dimension_numbers<[1], [0], [0], [1], [0, 0, 1, 1], [], []>} : vector<130x8xbf16>, vector<8x8xbf16>, vector<130x8xf32> -> vector<130x8xf32>
    %413 = arith.addf %408, %412 : vector<130x8xf32>
    %414 = vector.broadcast %259 : vector<1x8xf32> to vector<130x8xf32>
    %415 = arith.addf %413, %414 : vector<130x8xf32>
    %cst_284 = arith.constant 0.000000e+00 : f32
    %416 = vector.broadcast %cst_284 : f32 to vector<130x8xf32>
    %417 = arith.maximumf %415, %416 : vector<130x8xf32>
    %418 = vector.extract_strided_slice %417 {offsets = [0, 0], sizes = [4, 8], strides = [1, 1]} : vector<130x8xf32> to vector<4x8xf32>
    %c0_285 = arith.constant 0 : index
    %c0_286 = arith.constant 0 : index
    %c0_287 = arith.constant 0 : index
    %c0_288 = arith.constant 0 : index
    %c0_289 = arith.constant 0 : index
    %419 = vector.load %arg6[%c0_285, %c0_286, %c0_287, %c0_288, %c0_289] : memref<1x4x4x4x8xf32, #tpu.memory_space<vmem>>, vector<1x1x1x4x8xf32>
    %420 = vector.shape_cast %419 : vector<1x1x1x4x8xf32> to vector<4x8xf32>
    %421 = vector.shape_cast %418 : vector<4x8xf32> to vector<1x1x1x4x8xf32>
    tpu.vector_store %arg6[%c0_285, %c0_286, %c0_287, %c0_288, %c0_289], %421 {strides = array<i32>} : memref<1x4x4x4x8xf32, #tpu.memory_space<vmem>>, vector<1x1x1x4x8xf32>,
    %422 = vector.extract_strided_slice %417 {offsets = [6, 0], sizes = [4, 8], strides = [1, 1]} : vector<130x8xf32> to vector<4x8xf32>
    %c0_290 = arith.constant 0 : index
    %c0_291 = arith.constant 0 : index
    %c1_292 = arith.constant 1 : index
    %c0_293 = arith.constant 0 : index
    %c0_294 = arith.constant 0 : index
    %423 = vector.load %arg6[%c0_290, %c0_291, %c1_292, %c0_293, %c0_294] : memref<1x4x4x4x8xf32, #tpu.memory_space<vmem>>, vector<1x1x1x4x8xf32>
    %424 = vector.shape_cast %423 : vector<1x1x1x4x8xf32> to vector<4x8xf32>
    %425 = vector.shape_cast %422 : vector<4x8xf32> to vector<1x1x1x4x8xf32>
    tpu.vector_store %arg6[%c0_290, %c0_291, %c1_292, %c0_293, %c0_294], %425 {strides = array<i32>} : memref<1x4x4x4x8xf32, #tpu.memory_space<vmem>>, vector<1x1x1x4x8xf32>,
    %426 = vector.extract_strided_slice %417 {offsets = [12, 0], sizes = [4, 8], strides = [1, 1]} : vector<130x8xf32> to vector<4x8xf32>
    %c0_295 = arith.constant 0 : index
    %c0_296 = arith.constant 0 : index
    %c2_297 = arith.constant 2 : index
    %c0_298 = arith.constant 0 : index
    %c0_299 = arith.constant 0 : index
    %427 = vector.load %arg6[%c0_295, %c0_296, %c2_297, %c0_298, %c0_299] : memref<1x4x4x4x8xf32, #tpu.memory_space<vmem>>, vector<1x1x1x4x8xf32>
    %428 = vector.shape_cast %427 : vector<1x1x1x4x8xf32> to vector<4x8xf32>
    %429 = vector.shape_cast %426 : vector<4x8xf32> to vector<1x1x1x4x8xf32>
    tpu.vector_store %arg6[%c0_295, %c0_296, %c2_297, %c0_298, %c0_299], %429 {strides = array<i32>} : memref<1x4x4x4x8xf32, #tpu.memory_space<vmem>>, vector<1x1x1x4x8xf32>,
    %430 = vector.extract_strided_slice %417 {offsets = [18, 0], sizes = [4, 8], strides = [1, 1]} : vector<130x8xf32> to vector<4x8xf32>
    %c0_300 = arith.constant 0 : index
    %c0_301 = arith.constant 0 : index
    %c3_302 = arith.constant 3 : index
    %c0_303 = arith.constant 0 : index
    %c0_304 = arith.constant 0 : index
    %431 = vector.load %arg6[%c0_300, %c0_301, %c3_302, %c0_303, %c0_304] : memref<1x4x4x4x8xf32, #tpu.memory_space<vmem>>, vector<1x1x1x4x8xf32>
    %432 = vector.shape_cast %431 : vector<1x1x1x4x8xf32> to vector<4x8xf32>
    %433 = vector.shape_cast %430 : vector<4x8xf32> to vector<1x1x1x4x8xf32>
    tpu.vector_store %arg6[%c0_300, %c0_301, %c3_302, %c0_303, %c0_304], %433 {strides = array<i32>} : memref<1x4x4x4x8xf32, #tpu.memory_space<vmem>>, vector<1x1x1x4x8xf32>,
    %434 = vector.extract_strided_slice %417 {offsets = [36, 0], sizes = [4, 8], strides = [1, 1]} : vector<130x8xf32> to vector<4x8xf32>
    %c0_305 = arith.constant 0 : index
    %c1_306 = arith.constant 1 : index
    %c0_307 = arith.constant 0 : index
    %c0_308 = arith.constant 0 : index
    %c0_309 = arith.constant 0 : index
    %435 = vector.load %arg6[%c0_305, %c1_306, %c0_307, %c0_308, %c0_309] : memref<1x4x4x4x8xf32, #tpu.memory_space<vmem>>, vector<1x1x1x4x8xf32>
    %436 = vector.shape_cast %435 : vector<1x1x1x4x8xf32> to vector<4x8xf32>
    %437 = vector.shape_cast %434 : vector<4x8xf32> to vector<1x1x1x4x8xf32>
    tpu.vector_store %arg6[%c0_305, %c1_306, %c0_307, %c0_308, %c0_309], %437 {strides = array<i32>} : memref<1x4x4x4x8xf32, #tpu.memory_space<vmem>>, vector<1x1x1x4x8xf32>,
    %438 = vector.extract_strided_slice %417 {offsets = [42, 0], sizes = [4, 8], strides = [1, 1]} : vector<130x8xf32> to vector<4x8xf32>
    %c0_310 = arith.constant 0 : index
    %c1_311 = arith.constant 1 : index
    %c1_312 = arith.constant 1 : index
    %c0_313 = arith.constant 0 : index
    %c0_314 = arith.constant 0 : index
    %439 = vector.load %arg6[%c0_310, %c1_311, %c1_312, %c0_313, %c0_314] : memref<1x4x4x4x8xf32, #tpu.memory_space<vmem>>, vector<1x1x1x4x8xf32>
    %440 = vector.shape_cast %439 : vector<1x1x1x4x8xf32> to vector<4x8xf32>
    %441 = vector.shape_cast %438 : vector<4x8xf32> to vector<1x1x1x4x8xf32>
    tpu.vector_store %arg6[%c0_310, %c1_311, %c1_312, %c0_313, %c0_314], %441 {strides = array<i32>} : memref<1x4x4x4x8xf32, #tpu.memory_space<vmem>>, vector<1x1x1x4x8xf32>,
    %442 = vector.extract_strided_slice %417 {offsets = [48, 0], sizes = [4, 8], strides = [1, 1]} : vector<130x8xf32> to vector<4x8xf32>
    %c0_315 = arith.constant 0 : index
    %c1_316 = arith.constant 1 : index
    %c2_317 = arith.constant 2 : index
    %c0_318 = arith.constant 0 : index
    %c0_319 = arith.constant 0 : index
    %443 = vector.load %arg6[%c0_315, %c1_316, %c2_317, %c0_318, %c0_319] : memref<1x4x4x4x8xf32, #tpu.memory_space<vmem>>, vector<1x1x1x4x8xf32>
    %444 = vector.shape_cast %443 : vector<1x1x1x4x8xf32> to vector<4x8xf32>
    %445 = vector.shape_cast %442 : vector<4x8xf32> to vector<1x1x1x4x8xf32>
    tpu.vector_store %arg6[%c0_315, %c1_316, %c2_317, %c0_318, %c0_319], %445 {strides = array<i32>} : memref<1x4x4x4x8xf32, #tpu.memory_space<vmem>>, vector<1x1x1x4x8xf32>,
    %446 = vector.extract_strided_slice %417 {offsets = [54, 0], sizes = [4, 8], strides = [1, 1]} : vector<130x8xf32> to vector<4x8xf32>
    %c0_320 = arith.constant 0 : index
    %c1_321 = arith.constant 1 : index
    %c3_322 = arith.constant 3 : index
    %c0_323 = arith.constant 0 : index
    %c0_324 = arith.constant 0 : index
    %447 = vector.load %arg6[%c0_320, %c1_321, %c3_322, %c0_323, %c0_324] : memref<1x4x4x4x8xf32, #tpu.memory_space<vmem>>, vector<1x1x1x4x8xf32>
    %448 = vector.shape_cast %447 : vector<1x1x1x4x8xf32> to vector<4x8xf32>
    %449 = vector.shape_cast %446 : vector<4x8xf32> to vector<1x1x1x4x8xf32>
    tpu.vector_store %arg6[%c0_320, %c1_321, %c3_322, %c0_323, %c0_324], %449 {strides = array<i32>} : memref<1x4x4x4x8xf32, #tpu.memory_space<vmem>>, vector<1x1x1x4x8xf32>,
    %450 = vector.extract_strided_slice %417 {offsets = [72, 0], sizes = [4, 8], strides = [1, 1]} : vector<130x8xf32> to vector<4x8xf32>
    %c0_325 = arith.constant 0 : index
    %c2_326 = arith.constant 2 : index
    %c0_327 = arith.constant 0 : index
    %c0_328 = arith.constant 0 : index
    %c0_329 = arith.constant 0 : index
    %451 = vector.load %arg6[%c0_325, %c2_326, %c0_327, %c0_328, %c0_329] : memref<1x4x4x4x8xf32, #tpu.memory_space<vmem>>, vector<1x1x1x4x8xf32>
    %452 = vector.shape_cast %451 : vector<1x1x1x4x8xf32> to vector<4x8xf32>
    %453 = vector.shape_cast %450 : vector<4x8xf32> to vector<1x1x1x4x8xf32>
    tpu.vector_store %arg6[%c0_325, %c2_326, %c0_327, %c0_328, %c0_329], %453 {strides = array<i32>} : memref<1x4x4x4x8xf32, #tpu.memory_space<vmem>>, vector<1x1x1x4x8xf32>,
    %454 = vector.extract_strided_slice %417 {offsets = [78, 0], sizes = [4, 8], strides = [1, 1]} : vector<130x8xf32> to vector<4x8xf32>
    %c0_330 = arith.constant 0 : index
    %c2_331 = arith.constant 2 : index
    %c1_332 = arith.constant 1 : index
    %c0_333 = arith.constant 0 : index
    %c0_334 = arith.constant 0 : index
    %455 = vector.load %arg6[%c0_330, %c2_331, %c1_332, %c0_333, %c0_334] : memref<1x4x4x4x8xf32, #tpu.memory_space<vmem>>, vector<1x1x1x4x8xf32>
    %456 = vector.shape_cast %455 : vector<1x1x1x4x8xf32> to vector<4x8xf32>
    %457 = vector.shape_cast %454 : vector<4x8xf32> to vector<1x1x1x4x8xf32>
    tpu.vector_store %arg6[%c0_330, %c2_331, %c1_332, %c0_333, %c0_334], %457 {strides = array<i32>} : memref<1x4x4x4x8xf32, #tpu.memory_space<vmem>>, vector<1x1x1x4x8xf32>,
    %458 = vector.extract_strided_slice %417 {offsets = [84, 0], sizes = [4, 8], strides = [1, 1]} : vector<130x8xf32> to vector<4x8xf32>
    %c0_335 = arith.constant 0 : index
    %c2_336 = arith.constant 2 : index
    %c2_337 = arith.constant 2 : index
    %c0_338 = arith.constant 0 : index
    %c0_339 = arith.constant 0 : index
    %459 = vector.load %arg6[%c0_335, %c2_336, %c2_337, %c0_338, %c0_339] : memref<1x4x4x4x8xf32, #tpu.memory_space<vmem>>, vector<1x1x1x4x8xf32>
    %460 = vector.shape_cast %459 : vector<1x1x1x4x8xf32> to vector<4x8xf32>
    %461 = vector.shape_cast %458 : vector<4x8xf32> to vector<1x1x1x4x8xf32>
    tpu.vector_store %arg6[%c0_335, %c2_336, %c2_337, %c0_338, %c0_339], %461 {strides = array<i32>} : memref<1x4x4x4x8xf32, #tpu.memory_space<vmem>>, vector<1x1x1x4x8xf32>,
    %462 = vector.extract_strided_slice %417 {offsets = [90, 0], sizes = [4, 8], strides = [1, 1]} : vector<130x8xf32> to vector<4x8xf32>
    %c0_340 = arith.constant 0 : index
    %c2_341 = arith.constant 2 : index
    %c3_342 = arith.constant 3 : index
    %c0_343 = arith.constant 0 : index
    %c0_344 = arith.constant 0 : index
    %463 = vector.load %arg6[%c0_340, %c2_341, %c3_342, %c0_343, %c0_344] : memref<1x4x4x4x8xf32, #tpu.memory_space<vmem>>, vector<1x1x1x4x8xf32>
    %464 = vector.shape_cast %463 : vector<1x1x1x4x8xf32> to vector<4x8xf32>
    %465 = vector.shape_cast %462 : vector<4x8xf32> to vector<1x1x1x4x8xf32>
    tpu.vector_store %arg6[%c0_340, %c2_341, %c3_342, %c0_343, %c0_344], %465 {strides = array<i32>} : memref<1x4x4x4x8xf32, #tpu.memory_space<vmem>>, vector<1x1x1x4x8xf32>,
    %466 = vector.extract_strided_slice %417 {offsets = [108, 0], sizes = [4, 8], strides = [1, 1]} : vector<130x8xf32> to vector<4x8xf32>
    %c0_345 = arith.constant 0 : index
    %c3_346 = arith.constant 3 : index
    %c0_347 = arith.constant 0 : index
    %c0_348 = arith.constant 0 : index
    %c0_349 = arith.constant 0 : index
    %467 = vector.load %arg6[%c0_345, %c3_346, %c0_347, %c0_348, %c0_349] : memref<1x4x4x4x8xf32, #tpu.memory_space<vmem>>, vector<1x1x1x4x8xf32>
    %468 = vector.shape_cast %467 : vector<1x1x1x4x8xf32> to vector<4x8xf32>
    %469 = vector.shape_cast %466 : vector<4x8xf32> to vector<1x1x1x4x8xf32>
    tpu.vector_store %arg6[%c0_345, %c3_346, %c0_347, %c0_348, %c0_349], %469 {strides = array<i32>} : memref<1x4x4x4x8xf32, #tpu.memory_space<vmem>>, vector<1x1x1x4x8xf32>,
    %470 = vector.extract_strided_slice %417 {offsets = [114, 0], sizes = [4, 8], strides = [1, 1]} : vector<130x8xf32> to vector<4x8xf32>
    %c0_350 = arith.constant 0 : index
    %c3_351 = arith.constant 3 : index
    %c1_352 = arith.constant 1 : index
    %c0_353 = arith.constant 0 : index
    %c0_354 = arith.constant 0 : index
    %471 = vector.load %arg6[%c0_350, %c3_351, %c1_352, %c0_353, %c0_354] : memref<1x4x4x4x8xf32, #tpu.memory_space<vmem>>, vector<1x1x1x4x8xf32>
    %472 = vector.shape_cast %471 : vector<1x1x1x4x8xf32> to vector<4x8xf32>
    %473 = vector.shape_cast %470 : vector<4x8xf32> to vector<1x1x1x4x8xf32>
    tpu.vector_store %arg6[%c0_350, %c3_351, %c1_352, %c0_353, %c0_354], %473 {strides = array<i32>} : memref<1x4x4x4x8xf32, #tpu.memory_space<vmem>>, vector<1x1x1x4x8xf32>,
    %474 = vector.extract_strided_slice %417 {offsets = [120, 0], sizes = [4, 8], strides = [1, 1]} : vector<130x8xf32> to vector<4x8xf32>
    %c0_355 = arith.constant 0 : index
    %c3_356 = arith.constant 3 : index
    %c2_357 = arith.constant 2 : index
    %c0_358 = arith.constant 0 : index
    %c0_359 = arith.constant 0 : index
    %475 = vector.load %arg6[%c0_355, %c3_356, %c2_357, %c0_358, %c0_359] : memref<1x4x4x4x8xf32, #tpu.memory_space<vmem>>, vector<1x1x1x4x8xf32>
    %476 = vector.shape_cast %475 : vector<1x1x1x4x8xf32> to vector<4x8xf32>
    %477 = vector.shape_cast %474 : vector<4x8xf32> to vector<1x1x1x4x8xf32>
    tpu.vector_store %arg6[%c0_355, %c3_356, %c2_357, %c0_358, %c0_359], %477 {strides = array<i32>} : memref<1x4x4x4x8xf32, #tpu.memory_space<vmem>>, vector<1x1x1x4x8xf32>,
    %478 = vector.extract_strided_slice %417 {offsets = [126, 0], sizes = [4, 8], strides = [1, 1]} : vector<130x8xf32> to vector<4x8xf32>
    %c0_360 = arith.constant 0 : index
    %c3_361 = arith.constant 3 : index
    %c3_362 = arith.constant 3 : index
    %c0_363 = arith.constant 0 : index
    %c0_364 = arith.constant 0 : index
    %479 = vector.load %arg6[%c0_360, %c3_361, %c3_362, %c0_363, %c0_364] : memref<1x4x4x4x8xf32, #tpu.memory_space<vmem>>, vector<1x1x1x4x8xf32>
    %480 = vector.shape_cast %479 : vector<1x1x1x4x8xf32> to vector<4x8xf32>
    %481 = vector.shape_cast %478 : vector<4x8xf32> to vector<1x1x1x4x8xf32>
    tpu.vector_store %arg6[%c0_360, %c3_361, %c3_362, %c0_363, %c0_364], %481 {strides = array<i32>} : memref<1x4x4x4x8xf32, #tpu.memory_space<vmem>>, vector<1x1x1x4x8xf32>,
    return
  }
  func.func @transform_0(%arg0: i32) -> (i32, i32, i32, i32, i32) {
    %c0_i32 = arith.constant 0 : i32
    %c0_i32_0 = arith.constant 0 : i32
    %c0_i32_1 = arith.constant 0 : i32
    %c0_i32_2 = arith.constant 0 : i32
    %c0_i32_3 = arith.constant 0 : i32
    return %arg0, %c0_i32, %c0_i32_0, %c0_i32_1, %c0_i32_2 : i32, i32, i32, i32, i32
  }
  func.func @transform_1(%arg0: i32) -> (i32, i32, i32) {
    %c0_i32 = arith.constant 0 : i32
    %c0_i32_0 = arith.constant 0 : i32
    %c0_i32_1 = arith.constant 0 : i32
    %c0_i32_2 = arith.constant 0 : i32
    return %c0_i32, %c0_i32_0, %c0_i32_1 : i32, i32, i32
  }
  func.func @transform_2(%arg0: i32) -> (i32, i32) {
    %c0_i32 = arith.constant 0 : i32
    %c0_i32_0 = arith.constant 0 : i32
    %c0_i32_1 = arith.constant 0 : i32
    return %c0_i32, %c0_i32_0 : i32, i32
  }
  func.func @transform_3(%arg0: i32) -> (i32, i32, i32) {
    %c0_i32 = arith.constant 0 : i32
    %c0_i32_0 = arith.constant 0 : i32
    %c0_i32_1 = arith.constant 0 : i32
    %c0_i32_2 = arith.constant 0 : i32
    return %c0_i32, %c0_i32_0, %c0_i32_1 : i32, i32, i32
  }
  func.func @transform_4(%arg0: i32) -> (i32, i32) {
    %c0_i32 = arith.constant 0 : i32
    %c0_i32_0 = arith.constant 0 : i32
    %c0_i32_1 = arith.constant 0 : i32
    return %c0_i32, %c0_i32_0 : i32, i32
  }
  func.func @transform_5(%arg0: i32) -> (i32, i32, i32, i32, i32) {
    %c0_i32 = arith.constant 0 : i32
    %c0_i32_0 = arith.constant 0 : i32
    %c0_i32_1 = arith.constant 0 : i32
    %c0_i32_2 = arith.constant 0 : i32
    %c0_i32_3 = arith.constant 0 : i32
    return %arg0, %c0_i32, %c0_i32_0, %c0_i32_1, %c0_i32_2 : i32, i32, i32, i32, i32
  }
}

</mosaic_0001>

<bundles_post_ra>
// kernel: down3d_forward.1
= control target key start
LH: loop header
LB: loop body
LE: loop exit
PB: predicated region body
PF: predicated region fallthrough
CT: control target
= control target key end

     0   :  { %10 = vsyncpa [#allocation5], 0  ;;  %s19221_s0 = inlined_call_operand.vmem [shape: f32[2,8,8,4,8], index: 0, kind: input, shape index: {}]   ;;  %s19222_s1 = inlined_call_operand.vmem [shape: bf16[27,4,8], index: 1, kind: input, shape index: {}]   ;;  %s19223_s2 = inlined_call_operand.vmem [shape: f32[1,8], index: 2, kind: input, shape index: {}]   ;;  %s19224_s3 = inlined_call_operand.vmem [shape: bf16[27,8,8], index: 3, kind: input, shape index: {}]   ;;  %s19225_s4 = inlined_call_operand.vmem [shape: f32[1,8], index: 4, kind: input, shape index: {}]   ;;  %s19226_s5 = inlined_call_operand.hbm [shape: f32[2,4,4,4,8], index: 5, kind: output, shape index: {}]  }
   0x1   :  { %12 = vsyncpa [#allocation5 + $0x1], 0  ;;  %s14202_s18 = smov 0   ;;  %s14204_s19 = smov 0  }
   0x2   :  { %s14206_s20 = smov 0   ;;  %s14208_s21 = smov 0  }
   0x3 LB: > { %s14223_s22 = sadd.s32 4294967295, %s14164_s21   ;;  %s10871_s23 = sadd.s32 4294967294, %s14164_s21   ;;  %s14164_s21 = sphi %s14208_s21, %s19280_s21   ;;  %s14160_s20 = sphi %s14206_s20, %s19279_s20   ;;  %s14156_s19 = sphi %s14204_s19, %s19278_s19   ;;  %s14152_s18 = sphi %s14202_s18, %s19277_s18  }
   0x4   : > { %s14227_s24 = sadd.s32 1, %s14164_s21   ;;  %s135_s25 = sadd.s32 1, %s14160_s20 }
   0x5   : > { %s132_s26 = ssub.s32 %s14164_s21, %s14227_s24  ;;  %p145_p0 = scmp.ne.s32.totalorder %s14160_s20, %s14156_s19 }
   0x6   : > { %p133_p1 = scmp.eq.s32.totalorder %s132_s26, 0  ;;  %p146_p2 = scmp.eq.s32.totalorder %s14223_s22, 1 }
   0x7   : > { %p151_p3 = scmp.ne.s32.totalorder %s14156_s19, %s14152_s18  ;;  %p152_p4 = scmp.eq.s32.totalorder %s10871_s23, 1 }
   0x8   : > { %s14238_s27 = scalar_select %p133_p1, %s14160_s20, %s135_s25  }
   0x9   : > { %p14240_p5 = por %p146_p2, %p145_p0  ;;  %p14244_p6 = por %p152_p4, %p151_p3 }
   0xa   : > { %p10874_p7 = scmp.ge.s32.totalorder %s14164_s21, 1  ;;  %p190_p8 = scmp.lt.s32.totalorder %s14164_s21, 3 }
   0xc   : > { %p191_p9 = pnand %p10874_p7, %p190_p8 }
   0xe   : > { %194 = sbr.rel (%p191_p9) target bundleno = 2596 (0xa24), region = 40 }
  0x15   : > { %p218_p10 = scmp.lt.s32.totalorder %s14223_s22, 1  ;;  %v728_v0 = vld [vmem:[%s19222_s1] sm:$0x3]  ;;  %vm830_vm0 = vcmask 1041408   ;;  %v19227_v1 = vmov 0.0   ;;  %vm656_vm1 = vcmask 31744  }
  0x16   : > { %12022 = vmatprep.subr.bf16.mxu1 %v19227_v1  ;;  %v954_v2 = vsel %vm830_vm0, %v728_v0, 0  ;;  %11984 = vmatprep.subr.bf16.mxu0 %v19227_v1  ;;  %vm14167_vm2 = vmmov 0   ;;  %662 = vst.msk [vmem:[#allocation2 + $0x28] sm:$0xff] %vm656_vm1, %v19227_v1  ;;  %657 = vst.msk [vmem:[#allocation2] sm:$0xff] %vm656_vm1, %v19227_v1  ;;  %s14168_s12 = smov 124   ;;  %vm684_vm4 = vcmask 27648  }
  0x17   : > { %s14258_s7 = scalar_select %p218_p10, %s14223_s22, 1  ;;  %12023 = vmatpush3.bf16.msra.mxu1 %v954_v2  ;;  %12024 = vmatprep.mubr.msk.bf16.mxu1 %vm14167_vm2, %v19227_v1  ;;  %658 = vst.msk [vmem:[#allocation2 + $0x8] sm:$0xff] %vm656_vm1, %v19227_v1  ;;  %659 = vst.msk [vmem:[#allocation2 + $0x10] sm:$0xff] %vm656_vm1, %v19227_v1  ;;  %v10878_v24 = vld [vmem:[%s19222_s1 + $0x2] sm:$0x3]  ;;  %vm1068_vm5 = vcmask 1046528  }
  0x18   : > { %660 = vst.msk [vmem:[#allocation2 + $0x18] sm:$0xff] %vm656_vm1, %v19227_v1  ;;  %661 = vst.msk [vmem:[#allocation2 + $0x20] sm:$0xff] %vm656_vm1, %v19227_v1  ;;  %11986 = vmatprep.mubr.msk.bf16.mxu0 %vm14167_vm2, %v19227_v1  ;;  %12098 = vmatprep.subr.bf16.mxu1 %v19227_v1  ;;  %v832_v28 = vsel %vm830_vm0, %v10878_v24, 0  ;;  %vm731_vm3 = vsmask.f32 7424  ;;  %vm5886_vm6 = vcmask 1043456  }
  0x19   : > { %663 = vst.msk [vmem:[#allocation2 + $0x30] sm:$0xff] %vm656_vm1, %v19227_v1  ;;  %664 = vst.msk [vmem:[#allocation2 + $0x38] sm:$0xff] %vm656_vm1, %v19227_v1  ;;  %s11442_s8 = sshll.u32 %s14258_s7, 8  ;;  %11985 = vmatpush3.bf16.msra.mxu0 %v832_v28  ;;  %v10897_v50 = vld [vmem:[%s19222_s1 + $0x4] sm:$0x3]  ;;  %vm5705_vm7 = vcmask 64512  }
  0x1a   : > { %665 = vst.msk [vmem:[#allocation2 + $0x40] sm:$0xff] %vm656_vm1, %v19227_v1  ;;  %666 = vst.msk [vmem:[#allocation2 + $0x48] sm:$0xff] %vm656_vm1, %v19227_v1  ;;  %s14323_s11 = scalar_lea.vmem %s19221_s0, %s11442_s8  ;;  %12060 = vmatprep.subr.bf16.mxu0 %v19227_v1  ;;  %v1114_v51 = vsel %vm830_vm0, %v10897_v50, 0  ;;  %vm5733_vm8 = vcmask 60416   ;;  %vm5735_vm9 = vcmask 64518   ;;  %vm5737_vm10 = vcmask 58368  }
  0x1b   : > { %667 = vst.msk [vmem:[#allocation2 + $0x50] sm:$0xff] %vm656_vm1, %v19227_v1  ;;  %668 = vst.msk [vmem:[#allocation2 + $0x58] sm:$0xff] %vm656_vm1, %v19227_v1  ;;  %v14326_v3 = vld [vmem:[%s14323_s11 + $0x20] sm:$0xf]  ;;  %v14336_v5 = vld [vmem:[%s14323_s11 + $0x24] sm:$0xf] }
  0x1c   : > { %669 = vst.msk [vmem:[#allocation2 + $0x60] sm:$0xff] %vm656_vm1, %v19227_v1  ;;  %670 = vst.msk [vmem:[#allocation2 + $0x68] sm:$0xff] %vm656_vm1, %v19227_v1  ;;  %v14329_v4 = vld [vmem:[%s14323_s11] sm:$0xf]  ;;  %368 = vrot.lane.b32.xlu1 %v14326_v3, %s14168_s12  ;;  %v14339_v6 = vld [vmem:[%s14323_s11 + $0x4] sm:$0xf] }
  0x1d   : > { %671 = vst.msk [vmem:[#allocation2 + $0x70] sm:$0xff] %vm656_vm1, %v19227_v1  ;;  %672 = vst.msk [vmem:[#allocation2 + $0x78] sm:$0xff] %vm656_vm1, %v19227_v1  ;;  %352 = vrot.lane.b32.xlu0 %v14329_v4, %s14168_s12  ;;  %v14346_v7 = vld [vmem:[%s14323_s11 + $0xc] sm:$0xf]  ;;  %v14349_v8 = vld [vmem:[%s14323_s11 + $0x8] sm:$0xf] }
  0x1e   : > { %673 = vst.msk [vmem:[#allocation2 + $0x80] sm:$0xff] %vm656_vm1, %v19227_v1  ;;  %674 = vst.msk [vmem:[#allocation2 + $0x88] sm:$0xff] %vm656_vm1, %v19227_v1  ;;  %v702_v9 = vld [vmem:[#allocation2] sm:$0xff]  ;;  %v703_v10 = vld [vmem:[#allocation2 + $0x8] sm:$0xff]  ;;  %vm5739_vm11 = vcmask 64516   ;;  %vm5741_vm12 = vcmask 62466  }
  0x1f   : > { %675 = vst.msk [vmem:[#allocation2 + $0x90] sm:$0xff] %vm656_vm1, %v19227_v1  ;;  %676 = vst.msk [vmem:[#allocation2 + $0x98] sm:$0xff] %vm656_vm1, %v19227_v1  ;;  %v14356_v11 = vld [vmem:[%s14323_s11 + $0x14] sm:$0xf]  ;;  %v14359_v12 = vld [vmem:[%s14323_s11 + $0x10] sm:$0xf]  ;;  %v14361_v13 = vpack.c.bf16 %v703_v10, %v702_v9 }
  0x20   : > { %677 = vst.msk [vmem:[#allocation2 + $0xa0] sm:$0xff] %vm656_vm1, %v19227_v1  ;;  %678 = vst.msk [vmem:[#allocation2 + $0xa8] sm:$0xff] %vm656_vm1, %v19227_v1  ;;  %370 = vrot.lane.b32.xlu1 %v14336_v5, %s14168_s12  ;;  %v14370_v14 = vld [vmem:[%s14323_s11 + $0x1c] sm:$0xf]  ;;  %v14373_v15 = vld [vmem:[%s14323_s11 + $0x18] sm:$0xf] }
  0x21   : > { %679 = vst.msk [vmem:[#allocation2 + $0xb0] sm:$0xff] %vm656_vm1, %v19227_v1  ;;  %680 = vst.msk [vmem:[#allocation2 + $0xb8] sm:$0xff] %vm656_vm1, %v19227_v1  ;;  %354 = vrot.lane.b32.xlu0 %v14339_v6, %s14168_s12  ;;  %12025 = vmatmul.mubr.msk.bf16.vlgmr.msra.gmra.mrb[0].mxu1 %vm656_vm1, %v14361_v13  ;;  %v704_v16 = vld [vmem:[#allocation2 + $0x10] sm:$0xff]  ;;  %v705_v17 = vld [vmem:[#allocation2 + $0x18] sm:$0xff]  ;;  %v735_v18 = vshll.u32 %v14361_v13, 16  ;;  %v733_v22 = vshrl.u32 %v14361_v13, 16 }
  0x22   : > { %681 = vst.msk [vmem:[#allocation2 + $0xc0] sm:$0xff] %vm656_vm1, %v19227_v1  ;;  %682 = vst.msk [vmem:[#allocation2 + $0xc8] sm:$0xff] %vm656_vm1, %v19227_v1  ;;  %12028 = vmatprep.mubr.msk.bf16.mxu1 %vm14167_vm2, %v19227_v1  ;;  %v14383_v19 = vld [vmem:[%s14323_s11 + $0x2c] sm:$0xf]  ;;  %v14386_v20 = vld [vmem:[%s14323_s11 + $0x28] sm:$0xf]  ;;  %v14388_v21 = vpack.c.bf16 %v705_v17, %v704_v16 }
  0x23   : > { %683 = vst.msk [vmem:[#allocation2 + $0xd0] sm:$0xff] %vm656_vm1, %v19227_v1  ;;  %19246 = vst [vmem:[#allocation7_spill] sm:$0xff] %v14361_v13  ;;  %v14398_v23 = vld [vmem:[%s14323_s11 + $0x34] sm:$0xf]  ;;  %v737_v25 = vrot.slane %v735_v18, 1  ;;  %s215_s9 = sand.u32 1, %s14156_s19  }
  0x24   : > { %358 = vrot.lane.b32.xlu1 %v14346_v7, %s14168_s12  ;;  %v740_v26 = vshll.u32 %v14388_v21, 16  ;;  %v14405_v27 = vld [vmem:[%s14323_s11 + $0x30] sm:$0xf]  ;;  %v744_v29 = vshrl.u32 %v14388_v21, 16  ;;  %v14420_v34 = vld [vmem:[%s14323_s11 + $0x3c] sm:$0xf] }
  0x25   : > { %356 = vrot.lane.b32.xlu0 %v14349_v8, %s14168_s12  ;;  %v738_v30 = vor.u32 %v737_v25, %v733_v22  ;;  %v14423_v35 = vld [vmem:[%s14323_s11 + $0x38] sm:$0xf]  ;;  %v14433_v36 = vld [vmem:[%s14323_s11 + $0x44] sm:$0xf]  ;;  %v14436_v37 = vld [vmem:[%s14323_s11 + $0x40] sm:$0xf] }
  0x26   : > { %v742_v31 = vrot.slane %v740_v26, 1  ;;  %v14443_v38 = vld [vmem:[%s14323_s11 + $0x64] sm:$0xf]  ;;  %v14446_v39 = vld [vmem:[%s14323_s11 + $0x60] sm:$0xf]  ;;  %s11443_s14 = sshll.u32 %s14223_s22, 10 }
  0x27   : > { %v14453_v40 = vld [vmem:[%s14323_s11 + $0x4c] sm:$0xf]  ;;  %v14456_v41 = vld [vmem:[%s14323_s11 + $0x48] sm:$0xf]  ;;  %v14463_v42 = vld [vmem:[%s14323_s11 + $0x54] sm:$0xf]  ;;  %s19172_s23 = scalar_lea.hbm %s19226_s5, %s11443_s14 }
  0x28   : > { %362 = vrot.lane.b32.xlu1 %v14356_v11, %s14168_s12  ;;  %v743_v32 = vsel %vm731_vm3, %v738_v30, %v742_v31  ;;  %v14417_v33 = vor.u32 %v744_v29, %v742_v31  ;;  %v14466_v43 = vld [vmem:[%s14323_s11 + $0x50] sm:$0xf]  ;;  %v14473_v44 = vld [vmem:[%s14323_s11 + $0x6c] sm:$0xf]  ;;  %v14476_v45 = vld [vmem:[%s14323_s11 + $0x68] sm:$0xf] }
  0x29   : > { %360 = vrot.lane.b32.xlu0 %v14359_v12, %s14168_s12  ;;  %12029 = vmatmul.mubr.msk.bf16.gmra.mrb[4].mxu1 %vm656_vm1, %v14388_v21  ;;  %v14483_v46 = vld [vmem:[%s14323_s11 + $0x74] sm:$0xf]  ;;  %v14486_v47 = vld [vmem:[%s14323_s11 + $0x70] sm:$0xf]  ;;  %v14493_v48 = vld [vmem:[%s14323_s11 + $0x5c] sm:$0xf] }
  0x2a   : > { %12032 = vmatprep.mubr.msk.bf16.mxu1 %vm14167_vm2, %v19227_v1  ;;  %11987 = vmatmul.mubr.msk.bf16.vlgmr.msra.gmra.mrb[0].mxu0 %vm656_vm1, %v743_v32  ;;  %v14496_v49 = vld [vmem:[%s14323_s11 + $0x58] sm:$0xf]  ;;  %v14507_v52 = vld [vmem:[%s14323_s11 + $0x7c] sm:$0xf]  ;;  %v14518_v54 = vld [vmem:[%s14323_s11 + $0x84] sm:$0xf] }
  0x2b   : > { %11990 = vmatprep.mubr.msk.bf16.mxu0 %vm14167_vm2, %v19227_v1  ;;  %12061 = vmatpush3.bf16.msra.mxu0 %v1114_v51  ;;  %v14510_v53 = vld [vmem:[%s14323_s11 + $0x78] sm:$0xf]  ;;  %v14521_v55 = vld [vmem:[%s14323_s11 + $0x80] sm:$0xf]  ;;  %v14528_v56 = vld [vmem:[%s14323_s11 + $0x8c] sm:$0xf] }
  0x2c   : > { %366 = vrot.lane.b32.xlu1 %v14370_v14, %s14168_s12  ;;  %12136 = vmatprep.subr.bf16.mxu0 %v19227_v1  ;;  %v14531_v57 = vld [vmem:[%s14323_s11 + $0x88] sm:$0xf]  ;;  %v14538_v58 = vld [vmem:[%s14323_s11 + $0x94] sm:$0xf]  ;;  %v14541_v59 = vld [vmem:[%s14323_s11 + $0x90] sm:$0xf] }
  0x2d   : > { %364 = vrot.lane.b32.xlu0 %v14373_v15, %s14168_s12  ;;  %v14548_v60 = vld [vmem:[%s14323_s11 + $0xa4] sm:$0xf]  ;;  %v14551_v61 = vld [vmem:[%s14323_s11 + $0xa0] sm:$0xf]  ;;  %v14558_v62 = vld [vmem:[%s14323_s11 + $0xac] sm:$0xf] }
  0x2e   : > { %v14561_v63 = vld [vmem:[%s14323_s11 + $0xa8] sm:$0xf]  ;;  %v14568_v0 = vld [vmem:[%s14323_s11 + $0xb4] sm:$0xf]  ;;  %v14571_v2 = vld [vmem:[%s14323_s11 + $0xb0] sm:$0xf] }
  0x2f   : > { %v14578_v9 = vld [vmem:[%s14323_s11 + $0x9c] sm:$0xf]  ;;  %v14581_v10 = vld [vmem:[%s14323_s11 + $0x98] sm:$0xf]  ;;  %v14598_v18 = vld [vmem:[%s14323_s11 + $0xc4] sm:$0xf] }
  0x30   : > { %374 = vrot.lane.b32.xlu1 %v14383_v19, %s14168_s12  ;;  %v14588_v16 = vld [vmem:[%s14323_s11 + $0xbc] sm:$0xf]  ;;  %v14591_v17 = vld [vmem:[%s14323_s11 + $0xb8] sm:$0xf]  ;;  %19249 = vst [vmem:[#allocation10_spill] sm:$0xff] %v14598_v18  ;;  %s19180_s22 = scalar_lea.sflag [#allocation5], %s215_s9 }
  0x31   : > { %372 = vrot.lane.b32.xlu0 %v14386_v20, %s14168_s12  ;;  %19247 = vst [vmem:[#allocation8_spill] sm:$0xff] %v14588_v16  ;;  %19248 = vst [vmem:[#allocation9_spill] sm:$0xff] %v14591_v17  ;;  %v14601_v22 = vld [vmem:[%s14323_s11 + $0xc0] sm:$0xf]  ;;  %v14608_v24 = vld [vmem:[%s14323_s11 + $0xcc] sm:$0xf] }
  0x32   : > { %19250 = vst [vmem:[#allocation11_spill] sm:$0xff] %v14601_v22  ;;  %19251 = vst [vmem:[#allocation12_spill] sm:$0xff] %v14608_v24  ;;  %v14611_v25 = vld [vmem:[%s14323_s11 + $0xc8] sm:$0xf]  ;;  %v10907_v26 = vld [vmem:[%s19222_s1 + $0x6] sm:$0x3] }
  0x33   : > { %19252 = vst [vmem:[#allocation13_spill] sm:$0xff] %v14611_v25  ;;  %v1287_v28 = vsel %vm830_vm0, %v10907_v26, 0  ;;  %v14622_v29 = vld [vmem:[%s14323_s11 + $0xd4] sm:$0xf]  ;;  %v14625_v30 = vld [vmem:[%s14323_s11 + $0xd0] sm:$0xf] }
  0x34   : > { %378 = vrot.lane.b32.xlu1 %v14398_v23, %s14168_s12  ;;  %19253 = vst [vmem:[#allocation14_spill] sm:$0xff] %v14622_v29  ;;  %19254 = vst [vmem:[#allocation15_spill] sm:$0xff] %v14625_v30  ;;  %12099 = vmatpush3.bf16.msra.mxu1 %v1287_v28  ;;  %v14633_v31 = vld [vmem:[%s14323_s11 + $0xe4] sm:$0xf]  ;;  %v14636_v32 = vld [vmem:[%s14323_s11 + $0xe0] sm:$0xf] }
  0x35   : > { %376 = vrot.lane.b32.xlu0 %v14405_v27, %s14168_s12  ;;  %12174 = vmatprep.subr.bf16.mxu1 %v19227_v1  ;;  %19255 = vst [vmem:[#allocation16_spill] sm:$0xff] %v14633_v31  ;;  %19256 = vst [vmem:[#allocation17_spill] sm:$0xff] %v14636_v32  ;;  %v14643_v50 = vld [vmem:[%s14323_s11 + $0xec] sm:$0xf]  ;;  %v14646_v51 = vld [vmem:[%s14323_s11 + $0xe8] sm:$0xf] }
  0x36   : > { %19257 = vst [vmem:[#allocation18_spill] sm:$0xff] %v14643_v50  ;;  %19258 = vst [vmem:[#allocation19_spill] sm:$0xff] %v14646_v51  ;;  %v14653_v26 = vld [vmem:[%s14323_s11 + $0xf4] sm:$0xf]  ;;  %v14656_v28 = vld [vmem:[%s14323_s11 + $0xf0] sm:$0xf] }
  0x37   : > { %19259 = vst [vmem:[#allocation20_spill] sm:$0xff] %v14653_v26  ;;  %19260 = vst [vmem:[#allocation21_spill] sm:$0xff] %v14656_v28  ;;  %s14169_s26 = smov [#allocation4]  }
  0x38   : > { %382 = vrot.lane.b32.xlu1 %v14420_v34, %s14168_s12  ;;  %s14106_s30 = sshll.u32 %s14169_s26, 4  ;;  %s14107_s30 = int_to_ptr.vmem [resolvable:$false] %s14106_s30 }
  0x39   : > { %380 = vrot.lane.b32.xlu0 %v14423_v35, %s14168_s12  ;;  %s14108_s6 = scalar_lea.vmem %s14107_s30, 2048 }
  0x3c   : > { %386 = vrot.lane.b32.xlu1 %v14433_v36, %s14168_s12 }
  0x3d   : > { %384 = vrot.lane.b32.xlu0 %v14436_v37, %s14168_s12 }
  0x40   : > { %402 = vrot.lane.b32.xlu1 %v14443_v38, %s14168_s12 }
  0x41   : > { %400 = vrot.lane.b32.xlu0 %v14446_v39, %s14168_s12 }
  0x44   : > { %390 = vrot.lane.b32.xlu1 %v14453_v40, %s14168_s12 }
  0x45   : > { %388 = vrot.lane.b32.xlu0 %v14456_v41, %s14168_s12 }
  0x48   : > { %394 = vrot.lane.b32.xlu1 %v14463_v42, %s14168_s12 }
  0x49   : > { %392 = vrot.lane.b32.xlu0 %v14466_v43, %s14168_s12 }
  0x4c   : > { %406 = vrot.lane.b32.xlu1 %v14473_v44, %s14168_s12 }
  0x4d   : > { %404 = vrot.lane.b32.xlu0 %v14476_v45, %s14168_s12 }
  0x50   : > { %410 = vrot.lane.b32.xlu1 %v14483_v46, %s14168_s12 }
  0x51   : > { %408 = vrot.lane.b32.xlu0 %v14486_v47, %s14168_s12 }
  0x54   : > { %398 = vrot.lane.b32.xlu1 %v14493_v48, %s14168_s12 }
  0x55   : > { %396 = vrot.lane.b32.xlu0 %v14496_v49, %s14168_s12 }
  0x58   : > { %414 = vrot.lane.b32.xlu1 %v14507_v52, %s14168_s12 }
  0x59   : > { %412 = vrot.lane.b32.xlu0 %v14510_v53, %s14168_s12 }
  0x5c   : > { %418 = vrot.lane.b32.xlu1 %v14518_v54, %s14168_s12 }
  0x5d   : > { %416 = vrot.lane.b32.xlu0 %v14521_v55, %s14168_s12 }
  0x60   : > { %422 = vrot.lane.b32.xlu1 %v14528_v56, %s14168_s12 }
  0x61   : > { %420 = vrot.lane.b32.xlu0 %v14531_v57, %s14168_s12 }
  0x64   : > { %426 = vrot.lane.b32.xlu1 %v14538_v58, %s14168_s12 }
  0x65   : > { %424 = vrot.lane.b32.xlu0 %v14541_v59, %s14168_s12 }
  0x68   : > { %434 = vrot.lane.b32.xlu1 %v14548_v60, %s14168_s12 }
  0x69   : > { %432 = vrot.lane.b32.xlu0 %v14551_v61, %s14168_s12 }
  0x6c   : > { %438 = vrot.lane.b32.xlu1 %v14558_v62, %s14168_s12 }
  0x6d   : > { %436 = vrot.lane.b32.xlu0 %v14561_v63, %s14168_s12 }
  0x70   : > { %442 = vrot.lane.b32.xlu1 %v14568_v0, %s14168_s12 }
  0x71   : > { %440 = vrot.lane.b32.xlu0 %v14571_v2, %s14168_s12 }
  0x74   : > { %430 = vrot.lane.b32.xlu1 %v14578_v9, %s14168_s12 }
  0x75   : > { %428 = vrot.lane.b32.xlu0 %v14581_v10, %s14168_s12 }
  0x78   : > { %446 = vrot.lane.b32.xlu1 %v14588_v16, %s14168_s12 }
  0x79   : > { %444 = vrot.lane.b32.xlu0 %v14591_v17, %s14168_s12 }
  0x7c   : > { %450 = vrot.lane.b32.xlu1 %v14598_v18, %s14168_s12 }
  0x7d   : > { %448 = vrot.lane.b32.xlu0 %v14601_v22, %s14168_s12 }
  0x80   : > { %454 = vrot.lane.b32.xlu1 %v14608_v24, %s14168_s12 }
  0x81   : > { %452 = vrot.lane.b32.xlu0 %v14611_v25, %s14168_s12 }
  0x84   : > { %458 = vrot.lane.b32.xlu1 %v14622_v29, %s14168_s12 }
  0x85   : > { %456 = vrot.lane.b32.xlu0 %v14625_v30, %s14168_s12 }
  0x88   : > { %466 = vrot.lane.b32.xlu1 %v14633_v31, %s14168_s12 }
  0x89   : > { %464 = vrot.lane.b32.xlu0 %v14636_v32, %s14168_s12 }
  0x8c   : > { %470 = vrot.lane.b32.xlu1 %v14643_v50, %s14168_s12 }
  0x8d   : > { %468 = vrot.lane.b32.xlu0 %v14646_v51, %s14168_s12 }
  0x8e   : > { %v369_v1 = vpop.permute.xlu1 %368 }
  0x8f   : > { %v353_v13 = vpop.permute.xlu0 %352  ;;  %v552_v30 = vmax.f32 %v14326_v3, %v369_v1  ;;  %v706_v3 = vld [vmem:[#allocation2 + $0x20] sm:$0xff] }
  0x90   : > { %474 = vrot.lane.b32.xlu1 %v14653_v26, %s14168_s12  ;;  %v544_v29 = vmax.f32 %v14329_v4, %v353_v13 }
  0x91   : > { %472 = vrot.lane.b32.xlu0 %v14656_v28, %s14168_s12 }
  0x92   : > { %v371_v50 = vpop.permute.xlu1 %370  ;;  %v608_v32 = vmax.f32 %v544_v29, %v552_v30 }
  0x93   : > { %v355_v25 = vpop.permute.xlu0 %354  ;;  %v553_v51 = vmax.f32 %v14336_v5, %v371_v50 }
  0x94   : > { %v545_v24 = vmax.f32 %v14339_v6, %v355_v25 }
  0x96   : > { %v609_v31 = vmax.f32 %v545_v24, %v553_v51  ;;  %v359_v22 = vpop.permute.xlu1 %358  ;;  %v1070_v24 = vrot.slane %v14388_v21, 1 }
  0x97   : > { %v357_v18 = vpop.permute.xlu0 %356  ;;  %v547_v5 = vmax.f32 %v14346_v7, %v359_v22 }
  0x98   : > { %v640_v17 = vmax.f32 %v608_v32, %v609_v31  ;;  %v546_v25 = vmax.f32 %v14349_v8, %v357_v18  ;;  %v19261_v31 = vmov 0.0  }
  0x99   : > { %5710 = vst.msk [vmem:[#allocation3 + $0x20] sm:$0xff] %vm5705_vm7, %v19261_v31  ;;  %5711 = vst.msk [vmem:[#allocation3 + $0x28] sm:$0xff] %vm5705_vm7, %v19261_v31 }
  0x9a   : > { %685 = vst.msk [vmem:[#allocation2 + $0x2b] sm:$0xf] %vm684_vm4, %v640_v17  ;;  %v363_v26 = vpop.permute.xlu1 %362 }
  0x9b   : > { %v361_v28 = vpop.permute.xlu0 %360  ;;  %5712 = vst.msk [vmem:[#allocation3 + $0x30] sm:$0xff] %vm5705_vm7, %v19261_v31  ;;  %5706 = vst.msk [vmem:[#allocation3] sm:$0xff] %vm5705_vm7, %v19261_v31 }
  0x9c   : > { %v548_v8 = vmax.f32 %v14359_v12, %v361_v28  ;;  %5707 = vst.msk [vmem:[#allocation3 + $0x8] sm:$0xff] %vm5705_vm7, %v19261_v31  ;;  %5708 = vst.msk [vmem:[#allocation3 + $0x10] sm:$0xff] %vm5705_vm7, %v19261_v31 }
  0x9d   : > { %5709 = vst.msk [vmem:[#allocation3 + $0x18] sm:$0xff] %vm5705_vm7, %v19261_v31  ;;  %5713 = vst.msk [vmem:[#allocation3 + $0x38] sm:$0xff] %vm5705_vm7, %v19261_v31 }
  0x9e   : > { %v367_v16 = vpop.permute.xlu1 %366  ;;  %5714 = vst.msk [vmem:[#allocation3 + $0x40] sm:$0xff] %vm5705_vm7, %v19261_v31  ;;  %5715 = vst.msk [vmem:[#allocation3 + $0x48] sm:$0xff] %vm5705_vm7, %v19261_v31 }
  0x9f   : > { %v365_v1 = vpop.permute.xlu0 %364  ;;  %5716 = vst.msk [vmem:[#allocation3 + $0x50] sm:$0xff] %vm5705_vm7, %v19261_v31  ;;  %5717 = vst.msk [vmem:[#allocation3 + $0x58] sm:$0xff] %vm5705_vm7, %v19261_v31 }
  0xa0   : > { %5718 = vst.msk [vmem:[#allocation3 + $0x60] sm:$0xff] %vm5705_vm7, %v19261_v31  ;;  %5719 = vst.msk [vmem:[#allocation3 + $0x68] sm:$0xff] %vm5705_vm7, %v19261_v31 }
  0xa1   : > { %v707_v4 = vld [vmem:[#allocation2 + $0x28] sm:$0xff]  ;;  %5720 = vst.msk [vmem:[#allocation3 + $0x70] sm:$0xff] %vm5705_vm7, %v19261_v31  ;;  %5721 = vst.msk [vmem:[#allocation3 + $0x78] sm:$0xff] %vm5705_vm7, %v19261_v31 }
  0xa2   : > { %v14667_v13 = vpack.c.bf16 %v707_v4, %v706_v3  ;;  %v375_v50 = vpop.permute.xlu1 %374  ;;  %v549_v3 = vmax.f32 %v14356_v11, %v363_v26  ;;  %v551_v26 = vmax.f32 %v14370_v14, %v367_v16  ;;  %5722 = vst.msk [vmem:[#allocation3 + $0x80] sm:$0xff] %vm5705_vm7, %v19261_v31  ;;  %5723 = vst.msk [vmem:[#allocation3 + $0x88] sm:$0xff] %vm5705_vm7, %v19261_v31 }
  0xa3   : > { %v373_v6 = vpop.permute.xlu0 %372  ;;  %v555_v29 = vmax.f32 %v14383_v19, %v375_v50  ;;  %5724 = vst.msk [vmem:[#allocation3 + $0x90] sm:$0xff] %vm5705_vm7, %v19261_v31  ;;  %5725 = vst.msk [vmem:[#allocation3 + $0x98] sm:$0xff] %vm5705_vm7, %v19261_v31 }
  0xa4   : > { %v554_v17 = vmax.f32 %v14386_v20, %v373_v6  ;;  %12033 = vmatmul.mubr.msk.bf16.gmra.mrb[8].mxu1 %vm656_vm1, %v14667_v13  ;;  %v748_v30 = vshll.u32 %v14667_v13, 16  ;;  %v1072_v7 = vrot.slane %v14667_v13, 1  ;;  %5726 = vst.msk [vmem:[#allocation3 + $0xa0] sm:$0xff] %vm5705_vm7, %v19261_v31  ;;  %5727 = vst.msk [vmem:[#allocation3 + $0xa8] sm:$0xff] %vm5705_vm7, %v19261_v31 }
  0xa5   : > { %12036 = vmatprep.mubr.msk.bf16.mxu1 %vm14167_vm2, %v19261_v31  ;;  %v611_v22 = vmax.f32 %v547_v5, %v555_v29  ;;  %5728 = vst.msk [vmem:[#allocation3 + $0xb0] sm:$0xff] %vm5705_vm7, %v19261_v31  ;;  %5729 = vst.msk [vmem:[#allocation3 + $0xb8] sm:$0xff] %vm5705_vm7, %v19261_v31 }
  0xa6   : > { %v610_v32 = vmax.f32 %v546_v25, %v554_v17  ;;  %v750_v51 = vrot.slane %v748_v30, 1  ;;  %v379_v19 = vpop.permute.xlu1 %378  ;;  %v14687_v20 = vsel %vm1068_vm5, %v1070_v24, %v1072_v7  ;;  %5730 = vst.msk [vmem:[#allocation3 + $0xc0] sm:$0xff] %vm5705_vm7, %v19261_v31  ;;  %5731 = vst.msk [vmem:[#allocation3 + $0xc8] sm:$0xff] %vm5705_vm7, %v19261_v31 }
  0xa7   : > { %v377_v18 = vpop.permute.xlu0 %376  ;;  %v557_v50 = vmax.f32 %v14398_v23, %v379_v19  ;;  %v550_v23 = vmax.f32 %v14373_v15, %v365_v1  ;;  %5732 = vst.msk [vmem:[#allocation3 + $0xd0] sm:$0xff] %vm5705_vm7, %v19261_v31 }
  0xa8   : > { %v641_v4 = vmax.f32 %v610_v32, %v611_v22  ;;  %v556_v5 = vmax.f32 %v14405_v27, %v377_v18  ;;  %v751_v6 = vsel %vm731_vm3, %v14417_v33, %v750_v51 }
  0xa9   : > { %11991 = vmatmul.mubr.msk.bf16.gmra.mrb[4].mxu0 %vm656_vm1, %v751_v6  ;;  %v613_v11 = vmax.f32 %v549_v3, %v557_v50 }
  0xaa   : > { %686 = vst.msk [vmem:[#allocation2 + $0x31] sm:$0xf] %vm684_vm4, %v641_v4  ;;  %v612_v12 = vmax.f32 %v548_v8, %v556_v5  ;;  %11994 = vmatprep.mubr.msk.bf16.mxu0 %vm14167_vm2, %v19261_v31  ;;  %v383_v28 = vpop.permute.xlu1 %382  ;;  %v14702_v8 = vld [vmem:[#allocation2 + $0x24] sm:$0xff] }
  0xab   : > { %v381_v25 = vpop.permute.xlu0 %380  ;;  %v559_v27 = vmax.f32 %v14420_v34, %v383_v28 }
  0xac   : > { %v642_v29 = vmax.f32 %v612_v12, %v613_v11  ;;  %v558_v33 = vmax.f32 %v14423_v35, %v381_v25 }
  0xad   : > { %v615_v17 = vmax.f32 %v551_v26, %v559_v27 }
  0xae   : > { %687 = vst.msk [vmem:[#allocation2 + $0x37] sm:$0xf] %vm684_vm4, %v642_v29  ;;  %v614_v30 = vmax.f32 %v550_v23, %v558_v33  ;;  %v387_v22 = vpop.permute.xlu1 %386 }
  0xaf   : > { %v385_v32 = vpop.permute.xlu0 %384  ;;  %v561_v35 = vmax.f32 %v14433_v36, %v387_v22 }
  0xb0   : > { %v643_v3 = vmax.f32 %v614_v30, %v615_v17  ;;  %v560_v16 = vmax.f32 %v14436_v37, %v385_v32 }
  0xb1   : > { %v14704_v19 = vld [vmem:[#allocation2 + $0x2c] sm:$0xff] }
  0xb2   : > { %688 = vst.msk [vmem:[#allocation2 + $0x3d] sm:$0xf] %vm684_vm4, %v643_v3  ;;  %v14709_v14 = vpack.c.bf16 %v14704_v19, %v14702_v8  ;;  %v403_v15 = vpop.permute.xlu1 %402 }
  0xb3   : > { %v401_v34 = vpop.permute.xlu0 %400  ;;  %v569_v1 = vmax.f32 %v14443_v38, %v403_v15 }
  0xb4   : > { %v568_v18 = vmax.f32 %v14446_v39, %v401_v34  ;;  %v752_v39 = vshrl.u32 %v14667_v13, 16 }
  0xb5   : > { %v617_v4 = vmax.f32 %v561_v35, %v569_v1  ;;  %v708_v12 = vld [vmem:[#allocation2 + $0x30] sm:$0xff]  ;;  %v14738_v1 = vld [vmem:[#allocation2 + $0x44] sm:$0xff] }
  0xb6   : > { %v616_v50 = vmax.f32 %v560_v16, %v568_v18  ;;  %v391_v5 = vpop.permute.xlu1 %390  ;;  %v14716_v25 = vld [vmem:[#allocation2 + $0x34] sm:$0xff]  ;;  %v754_v33 = vor.u32 %v752_v39, %v750_v51 }
  0xb7   : > { %v389_v6 = vpop.permute.xlu0 %388  ;;  %v563_v30 = vmax.f32 %v14453_v40, %v391_v5 }
  0xb8   : > { %v644_v11 = vmax.f32 %v616_v50, %v617_v4  ;;  %v562_v15 = vmax.f32 %v14456_v41, %v389_v6 }
  0xb9   : > { %v709_v26 = vld [vmem:[#allocation2 + $0x38] sm:$0xff]  ;;  %v710_v40 = vld [vmem:[#allocation2 + $0x40] sm:$0xff] }
  0xba   : > { %689 = vst.msk [vmem:[#allocation2 + $0x4f] sm:$0xf] %vm684_vm4, %v644_v11  ;;  %v722_v28 = vpack.c.bf16 %v709_v26, %v708_v12  ;;  %v14718_v23 = vld [vmem:[#allocation2 + $0x3c] sm:$0xff]  ;;  %v395_v36 = vpop.permute.xlu1 %394 }
  0xbb   : > { %v393_v37 = vpop.permute.xlu0 %392  ;;  %v14722_v38 = vpack.c.bf16 %v14718_v23, %v14716_v25 }
  0xbc   : > { %12037 = vmatmul.mubr.msk.bf16.gmra.mrb[12].mxu1 %vm656_vm1, %v722_v28  ;;  %v756_v29 = vshll.u32 %v722_v28, 16  ;;  %v1074_v27 = vrot.slane %v722_v28, 1  ;;  %v760_v6 = vshrl.u32 %v722_v28, 16 }
  0xbd   : > { %12040 = vmatprep.mubr.msk.bf16.mxu1 %vm14167_vm2, %v19261_v31 }
  0xbe   : > { %v758_v17 = vrot.slane %v756_v29, 1  ;;  %v407_v22 = vpop.permute.xlu1 %406  ;;  %v14732_v3 = vsel %vm1068_vm5, %v1072_v7, %v1074_v27 }
  0xbf   : > { %v405_v32 = vpop.permute.xlu0 %404  ;;  %v571_v34 = vmax.f32 %v14473_v44, %v407_v22  ;;  %v565_v44 = vmax.f32 %v14463_v42, %v395_v36 }
  0xc0   : > { %v570_v35 = vmax.f32 %v14476_v45, %v405_v32  ;;  %v759_v16 = vsel %vm731_vm3, %v754_v33, %v758_v17  ;;  %v564_v45 = vmax.f32 %v14466_v43, %v393_v37  ;;  %v762_v43 = vor.u32 %v760_v6, %v758_v17 }
  0xc1   : > { %11995 = vmatmul.mubr.msk.bf16.gmra.mrb[8].mxu0 %vm656_vm1, %v759_v16  ;;  %v711_v51 = vld [vmem:[#allocation2 + $0x48] sm:$0xff]  ;;  %v619_v13 = vmax.f32 %v563_v30, %v571_v34 }
  0xc2   : > { %v14741_v18 = vld [vmem:[#allocation2 + $0x4c] sm:$0xff]  ;;  %v618_v4 = vmax.f32 %v562_v15, %v570_v35  ;;  %v723_v7 = vpack.c.bf16 %v711_v51, %v710_v40  ;;  %11998 = vmatprep.mubr.msk.bf16.mxu0 %vm14167_vm2, %v19261_v31  ;;  %v411_v50 = vpop.permute.xlu1 %410 }
  0xc3   : > { %v14747_v41 = vpack.c.bf16 %v14741_v18, %v14738_v1  ;;  %v409_v5 = vpop.permute.xlu0 %408  ;;  %v573_v12 = vmax.f32 %v14483_v46, %v411_v50 }
  0xc4   : > { %v645_v11 = vmax.f32 %v618_v4, %v619_v13  ;;  %v572_v26 = vmax.f32 %v14486_v47, %v409_v5  ;;  %12041 = vmatmul.mubr.msk.bf16.gmra.mrb[16].mxu1 %vm656_vm1, %v723_v7  ;;  %v764_v39 = vshll.u32 %v723_v7, 16  ;;  %v1076_v29 = vrot.slane %v723_v7, 1 }
  0xc5   : > { %12044 = vmatprep.mubr.msk.bf16.mxu1 %vm14167_vm2, %v19261_v31  ;;  %v621_v42 = vmax.f32 %v565_v44, %v573_v12  ;;  %v768_v5 = vshrl.u32 %v723_v7, 16 }
  0xc6   : > { %690 = vst.msk [vmem:[#allocation2 + $0x55] sm:$0xf] %vm684_vm4, %v645_v11  ;;  %v620_v36 = vmax.f32 %v564_v45, %v572_v26  ;;  %v766_v37 = vrot.slane %v764_v39, 1  ;;  %v399_v33 = vpop.permute.xlu1 %398  ;;  %v14758_v30 = vsel %vm1068_vm5, %v1074_v27, %v1076_v29 }
  0xc7   : > { %v397_v28 = vpop.permute.xlu0 %396  ;;  %v567_v17 = vmax.f32 %v14493_v48, %v399_v33 }
  0xc8   : > { %v646_v46 = vmax.f32 %v620_v36, %v621_v42  ;;  %v767_v47 = vsel %vm731_vm3, %v762_v43, %v766_v37  ;;  %v566_v15 = vmax.f32 %v14496_v49, %v397_v28  ;;  %v770_v12 = vor.u32 %v768_v5, %v766_v37  ;;  %v715_v36 = vld [vmem:[#allocation2 + $0x68] sm:$0xff] }
  0xc9   : > { %11999 = vmatmul.mubr.msk.bf16.gmra.mrb[12].mxu0 %vm656_vm1, %v767_v47 }
  0xca   : > { %691 = vst.msk [vmem:[#allocation2 + $0x5b] sm:$0xf] %vm684_vm4, %v646_v46  ;;  %12002 = vmatprep.mubr.msk.bf16.mxu0 %vm14167_vm2, %v19261_v31  ;;  %v415_v22 = vpop.permute.xlu1 %414 }
  0xcb   : > { %v413_v32 = vpop.permute.xlu0 %412  ;;  %v575_v34 = vmax.f32 %v14507_v52, %v415_v22 }
  0xcc   : > { %v574_v27 = vmax.f32 %v14510_v53, %v413_v32 }
  0xcd   : > { %v623_v35 = vmax.f32 %v567_v17, %v575_v34  ;;  %v14769_v13 = vld [vmem:[#allocation2 + $0x4e] sm:$0xff] }
  0xce   : > { %v622_v16 = vmax.f32 %v566_v15, %v574_v27  ;;  %v419_v40 = vpop.permute.xlu1 %418  ;;  %v712_v45 = vld [vmem:[#allocation2 + $0x50] sm:$0xff] }
  0xcf   : > { %v417_v51 = vpop.permute.xlu0 %416  ;;  %v577_v47 = vmax.f32 %v14518_v54, %v419_v40 }
  0xd0   : > { %v647_v4 = vmax.f32 %v622_v16, %v623_v35  ;;  %v576_v22 = vmax.f32 %v14521_v55, %v417_v51 }
  0xd1   : > { %v14771_v44 = vld [vmem:[#allocation2 + $0x56] sm:$0xff] }
  0xd2   : > { %v713_v50 = vld [vmem:[#allocation2 + $0x58] sm:$0xff]  ;;  %v14775_v48 = vpack.c.bf16 %v14771_v44, %v14769_v13  ;;  %692 = vst.msk [vmem:[#allocation2 + $0x61] sm:$0xf] %vm684_vm4, %v647_v4  ;;  %v423_v52 = vpop.permute.xlu1 %422 }
  0xd3   : > { %v724_v49 = vpack.c.bf16 %v713_v50, %v712_v45  ;;  %v421_v53 = vpop.permute.xlu0 %420  ;;  %v14790_v7 = vld [vmem:[#allocation2 + $0x54] sm:$0xff]  ;;  %v579_v4 = vmax.f32 %v14528_v56, %v423_v52 }
  0xd5   : > { %12045 = vmatmul.mubr.msk.bf16.gmra.mrb[20].mxu1 %vm656_vm1, %v724_v49  ;;  %v772_v6 = vshll.u32 %v724_v49, 16  ;;  %v1078_v11 = vrot.slane %v724_v49, 1  ;;  %v776_v27 = vshrl.u32 %v724_v49, 16 }
  0xd6   : > { %12048 = vmatprep.mubr.msk.bf16.mxu1 %vm14167_vm2, %v19261_v31  ;;  %v427_v39 = vpop.permute.xlu1 %426 }
  0xd7   : > { %v774_v26 = vrot.slane %v772_v6, 1  ;;  %v425_v42 = vpop.permute.xlu0 %424  ;;  %v14782_v43 = vsel %vm1068_vm5, %v1076_v29, %v1078_v11  ;;  %v581_v52 = vmax.f32 %v14538_v58, %v427_v39 }
  0xd9   : > { %v775_v33 = vsel %vm731_vm3, %v770_v12, %v774_v26  ;;  %v714_v28 = vld [vmem:[#allocation2 + $0x60] sm:$0xff]  ;;  %v778_v40 = vor.u32 %v776_v27, %v774_v26  ;;  %v580_v26 = vmax.f32 %v14541_v59, %v425_v42  ;;  %v19262_v42 = vld [vmem:[#allocation8_spill] sm:$0xff] }
  0xda   : > { %12003 = vmatmul.mubr.msk.bf16.gmra.mrb[16].mxu0 %vm656_vm1, %v775_v33  ;;  %v14786_v46 = vpack.c.bf16 %v715_v36, %v714_v28  ;;  %v14792_v37 = vld [vmem:[#allocation2 + $0x5c] sm:$0xff]  ;;  %v435_v29 = vpop.permute.xlu1 %434 }
  0xdb   : > { %12006 = vmatprep.mubr.msk.bf16.mxu0 %vm14167_vm2, %v19261_v31  ;;  %v433_v32 = vpop.permute.xlu0 %432  ;;  %v14798_v17 = vpack.c.bf16 %v14792_v37, %v14790_v7  ;;  %v585_v15 = vmax.f32 %v14548_v60, %v435_v29  ;;  %v578_v60 = vmax.f32 %v14531_v57, %v421_v53  ;;  %v19263_v27 = vld [vmem:[#allocation9_spill] sm:$0xff] }
  0xdc   : > { %v584_v34 = vmax.f32 %v14551_v61, %v433_v32  ;;  %v780_v35 = vshll.u32 %v14786_v46, 16  ;;  %v1080_v54 = vrot.slane %v14786_v46, 1  ;;  %v14827_v32 = vld [vmem:[#allocation2 + $0x64] sm:$0xff] }
  0xdd   : > { %12049 = vmatmul.mubr.msk.bf16.gmra.mrb[24].mxu1 %vm656_vm1, %v14786_v46  ;;  %v625_v55 = vmax.f32 %v577_v47, %v585_v15  ;;  %v3457_v21 = vld [vmem:[#allocation2 + $0x60] sm:$0xff] }
  0xde   : > { %12052 = vmatprep.mubr.msk.bf16.mxu1 %vm14167_vm2, %v19261_v31  ;;  %v624_v16 = vmax.f32 %v576_v22, %v584_v34  ;;  %v782_v51 = vrot.slane %v780_v35, 1  ;;  %v439_v61 = vpop.permute.xlu1 %438  ;;  %v14813_v50 = vsel %vm1068_vm5, %v1078_v11, %v1080_v54 }
  0xdf   : > { %v437_v45 = vpop.permute.xlu0 %436  ;;  %v587_v5 = vmax.f32 %v14558_v62, %v439_v61 }
  0xe0   : > { %v648_v49 = vmax.f32 %v624_v16, %v625_v55  ;;  %v586_v6 = vmax.f32 %v14561_v63, %v437_v45  ;;  %v783_v12 = vsel %vm731_vm3, %v778_v40, %v782_v51 }
  0xe1   : > { %v627_v56 = vmax.f32 %v579_v4, %v587_v5 }
  0xe2   : > { %12007 = vmatmul.mubr.msk.bf16.gmra.mrb[20].mxu0 %vm656_vm1, %v783_v12  ;;  %693 = vst.msk [vmem:[#allocation2 + $0x73] sm:$0xf] %vm684_vm4, %v648_v49  ;;  %v626_v57 = vmax.f32 %v578_v60, %v586_v6  ;;  %v443_v53 = vpop.permute.xlu1 %442 }
  0xe3   : > { %12010 = vmatprep.mubr.msk.bf16.mxu0 %vm14167_vm2, %v19261_v31  ;;  %v441_v11 = vpop.permute.xlu0 %440  ;;  %v589_v63 = vmax.f32 %v14568_v0, %v443_v53 }
  0xe4   : > { %v649_v62 = vmax.f32 %v626_v57, %v627_v56  ;;  %v588_v36 = vmax.f32 %v14571_v2, %v441_v11 }
  0xe5   : > { %v629_v33 = vmax.f32 %v581_v52, %v589_v63  ;;  %v784_v52 = vshrl.u32 %v14786_v46, 16 }
  0xe6   : > { %694 = vst.msk [vmem:[#allocation2 + $0x79] sm:$0xf] %vm684_vm4, %v649_v62  ;;  %v628_v28 = vmax.f32 %v580_v26, %v588_v36  ;;  %v431_v47 = vpop.permute.xlu1 %430 }
  0xe7   : > { %v429_v22 = vpop.permute.xlu0 %428  ;;  %v583_v58 = vmax.f32 %v14578_v9, %v431_v47  ;;  %v786_v62 = vor.u32 %v784_v52, %v782_v51  ;;  %v19265_v51 = vld [vmem:[#allocation11_spill] sm:$0xff] }
  0xe8   : > { %v650_v29 = vmax.f32 %v628_v28, %v629_v33  ;;  %v582_v59 = vmax.f32 %v14581_v10, %v429_v22 }
  0xe9   : > { %v14829_v15 = vld [vmem:[#allocation2 + $0x6c] sm:$0xff] }
  0xea   : > { %695 = vst.msk [vmem:[#allocation2 + $0x7f] sm:$0xf] %vm684_vm4, %v650_v29  ;;  %v14836_v0 = vpack.c.bf16 %v14829_v15, %v14827_v32  ;;  %v447_v2 = vpop.permute.xlu1 %446  ;;  %v716_v61 = vld [vmem:[#allocation2 + $0x70] sm:$0xff]  ;;  %v19264_v29 = vld [vmem:[#allocation10_spill] sm:$0xff] }
  0xeb   : > { %v445_v39 = vpop.permute.xlu0 %444  ;;  %v591_v34 = vmax.f32 %v19262_v42, %v447_v2  ;;  %v19266_v42 = vld [vmem:[#allocation16_spill] sm:$0xff] }
  0xec   : > { %v590_v35 = vmax.f32 %v19263_v27, %v445_v39  ;;  %v19267_v27 = vld [vmem:[#allocation17_spill] sm:$0xff] }
  0xed   : > { %v631_v55 = vmax.f32 %v583_v58, %v591_v34  ;;  %v14840_v45 = vld [vmem:[#allocation2 + $0x74] sm:$0xff] }
  0xee   : > { %v630_v16 = vmax.f32 %v582_v59, %v590_v35  ;;  %v451_v40 = vpop.permute.xlu1 %450 }
  0xef   : > { %v449_v4 = vpop.permute.xlu0 %448  ;;  %v593_v58 = vmax.f32 %v19264_v29, %v451_v40  ;;  %v1232_v40 = vld [vmem:[#allocation2 + $0xe] sm:$0xff] }
  0xf0   : > { %v651_v60 = vmax.f32 %v630_v16, %v631_v55  ;;  %v592_v59 = vmax.f32 %v19265_v51, %v449_v4  ;;  %v1231_v16 = vld [vmem:[#allocation2 + $0x6] sm:$0xff]  ;;  %v19268_v4 = vld [vmem:[#allocation12_spill] sm:$0xff] }
  0xf1   : > { %v717_v9 = vld [vmem:[#allocation2 + $0x78] sm:$0xff]  ;;  %v718_v10 = vld [vmem:[#allocation2 + $0x80] sm:$0xf]  ;;  %v14884_v51 = vpack.c.bf16 %v1232_v40, %v1231_v16 }
  0xf2   : > { %v14842_v49 = vld [vmem:[#allocation2 + $0x7c] sm:$0xff]  ;;  %696 = vst.msk [vmem:[#allocation2 + $0x85] sm:$0xf] %vm684_vm4, %v651_v60  ;;  %v726_v5 = vpack.c.bf16 %v717_v9, %v716_v61  ;;  %v14845_v6 = vpack.c.bf16 %v718_v10, %v718_v10  ;;  %v455_v56 = vpop.permute.xlu1 %454 }
  0xf3   : > { %v14849_v12 = vpack.c.bf16 %v14842_v49, %v14840_v45  ;;  %v453_v57 = vpop.permute.xlu0 %452  ;;  %v595_v61 = vmax.f32 %v19268_v4, %v455_v56  ;;  %v19269_v10 = vld [vmem:[#allocation13_spill] sm:$0xff]  ;;  %v19270_v56 = vld [vmem:[#allocation18_spill] sm:$0xff] }
  0xf4   : > { %12053 = vmatmul.mubr.msk.bf16.gmra.mrb[28].mxu1 %vm656_vm1, %v726_v5  ;;  %v788_v53 = vshll.u32 %v726_v5, 16  ;;  %v1082_v11 = vrot.slane %v726_v5, 1  ;;  %v1084_v26 = vrot.slane %v14845_v6, 1  ;;  %v792_v46 = vshrl.u32 %v726_v5, 16  ;;  %v990_v60 = vpop.f32.mrb[0].mxu1 }
  0xf5   : > { %12056 = vmatprep.mubr.msk.bf16.mxu1 %vm14167_vm2, %v19261_v31  ;;  %v12026_v9 = vpop.f32.mrb[1].mxu1  ;;  %v594_v5 = vmax.f32 %v19269_v10, %v453_v57 }
  0xf6   : > { %v790_v63 = vrot.slane %v788_v53, 1  ;;  %v459_v36 = vpop.permute.xlu1 %458  ;;  %v14859_v28 = vsel %vm1068_vm5, %v1080_v54, %v1082_v11  ;;  %v14864_v47 = vsel %vm1068_vm5, %v1082_v11, %v1084_v26  ;;  %v796_v54 = vshll.u32 %v14845_v6, 16 }
  0xf7   : > { %v457_v33 = vpop.permute.xlu0 %456 }
  0xf8   : > { %v791_v22 = vsel %vm731_vm3, %v786_v62, %v790_v63  ;;  %v794_v55 = vor.u32 %v792_v46, %v790_v63  ;;  %v798_v11 = vrot.slane %v796_v54, 1  ;;  %v10927_v62 = vld [vmem:[%s19222_s1 + $0xa] sm:$0x3] }
  0xf9   : > { %12011 = vmatmul.mubr.msk.bf16.gmra.mrb[24].mxu0 %vm656_vm1, %v791_v22  ;;  %v993_v22 = vpop.f32.mrb[2].mxu1 }
  0xfa   : > { %12014 = vmatprep.mubr.msk.bf16.mxu0 %vm14167_vm2, %v19261_v31  ;;  %v467_v2 = vpop.permute.xlu1 %466  ;;  %v12027_v57 = vpop.f32.mrb[3].mxu1 }
  0xfb   : > { %v465_v39 = vpop.permute.xlu0 %464  ;;  %v601_v34 = vmax.f32 %v19266_v42, %v467_v2  ;;  %v3454_v57 = vld [vmem:[#allocation2 + $0x48] sm:$0xff] }
  0xfc   : > { %v600_v35 = vmax.f32 %v19267_v27, %v465_v39  ;;  %12057 = vmatmul.mubr.msk.bf16.gmra.mrb[32].mxu1 %vm656_vm1, %v14845_v6  ;;  %v19271_v39 = vld [vmem:[#allocation19_spill] sm:$0xff]  ;;  %v799_v27 = vsel %vm731_vm3, %v794_v55, %v798_v11  ;;  %v19274_v55 = vld [vmem:[#allocation20_spill] sm:$0xff] }
  0xfd   : > { %12100 = vmatprep.mubr.msk.bf16.mxu1 %vm14167_vm2, %v19261_v31  ;;  %v633_v52 = vmax.f32 %v593_v58, %v601_v34  ;;  %v1669_v58 = vsel %vm830_vm0, %v10927_v62, 0  ;;  %v19273_v34 = vld [vmem:[#allocation15_spill] sm:$0xff] }
  0xfe   : > { %v632_v53 = vmax.f32 %v592_v59, %v600_v35  ;;  %v471_v63 = vpop.permute.xlu1 %470  ;;  %v19272_v59 = vld [vmem:[#allocation14_spill] sm:$0xff]  ;;  %v596_v35 = vmax.f32 %v19273_v34, %v457_v33  ;;  %v800_v33 = vshrl.u32 %v14845_v6, 16 }
  0xff   : > { %v469_v29 = vpop.permute.xlu0 %468  ;;  %v603_v2 = vmax.f32 %v19270_v56, %v471_v63  ;;  %v597_v54 = vmax.f32 %v19272_v59, %v459_v36  ;;  %v14900_v36 = vpop.f32.mrb[4].mxu1 }
 0x100   : > { %v652_v46 = vmax.f32 %v632_v53, %v633_v52  ;;  %v602_v42 = vmax.f32 %v19271_v39, %v469_v29  ;;  %v19275_v53 = vld [vmem:[#allocation21_spill] sm:$0xff]  ;;  %v802_v56 = vor.u32 %v800_v33, %v798_v11  ;;  %v868_v59 = vpop.f32.mrb[0].mxu0 }
 0x101   : > { %12015 = vmatmul.mubr.msk.bf16.gmra.mrb[28].mxu0 %vm656_vm1, %v799_v27  ;;  %v635_v16 = vmax.f32 %v595_v61, %v603_v2  ;;  %v12030_v61 = vpop.f32.mrb[5].mxu1  ;;  %v1233_v2 = vld [vmem:[#allocation2 + $0x16] sm:$0xff]  ;;  %v1234_v39 = vld [vmem:[#allocation2 + $0x1e] sm:$0xff]  ;;  %v14916_v11 = vadd.f32 %v990_v60, %v868_v59 }
 0x102   : > { %697 = vst.msk [vmem:[#allocation2 + $0x97] sm:$0xf] %vm684_vm4, %v652_v46  ;;  %v634_v40 = vmax.f32 %v594_v5, %v602_v42  ;;  %12018 = vmatprep.mubr.msk.bf16.mxu0 %vm14167_vm2, %v19261_v31  ;;  %v475_v4 = vpop.permute.xlu1 %474  ;;  %v1001_v29 = vpop.f32.mrb[6].mxu1  ;;  %v3455_v46 = vld [vmem:[#allocation2 + $0x50] sm:$0xff]  ;;  %v1238_v33 = vld [vmem:[#allocation2 + $0x3e] sm:$0xff] }
 0x103   : > { %v473_v9 = vpop.permute.xlu0 %472  ;;  %v605_v52 = vmax.f32 %v19274_v55, %v475_v4  ;;  %v12031_v42 = vpop.f32.mrb[7].mxu1  ;;  %v14908_v34 = vpack.c.bf16 %v3455_v46, %v3454_v57  ;;  %v10917_v4 = vld [vmem:[%s19222_s1 + $0x8] sm:$0x3]  ;;  %v3459_v61 = vld [vmem:[#allocation2 + $0x70] sm:$0xff] }
 0x104   : > { %v653_v10 = vmax.f32 %v634_v40, %v635_v16  ;;  %12101 = vmatmul.mubr.msk.bf16.vlgmr.msra.gmra.mrb[36].mxu1 %vm656_vm1, %v14884_v51  ;;  %v604_v62 = vmax.f32 %v19275_v53, %v473_v9  ;;  %v11988_v16 = vpop.f32.mrb[1].mxu0  ;;  %v1496_v55 = vsel %vm830_vm0, %v10917_v4, 0  ;;  %v1235_v53 = vld [vmem:[#allocation2 + $0x26] sm:$0xff]  ;;  %v15003_v4 = vld [vmem:[%s14323_s11 + $0xd8] sm:$0xf] }
 0x105   : > { %12104 = vmatprep.mubr.msk.bf16.mxu1 %vm14167_vm2, %v19261_v31  ;;  %12175 = vmatpush3.bf16.msra.mxu1 %v1669_v58  ;;  %v637_v5 = vmax.f32 %v597_v54, %v605_v52  ;;  %v14910_v58 = vpack.c.bf16 %v1234_v39, %v1233_v2  ;;  %v19276_v54 = vld [vmem:[#allocation7_spill] sm:$0xff]  ;;  %v871_v40 = vpop.f32.mrb[2].mxu0  ;;  %v3458_v46 = vld [vmem:[#allocation2 + $0x68] sm:$0xff] }
 0x106   : > { %698 = vst.msk [vmem:[#allocation2 + $0x9d] sm:$0xf] %vm684_vm4, %v653_v10  ;;  %v636_v63 = vmax.f32 %v596_v35, %v604_v62  ;;  %12250 = vmatprep.subr.bf16.mxu1 %v19261_v31  ;;  %v1069_v35 = vrot.slane %v19276_v54, 1  ;;  %v14923_v9 = vadd.f32 %v993_v22, %v871_v40  ;;  %v11989_v10 = vpop.f32.mrb[3].mxu0  ;;  %v1236_v52 = vld [vmem:[#allocation2 + $0x2e] sm:$0xff]  ;;  %v3456_v22 = vld [vmem:[#allocation2 + $0x58] sm:$0xff]  ;;  %v14949_v42 = vpack.c.bf16 %v3459_v61, %v3458_v46 }
 0x107   : > { %v14932_v62 = vpack.c.bf16 %v1236_v52, %v1235_v53  ;;  %v3462_v39 = vld [vmem:[#allocation2 + $0x88] sm:$0xff]  ;;  %v1242_v54 = vld [vmem:[#allocation2 + $0x5e] sm:$0xff]  ;;  %v1245_v16 = vld [vmem:[#allocation2 + $0x76] sm:$0xff]  ;;  %460 = vrot.lane.b32.xlu0 %v15003_v4, %s14168_s12  ;;  %v1625_v52 = vrot.slane %v14910_v58, 1 }
 0x108   : > { %v654_v27 = vmax.f32 %v636_v63, %v637_v5  ;;  %v1071_v60 = vsel %vm1068_vm5, %v1069_v35, %v1070_v24  ;;  %v1237_v24 = vld [vmem:[#allocation2 + $0x36] sm:$0xff]  ;;  %v3461_v5 = vld [vmem:[#allocation2 + $0x80] sm:$0xff]  ;;  %v14941_v63 = vpack.c.bf16 %v3457_v21, %v3456_v22  ;;  %v14973_v35 = vpack.c.bf16 %v1242_v54, %v14771_v44  ;;  %v10947_v53 = vld [vmem:[%s19222_s1 + $0xe] sm:$0x3] }
 0x109   : > { %12019 = vmatmul.mubr.msk.bf16.gmra.mrb[32].mxu0 %vm656_vm1, %v802_v56  ;;  %v3463_v29 = vld [vmem:[#allocation2 + $0x90] sm:$0xff]  ;;  %v3460_v56 = vld [vmem:[#allocation2 + $0x78] sm:$0xff]  ;;  %v14945_v2 = vpack.c.bf16 %v1238_v33, %v1237_v24  ;;  %v1408_v24 = vshll.u32 %v14884_v51, 16  ;;  %v2051_v22 = vsel %vm830_vm0, %v10947_v53, 0  ;;  %v1406_v33 = vshrl.u32 %v14884_v51, 16 }
 0x10a   : > { %12062 = vmatprep.mubr.msk.bf16.mxu0 %vm14167_vm2, %v19261_v31  ;;  %699 = vst.msk [vmem:[#allocation2 + $0xa3] sm:$0xf] %vm684_vm4, %v654_v27  ;;  %v14951_v27 = vpack.c.bf16 %v3461_v5, %v3460_v56  ;;  %v14953_v57 = vpack.c.bf16 %v3463_v29, %v3462_v39  ;;  %v1246_v44 = vld [vmem:[#allocation2 + $0x7e] sm:$0xff]  ;;  %v1412_v5 = vshll.u32 %v14910_v58, 16  ;;  %v10937_v56 = vld [vmem:[%s19222_s1 + $0xc] sm:$0x3] }
 0x10b   : > { %v14993_v40 = vpack.c.bf16 %v1246_v44, %v1245_v16  ;;  %v15014_v10 = vld [vmem:[%s14323_s11 + $0xfc] sm:$0xf]  ;;  %v1410_v61 = vrot.slane %v1408_v24, 1  ;;  %v1629_v39 = vrot.slane %v14945_v2, 1  ;;  %v1419_v54 = vshll.u32 %v14932_v62, 16 }
 0x10c   : > { %12105 = vmatmul.mubr.msk.bf16.gmra.mrb[40].mxu1 %vm656_vm1, %v14910_v58  ;;  %v1633_v24 = vrot.slane %v14973_v35, 1 }
 0x10d   : > { %12108 = vmatprep.mubr.msk.bf16.mxu1 %vm14167_vm2, %v19261_v31  ;;  %v1411_v29 = vor.u32 %v1410_v61, %v1406_v33  ;;  %v1421_v44 = vrot.slane %v1419_v54, 1 }
 0x111   : > { %12063 = vmatmul.mubr.msk.bf16.vlgmr.msra.gmra.mrb[36].mxu0 %vm656_vm1, %v1071_v60  ;;  %v15017_v60 = vld [vmem:[%s14323_s11 + $0xf8] sm:$0xf] }
 0x112   : > { %12137 = vmatpush3.bf16.msra.mxu0 %v1496_v55  ;;  %12066 = vmatprep.mubr.msk.bf16.mxu0 %vm14167_vm2, %v19261_v31 }
 0x113   : > { %12212 = vmatprep.subr.bf16.mxu0 %v19261_v31  ;;  %476 = vrot.lane.b32.xlu0 %v15017_v60, %s14168_s12 }
 0x114   : > { %12109 = vmatmul.mubr.msk.bf16.gmra.mrb[44].mxu1 %vm656_vm1, %v14932_v62 }
 0x115   : > { %12112 = vmatprep.mubr.msk.bf16.mxu1 %vm14167_vm2, %v19261_v31 }
 0x119   : > { %12067 = vmatmul.mubr.msk.bf16.gmra.mrb[40].mxu0 %vm656_vm1, %v14687_v20  ;;  %v1239_v20 = vld [vmem:[#allocation2 + $0x46] sm:$0xff] }
 0x11a   : > { %12070 = vmatprep.mubr.msk.bf16.mxu0 %vm14167_vm2, %v19261_v31  ;;  %v14962_v59 = vpack.c.bf16 %v14769_v13, %v1239_v20  ;;  %v1244_v13 = vld [vmem:[#allocation2 + $0x6e] sm:$0xff]  ;;  %v1416_v20 = vshrl.u32 %v14910_v58, 16 }
 0x11c   : > { %12113 = vmatmul.mubr.msk.bf16.gmra.mrb[48].mxu1 %vm656_vm1, %v14945_v2  ;;  %v1631_v58 = vrot.slane %v14962_v59, 1  ;;  %v1433_v33 = vshll.u32 %v14962_v59, 16 }
 0x11d   : > { %12116 = vmatprep.mubr.msk.bf16.mxu1 %vm14167_vm2, %v19261_v31 }
 0x11e   : > { %v1634_v61 = vsel %vm1068_vm5, %v1631_v58, %v1633_v24 }
 0x121   : > { %12071 = vmatmul.mubr.msk.bf16.gmra.mrb[44].mxu0 %vm656_vm1, %v14732_v3  ;;  %v1243_v3 = vld [vmem:[#allocation2 + $0x66] sm:$0xff] }
 0x122   : > { %12074 = vmatprep.mubr.msk.bf16.mxu0 %vm14167_vm2, %v19261_v31 }
 0x124   : > { %12117 = vmatmul.mubr.msk.bf16.gmra.mrb[52].mxu1 %vm656_vm1, %v14962_v59 }
 0x125   : > { %12120 = vmatprep.mubr.msk.bf16.mxu1 %vm14167_vm2, %v19261_v31 }
 0x129   : > { %12075 = vmatmul.mubr.msk.bf16.gmra.mrb[48].mxu0 %vm656_vm1, %v14758_v30  ;;  %v14983_v30 = vpack.c.bf16 %v1244_v13, %v1243_v3 }
 0x12a   : > { %12078 = vmatprep.mubr.msk.bf16.mxu0 %vm14167_vm2, %v19261_v31 }
 0x12c   : > { %12121 = vmatmul.mubr.msk.bf16.gmra.mrb[56].mxu1 %vm656_vm1, %v14973_v35 }
 0x12d   : > { %12124 = vmatprep.mubr.msk.bf16.mxu1 %vm14167_vm2, %v19261_v31 }
 0x131   : > { %12079 = vmatmul.mubr.msk.bf16.gmra.mrb[52].mxu0 %vm656_vm1, %v14782_v43  ;;  %v15000_v43 = vld [vmem:[%s14323_s11 + $0xdc] sm:$0xf] }
 0x132   : > { %12082 = vmatprep.mubr.msk.bf16.mxu0 %vm14167_vm2, %v19261_v31  ;;  %462 = vrot.lane.b32.xlu1 %v15000_v43, %s14168_s12 }
 0x134   : > { %12125 = vmatmul.mubr.msk.bf16.gmra.mrb[60].mxu1 %vm656_vm1, %v14983_v30 }
 0x135   : > { %12128 = vmatprep.mubr.msk.bf16.mxu1 %vm14167_vm2, %v19261_v31 }
 0x136   : > { %478 = vrot.lane.b32.xlu1 %v15014_v10, %s14168_s12  ;;  %s10875_s12 = sshll.u32 %s215_s9, 6 }
 0x137   : > { %s19103_s13 = scalar_lea.vmem [#allocation4], %s10875_s12 }
 0x138   : > { %s10809_s15 = sshll.u32 %s19103_s13, 4  ;;  %s19174_s15 = int_to_ptr.vmem [resolvable:$true] %s10809_s15 }
 0x139   : > { %12083 = vmatmul.mubr.msk.bf16.gmra.mrb[56].mxu0 %vm656_vm1, %v14813_v50  ;;  %v1247_v50 = vld [vmem:[#allocation2 + $0x86] sm:$0xf]  ;;  %s14102_s25 = scalar_lea.vmem %s19174_s15, 1024  ;;  %p14109_p0 = scmp.lt.s32.totalorder %s19174_s15, %s14107_s30 }
 0x13a   : > { %12086 = vmatprep.mubr.msk.bf16.mxu0 %vm14167_vm2, %v19261_v31  ;;  %v15019_v55 = vpack.c.bf16 %v1247_v50, %v1247_v50  ;;  %v1426_v50 = vshll.u32 %v14945_v2, 16  ;;  %p14103_p11 = scmp.ne.s32.totalorder %s19174_s15, %s14102_s25  ;;  %p14110_p1 = scmp.lt.s32.totalorder %s14108_s6, %s14102_s25 }
 0x13c   : > { %12129 = vmatmul.mubr.msk.bf16.gmra.mrb[64].mxu1 %vm656_vm1, %v14993_v40  ;;  %v1428_v53 = vrot.slane %v1426_v50, 1  ;;  %v1444_v50 = vshrl.u32 %v14973_v35, 16  ;;  %p14104_p12 = pnand %p14103_p11, %p14240_p5  ;;  %p14111_p2 = por %p14110_p1, %p14109_p0 }
 0x13d   : > { %12132 = vmatprep.mubr.msk.bf16.mxu1 %vm14167_vm2, %v19261_v31 }
 0x13e   : > { %p14105_p13 = pneg %p14104_p12 }
 0x140   : > { %p14112_p3 = pnand %p14111_p2, %p14105_p13 }
 0x141   : > { %12087 = vmatmul.mubr.msk.bf16.gmra.mrb[60].mxu0 %vm656_vm1, %v14859_v28  ;;  %v1624_v28 = vrot.slane %v14884_v51, 1  ;;  %v1414_v51 = vrot.slane %v1412_v5, 1 }
 0x142   : > { %12090 = vmatprep.mubr.msk.bf16.mxu0 %vm14167_vm2, %v19261_v31 }
 0x143   : > { %v1626_v21 = vsel %vm1068_vm5, %v1624_v28, %v1625_v52  ;;  %v1415_v6 = vsel %vm731_vm3, %v1411_v29, %v1414_v51  ;;  %v1418_v13 = vor.u32 %v1416_v20, %v1414_v51  ;;  %v1632_v28 = vsel %vm1068_vm5, %v1629_v39, %v1631_v58 }
 0x144   : > { %12133 = vmatmul.mubr.msk.bf16.gmra.mrb[68].mxu1 %vm656_vm1, %v15019_v55  ;;  %v1635_v29 = vrot.slane %v14983_v30, 1  ;;  %v1440_v51 = vshll.u32 %v14973_v35, 16  ;;  %v1637_v20 = vrot.slane %v14993_v40, 1 }
 0x145   : > { %12176 = vmatprep.mubr.msk.bf16.mxu1 %vm14167_vm2, %v19261_v31  ;;  %v1422_v16 = vsel %vm731_vm3, %v1418_v13, %v1421_v44  ;;  %v1447_v13 = vshll.u32 %v14983_v30, 16 }
 0x149   : > { %12091 = vmatmul.mubr.msk.bf16.gmra.mrb[64].mxu0 %vm656_vm1, %v14864_v47  ;;  %v1627_v47 = vrot.slane %v14932_v62, 1 }
 0x14a   : > { %12094 = vmatprep.mubr.msk.bf16.mxu0 %vm14167_vm2, %v19261_v31 }
 0x14b   : > { %v1628_v46 = vsel %vm1068_vm5, %v1625_v52, %v1627_v47  ;;  %v1630_v3 = vsel %vm1068_vm5, %v1627_v47, %v1629_v39  ;;  %v1423_v52 = vshrl.u32 %v14932_v62, 16  ;;  %v1430_v62 = vshrl.u32 %v14945_v2, 16 }
 0x14c   : > { %12177 = vmatmul.mubr.msk.bf16.vlgmr.msra.gmra.mrb[72].mxu1 %vm656_vm1, %v1626_v21  ;;  %v1435_v47 = vrot.slane %v1433_v33, 1  ;;  %v1437_v2 = vshrl.u32 %v14962_v59, 16  ;;  %v1638_v59 = vsel %vm1068_vm5, %v1635_v29, %v1637_v20  ;;  %v1639_v33 = vrot.slane %v15019_v55, 1 }
 0x14d   : > { %12180 = vmatprep.mubr.msk.bf16.mxu1 %vm14167_vm2, %v19261_v31  ;;  %12251 = vmatpush3.bf16.msra.mxu1 %v2051_v22  ;;  %v1425_v21 = vor.u32 %v1423_v52, %v1421_v44  ;;  %v1432_v5 = vor.u32 %v1430_v62, %v1428_v53  ;;  %v1454_v62 = vshll.u32 %v14993_v40, 16 }
 0x14e   : > { %12326 = vmatprep.subr.bf16.mxu1 %v19261_v31 }
 0x14f   : > { %v1429_v22 = vsel %vm731_vm3, %v1425_v21, %v1428_v53 }
 0x151   : > { %12095 = vmatmul.mubr.msk.bf16.gmra.mrb[68].mxu0 %vm656_vm1, %v1084_v26  ;;  %v1842_v26 = vsel %vm830_vm0, %v10937_v56, 0  ;;  %v1636_v56 = vsel %vm1068_vm5, %v1633_v24, %v1635_v29  ;;  %v1451_v29 = vshrl.u32 %v14983_v30, 16  ;;  %v1458_v30 = vshrl.u32 %v14993_v40, 16  ;;  %v10967_v40 = vld [vmem:[%s19222_s1 + $0x12] sm:$0x3] }
 0x152   : > { %12138 = vmatprep.mubr.msk.bf16.mxu0 %vm14167_vm2, %v19261_v31 }
 0x154   : > { %12181 = vmatmul.mubr.msk.bf16.gmra.mrb[76].mxu1 %vm656_vm1, %v1628_v46  ;;  %v1436_v46 = vsel %vm731_vm3, %v1432_v5, %v1435_v47  ;;  %v1787_v5 = vld [vmem:[#allocation2 + $0x14] sm:$0xff] }
 0x155   : > { %12184 = vmatprep.mubr.msk.bf16.mxu1 %vm14167_vm2, %v19261_v31 }
 0x159   : > { %12139 = vmatmul.mubr.msk.bf16.vlgmr.msra.gmra.mrb[72].mxu0 %vm656_vm1, %v1415_v6  ;;  %v1442_v6 = vrot.slane %v1440_v51, 1  ;;  %v1788_v51 = vld [vmem:[#allocation2 + $0x1c] sm:$0xff] }
 0x15a   : > { %12213 = vmatpush3.bf16.msra.mxu0 %v1842_v26  ;;  %12142 = vmatprep.mubr.msk.bf16.mxu0 %vm14167_vm2, %v19261_v31  ;;  %v1439_v26 = vor.u32 %v1437_v2, %v1435_v47  ;;  %v1786_v47 = vld [vmem:[#allocation2 + $0xc] sm:$0xff]  ;;  %v15140_v2 = vpack.c.bf16 %v14702_v8, %v1788_v51 }
 0x15b   : > { %12288 = vmatprep.subr.bf16.mxu0 %v19261_v31  ;;  %v1446_v24 = vor.u32 %v1444_v50, %v1442_v6  ;;  %v15133_v35 = vpack.c.bf16 %v1787_v5, %v1786_v47 }
 0x15c   : > { %12185 = vmatmul.mubr.msk.bf16.gmra.mrb[80].mxu1 %vm656_vm1, %v1630_v3  ;;  %v1443_v3 = vsel %vm731_vm3, %v1439_v26, %v1442_v6 }
 0x15d   : > { %12188 = vmatprep.mubr.msk.bf16.mxu1 %vm14167_vm2, %v19261_v31  ;;  %v1963_v6 = vshll.u32 %v15133_v35, 16 }
 0x161   : > { %12143 = vmatmul.mubr.msk.bf16.gmra.mrb[76].mxu0 %vm656_vm1, %v1422_v16 }
 0x162   : > { %12146 = vmatprep.mubr.msk.bf16.mxu0 %vm14167_vm2, %v19261_v31 }
 0x164   : > { %12189 = vmatmul.mubr.msk.bf16.gmra.mrb[84].mxu1 %vm656_vm1, %v1632_v28  ;;  %v1449_v28 = vrot.slane %v1447_v13, 1  ;;  %v1967_v13 = vshll.u32 %v15140_v2, 16 }
 0x165   : > { %12192 = vmatprep.mubr.msk.bf16.mxu1 %vm14167_vm2, %v19261_v31 }
 0x166   : > { %v1969_v50 = vrot.slane %v1967_v13, 1 }
 0x169   : > { %12147 = vmatmul.mubr.msk.bf16.gmra.mrb[80].mxu0 %vm656_vm1, %v1429_v22 }
 0x16a   : > { %12150 = vmatprep.mubr.msk.bf16.mxu0 %vm14167_vm2, %v19261_v31 }
 0x16c   : > { %12193 = vmatmul.mubr.msk.bf16.gmra.mrb[88].mxu1 %vm656_vm1, %v1634_v61  ;;  %v1450_v61 = vsel %vm731_vm3, %v1446_v24, %v1449_v28 }
 0x16d   : > { %12196 = vmatprep.mubr.msk.bf16.mxu1 %vm14167_vm2, %v19261_v31 }
 0x171   : > { %12151 = vmatmul.mubr.msk.bf16.gmra.mrb[84].mxu0 %vm656_vm1, %v1436_v46  ;;  %v1456_v46 = vrot.slane %v1454_v62, 1 }
 0x172   : > { %12154 = vmatprep.mubr.msk.bf16.mxu0 %vm14167_vm2, %v19261_v31 }
 0x173   : > { %v1460_v8 = vor.u32 %v1458_v30, %v1456_v46 }
 0x174   : > { %12197 = vmatmul.mubr.msk.bf16.gmra.mrb[92].mxu1 %vm656_vm1, %v1636_v56  ;;  %v1453_v56 = vor.u32 %v1451_v29, %v1449_v28  ;;  %v15156_v28 = vpack.c.bf16 %v14716_v25, %v14704_v19  ;;  %v1465_v19 = vshrl.u32 %v15019_v55, 16  ;;  %v1971_v29 = vshrl.u32 %v15140_v2, 16 }
 0x175   : > { %12200 = vmatprep.mubr.msk.bf16.mxu1 %vm14167_vm2, %v19261_v31 }
 0x176   : > { %v1457_v26 = vsel %vm731_vm3, %v1453_v56, %v1456_v46  ;;  %v1974_v25 = vshll.u32 %v15156_v28, 16  ;;  %v1973_v30 = vor.u32 %v1971_v29, %v1969_v50 }
 0x177   : > { %v15108_v39 = vpop.f32.mrb[8].mxu1 }
 0x178   : > { %v12034_v54 = vpop.f32.mrb[9].mxu1 }
 0x179   : > { %v15113_v44 = vpop.f32.mrb[10].mxu1  ;;  %12155 = vmatmul.mubr.msk.bf16.gmra.mrb[88].mxu0 %vm656_vm1, %v1443_v3  ;;  %v1961_v54 = vshrl.u32 %v15133_v35, 16  ;;  %v1965_v3 = vrot.slane %v1963_v6, 1  ;;  %v1976_v6 = vrot.slane %v1974_v25, 1 }
 0x17a   : > { %v12035_v58 = vpop.f32.mrb[11].mxu1  ;;  %12158 = vmatprep.mubr.msk.bf16.mxu0 %vm14167_vm2, %v19261_v31 }
 0x17c   : > { %v876_v16 = vpop.f32.mrb[4].mxu0  ;;  %12201 = vmatmul.mubr.msk.bf16.gmra.mrb[96].mxu1 %vm656_vm1, %v1638_v59 }
 0x17d   : > { %v15122_v52 = vadd.f32 %v14900_v36, %v876_v16  ;;  %v11992_v53 = vpop.f32.mrb[5].mxu0  ;;  %12204 = vmatprep.mubr.msk.bf16.mxu1 %vm14167_vm2, %v19261_v31  ;;  %v1640_v36 = vsel %vm1068_vm5, %v1637_v20, %v1639_v33  ;;  %v1461_v20 = vshll.u32 %v15019_v55, 16  ;;  %v1966_v16 = vor.u32 %v1965_v3, %v1961_v54 }
 0x17e   : > { %v879_v21 = vpop.f32.mrb[6].mxu0 }
 0x17f   : > { %v11993_v22 = vpop.f32.mrb[7].mxu0  ;;  %v1463_v58 = vrot.slane %v1461_v20, 1 }
 0x181   : > { %12159 = vmatmul.mubr.msk.bf16.gmra.mrb[92].mxu0 %vm656_vm1, %v1450_v61  ;;  %v1464_v21 = vsel %vm731_vm3, %v1460_v8, %v1463_v58  ;;  %v1970_v61 = vsel %vm731_vm3, %v1966_v16, %v1969_v50  ;;  %v1467_v56 = vor.u32 %v1465_v19, %v1463_v58  ;;  %v1978_v16 = vshrl.u32 %v15156_v28, 16 }
 0x182   : > { %12162 = vmatprep.mubr.msk.bf16.mxu0 %vm14167_vm2, %v19261_v31  ;;  %v15218_v19 = vpack.c.bf16 %v14827_v32, %v14792_v37 }
 0x184   : > { %12205 = vmatmul.mubr.msk.bf16.gmra.mrb[100].mxu1 %vm656_vm1, %v1640_v36 }
 0x185   : > { %12208 = vmatprep.mubr.msk.bf16.mxu1 %vm14167_vm2, %v19261_v31 }
 0x189   : > { %12163 = vmatmul.mubr.msk.bf16.gmra.mrb[96].mxu0 %vm656_vm1, %v1457_v26 }
 0x18a   : > { %12166 = vmatprep.mubr.msk.bf16.mxu0 %vm14167_vm2, %v19261_v31 }
 0x18c   : > { %12209 = vmatmul.mubr.msk.bf16.gmra.mrb[104].mxu1 %vm656_vm1, %v1639_v33  ;;  %v2397_v33 = vsel %vm830_vm0, %v10967_v40, 0 }
 0x18d   : > { %12252 = vmatprep.mubr.msk.bf16.mxu1 %vm14167_vm2, %v19261_v31 }
 0x18f   : > { %v1013_v59 = vpop.f32.mrb[12].mxu1 }
 0x190   : > { %v12038_v53 = vpop.f32.mrb[13].mxu1 }
 0x191   : > { %v1016_v24 = vpop.f32.mrb[14].mxu1  ;;  %12167 = vmatmul.mubr.msk.bf16.gmra.mrb[100].mxu0 %vm656_vm1, %v1464_v21 }
 0x192   : > { %v12039_v22 = vpop.f32.mrb[15].mxu1  ;;  %12170 = vmatprep.mubr.msk.bf16.mxu0 %vm14167_vm2, %v19261_v31 }
 0x193   : > { %v15203_v22 = vpack.c.bf16 %v14790_v7, %v14741_v18 }
 0x194   : > { %v883_v62 = vpop.f32.mrb[8].mxu0  ;;  %12253 = vmatmul.mubr.msk.bf16.vlgmr.msra.gmra.mrb[108].mxu1 %vm656_vm1, %v1970_v61 }
 0x195   : > { %v15171_v47 = vadd.f32 %v15108_v39, %v883_v62  ;;  %v11996_v5 = vpop.f32.mrb[9].mxu0  ;;  %12256 = vmatprep.mubr.msk.bf16.mxu1 %vm14167_vm2, %v19261_v31  ;;  %12327 = vmatpush3.bf16.msra.mxu1 %v2397_v33  ;;  %v15182_v39 = vpack.c.bf16 %v14738_v1, %v14718_v23  ;;  %v10957_v23 = vld [vmem:[%s19222_s1 + $0x10] sm:$0x3] }
 0x196   : > { %v886_v36 = vpop.f32.mrb[10].mxu0  ;;  %12402 = vmatprep.subr.bf16.mxu1 %v19261_v31  ;;  %v2224_v53 = vsel %vm830_vm0, %v10957_v23, 0 }
 0x197   : > { %v15178_v55 = vadd.f32 %v15113_v44, %v886_v36  ;;  %v11997_v46 = vpop.f32.mrb[11].mxu0  ;;  %v1021_v51 = vpop.f32.mrb[16].mxu1  ;;  %v1977_v44 = vsel %vm731_vm3, %v1973_v30, %v1976_v6  ;;  %v1981_v3 = vshll.u32 %v15182_v39, 16  ;;  %v1985_v7 = vshrl.u32 %v15182_v39, 16 }
 0x198   : > { %v12042_v26 = vpop.f32.mrb[17].mxu1  ;;  %v1995_v46 = vshll.u32 %v15218_v19, 16  ;;  %v1992_v30 = vshrl.u32 %v15203_v22, 16 }
 0x199   : > { %v1023_v20 = vpop.f32.mrb[18].mxu1  ;;  %12171 = vmatmul.mubr.msk.bf16.gmra.mrb[104].mxu0 %vm656_vm1, %v1467_v56  ;;  %v1983_v21 = vrot.slane %v1981_v3, 1 }
 0x19a   : > { %v12043_v54 = vpop.f32.mrb[19].mxu1  ;;  %12214 = vmatprep.mubr.msk.bf16.mxu0 %vm14167_vm2, %v19261_v31 }
 0x19b   : > { %v1987_v5 = vor.u32 %v1985_v7, %v1983_v21  ;;  %v1997_v54 = vrot.slane %v1995_v46, 1 }
 0x19c   : > { %v891_v13 = vpop.f32.mrb[12].mxu0  ;;  %12257 = vmatmul.mubr.msk.bf16.gmra.mrb[112].mxu1 %vm656_vm1, %v1977_v44  ;;  %v15234_v44 = vpack.c.bf16 %v14840_v45, %v14829_v15  ;;  %v15245_v15 = vld [vmem:[#allocation2 + $0x84] sm:$0xff] }
 0x19d   : > { %v15193_v1 = vadd.f32 %v1013_v59, %v891_v13  ;;  %v12000_v8 = vpop.f32.mrb[13].mxu0  ;;  %12260 = vmatprep.mubr.msk.bf16.mxu1 %vm14167_vm2, %v19261_v31  ;;  %v1980_v59 = vor.u32 %v1978_v16, %v1976_v6 }
 0x19e   : > { %v894_v58 = vpop.f32.mrb[14].mxu0 }
 0x19f   : > { %v15198_v50 = vadd.f32 %v1016_v24, %v894_v58  ;;  %v12001_v40 = vpop.f32.mrb[15].mxu0  ;;  %v1984_v33 = vsel %vm731_vm3, %v1980_v59, %v1983_v21  ;;  %v1988_v24 = vshll.u32 %v15203_v22, 16 }
 0x1a0   : > { %v2002_v40 = vshll.u32 %v15234_v44, 16 }
 0x1a1   : > { %12215 = vmatmul.mubr.msk.bf16.vlgmr.msra.gmra.mrb[108].mxu0 %vm656_vm1, %v15133_v35  ;;  %v1990_v61 = vrot.slane %v1988_v24, 1 }
 0x1a2   : > { %12289 = vmatpush3.bf16.msra.mxu0 %v2224_v53  ;;  %12218 = vmatprep.mubr.msk.bf16.mxu0 %vm14167_vm2, %v19261_v31  ;;  %v2004_v46 = vrot.slane %v2002_v40, 1 }
 0x1a3   : > { %12364 = vmatprep.subr.bf16.mxu0 %v19261_v31  ;;  %v1991_v29 = vsel %vm731_vm3, %v1987_v5, %v1990_v61  ;;  %v1994_v8 = vor.u32 %v1992_v30, %v1990_v61  ;;  %v1999_v61 = vshrl.u32 %v15218_v19, 16 }
 0x1a4   : > { %12261 = vmatmul.mubr.msk.bf16.gmra.mrb[116].mxu1 %vm656_vm1, %v1984_v33  ;;  %v463_v13 = vpop.permute.xlu1 %462 }
 0x1a5   : > { %12264 = vmatprep.mubr.msk.bf16.mxu1 %vm14167_vm2, %v19261_v31  ;;  %v1998_v16 = vsel %vm731_vm3, %v1994_v8, %v1997_v54  ;;  %v599_v45 = vmax.f32 %v15000_v43, %v463_v13  ;;  %v15259_v43 = vpack.c.bf16 %v15245_v15, %v14842_v49  ;;  %v1802_v49 = vld [vmem:[#allocation2 + $0x8c] sm:$0xf] }
 0x1a6   : > { %v15275_v30 = vpack.c.bf16 %v1802_v49, %v1802_v49 }
 0x1a7   : > { %v2013_v13 = vshrl.u32 %v15259_v43, 16 }
 0x1a8   : > { %v1028_v18 = vpop.f32.mrb[20].mxu1  ;;  %v479_v24 = vpop.permute.xlu1 %478 }
 0x1a9   : > { %v12046_v25 = vpop.f32.mrb[21].mxu1  ;;  %12219 = vmatmul.mubr.msk.bf16.gmra.mrb[112].mxu0 %vm656_vm1, %v15140_v2 }
 0x1aa   : > { %v1031_v62 = vpop.f32.mrb[22].mxu1  ;;  %12222 = vmatprep.mubr.msk.bf16.mxu0 %vm14167_vm2, %v19261_v31  ;;  %v607_v25 = vmax.f32 %v15014_v10, %v479_v24 }
 0x1ab   : > { %v12047_v36 = vpop.f32.mrb[23].mxu1 }
 0x1ac   : > { %12265 = vmatmul.mubr.msk.bf16.gmra.mrb[120].mxu1 %vm656_vm1, %v1991_v29 }
 0x1ad   : > { %v899_v51 = vpop.f32.mrb[16].mxu0  ;;  %12268 = vmatprep.mubr.msk.bf16.mxu1 %vm14167_vm2, %v19261_v31 }
 0x1ae   : > { %v12004_v56 = vpop.f32.mrb[17].mxu0  ;;  %v639_v51 = vmax.f32 %v599_v45, %v607_v25 }
 0x1af   : > { %v901_v37 = vpop.f32.mrb[18].mxu0 }
 0x1b0   : > { %v15229_v32 = vadd.f32 %v1023_v20, %v901_v37  ;;  %v12005_v6 = vpop.f32.mrb[19].mxu0  ;;  %v1036_v26 = vpop.f32.mrb[24].mxu1 }
 0x1b1   : > { %v12050_v3 = vpop.f32.mrb[25].mxu1  ;;  %12223 = vmatmul.mubr.msk.bf16.gmra.mrb[116].mxu0 %vm656_vm1, %v15156_v28  ;;  %v461_v20 = vpop.permute.xlu0 %460 }
 0x1b2   : > { %v15236_v23 = vpop.f32.mrb[26].mxu1  ;;  %12226 = vmatprep.mubr.msk.bf16.mxu0 %vm14167_vm2, %v19261_v31  ;;  %v598_v33 = vmax.f32 %v15003_v4, %v461_v20  ;;  %v2001_v4 = vor.u32 %v1999_v61, %v1997_v54  ;;  %v2016_v3 = vshll.u32 %v15275_v30, 16 }
 0x1b3   : > { %v12051_v58 = vpop.f32.mrb[27].mxu1 }
 0x1b4   : > { %12269 = vmatmul.mubr.msk.bf16.gmra.mrb[124].mxu1 %vm656_vm1, %v1998_v16  ;;  %v2005_v10 = vsel %vm731_vm3, %v2001_v4, %v2004_v46  ;;  %v2018_v20 = vrot.slane %v2016_v3, 1 }
 0x1b5   : > { %v906_v53 = vpop.f32.mrb[20].mxu0  ;;  %12272 = vmatprep.mubr.msk.bf16.mxu1 %vm14167_vm2, %v19261_v31  ;;  %v477_v5 = vpop.permute.xlu0 %476 }
 0x1b6   : > { %v15248_v21 = vadd.f32 %v1028_v18, %v906_v53  ;;  %v12008_v59 = vpop.f32.mrb[21].mxu0  ;;  %v606_v18 = vmax.f32 %v15017_v60, %v477_v5  ;;  %v2006_v60 = vshrl.u32 %v15234_v44, 16 }
 0x1b7   : > { %v909_v7 = vpop.f32.mrb[22].mxu0 }
 0x1b8   : > { %v15255_v36 = vadd.f32 %v1031_v62, %v909_v7  ;;  %v12009_v29 = vpop.f32.mrb[23].mxu0  ;;  %v638_v56 = vmax.f32 %v598_v33, %v606_v18  ;;  %v2009_v62 = vshll.u32 %v15259_v43, 16  ;;  %v2008_v26 = vor.u32 %v2006_v60, %v2004_v46  ;;  %v10987_v60 = vld [vmem:[%s19222_s1 + $0x16] sm:$0x3] }
 0x1b9   : > { %12227 = vmatmul.mubr.msk.bf16.gmra.mrb[120].mxu0 %vm656_vm1, %v15182_v39  ;;  %v2020_v33 = vshrl.u32 %v15275_v30, 16  ;;  %v2779_v3 = vsel %vm830_vm0, %v10987_v60, 0 }
 0x1ba   : > { %12230 = vmatprep.mubr.msk.bf16.mxu0 %vm14167_vm2, %v19261_v31  ;;  %v655_v37 = vmax.f32 %v638_v56, %v639_v51  ;;  %v2011_v6 = vrot.slane %v2009_v62, 1 }
 0x1bb   : > { %v2022_v46 = vor.u32 %v2020_v33, %v2018_v20 }
 0x1bc   : > { %12273 = vmatmul.mubr.msk.bf16.gmra.mrb[128].mxu1 %vm656_vm1, %v2005_v10  ;;  %700 = vst.msk [vmem:[#allocation2 + $0xa9] sm:$0xf] %vm684_vm4, %v655_v37  ;;  %v2012_v54 = vsel %vm731_vm3, %v2008_v26, %v2011_v6  ;;  %v2015_v58 = vor.u32 %v2013_v13, %v2011_v6 }
 0x1bd   : > { %12276 = vmatprep.mubr.msk.bf16.mxu1 %vm14167_vm2, %v19261_v31 }
 0x1be   : > { %v2019_v45 = vsel %vm731_vm3, %v2015_v58, %v2018_v20 }
 0x1c1   : > { %12231 = vmatmul.mubr.msk.bf16.gmra.mrb[124].mxu0 %vm656_vm1, %v15203_v22 }
 0x1c2   : > { %12234 = vmatprep.mubr.msk.bf16.mxu0 %vm14167_vm2, %v19261_v31 }
 0x1c4   : > { %12277 = vmatmul.mubr.msk.bf16.gmra.mrb[132].mxu1 %vm656_vm1, %v2012_v54 }
 0x1c5   : > { %12280 = vmatprep.mubr.msk.bf16.mxu1 %vm14167_vm2, %v19261_v31 }
 0x1c7   : > { %v1043_v8 = vpop.f32.mrb[28].mxu1 }
 0x1c8   : > { %v12054_v16 = vpop.f32.mrb[29].mxu1 }
 0x1c9   : > { %v1046_v40 = vpop.f32.mrb[30].mxu1  ;;  %12235 = vmatmul.mubr.msk.bf16.gmra.mrb[128].mxu0 %vm656_vm1, %v15218_v19 }
 0x1ca   : > { %v12055_v53 = vpop.f32.mrb[31].mxu1  ;;  %12238 = vmatprep.mubr.msk.bf16.mxu0 %vm14167_vm2, %v19261_v31 }
 0x1cc   : > { %v914_v59 = vpop.f32.mrb[24].mxu0  ;;  %12281 = vmatmul.mubr.msk.bf16.gmra.mrb[136].mxu1 %vm656_vm1, %v2019_v45 }
 0x1cd   : > { %v12012_v24 = vpop.f32.mrb[25].mxu0  ;;  %12284 = vmatprep.mubr.msk.bf16.mxu1 %vm14167_vm2, %v19261_v31 }
 0x1ce   : > { %v916_v7 = vpop.f32.mrb[26].mxu0  ;;  %v2179_v24 = vrot.slane %v15133_v35, 1 }
 0x1cf   : > { %v15295_v61 = vadd.f32 %v15236_v23, %v916_v7  ;;  %v12013_v25 = vpop.f32.mrb[27].mxu0  ;;  %v1051_v5 = vpop.f32.mrb[32].mxu1  ;;  %v2180_v7 = vrot.slane %v15140_v2, 1 }
 0x1d0   : > { %v12058_v29 = vpop.f32.mrb[33].mxu1  ;;  %v10977_v25 = vld [vmem:[%s19222_s1 + $0x14] sm:$0x3] }
 0x1d1   : > { %v1054_v18 = vpop.f32.mrb[34].mxu1  ;;  %12239 = vmatmul.mubr.msk.bf16.gmra.mrb[132].mxu0 %vm656_vm1, %v15234_v44 }
 0x1d2   : > { %v12059_v51 = vpop.f32.mrb[35].mxu1  ;;  %12242 = vmatprep.mubr.msk.bf16.mxu0 %vm14167_vm2, %v19261_v31 }
 0x1d4   : > { %v921_v4 = vpop.f32.mrb[28].mxu0  ;;  %12285 = vmatmul.mubr.msk.bf16.gmra.mrb[140].mxu1 %vm656_vm1, %v2022_v46 }
 0x1d5   : > { %v15302_v56 = vadd.f32 %v1043_v8, %v921_v4  ;;  %v12016_v10 = vpop.f32.mrb[29].mxu0  ;;  %12328 = vmatprep.mubr.msk.bf16.mxu1 %vm14167_vm2, %v19261_v31 }
 0x1d6   : > { %v924_v23 = vpop.f32.mrb[30].mxu0  ;;  %v2606_v10 = vsel %vm830_vm0, %v10977_v25, 0 }
 0x1d7   : > { %v15306_v62 = vadd.f32 %v1046_v40, %v924_v23  ;;  %v12017_v37 = vpop.f32.mrb[31].mxu0  ;;  %v1323_v49 = vpop.f32.mrb[36].mxu1  ;;  %v2181_v23 = vsel %vm1068_vm5, %v2179_v24, %v2180_v7 }
 0x1d8   : > { %v12102_v6 = vpop.f32.mrb[37].mxu1 }
 0x1d9   : > { %12243 = vmatmul.mubr.msk.bf16.gmra.mrb[136].mxu0 %vm656_vm1, %v15259_v43  ;;  %v1326_v26 = vpop.f32.mrb[38].mxu1 }
 0x1da   : > { %12246 = vmatprep.mubr.msk.bf16.mxu0 %vm14167_vm2, %v19261_v31  ;;  %v12103_v54 = vpop.f32.mrb[39].mxu1 }
 0x1dc   : > { %v929_v13 = vpop.f32.mrb[32].mxu0  ;;  %12329 = vmatmul.mubr.msk.bf16.vlgmr.msra.gmra.mrb[144].mxu1 %vm656_vm1, %v14709_v14 }
 0x1dd   : > { %v15318_v8 = vadd.f32 %v1051_v5, %v929_v13  ;;  %v12020_v58 = vpop.f32.mrb[33].mxu0  ;;  %12332 = vmatprep.mubr.msk.bf16.mxu1 %vm14167_vm2, %v19261_v31  ;;  %12403 = vmatpush3.bf16.msra.mxu1 %v2779_v3 }
 0x1de   : > { %v932_v20 = vpop.f32.mrb[34].mxu0  ;;  %12478 = vmatprep.subr.bf16.mxu1 %v19261_v31 }
 0x1df   : > { %v12021_v16 = vpop.f32.mrb[35].mxu0  ;;  %v1331_v40 = vpop.f32.mrb[40].mxu1 }
 0x1e0   : > { %v12106_v53 = vpop.f32.mrb[41].mxu1 }
 0x1e1   : > { %12247 = vmatmul.mubr.msk.bf16.gmra.mrb[140].mxu0 %vm656_vm1, %v15275_v30  ;;  %v1334_v45 = vpop.f32.mrb[42].mxu1 }
 0x1e2   : > { %v12107_v59 = vpop.f32.mrb[43].mxu1  ;;  %12290 = vmatprep.mubr.msk.bf16.mxu0 %vm14167_vm2, %v19261_v31 }
 0x1e4   : > { %v1150_v33 = vpop.f32.mrb[36].mxu0  ;;  %12333 = vmatmul.mubr.msk.bf16.gmra.mrb[148].mxu1 %vm656_vm1, %v14722_v38 }
 0x1e5   : > { %v1217_v5 = vadd.f32 %v1150_v33, %v14916_v11  ;;  %v12064_v29 = vpop.f32.mrb[37].mxu0  ;;  %12336 = vmatprep.mubr.msk.bf16.mxu1 %vm14167_vm2, %v19261_v31 }
 0x1e6   : > { %v1153_v46 = vpop.f32.mrb[38].mxu0 }
 0x1e7   : > { %v1218_v18 = vadd.f32 %v1153_v46, %v14923_v9  ;;  %v12065_v51 = vpop.f32.mrb[39].mxu0  ;;  %v1338_v4 = vpop.f32.mrb[44].mxu1  ;;  %v15339_v35 = vadd.f32 %v1323_v49, %v1217_v5  ;;  %v2182_v49 = vrot.slane %v15156_v28, 1  ;;  %v2184_v28 = vrot.slane %v15182_v39, 1 }
 0x1e8   : > { %v12110_v2 = vpop.f32.mrb[45].mxu1 }
 0x1e9   : > { %v1341_v37 = vpop.f32.mrb[46].mxu1  ;;  %12291 = vmatmul.mubr.msk.bf16.vlgmr.msra.gmra.mrb[144].mxu0 %vm656_vm1, %v2181_v23  ;;  %v15343_v11 = vadd.f32 %v1326_v26, %v1218_v18  ;;  %v2183_v16 = vsel %vm1068_vm5, %v2180_v7, %v2182_v49  ;;  %v2185_v46 = vsel %vm1068_vm5, %v2182_v49, %v2184_v28 }
 0x1ea   : > { %12365 = vmatpush3.bf16.msra.mxu0 %v2606_v10  ;;  %v12111_v60 = vpop.f32.mrb[47].mxu1  ;;  %12294 = vmatprep.mubr.msk.bf16.mxu0 %vm14167_vm2, %v19261_v31 }
 0x1eb   : > { %12440 = vmatprep.subr.bf16.mxu0 %v19261_v31 }
 0x1ec   : > { %v1158_v9 = vpop.f32.mrb[40].mxu0  ;;  %12337 = vmatmul.mubr.msk.bf16.gmra.mrb[152].mxu1 %vm656_vm1, %v14747_v41 }
 0x1ed   : > { %v1219_v6 = vadd.f32 %v1158_v9, %v15122_v52  ;;  %v12068_v54 = vpop.f32.mrb[41].mxu0  ;;  %12340 = vmatprep.mubr.msk.bf16.mxu1 %vm14167_vm2, %v19261_v31 }
 0x1ee   : > { %v1161_v26 = vpop.f32.mrb[42].mxu0 }
 0x1ef   : > { %v12069_v3 = vpop.f32.mrb[43].mxu0  ;;  %v1346_v13 = vpop.f32.mrb[48].mxu1  ;;  %v15354_v58 = vadd.f32 %v1331_v40, %v1219_v6 }
 0x1f0   : > { %v12114_v20 = vpop.f32.mrb[49].mxu1 }
 0x1f1   : > { %v1349_v53 = vpop.f32.mrb[50].mxu1  ;;  %12295 = vmatmul.mubr.msk.bf16.gmra.mrb[148].mxu0 %vm656_vm1, %v2183_v16 }
 0x1f2   : > { %v12115_v45 = vpop.f32.mrb[51].mxu1  ;;  %12298 = vmatprep.mubr.msk.bf16.mxu0 %vm14167_vm2, %v19261_v31 }
 0x1f3   : > { %v2354_v45 = vld [vmem:[#allocation2 + $0x8c] sm:$0xff] }
 0x1f4   : > { %v1165_v52 = vpop.f32.mrb[44].mxu0  ;;  %12341 = vmatmul.mubr.msk.bf16.gmra.mrb[156].mxu1 %vm656_vm1, %v14798_v17 }
 0x1f5   : > { %v1220_v59 = vadd.f32 %v1165_v52, %v15171_v47  ;;  %v12072_v40 = vpop.f32.mrb[45].mxu0  ;;  %12344 = vmatprep.mubr.msk.bf16.mxu1 %vm14167_vm2, %v19261_v31 }
 0x1f6   : > { %v1168_v33 = vpop.f32.mrb[46].mxu0 }
 0x1f7   : > { %v1221_v24 = vadd.f32 %v1168_v33, %v15178_v55  ;;  %v12073_v7 = vpop.f32.mrb[47].mxu0  ;;  %v1354_v25 = vpop.f32.mrb[52].mxu1  ;;  %v15367_v5 = vadd.f32 %v1338_v4, %v1220_v59  ;;  %v2186_v55 = vrot.slane %v15203_v22, 1 }
 0x1f8   : > { %v12118_v29 = vpop.f32.mrb[53].mxu1 }
 0x1f9   : > { %v1356_v18 = vpop.f32.mrb[54].mxu1  ;;  %12299 = vmatmul.mubr.msk.bf16.gmra.mrb[152].mxu0 %vm656_vm1, %v2185_v46  ;;  %v15371_v39 = vadd.f32 %v1341_v37, %v1221_v24  ;;  %v2187_v6 = vsel %vm1068_vm5, %v2184_v28, %v2186_v55 }
 0x1fa   : > { %v12119_v47 = vpop.f32.mrb[55].mxu1  ;;  %12302 = vmatprep.mubr.msk.bf16.mxu0 %vm14167_vm2, %v19261_v31 }
 0x1fb   : > { %v2355_v47 = vld [vmem:[#allocation2 + $0x94] sm:$0xff] }
 0x1fc   : > { %v1173_v51 = vpop.f32.mrb[48].mxu0  ;;  %12345 = vmatmul.mubr.msk.bf16.gmra.mrb[160].mxu1 %vm656_vm1, %v14836_v0 }
 0x1fd   : > { %v1222_v4 = vadd.f32 %v1173_v51, %v15193_v1  ;;  %v12076_v10 = vpop.f32.mrb[49].mxu0  ;;  %12348 = vmatprep.mubr.msk.bf16.mxu1 %vm14167_vm2, %v19261_v31  ;;  %v2356_v51 = vld [vmem:[#allocation2 + $0x9c] sm:$0xff] }
 0x1fe   : > { %v1176_v2 = vpop.f32.mrb[50].mxu0 }
 0x1ff   : > { %v1223_v23 = vadd.f32 %v1176_v2, %v15198_v50  ;;  %v12077_v37 = vpop.f32.mrb[51].mxu0  ;;  %v1361_v60 = vpop.f32.mrb[56].mxu1  ;;  %v15382_v9 = vadd.f32 %v1346_v13, %v1222_v4  ;;  %v2188_v50 = vrot.slane %v15218_v19, 1  ;;  %v15401_v19 = vpack.c.bf16 %v2354_v45, %v15245_v15 }
 0x200   : > { %v12122_v49 = vpop.f32.mrb[57].mxu1  ;;  %v2192_v37 = vrot.slane %v15259_v43, 1 }
 0x201   : > { %v1364_v54 = vpop.f32.mrb[58].mxu1  ;;  %12303 = vmatmul.mubr.msk.bf16.gmra.mrb[156].mxu0 %vm656_vm1, %v2187_v6  ;;  %v15386_v22 = vadd.f32 %v1349_v53, %v1223_v23  ;;  %v2189_v28 = vsel %vm1068_vm5, %v2186_v55, %v2188_v50  ;;  %v15418_v23 = vpack.c.bf16 %v2356_v51, %v2355_v47  ;;  %v2357_v49 = vld [vmem:[#allocation2 + $0xa4] sm:$0xf] }
 0x202   : > { %v12123_v1 = vpop.f32.mrb[59].mxu1  ;;  %12306 = vmatprep.mubr.msk.bf16.mxu0 %vm14167_vm2, %v19261_v31 }
 0x204   : > { %v1181_v26 = vpop.f32.mrb[52].mxu0  ;;  %12349 = vmatmul.mubr.msk.bf16.gmra.mrb[164].mxu1 %vm656_vm1, %v14849_v12 }
 0x205   : > { %v12080_v3 = vpop.f32.mrb[53].mxu0  ;;  %12352 = vmatprep.mubr.msk.bf16.mxu1 %vm14167_vm2, %v19261_v31 }
 0x206   : > { %v1183_v13 = vpop.f32.mrb[54].mxu0  ;;  %v15429_v3 = vpack.c.bf16 %v2357_v49, %v2357_v49 }
 0x207   : > { %v1224_v20 = vadd.f32 %v1183_v13, %v15229_v32  ;;  %v12081_v16 = vpop.f32.mrb[55].mxu0  ;;  %v1369_v53 = vpop.f32.mrb[60].mxu1  ;;  %v2190_v32 = vrot.slane %v15234_v44, 1 }
 0x208   : > { %v12126_v52 = vpop.f32.mrb[61].mxu1 }
 0x209   : > { %v1371_v59 = vpop.f32.mrb[62].mxu1  ;;  %12307 = vmatmul.mubr.msk.bf16.gmra.mrb[160].mxu0 %vm656_vm1, %v2189_v28  ;;  %v15398_v40 = vadd.f32 %v1356_v18, %v1224_v20  ;;  %v2191_v10 = vsel %vm1068_vm5, %v2188_v50, %v2190_v32  ;;  %v2193_v50 = vsel %vm1068_vm5, %v2190_v32, %v2192_v37  ;;  %v2735_v32 = vrot.slane %v14722_v38, 1 }
 0x20a   : > { %v12127_v33 = vpop.f32.mrb[63].mxu1  ;;  %12310 = vmatprep.mubr.msk.bf16.mxu0 %vm14167_vm2, %v19261_v31 }
 0x20c   : > { %v1188_v24 = vpop.f32.mrb[56].mxu0  ;;  %12353 = vmatmul.mubr.msk.bf16.gmra.mrb[168].mxu1 %vm656_vm1, %v15401_v19 }
 0x20d   : > { %v1225_v7 = vadd.f32 %v1188_v24, %v15248_v21  ;;  %v12084_v25 = vpop.f32.mrb[57].mxu0  ;;  %12356 = vmatprep.mubr.msk.bf16.mxu1 %vm14167_vm2, %v19261_v31 }
 0x20e   : > { %v1191_v29 = vpop.f32.mrb[58].mxu0  ;;  %v11007_v25 = vld [vmem:[%s19222_s1 + $0x1a] sm:$0x3] }
 0x20f   : > { %v1226_v46 = vadd.f32 %v1191_v29, %v15255_v36  ;;  %v12085_v15 = vpop.f32.mrb[59].mxu0  ;;  %v1376_v18 = vpop.f32.mrb[64].mxu1  ;;  %v15412_v55 = vadd.f32 %v1361_v60, %v1225_v7  ;;  %v2734_v29 = vrot.slane %v14709_v14, 1 }
 0x210   : > { %v12130_v4 = vpop.f32.mrb[65].mxu1 }
 0x211   : > { %v1379_v2 = vpop.f32.mrb[66].mxu1  ;;  %12311 = vmatmul.mubr.msk.bf16.gmra.mrb[164].mxu0 %vm656_vm1, %v2191_v10  ;;  %v15416_v44 = vadd.f32 %v1364_v54, %v1226_v46  ;;  %v2736_v47 = vsel %vm1068_vm5, %v2734_v29, %v2735_v32 }
 0x212   : > { %v12131_v21 = vpop.f32.mrb[67].mxu1  ;;  %12314 = vmatprep.mubr.msk.bf16.mxu0 %vm14167_vm2, %v19261_v31 }
 0x213   : > { %v2518_v21 = vshll.u32 %v14709_v14, 16 }
 0x214   : > { %v1196_v36 = vpop.f32.mrb[60].mxu0  ;;  %12357 = vmatmul.mubr.msk.bf16.gmra.mrb[172].mxu1 %vm656_vm1, %v15418_v23 }
 0x215   : > { %v12088_v60 = vpop.f32.mrb[61].mxu0  ;;  %12360 = vmatprep.mubr.msk.bf16.mxu1 %vm14167_vm2, %v19261_v31 }
 0x216   : > { %v1198_v6 = vpop.f32.mrb[62].mxu0  ;;  %v2737_v60 = vrot.slane %v14747_v41, 1 }
 0x217   : > { %v1227_v54 = vadd.f32 %v1198_v6, %v15295_v61  ;;  %v12089_v1 = vpop.f32.mrb[63].mxu0  ;;  %v1384_v26 = vpop.f32.mrb[68].mxu1  ;;  %v2194_v61 = vrot.slane %v15275_v30, 1 }
 0x218   : > { %v12134_v13 = vpop.f32.mrb[69].mxu1 }
 0x219   : > { %12315 = vmatmul.mubr.msk.bf16.gmra.mrb[168].mxu0 %vm656_vm1, %v2193_v50  ;;  %v1387_v20 = vpop.f32.mrb[70].mxu1  ;;  %v15432_v16 = vadd.f32 %v1371_v59, %v1227_v54  ;;  %v2195_v30 = vsel %vm1068_vm5, %v2192_v37, %v2194_v61  ;;  %v2522_v54 = vshll.u32 %v14722_v38, 16  ;;  %v2520_v50 = vrot.slane %v2518_v21, 1 }
 0x21a   : > { %12318 = vmatprep.mubr.msk.bf16.mxu0 %vm14167_vm2, %v19261_v31  ;;  %v12135_v43 = vpop.f32.mrb[71].mxu1  ;;  %v2738_v13 = vsel %vm1068_vm5, %v2735_v32, %v2737_v60 }
 0x21b   : > { %v2516_v43 = vshrl.u32 %v14709_v14, 16  ;;  %v2739_v14 = vrot.slane %v14798_v17, 1 }
 0x21c   : > { %v1203_v53 = vpop.f32.mrb[64].mxu0  ;;  %12361 = vmatmul.mubr.msk.bf16.gmra.mrb[176].mxu1 %vm656_vm1, %v15429_v3 }
 0x21d   : > { %v1228_v45 = vadd.f32 %v1203_v53, %v15302_v56  ;;  %v12092_v52 = vpop.f32.mrb[65].mxu0  ;;  %12404 = vmatprep.mubr.msk.bf16.mxu1 %vm14167_vm2, %v19261_v31  ;;  %v10997_v53 = vld [vmem:[%s19222_s1 + $0x18] sm:$0x3] }
 0x21e   : > { %v1206_v28 = vpop.f32.mrb[66].mxu0 }
 0x21f   : > { %v1229_v59 = vadd.f32 %v1206_v28, %v15306_v62  ;;  %v12093_v33 = vpop.f32.mrb[67].mxu0  ;;  %v1705_v24 = vpop.f32.mrb[72].mxu1  ;;  %v15444_v7 = vadd.f32 %v1376_v18, %v1228_v45  ;;  %v3161_v18 = vsel %vm830_vm0, %v11007_v25, 0  ;;  %v2521_v28 = vor.u32 %v2520_v50, %v2516_v43 }
 0x220   : > { %v12178_v56 = vpop.f32.mrb[73].mxu1  ;;  %v2952_v25 = vsel %vm830_vm0, %v10997_v53, 0 }
 0x221   : > { %12319 = vmatmul.mubr.msk.bf16.gmra.mrb[172].mxu0 %vm656_vm1, %v2195_v30  ;;  %v1708_v46 = vpop.f32.mrb[74].mxu1  ;;  %v15452_v15 = vadd.f32 %v1379_v2, %v1229_v59 }
 0x222   : > { %v12179_v62 = vpop.f32.mrb[75].mxu1  ;;  %12322 = vmatprep.mubr.msk.bf16.mxu0 %vm14167_vm2, %v19261_v31 }
 0x224   : > { %v1211_v51 = vpop.f32.mrb[68].mxu0  ;;  %12405 = vmatmul.mubr.msk.bf16.vlgmr.msra.gmra.mrb[180].mxu1 %vm656_vm1, %v2736_v47  ;;  %v2740_v47 = vsel %vm1068_vm5, %v2737_v60, %v2739_v14  ;;  %v2741_v60 = vrot.slane %v14836_v0, 1 }
 0x225   : > { %v1230_v4 = vadd.f32 %v1211_v51, %v15318_v8  ;;  %v12096_v10 = vpop.f32.mrb[69].mxu0  ;;  %12408 = vmatprep.mubr.msk.bf16.mxu1 %vm14167_vm2, %v19261_v31  ;;  %12479 = vmatpush3.bf16.msra.mxu1 %v3161_v18  ;;  %v2526_v51 = vshrl.u32 %v14722_v38, 16  ;;  %v2536_v38 = vshll.u32 %v14798_v17, 16 }
 0x226   : > { %v1214_v2 = vpop.f32.mrb[70].mxu0  ;;  %12554 = vmatprep.subr.bf16.mxu1 %v19261_v31 }
 0x227   : > { %v12097_v36 = vpop.f32.mrb[71].mxu0  ;;  %v1713_v37 = vpop.f32.mrb[76].mxu1  ;;  %v15465_v49 = vadd.f32 %v1384_v26, %v1230_v4  ;;  %v2524_v26 = vrot.slane %v2522_v54, 1  ;;  %v2538_v43 = vrot.slane %v2536_v38, 1 }
 0x228   : > { %v12182_v6 = vpop.f32.mrb[77].mxu1 }
 0x229   : > { %v1716_v8 = vpop.f32.mrb[78].mxu1  ;;  %12323 = vmatmul.mubr.msk.bf16.gmra.mrb[176].mxu0 %vm656_vm1, %v2194_v61  ;;  %v2525_v29 = vsel %vm731_vm3, %v2521_v28, %v2524_v26  ;;  %v2528_v21 = vor.u32 %v2526_v51, %v2524_v26 }
 0x22a   : > { %v12183_v1 = vpop.f32.mrb[79].mxu1  ;;  %12366 = vmatprep.mubr.msk.bf16.mxu0 %vm14167_vm2, %v19261_v31 }
 0x22c   : > { %v1532_v20 = vpop.f32.mrb[72].mxu0  ;;  %12409 = vmatmul.mubr.msk.bf16.gmra.mrb[184].mxu1 %vm656_vm1, %v2738_v13  ;;  %v2742_v13 = vsel %vm1068_vm5, %v2739_v14, %v2741_v60 }
 0x22d   : > { %v1599_v45 = vadd.f32 %v1532_v20, %v15339_v35  ;;  %v12140_v61 = vpop.f32.mrb[73].mxu0  ;;  %12412 = vmatprep.mubr.msk.bf16.mxu1 %vm14167_vm2, %v19261_v31  ;;  %v2529_v35 = vshll.u32 %v14747_v41, 16 }
 0x22e   : > { %v1535_v52 = vpop.f32.mrb[74].mxu0 }
 0x22f   : > { %v1600_v59 = vadd.f32 %v1535_v52, %v15343_v11  ;;  %v12141_v33 = vpop.f32.mrb[75].mxu0  ;;  %v1720_v32 = vpop.f32.mrb[80].mxu1  ;;  %v15483_v30 = vadd.f32 %v1705_v24, %v1599_v45  ;;  %v2531_v4 = vrot.slane %v2529_v35, 1 }
 0x230   : > { %v12186_v56 = vpop.f32.mrb[81].mxu1  ;;  %v2743_v33 = vrot.slane %v14849_v12, 1 }
 0x231   : > { %v1723_v62 = vpop.f32.mrb[82].mxu1  ;;  %12367 = vmatmul.mubr.msk.bf16.vlgmr.msra.gmra.mrb[180].mxu0 %vm656_vm1, %v2525_v29  ;;  %v15488_v18 = vadd.f32 %v1708_v46, %v1600_v59  ;;  %v2532_v1 = vsel %vm731_vm3, %v2528_v21, %v2531_v4  ;;  %v2543_v56 = vshll.u32 %v14836_v0, 16  ;;  %v2745_v21 = vrot.slane %v15401_v19, 1 }
 0x232   : > { %12441 = vmatpush3.bf16.msra.mxu0 %v2952_v25  ;;  %v12187_v11 = vpop.f32.mrb[83].mxu1  ;;  %12370 = vmatprep.mubr.msk.bf16.mxu0 %vm14167_vm2, %v19261_v31 }
 0x233   : > { %12516 = vmatprep.subr.bf16.mxu0 %v19261_v31 }
 0x234   : > { %v1540_v24 = vpop.f32.mrb[76].mxu0  ;;  %12413 = vmatmul.mubr.msk.bf16.gmra.mrb[188].mxu1 %vm656_vm1, %v2740_v47  ;;  %v2545_v47 = vrot.slane %v2543_v56, 1 }
 0x235   : > { %v1601_v10 = vadd.f32 %v1540_v24, %v15354_v58  ;;  %v12144_v2 = vpop.f32.mrb[77].mxu0  ;;  %12416 = vmatprep.mubr.msk.bf16.mxu1 %vm14167_vm2, %v19261_v31 }
 0x236   : > { %v1543_v46 = vpop.f32.mrb[78].mxu0 }
 0x237   : > { %v12145_v36 = vpop.f32.mrb[79].mxu0  ;;  %v1728_v6 = vpop.f32.mrb[84].mxu1  ;;  %v15500_v54 = vadd.f32 %v1713_v37, %v1601_v10  ;;  %v2533_v37 = vshrl.u32 %v14747_v41, 16 }
 0x238   : > { %v12190_v8 = vpop.f32.mrb[85].mxu1 }
 0x239   : > { %v1731_v50 = vpop.f32.mrb[86].mxu1  ;;  %12371 = vmatmul.mubr.msk.bf16.gmra.mrb[184].mxu0 %vm656_vm1, %v2532_v1  ;;  %v2535_v61 = vor.u32 %v2533_v37, %v2531_v4  ;;  %v2550_v8 = vshll.u32 %v14849_v12, 16 }
 0x23a   : > { %v12191_v58 = vpop.f32.mrb[87].mxu1  ;;  %12374 = vmatprep.mubr.msk.bf16.mxu0 %vm14167_vm2, %v19261_v31 }
 0x23b   : > { %v2539_v41 = vsel %vm731_vm3, %v2535_v61, %v2538_v43 }
 0x23c   : > { %v1547_v20 = vpop.f32.mrb[80].mxu0  ;;  %12417 = vmatmul.mubr.msk.bf16.gmra.mrb[192].mxu1 %vm656_vm1, %v2742_v13  ;;  %v2552_v13 = vrot.slane %v2550_v8, 1 }
 0x23d   : > { %v1602_v26 = vadd.f32 %v1547_v20, %v15367_v5  ;;  %v12148_v53 = vpop.f32.mrb[81].mxu0  ;;  %12420 = vmatprep.mubr.msk.bf16.mxu1 %vm14167_vm2, %v19261_v31 }
 0x23e   : > { %v1550_v45 = vpop.f32.mrb[82].mxu0 }
 0x23f   : > { %v1603_v52 = vadd.f32 %v1550_v45, %v15371_v39  ;;  %v12149_v28 = vpop.f32.mrb[83].mxu0  ;;  %v1736_v59 = vpop.f32.mrb[88].mxu1  ;;  %v15515_v25 = vadd.f32 %v1720_v32, %v1602_v26  ;;  %v2744_v39 = vsel %vm1068_vm5, %v2741_v60, %v2743_v33  ;;  %v2540_v32 = vshrl.u32 %v14798_v17, 16 }
 0x240   : > { %v12194_v14 = vpop.f32.mrb[89].mxu1  ;;  %v2747_v45 = vrot.slane %v15418_v23, 1  ;;  %v2557_v28 = vshll.u32 %v15401_v19, 16 }
 0x241   : > { %v1738_v5 = vpop.f32.mrb[90].mxu1  ;;  %12375 = vmatmul.mubr.msk.bf16.gmra.mrb[188].mxu0 %vm656_vm1, %v2539_v41  ;;  %v15520_v29 = vadd.f32 %v1723_v62, %v1603_v52  ;;  %v2542_v4 = vor.u32 %v2540_v32, %v2538_v43  ;;  %v2554_v41 = vshrl.u32 %v14849_v12, 16 }
 0x242   : > { %v12195_v35 = vpop.f32.mrb[91].mxu1  ;;  %12378 = vmatprep.mubr.msk.bf16.mxu0 %vm14167_vm2, %v19261_v31  ;;  %v2559_v56 = vrot.slane %v2557_v28, 1 }
 0x243   : > { %v2546_v17 = vsel %vm731_vm3, %v2542_v4, %v2545_v47 }
 0x244   : > { %v1555_v11 = vpop.f32.mrb[84].mxu0  ;;  %12421 = vmatmul.mubr.msk.bf16.gmra.mrb[196].mxu1 %vm656_vm1, %v2744_v39 }
 0x245   : > { %v1604_v24 = vadd.f32 %v1555_v11, %v15382_v9  ;;  %v12152_v51 = vpop.f32.mrb[85].mxu0  ;;  %12424 = vmatprep.mubr.msk.bf16.mxu1 %vm14167_vm2, %v19261_v31  ;;  %v2556_v11 = vor.u32 %v2554_v41, %v2552_v13 }
 0x246   : > { %v1558_v62 = vpop.f32.mrb[86].mxu0  ;;  %v2749_v51 = vrot.slane %v15429_v3, 1 }
 0x247   : > { %v1605_v10 = vadd.f32 %v1558_v62, %v15386_v22  ;;  %v12153_v2 = vpop.f32.mrb[87].mxu0  ;;  %v1743_v46 = vpop.f32.mrb[92].mxu1  ;;  %v15532_v36 = vadd.f32 %v1728_v6, %v1604_v24  ;;  %v2746_v22 = vsel %vm1068_vm5, %v2743_v33, %v2745_v21  ;;  %v2547_v6 = vshrl.u32 %v14836_v0, 16 }
 0x248   : > { %v12198_v60 = vpop.f32.mrb[93].mxu1  ;;  %v2560_v12 = vsel %vm731_vm3, %v2556_v11, %v2559_v56 }
 0x249   : > { %v1746_v9 = vpop.f32.mrb[94].mxu1  ;;  %12379 = vmatmul.mubr.msk.bf16.gmra.mrb[192].mxu0 %vm656_vm1, %v2546_v17  ;;  %v15537_v1 = vadd.f32 %v1731_v50, %v1605_v10  ;;  %v2549_v43 = vor.u32 %v2547_v6, %v2545_v47  ;;  %v2561_v10 = vshrl.u32 %v15401_v19, 16  ;;  %v2896_v19 = vld [vmem:[#allocation2 + $0x2a] sm:$0xff] }
 0x24a   : > { %v12199_v38 = vpop.f32.mrb[95].mxu1  ;;  %12382 = vmatprep.mubr.msk.bf16.mxu0 %vm14167_vm2, %v19261_v31 }
 0x24b   : > { %v2553_v52 = vsel %vm731_vm3, %v2549_v43, %v2552_v13  ;;  %v2563_v8 = vor.u32 %v2561_v10, %v2559_v56  ;;  %v2901_v56 = vld [vmem:[#allocation2 + $0x52] sm:$0xff] }
 0x24c   : > { %v1563_v58 = vpop.f32.mrb[88].mxu0  ;;  %12425 = vmatmul.mubr.msk.bf16.gmra.mrb[200].mxu1 %vm656_vm1, %v2746_v22  ;;  %v2898_v22 = vld [vmem:[#allocation2 + $0x3a] sm:$0xff] }
 0x24d   : > { %v12156_v20 = vpop.f32.mrb[89].mxu0  ;;  %12428 = vmatprep.mubr.msk.bf16.mxu1 %vm14167_vm2, %v19261_v31  ;;  %v2899_v58 = vld [vmem:[#allocation2 + $0x42] sm:$0xff] }
 0x24e   : > { %v1565_v37 = vpop.f32.mrb[90].mxu0 }
 0x24f   : > { %v1606_v50 = vadd.f32 %v1565_v37, %v15398_v40  ;;  %v12157_v26 = vpop.f32.mrb[91].mxu0  ;;  %v1751_v53 = vpop.f32.mrb[96].mxu1  ;;  %v2748_v40 = vsel %vm1068_vm5, %v2745_v21, %v2747_v45 }
 0x250   : > { %v12202_v61 = vpop.f32.mrb[97].mxu1 }
 0x251   : > { %v1753_v59 = vpop.f32.mrb[98].mxu1  ;;  %12383 = vmatmul.mubr.msk.bf16.gmra.mrb[196].mxu0 %vm656_vm1, %v2553_v52  ;;  %v15551_v0 = vadd.f32 %v1738_v5, %v1606_v50  ;;  %v15580_v50 = vpack.c.bf16 %v2899_v58, %v2898_v22  ;;  %v2571_v61 = vshll.u32 %v15429_v3, 16  ;;  %v2902_v58 = vld [vmem:[#allocation2 + $0x5a] sm:$0xff] }
 0x252   : > { %v12203_v33 = vpop.f32.mrb[99].mxu1  ;;  %12386 = vmatprep.mubr.msk.bf16.mxu0 %vm14167_vm2, %v19261_v31 }
 0x254   : > { %v1570_v14 = vpop.f32.mrb[92].mxu0  ;;  %12429 = vmatmul.mubr.msk.bf16.gmra.mrb[204].mxu1 %vm656_vm1, %v2748_v40 }
 0x255   : > { %v1607_v35 = vadd.f32 %v1570_v14, %v15412_v55  ;;  %v12160_v39 = vpop.f32.mrb[93].mxu0  ;;  %12432 = vmatprep.mubr.msk.bf16.mxu1 %vm14167_vm2, %v19261_v31  ;;  %v2564_v55 = vshll.u32 %v15418_v23, 16 }
 0x256   : > { %v1573_v5 = vpop.f32.mrb[94].mxu0 }
 0x257   : > { %v1608_v32 = vadd.f32 %v1573_v5, %v15416_v44  ;;  %v12161_v47 = vpop.f32.mrb[95].mxu0  ;;  %v1758_v24 = vpop.f32.mrb[100].mxu1  ;;  %v15563_v62 = vadd.f32 %v1743_v46, %v1607_v35  ;;  %v2897_v44 = vld [vmem:[#allocation2 + $0x32] sm:$0xff]  ;;  %v2750_v46 = vsel %vm1068_vm5, %v2747_v45, %v2749_v51  ;;  %v2566_v38 = vrot.slane %v2564_v55, 1 }
 0x258   : > { %v12206_v4 = vpop.f32.mrb[101].mxu1  ;;  %v2568_v45 = vshrl.u32 %v15418_v23, 16  ;;  %v2573_v23 = vrot.slane %v2571_v61, 1  ;;  %v3081_v61 = vshrl.u32 %v15580_v50, 16 }
 0x259   : > { %v1761_v2 = vpop.f32.mrb[102].mxu1  ;;  %12387 = vmatmul.mubr.msk.bf16.gmra.mrb[200].mxu0 %vm656_vm1, %v2560_v12  ;;  %v15569_v21 = vadd.f32 %v1746_v9, %v1608_v32  ;;  %v15577_v9 = vpack.c.bf16 %v2897_v44, %v2896_v19  ;;  %v2567_v53 = vsel %vm731_vm3, %v2563_v8, %v2566_v38  ;;  %v2900_v32 = vld [vmem:[#allocation2 + $0x4a] sm:$0xff]  ;;  %v2575_v19 = vshrl.u32 %v15429_v3, 16 }
 0x25a   : > { %v12207_v60 = vpop.f32.mrb[103].mxu1  ;;  %12390 = vmatprep.mubr.msk.bf16.mxu0 %vm14167_vm2, %v19261_v31  ;;  %v2570_v41 = vor.u32 %v2568_v45, %v2566_v38 }
 0x25b   : > { %v3073_v28 = vshll.u32 %v15577_v9, 16  ;;  %v3071_v11 = vshrl.u32 %v15577_v9, 16  ;;  %v2577_v45 = vor.u32 %v2575_v19, %v2573_v23 }
 0x25c   : > { %v1578_v17 = vpop.f32.mrb[96].mxu0  ;;  %12433 = vmatmul.mubr.msk.bf16.gmra.mrb[208].mxu1 %vm656_vm1, %v2750_v46  ;;  %v2574_v44 = vsel %vm731_vm3, %v2570_v41, %v2573_v23  ;;  %v2904_v23 = vld [vmem:[#allocation2 + $0x6a] sm:$0xff] }
 0x25d   : > { %v12164_v6 = vpop.f32.mrb[97].mxu0  ;;  %12436 = vmatprep.mubr.msk.bf16.mxu1 %vm14167_vm2, %v19261_v31 }
 0x25e   : > { %v1580_v13 = vpop.f32.mrb[98].mxu0  ;;  %v2903_v6 = vld [vmem:[#allocation2 + $0x62] sm:$0xff] }
 0x25f   : > { %v1609_v20 = vadd.f32 %v1580_v13, %v15432_v16  ;;  %v12165_v37 = vpop.f32.mrb[99].mxu0  ;;  %v1766_v43 = vpop.f32.mrb[104].mxu1  ;;  %v3077_v16 = vshll.u32 %v15580_v50, 16 }
 0x260   : > { %v12210_v26 = vpop.f32.mrb[105].mxu1 }
 0x261   : > { %v1769_v52 = vpop.f32.mrb[106].mxu1  ;;  %12391 = vmatmul.mubr.msk.bf16.gmra.mrb[204].mxu0 %vm656_vm1, %v2567_v53  ;;  %v15587_v33 = vadd.f32 %v1753_v59, %v1609_v20  ;;  %v3075_v59 = vrot.slane %v3073_v28, 1  ;;  %v3079_v10 = vrot.slane %v3077_v16, 1  ;;  %v15619_v26 = vpack.c.bf16 %v2903_v6, %v2902_v58  ;;  %v2907_v58 = vld [vmem:[#allocation2 + $0x82] sm:$0xff] }
 0x262   : > { %v12211_v40 = vpop.f32.mrb[107].mxu1  ;;  %12394 = vmatprep.mubr.msk.bf16.mxu0 %vm14167_vm2, %v19261_v31 }
 0x263   : > { %v3076_v17 = vor.u32 %v3075_v59, %v3071_v11  ;;  %v3083_v16 = vor.u32 %v3081_v61, %v3079_v10  ;;  %v3091_v41 = vshll.u32 %v15619_v26, 16 }
 0x264   : > { %v1585_v14 = vpop.f32.mrb[100].mxu0  ;;  %12437 = vmatmul.mubr.msk.bf16.gmra.mrb[212].mxu1 %vm656_vm1, %v2749_v51  ;;  %v15598_v51 = vpack.c.bf16 %v2901_v56, %v2900_v32 }
 0x265   : > { %v1610_v35 = vadd.f32 %v1585_v14, %v15444_v7  ;;  %v12168_v39 = vpop.f32.mrb[101].mxu0  ;;  %12480 = vmatprep.mubr.msk.bf16.mxu1 %vm14167_vm2, %v19261_v31  ;;  %v11027_v7 = vld [vmem:[%s19222_s1 + $0x1e] sm:$0x3]  ;;  %v3080_v38 = vsel %vm731_vm3, %v3076_v17, %v3079_v10 }
 0x266   : > { %v1588_v5 = vpop.f32.mrb[102].mxu0  ;;  %v3084_v22 = vshll.u32 %v15598_v51, 16  ;;  %v2905_v39 = vld [vmem:[#allocation2 + $0x72] sm:$0xff]  ;;  %v3088_v32 = vshrl.u32 %v15598_v51, 16 }
 0x267   : > { %v1611_v47 = vadd.f32 %v1588_v5, %v15452_v15  ;;  %v12169_v4 = vpop.f32.mrb[103].mxu0  ;;  %v2087_v12 = vpop.f32.mrb[108].mxu1  ;;  %v15600_v55 = vadd.f32 %v1758_v24, %v1610_v35  ;;  %v3507_v24 = vsel %vm830_vm0, %v11027_v7, 0 }
 0x268   : > { %v12254_v60 = vpop.f32.mrb[109].mxu1  ;;  %v3086_v52 = vrot.slane %v3084_v22, 1 }
 0x269   : > { %v2090_v46 = vpop.f32.mrb[110].mxu1  ;;  %12395 = vmatmul.mubr.msk.bf16.gmra.mrb[208].mxu0 %vm656_vm1, %v2574_v44  ;;  %v15607_v8 = vadd.f32 %v1761_v2, %v1611_v47  ;;  %v3093_v47 = vrot.slane %v3091_v41, 1  ;;  %v15640_v44 = vpack.c.bf16 %v2905_v39, %v2904_v23 }
 0x26a   : > { %v12255_v15 = vpop.f32.mrb[111].mxu1  ;;  %12398 = vmatprep.mubr.msk.bf16.mxu0 %vm14167_vm2, %v19261_v31  ;;  %v3087_v56 = vsel %vm731_vm3, %v3083_v16, %v3086_v52 }
 0x26b   : > { %v3098_v22 = vshll.u32 %v15640_v44, 16 }
 0x26c   : > { %v1593_v13 = vpop.f32.mrb[104].mxu0  ;;  %12481 = vmatmul.mubr.msk.bf16.vlgmr.msra.gmra.mrb[216].mxu1 %vm656_vm1, %v3080_v38 }
 0x26d   : > { %v1612_v2 = vadd.f32 %v1593_v13, %v15465_v49  ;;  %v12172_v20 = vpop.f32.mrb[105].mxu0  ;;  %12484 = vmatprep.mubr.msk.bf16.mxu1 %vm14167_vm2, %v19261_v31  ;;  %12555 = vmatpush3.bf16.msra.mxu1 %v3507_v24  ;;  %v3090_v24 = vor.u32 %v3088_v32, %v3086_v52 }
 0x26e   : > { %v1596_v37 = vpop.f32.mrb[106].mxu0  ;;  %12630 = vmatprep.subr.bf16.mxu1 %v19261_v31 }
 0x26f   : > { %v12173_v3 = vpop.f32.mrb[107].mxu0  ;;  %v2095_v53 = vpop.f32.mrb[112].mxu1  ;;  %v15623_v28 = vadd.f32 %v1766_v43, %v1612_v2  ;;  %v11017_v43 = vld [vmem:[%s19222_s1 + $0x1c] sm:$0x3] }
 0x270   : > { %v12258_v40 = vpop.f32.mrb[113].mxu1  ;;  %v3334_v60 = vsel %vm830_vm0, %v11017_v43, 0  ;;  %v2906_v2 = vld [vmem:[#allocation2 + $0x7a] sm:$0xff]  ;;  %v3095_v3 = vshrl.u32 %v15619_v26, 16 }
 0x271   : > { %v2098_v49 = vpop.f32.mrb[114].mxu1  ;;  %12399 = vmatmul.mubr.msk.bf16.gmra.mrb[212].mxu0 %vm656_vm1, %v2577_v45  ;;  %v3100_v45 = vrot.slane %v3098_v22, 1  ;;  %v15658_v61 = vpack.c.bf16 %v2907_v58, %v2906_v2 }
 0x272   : > { %v12259_v14 = vpop.f32.mrb[115].mxu1  ;;  %12442 = vmatprep.mubr.msk.bf16.mxu0 %vm14167_vm2, %v19261_v31 }
 0x273   : > { %v3105_v41 = vshll.u32 %v15658_v61, 16 }
 0x274   : > { %v1878_v35 = vpop.f32.mrb[108].mxu0  ;;  %12485 = vmatmul.mubr.msk.bf16.gmra.mrb[220].mxu1 %vm656_vm1, %v3087_v56 }
 0x275   : > { %v1945_v59 = vadd.f32 %v1878_v35, %v15483_v30  ;;  %v12216_v5 = vpop.f32.mrb[109].mxu0  ;;  %12488 = vmatprep.mubr.msk.bf16.mxu1 %vm14167_vm2, %v19261_v31  ;;  %v2908_v35 = vld [vmem:[#allocation2 + $0x8a] sm:$0xff] }
 0x276   : > { %v1881_v11 = vpop.f32.mrb[110].mxu0 }
 0x277   : > { %v1946_v4 = vadd.f32 %v1881_v11, %v15488_v18  ;;  %v12217_v10 = vpop.f32.mrb[111].mxu0  ;;  %v2102_v7 = vpop.f32.mrb[116].mxu1  ;;  %v15642_v17 = vadd.f32 %v2087_v12, %v1945_v59  ;;  %v3094_v18 = vsel %vm731_vm3, %v3090_v24, %v3093_v47  ;;  %v3102_v59 = vshrl.u32 %v15640_v44, 16 }
 0x278   : > { %v12262_v15 = vpop.f32.mrb[117].mxu1 }
 0x279   : > { %v2105_v30 = vpop.f32.mrb[118].mxu1  ;;  %12443 = vmatmul.mubr.msk.bf16.vlgmr.msra.gmra.mrb[216].mxu0 %vm656_vm1, %v15577_v9  ;;  %v15646_v38 = vadd.f32 %v2090_v46, %v1946_v4 }
 0x27a   : > { %12517 = vmatpush3.bf16.msra.mxu0 %v3334_v60  ;;  %v12263_v19 = vpop.f32.mrb[119].mxu1  ;;  %12446 = vmatprep.mubr.msk.bf16.mxu0 %vm14167_vm2, %v19261_v31 }
 0x27b   : > { %12592 = vmatprep.subr.bf16.mxu0 %v19261_v31 }
 0x27c   : > { %v1886_v12 = vpop.f32.mrb[112].mxu0  ;;  %12489 = vmatmul.mubr.msk.bf16.gmra.mrb[224].mxu1 %vm656_vm1, %v3094_v18 }
 0x27d   : > { %v1947_v6 = vadd.f32 %v1886_v12, %v15500_v54  ;;  %v12220_v13 = vpop.f32.mrb[113].mxu0  ;;  %12492 = vmatprep.mubr.msk.bf16.mxu1 %vm14167_vm2, %v19261_v31  ;;  %v3097_v54 = vor.u32 %v3095_v3, %v3093_v47  ;;  %v3107_v47 = vrot.slane %v3105_v41, 1 }
 0x27e   : > { %v1889_v46 = vpop.f32.mrb[114].mxu0 }
 0x27f   : > { %v12221_v20 = vpop.f32.mrb[115].mxu0  ;;  %v2110_v37 = vpop.f32.mrb[120].mxu1  ;;  %v15660_v52 = vadd.f32 %v2095_v53, %v1947_v6  ;;  %v3101_v14 = vsel %vm731_vm3, %v3097_v54, %v3100_v45  ;;  %v2909_v53 = vld [vmem:[#allocation2 + $0x92] sm:$0xff]  ;;  %v2911_v6 = vld [vmem:[#allocation2 + $0xa2] sm:$0xff] }
 0x280   : > { %v12266_v40 = vpop.f32.mrb[121].mxu1  ;;  %v15674_v4 = vpack.c.bf16 %v2909_v53, %v2908_v35  ;;  %v3109_v20 = vshrl.u32 %v15658_v61, 16  ;;  %v2912_v35 = vld [vmem:[#allocation2 + $0xaa] sm:$0xf] }
 0x281   : > { %v2113_v49 = vpop.f32.mrb[122].mxu1  ;;  %12447 = vmatmul.mubr.msk.bf16.gmra.mrb[220].mxu0 %vm656_vm1, %v15580_v50 }
 0x282   : > { %v12267_v16 = vpop.f32.mrb[123].mxu1  ;;  %12450 = vmatprep.mubr.msk.bf16.mxu0 %vm14167_vm2, %v19261_v31  ;;  %v3112_v18 = vshll.u32 %v15674_v4, 16 }
 0x284   : > { %v1893_v56 = vpop.f32.mrb[116].mxu0  ;;  %12493 = vmatmul.mubr.msk.bf16.gmra.mrb[228].mxu1 %vm656_vm1, %v3101_v14  ;;  %v3114_v3 = vrot.slane %v3112_v18, 1 }
 0x285   : > { %v1948_v43 = vadd.f32 %v1893_v56, %v15515_v25  ;;  %v12224_v23 = vpop.f32.mrb[117].mxu0  ;;  %12496 = vmatprep.mubr.msk.bf16.mxu1 %vm14167_vm2, %v19261_v31  ;;  %v3104_v25 = vor.u32 %v3102_v59, %v3100_v45  ;;  %v3116_v56 = vshrl.u32 %v15674_v4, 16 }
 0x286   : > { %v1896_v39 = vpop.f32.mrb[118].mxu0 }
 0x287   : > { %v1949_v5 = vadd.f32 %v1896_v39, %v15520_v29  ;;  %v12225_v11 = vpop.f32.mrb[119].mxu0  ;;  %v2118_v32 = vpop.f32.mrb[124].mxu1  ;;  %v15676_v10 = vadd.f32 %v2102_v7, %v1948_v43  ;;  %v3108_v29 = vsel %vm731_vm3, %v3104_v25, %v3107_v47 }
 0x288   : > { %v12270_v60 = vpop.f32.mrb[125].mxu1  ;;  %v15709_v11 = vpack.c.bf16 %v2912_v35, %v2912_v35 }
 0x289   : > { %v2120_v15 = vpop.f32.mrb[126].mxu1  ;;  %12451 = vmatmul.mubr.msk.bf16.gmra.mrb[224].mxu0 %vm656_vm1, %v15598_v51  ;;  %v15680_v24 = vadd.f32 %v2105_v30, %v1949_v5  ;;  %v2910_v30 = vld [vmem:[#allocation2 + $0x9a] sm:$0xff]  ;;  %v3118_v5 = vor.u32 %v3116_v56, %v3114_v3 }
 0x28a   : > { %v12271_v19 = vpop.f32.mrb[127].mxu1  ;;  %12454 = vmatprep.mubr.msk.bf16.mxu0 %vm14167_vm2, %v19261_v31  ;;  %v15696_v16 = vpack.c.bf16 %v2911_v6, %v2910_v30  ;;  %v3126_v18 = vshll.u32 %v15709_v11, 16 }
 0x28c   : > { %v1901_v22 = vpop.f32.mrb[120].mxu0  ;;  %12497 = vmatmul.mubr.msk.bf16.gmra.mrb[232].mxu1 %vm656_vm1, %v3108_v29  ;;  %v3119_v43 = vshll.u32 %v15696_v16, 16 }
 0x28d   : > { %v1950_v7 = vadd.f32 %v1901_v22, %v15532_v36  ;;  %v12228_v12 = vpop.f32.mrb[121].mxu0  ;;  %12500 = vmatprep.mubr.msk.bf16.mxu1 %vm14167_vm2, %v19261_v31  ;;  %v3111_v36 = vor.u32 %v3109_v20, %v3107_v47 }
 0x28e   : > { %v1904_v58 = vpop.f32.mrb[122].mxu0  ;;  %v3121_v60 = vrot.slane %v3119_v43, 1 }
 0x28f   : > { %v1951_v13 = vadd.f32 %v1904_v58, %v15537_v1  ;;  %v12229_v46 = vpop.f32.mrb[123].mxu0  ;;  %v2125_v2 = vpop.f32.mrb[128].mxu1  ;;  %v15692_v45 = vadd.f32 %v2110_v37, %v1950_v7  ;;  %v3115_v1 = vsel %vm731_vm3, %v3111_v36, %v3114_v3 }
 0x290   : > { %v12274_v40 = vpop.f32.mrb[129].mxu1  ;;  %v3122_v29 = vsel %vm731_vm3, %v3118_v5, %v3121_v60  ;;  %v3128_v46 = vrot.slane %v3126_v18, 1  ;;  %v11047_v18 = vld [vmem:[%s19222_s1 + $0x22] sm:$0x3] }
 0x291   : > { %v2128_v54 = vpop.f32.mrb[130].mxu1  ;;  %12455 = vmatmul.mubr.msk.bf16.gmra.mrb[228].mxu0 %vm656_vm1, %v15619_v26  ;;  %v15698_v14 = vadd.f32 %v2113_v49, %v1951_v13 }
 0x292   : > { %v12275_v41 = vpop.f32.mrb[131].mxu1  ;;  %12458 = vmatprep.mubr.msk.bf16.mxu0 %vm14167_vm2, %v19261_v31 }
 0x294   : > { %v1909_v37 = vpop.f32.mrb[124].mxu0  ;;  %12501 = vmatmul.mubr.msk.bf16.gmra.mrb[236].mxu1 %vm656_vm1, %v3115_v1  ;;  %v3130_v1 = vshrl.u32 %v15709_v11, 16 }
 0x295   : > { %v12232_v53 = vpop.f32.mrb[125].mxu0  ;;  %12504 = vmatprep.mubr.msk.bf16.mxu1 %vm14167_vm2, %v19261_v31 }
 0x296   : > { %v1911_v49 = vpop.f32.mrb[126].mxu0  ;;  %v3132_v43 = vor.u32 %v3130_v1, %v3128_v46  ;;  %v3453_v1 = vld [vmem:[#allocation2 + $0x40] sm:$0xff] }
 0x297   : > { %v1952_v23 = vadd.f32 %v1911_v49, %v15551_v0  ;;  %v12233_v39 = vpop.f32.mrb[127].mxu0  ;;  %v2133_v59 = vpop.f32.mrb[132].mxu1  ;;  %v3123_v0 = vshrl.u32 %v15696_v16, 16 }
 0x298   : > { %v12278_v32 = vpop.f32.mrb[133].mxu1 }
 0x299   : > { %v2135_v47 = vpop.f32.mrb[134].mxu1  ;;  %12459 = vmatmul.mubr.msk.bf16.gmra.mrb[232].mxu0 %vm656_vm1, %v15640_v44  ;;  %v15713_v25 = vadd.f32 %v2120_v15, %v1952_v23  ;;  %v3125_v13 = vor.u32 %v3123_v0, %v3121_v60 }
 0x29a   : > { %v12279_v19 = vpop.f32.mrb[135].mxu1  ;;  %12462 = vmatprep.mubr.msk.bf16.mxu0 %vm14167_vm2, %v19261_v31 }
 0x29b   : > { %v3129_v41 = vsel %vm731_vm3, %v3125_v13, %v3128_v46 }
 0x29c   : > { %v1916_v22 = vpop.f32.mrb[128].mxu0  ;;  %12505 = vmatmul.mubr.msk.bf16.gmra.mrb[240].mxu1 %vm656_vm1, %v3122_v29 }
 0x29d   : > { %v1953_v7 = vadd.f32 %v1916_v22, %v15563_v62  ;;  %v12236_v12 = vpop.f32.mrb[129].mxu0  ;;  %12508 = vmatprep.mubr.msk.bf16.mxu1 %vm14167_vm2, %v19261_v31 }
 0x29e   : > { %v1919_v15 = vpop.f32.mrb[130].mxu0 }
 0x29f   : > { %v1954_v58 = vadd.f32 %v1919_v15, %v15569_v21  ;;  %v12237_v30 = vpop.f32.mrb[131].mxu0  ;;  %v2140_v6 = vpop.f32.mrb[136].mxu1  ;;  %v15725_v20 = vadd.f32 %v2125_v2, %v1953_v7 }
 0x2a0   : > { %v12282_v3 = vpop.f32.mrb[137].mxu1 }
 0x2a1   : > { %v2143_v40 = vpop.f32.mrb[138].mxu1  ;;  %12463 = vmatmul.mubr.msk.bf16.gmra.mrb[236].mxu0 %vm656_vm1, %v15658_v61  ;;  %v15729_v36 = vadd.f32 %v2128_v54, %v1954_v58 }
 0x2a2   : > { %v12283_v62 = vpop.f32.mrb[139].mxu1  ;;  %12466 = vmatprep.mubr.msk.bf16.mxu0 %vm14167_vm2, %v19261_v31 }
 0x2a4   : > { %v1924_v21 = vpop.f32.mrb[132].mxu0  ;;  %12509 = vmatmul.mubr.msk.bf16.gmra.mrb[244].mxu1 %vm656_vm1, %v3129_v41 }
 0x2a5   : > { %v12240_v2 = vpop.f32.mrb[133].mxu0  ;;  %12512 = vmatprep.mubr.msk.bf16.mxu1 %vm14167_vm2, %v19261_v31 }
 0x2a6   : > { %v1926_v56 = vpop.f32.mrb[134].mxu0 }
 0x2a7   : > { %v1955_v37 = vadd.f32 %v1926_v56, %v15587_v33  ;;  %v12241_v54 = vpop.f32.mrb[135].mxu0  ;;  %v2148_v35 = vpop.f32.mrb[140].mxu1 }
 0x2a8   : > { %v12286_v53 = vpop.f32.mrb[141].mxu1  ;;  %v3290_v54 = vrot.slane %v15580_v50, 1 }
 0x2a9   : > { %12467 = vmatmul.mubr.msk.bf16.gmra.mrb[240].mxu0 %vm656_vm1, %v15674_v4  ;;  %v2151_v49 = vpop.f32.mrb[142].mxu1  ;;  %v15741_v23 = vadd.f32 %v2135_v47, %v1955_v37  ;;  %v3452_v47 = vld [vmem:[#allocation2 + $0x38] sm:$0xff] }
 0x2aa   : > { %v12287_v39 = vpop.f32.mrb[143].mxu1  ;;  %12470 = vmatprep.mubr.msk.bf16.mxu0 %vm14167_vm2, %v19261_v31 }
 0x2ab   : > { %v3289_v39 = vrot.slane %v15577_v9, 1  ;;  %v14082_v9 = vld [vmem:[#allocation2 + $0x58] sm:$0xff] }
 0x2ac   : > { %v1931_v59 = vpop.f32.mrb[136].mxu0  ;;  %12513 = vmatmul.mubr.msk.bf16.gmra.mrb[248].mxu1 %vm656_vm1, %v3132_v43 }
 0x2ad   : > { %v1956_v5 = vadd.f32 %v1931_v59, %v15600_v55  ;;  %v12244_v33 = vpop.f32.mrb[137].mxu0  ;;  %12556 = vmatprep.mubr.msk.bf16.mxu1 %vm14167_vm2, %v19261_v31  ;;  %v3451_v55 = vld [vmem:[#allocation2 + $0x30] sm:$0xff] }
 0x2ae   : > { %v1934_v32 = vpop.f32.mrb[138].mxu0  ;;  %v15759_v58 = vpack.c.bf16 %v3452_v47, %v3451_v55 }
 0x2af   : > { %v1957_v60 = vadd.f32 %v1934_v32, %v15607_v8  ;;  %v12245_v19 = vpop.f32.mrb[139].mxu0  ;;  %v2433_v29 = vpop.f32.mrb[144].mxu1  ;;  %v15750_v0 = vadd.f32 %v2140_v6, %v1956_v5  ;;  %v3889_v8 = vsel %vm830_vm0, %v11047_v18, 0 }
 0x2b0   : > { %v12330_v22 = vpop.f32.mrb[145].mxu1  ;;  %v3291_v19 = vsel %vm1068_vm5, %v3289_v39, %v3290_v54 }
 0x2b1   : > { %v2436_v7 = vpop.f32.mrb[146].mxu1  ;;  %12471 = vmatmul.mubr.msk.bf16.gmra.mrb[244].mxu0 %vm656_vm1, %v15696_v16  ;;  %v15757_v12 = vadd.f32 %v2143_v40, %v1957_v60  ;;  %v14081_v22 = vld [vmem:[#allocation2 + $0x50] sm:$0xff] }
 0x2b2   : > { %v12331_v15 = vpop.f32.mrb[147].mxu1  ;;  %12474 = vmatprep.mubr.msk.bf16.mxu0 %vm14167_vm2, %v19261_v31  ;;  %v15796_v55 = vpack.c.bf16 %v14082_v9, %v14081_v22 }
 0x2b4   : > { %v1939_v30 = vpop.f32.mrb[140].mxu0  ;;  %12557 = vmatmul.mubr.msk.bf16.vlgmr.msra.gmra.mrb[252].mxu1 %vm656_vm1, %v15759_v58 }
 0x2b5   : > { %v1958_v6 = vadd.f32 %v1939_v30, %v15623_v28  ;;  %v12248_v13 = vpop.f32.mrb[141].mxu0  ;;  %12560 = vmatprep.mubr.msk.bf16.mxu1 %vm14167_vm2, %v19261_v31  ;;  %12631 = vmatpush3.bf16.msra.mxu1 %v3889_v8  ;;  %v14080_v28 = vld [vmem:[#allocation2 + $0x48] sm:$0xff] }
 0x2b6   : > { %v1942_v46 = vpop.f32.mrb[142].mxu0  ;;  %12706 = vmatprep.subr.bf16.mxu1 %v19261_v31  ;;  %v15774_v56 = vpack.c.bf16 %v14080_v28, %v3453_v1  ;;  %v14083_v1 = vld [vmem:[#allocation2 + $0x60] sm:$0xff] }
 0x2b7   : > { %v12249_v3 = vpop.f32.mrb[143].mxu0  ;;  %v2441_v40 = vpop.f32.mrb[148].mxu1  ;;  %v15770_v62 = vadd.f32 %v2148_v35, %v1958_v6  ;;  %v11037_v35 = vld [vmem:[%s19222_s1 + $0x20] sm:$0x3] }
 0x2b8   : > { %v12334_v41 = vpop.f32.mrb[149].mxu1  ;;  %v3716_v32 = vsel %vm830_vm0, %v11037_v35, 0 }
 0x2b9   : > { %v2444_v21 = vpop.f32.mrb[150].mxu1  ;;  %12475 = vmatmul.mubr.msk.bf16.gmra.mrb[248].mxu0 %vm656_vm1, %v15709_v11 }
 0x2ba   : > { %v12335_v2 = vpop.f32.mrb[151].mxu1  ;;  %12518 = vmatprep.mubr.msk.bf16.mxu0 %vm14167_vm2, %v19261_v31 }
 0x2bc   : > { %v2260_v37 = vpop.f32.mrb[144].mxu0  ;;  %12561 = vmatmul.mubr.msk.bf16.gmra.mrb[0].mxu1 %vm656_vm1, %v15774_v56 }
 0x2bd   : > { %v2327_v53 = vadd.f32 %v2260_v37, %v15642_v17  ;;  %v12292_v43 = vpop.f32.mrb[145].mxu0  ;;  %12564 = vmatprep.mubr.msk.bf16.mxu1 %vm14167_vm2, %v19261_v31 }
 0x2be   : > { %v2263_v49 = vpop.f32.mrb[146].mxu0 }
 0x2bf   : > { %v2328_v59 = vadd.f32 %v2263_v49, %v15646_v38  ;;  %v12293_v5 = vpop.f32.mrb[147].mxu0  ;;  %v2448_v33 = vpop.f32.mrb[152].mxu1  ;;  %v15790_v50 = vadd.f32 %v2433_v29, %v2327_v53  ;;  %v3292_v29 = vrot.slane %v15598_v51, 1  ;;  %v14084_v51 = vld [vmem:[#allocation2 + $0x68] sm:$0xff] }
 0x2c0   : > { %v12338_v60 = vpop.f32.mrb[153].mxu1  ;;  %v15811_v2 = vpack.c.bf16 %v14084_v51, %v14083_v1 }
 0x2c1   : > { %v2451_v47 = vpop.f32.mrb[154].mxu1  ;;  %12519 = vmatmul.mubr.msk.bf16.vlgmr.msra.gmra.mrb[252].mxu0 %vm656_vm1, %v3291_v19  ;;  %v15794_v17 = vadd.f32 %v2436_v7, %v2328_v59  ;;  %v3293_v3 = vsel %vm1068_vm5, %v3290_v54, %v3292_v29  ;;  %v14086_v60 = vld [vmem:[#allocation2 + $0x78] sm:$0xff] }
 0x2c2   : > { %12593 = vmatpush3.bf16.msra.mxu0 %v3716_v32  ;;  %v12339_v18 = vpop.f32.mrb[155].mxu1  ;;  %12522 = vmatprep.mubr.msk.bf16.mxu0 %vm14167_vm2, %v19261_v31  ;;  %v14085_v32 = vld [vmem:[#allocation2 + $0x70] sm:$0xff] }
 0x2c3   : > { %12668 = vmatprep.subr.bf16.mxu0 %v19261_v31  ;;  %v15828_v19 = vpack.c.bf16 %v14086_v60, %v14085_v32 }
 0x2c4   : > { %v2268_v38 = vpop.f32.mrb[148].mxu0  ;;  %12565 = vmatmul.mubr.msk.bf16.gmra.mrb[4].mxu1 %vm656_vm1, %v15796_v55 }
 0x2c5   : > { %v2329_v7 = vadd.f32 %v2268_v38, %v15660_v52  ;;  %v12296_v15 = vpop.f32.mrb[149].mxu0  ;;  %12568 = vmatprep.mubr.msk.bf16.mxu1 %vm14167_vm2, %v19261_v31 }
 0x2c6   : > { %v2271_v8 = vpop.f32.mrb[150].mxu0 }
 0x2c7   : > { %v12297_v30 = vpop.f32.mrb[151].mxu0  ;;  %v2456_v6 = vpop.f32.mrb[156].mxu1  ;;  %v15807_v13 = vadd.f32 %v2441_v40, %v2329_v7  ;;  %v3294_v40 = vrot.slane %v15619_v26, 1 }
 0x2c8   : > { %v12342_v46 = vpop.f32.mrb[157].mxu1 }
 0x2c9   : > { %v2459_v41 = vpop.f32.mrb[158].mxu1  ;;  %12523 = vmatmul.mubr.msk.bf16.gmra.mrb[0].mxu0 %vm656_vm1, %v3293_v3  ;;  %v3295_v59 = vsel %vm1068_vm5, %v3292_v29, %v3294_v40  ;;  %v14087_v46 = vld [vmem:[#allocation2 + $0x80] sm:$0xff]  ;;  %v14088_v3 = vld [vmem:[#allocation2 + $0x88] sm:$0xff] }
 0x2ca   : > { %v12343_v21 = vpop.f32.mrb[159].mxu1  ;;  %12526 = vmatprep.mubr.msk.bf16.mxu0 %vm14167_vm2, %v19261_v31 }
 0x2cb   : > { %v15845_v21 = vpack.c.bf16 %v14088_v3, %v14087_v46 }
 0x2cc   : > { %v2275_v52 = vpop.f32.mrb[152].mxu0  ;;  %12569 = vmatmul.mubr.msk.bf16.gmra.mrb[8].mxu1 %vm656_vm1, %v15811_v2 }
 0x2cd   : > { %v2330_v28 = vadd.f32 %v2275_v52, %v15676_v10  ;;  %v12300_v37 = vpop.f32.mrb[153].mxu0  ;;  %12572 = vmatprep.mubr.msk.bf16.mxu1 %vm14167_vm2, %v19261_v31 }
 0x2ce   : > { %v2278_v54 = vpop.f32.mrb[154].mxu0 }
 0x2cf   : > { %v2331_v35 = vadd.f32 %v2278_v54, %v15680_v24  ;;  %v12301_v53 = vpop.f32.mrb[155].mxu0  ;;  %v2464_v43 = vpop.f32.mrb[160].mxu1  ;;  %v15822_v49 = vadd.f32 %v2448_v33, %v2330_v28  ;;  %v3296_v33 = vrot.slane %v15640_v44, 1  ;;  %v15855_v28 = vld [vmem:[#allocation2 + $0x98] sm:$0xff] }
 0x2d0   : > { %v12346_v39 = vpop.f32.mrb[161].mxu1  ;;  %v14089_v43 = vld [vmem:[#allocation2 + $0x90] sm:$0xff] }
 0x2d1   : > { %v2466_v5 = vpop.f32.mrb[162].mxu1  ;;  %12527 = vmatmul.mubr.msk.bf16.gmra.mrb[4].mxu0 %vm656_vm1, %v3295_v59  ;;  %v15826_v26 = vadd.f32 %v2451_v47, %v2331_v35  ;;  %v3297_v8 = vsel %vm1068_vm5, %v3294_v40, %v3296_v33  ;;  %v15862_v39 = vpack.c.bf16 %v15855_v28, %v14089_v43  ;;  %v3300_v59 = vrot.slane %v15674_v4, 1  ;;  %v15879_v4 = vld [vmem:[#allocation2 + $0xa0] sm:$0xff] }
 0x2d2   : > { %v12347_v10 = vpop.f32.mrb[163].mxu1  ;;  %12530 = vmatprep.mubr.msk.bf16.mxu0 %vm14167_vm2, %v19261_v31 }
 0x2d4   : > { %v2283_v24 = vpop.f32.mrb[156].mxu0  ;;  %12573 = vmatmul.mubr.msk.bf16.gmra.mrb[12].mxu1 %vm656_vm1, %v15828_v19 }
 0x2d5   : > { %v2332_v18 = vadd.f32 %v2283_v24, %v15692_v45  ;;  %v12304_v22 = vpop.f32.mrb[157].mxu0  ;;  %12576 = vmatprep.mubr.msk.bf16.mxu1 %vm14167_vm2, %v19261_v31 }
 0x2d6   : > { %v2286_v47 = vpop.f32.mrb[158].mxu0 }
 0x2d7   : > { %v2333_v9 = vadd.f32 %v2286_v47, %v15698_v14  ;;  %v12305_v38 = vpop.f32.mrb[159].mxu0  ;;  %v2471_v29 = vpop.f32.mrb[164].mxu1  ;;  %v15839_v7 = vadd.f32 %v2456_v6, %v2332_v18  ;;  %v3298_v6 = vrot.slane %v15658_v61, 1 }
 0x2d8   : > { %v12350_v15 = vpop.f32.mrb[165].mxu1 }
 0x2d9   : > { %v2474_v30 = vpop.f32.mrb[166].mxu1  ;;  %12531 = vmatmul.mubr.msk.bf16.gmra.mrb[8].mxu0 %vm656_vm1, %v3297_v8  ;;  %v15843_v44 = vadd.f32 %v2459_v41, %v2333_v9  ;;  %v3299_v54 = vsel %vm1068_vm5, %v3296_v33, %v3298_v6  ;;  %v15873_v33 = vld [vmem:[#allocation2 + $0xa8] sm:$0xff]  ;;  %v3301_v47 = vsel %vm1068_vm5, %v3298_v6, %v3300_v59  ;;  %v3302_v8 = vrot.slane %v15696_v16, 1  ;;  %v3467_v6 = vld [vmem:[#allocation2 + $0xb0] sm:$0xf] }
 0x2da   : > { %v12351_v45 = vpop.f32.mrb[167].mxu1  ;;  %12534 = vmatprep.mubr.msk.bf16.mxu0 %vm14167_vm2, %v19261_v31  ;;  %v15885_v15 = vpack.c.bf16 %v15873_v33, %v15879_v4 }
 0x2dc   : > { %v2291_v14 = vpop.f32.mrb[160].mxu0  ;;  %12577 = vmatmul.mubr.msk.bf16.gmra.mrb[16].mxu1 %vm656_vm1, %v15845_v21 }
 0x2dd   : > { %v12308_v1 = vpop.f32.mrb[161].mxu0  ;;  %12580 = vmatprep.mubr.msk.bf16.mxu1 %vm14167_vm2, %v19261_v31 }
 0x2de   : > { %v2293_v41 = vpop.f32.mrb[162].mxu0  ;;  %v3303_v1 = vsel %vm1068_vm5, %v3300_v59, %v3302_v8 }
 0x2df   : > { %v2334_v51 = vadd.f32 %v2293_v41, %v15713_v25  ;;  %v12309_v52 = vpop.f32.mrb[163].mxu0  ;;  %v2479_v40 = vpop.f32.mrb[168].mxu1 }
 0x2e0   : > { %v12354_v37 = vpop.f32.mrb[169].mxu1  ;;  %v15899_v40 = vpack.c.bf16 %v3467_v6, %v3467_v6 }
 0x2e1   : > { %v2481_v35 = vpop.f32.mrb[170].mxu1  ;;  %12535 = vmatmul.mubr.msk.bf16.gmra.mrb[12].mxu0 %vm656_vm1, %v3299_v54  ;;  %v15859_v53 = vadd.f32 %v2466_v5, %v2334_v51 }
 0x2e2   : > { %v12355_v61 = vpop.f32.mrb[171].mxu1  ;;  %12538 = vmatprep.mubr.msk.bf16.mxu0 %vm14167_vm2, %v19261_v31 }
 0x2e4   : > { %v2298_v25 = vpop.f32.mrb[164].mxu0  ;;  %12581 = vmatmul.mubr.msk.bf16.gmra.mrb[20].mxu1 %vm656_vm1, %v15862_v39 }
 0x2e5   : > { %v2335_v10 = vadd.f32 %v2298_v25, %v15725_v20  ;;  %v12312_v32 = vpop.f32.mrb[165].mxu0  ;;  %12584 = vmatprep.mubr.msk.bf16.mxu1 %vm14167_vm2, %v19261_v31 }
 0x2e6   : > { %v2301_v5 = vpop.f32.mrb[166].mxu0 }
 0x2e7   : > { %v2336_v60 = vadd.f32 %v2301_v5, %v15729_v36  ;;  %v12313_v24 = vpop.f32.mrb[167].mxu0  ;;  %v2486_v18 = vpop.f32.mrb[172].mxu1  ;;  %v15875_v22 = vadd.f32 %v2471_v29, %v2335_v10  ;;  %v3845_v10 = vrot.slane %v15774_v56, 1  ;;  %v11067_v5 = vld [vmem:[%s19222_s1 + $0x26] sm:$0x3] }
 0x2e8   : > { %v12358_v9 = vpop.f32.mrb[173].mxu1 }
 0x2e9   : > { %12539 = vmatmul.mubr.msk.bf16.gmra.mrb[16].mxu0 %vm656_vm1, %v3301_v47  ;;  %v2489_v20 = vpop.f32.mrb[174].mxu1  ;;  %v15881_v38 = vadd.f32 %v2474_v30, %v2336_v60  ;;  %v3844_v60 = vrot.slane %v15759_v58, 1 }
 0x2ea   : > { %12542 = vmatprep.mubr.msk.bf16.mxu0 %vm14167_vm2, %v19261_v31  ;;  %v12359_v36 = vpop.f32.mrb[175].mxu1 }
 0x2eb   : > { %v3846_v9 = vsel %vm1068_vm5, %v3844_v60, %v3845_v10  ;;  %v3849_v60 = vrot.slane %v15811_v2, 1 }
 0x2ec   : > { %v2306_v29 = vpop.f32.mrb[168].mxu0  ;;  %12585 = vmatmul.mubr.msk.bf16.gmra.mrb[24].mxu1 %vm656_vm1, %v15885_v15 }
 0x2ed   : > { %v12316_v45 = vpop.f32.mrb[169].mxu0  ;;  %12588 = vmatprep.mubr.msk.bf16.mxu1 %vm14167_vm2, %v19261_v31 }
 0x2ee   : > { %v2308_v30 = vpop.f32.mrb[170].mxu0 }
 0x2ef   : > { %v2337_v46 = vadd.f32 %v2308_v30, %v15741_v23  ;;  %v12317_v3 = vpop.f32.mrb[171].mxu0  ;;  %v2494_v14 = vpop.f32.mrb[176].mxu1  ;;  %v3304_v23 = vrot.slane %v15709_v11, 1 }
 0x2f0   : > { %v12362_v41 = vpop.f32.mrb[177].mxu1  ;;  %v3847_v3 = vrot.slane %v15796_v55, 1 }
 0x2f1   : > { %12543 = vmatmul.mubr.msk.bf16.gmra.mrb[20].mxu0 %vm656_vm1, %v3303_v1  ;;  %v2497_v51 = vpop.f32.mrb[178].mxu1  ;;  %v15897_v52 = vadd.f32 %v2481_v35, %v2337_v46  ;;  %v3632_v41 = vshll.u32 %v15774_v56, 16 }
 0x2f2   : > { %v12363_v16 = vpop.f32.mrb[179].mxu1  ;;  %12546 = vmatprep.mubr.msk.bf16.mxu0 %vm14167_vm2, %v19261_v31 }
 0x2f4   : > { %v2313_v37 = vpop.f32.mrb[172].mxu0  ;;  %12589 = vmatmul.mubr.msk.bf16.gmra.mrb[28].mxu1 %vm656_vm1, %v15899_v40 }
 0x2f5   : > { %v2338_v54 = vadd.f32 %v2313_v37, %v15750_v0  ;;  %v12320_v61 = vpop.f32.mrb[173].mxu0  ;;  %12632 = vmatprep.mubr.msk.bf16.mxu1 %vm14167_vm2, %v19261_v31  ;;  %v3305_v0 = vsel %vm1068_vm5, %v3302_v8, %v3304_v23  ;;  %v3848_v37 = vsel %vm1068_vm5, %v3845_v10, %v3847_v3 }
 0x2f6   : > { %v2316_v35 = vpop.f32.mrb[174].mxu0 }
 0x2f7   : > { %v2339_v43 = vadd.f32 %v2316_v35, %v15757_v12  ;;  %v12321_v25 = vpop.f32.mrb[175].mxu0  ;;  %v2815_v59 = vpop.f32.mrb[180].mxu1  ;;  %v15911_v32 = vadd.f32 %v2486_v18, %v2338_v54  ;;  %v4271_v18 = vsel %vm830_vm0, %v11067_v5, 0  ;;  %v3626_v54 = vshrl.u32 %v15759_v58, 16  ;;  %v11057_v35 = vld [vmem:[%s19222_s1 + $0x24] sm:$0x3] }
 0x2f8   : > { %v12406_v11 = vpop.f32.mrb[181].mxu1 }
 0x2f9   : > { %v2818_v24 = vpop.f32.mrb[182].mxu1  ;;  %12547 = vmatmul.mubr.msk.bf16.gmra.mrb[24].mxu0 %vm656_vm1, %v3305_v0  ;;  %v15919_v47 = vadd.f32 %v2489_v20, %v2339_v43  ;;  %v3628_v20 = vshll.u32 %v15759_v58, 16  ;;  %v4062_v0 = vsel %vm830_vm0, %v11057_v35, 0 }
 0x2fa   : > { %v12407_v12 = vpop.f32.mrb[183].mxu1  ;;  %12550 = vmatprep.mubr.msk.bf16.mxu0 %vm14167_vm2, %v19261_v31 }
 0x2fb   : > { %v3630_v51 = vrot.slane %v3628_v20, 1  ;;  %v3636_v20 = vshrl.u32 %v15774_v56, 16  ;;  %v3646_v56 = vshll.u32 %v15811_v2, 16 }
 0x2fc   : > { %v2321_v36 = vpop.f32.mrb[176].mxu0  ;;  %12633 = vmatmul.mubr.msk.bf16.vlgmr.msra.gmra.mrb[32].mxu1 %vm656_vm1, %v3846_v9 }
 0x2fd   : > { %v2340_v29 = vadd.f32 %v2321_v36, %v15770_v62  ;;  %v12324_v8 = vpop.f32.mrb[177].mxu0  ;;  %12636 = vmatprep.mubr.msk.bf16.mxu1 %vm14167_vm2, %v19261_v31  ;;  %12707 = vmatpush3.bf16.msra.mxu1 %v4271_v18  ;;  %v3631_v25 = vor.u32 %v3630_v51, %v3626_v54 }
 0x2fe   : > { %v2324_v45 = vpop.f32.mrb[178].mxu0  ;;  %12782 = vmatprep.subr.bf16.mxu1 %v19261_v31  ;;  %v3850_v8 = vsel %vm1068_vm5, %v3847_v3, %v3849_v60  ;;  %v3851_v3 = vrot.slane %v15828_v19, 1 }
 0x2ff   : > { %v12325_v30 = vpop.f32.mrb[179].mxu0  ;;  %v2823_v46 = vpop.f32.mrb[184].mxu1  ;;  %v15932_v6 = vadd.f32 %v2494_v14, %v2340_v29  ;;  %v3634_v14 = vrot.slane %v3632_v41, 1 }
 0x300   : > { %v12410_v1 = vpop.f32.mrb[185].mxu1 }
 0x301   : > { %v2826_v62 = vpop.f32.mrb[186].mxu1  ;;  %12551 = vmatmul.mubr.msk.bf16.gmra.mrb[28].mxu0 %vm656_vm1, %v3304_v23  ;;  %v3635_v9 = vsel %vm731_vm3, %v3631_v25, %v3634_v14  ;;  %v3638_v41 = vor.u32 %v3636_v20, %v3634_v14  ;;  %v3852_v14 = vsel %vm1068_vm5, %v3849_v60, %v3851_v3  ;;  %v3853_v60 = vrot.slane %v15845_v21, 1 }
 0x302   : > { %v12411_v16 = vpop.f32.mrb[187].mxu1  ;;  %12594 = vmatprep.mubr.msk.bf16.mxu0 %vm14167_vm2, %v19261_v31 }
 0x304   : > { %v2642_v61 = vpop.f32.mrb[180].mxu0  ;;  %12637 = vmatmul.mubr.msk.bf16.gmra.mrb[36].mxu1 %vm656_vm1, %v3848_v37 }
 0x305   : > { %v2709_v43 = vadd.f32 %v2642_v61, %v15790_v50  ;;  %v12368_v23 = vpop.f32.mrb[181].mxu0  ;;  %12640 = vmatprep.mubr.msk.bf16.mxu1 %vm14167_vm2, %v19261_v31  ;;  %v3639_v50 = vshll.u32 %v15796_v55, 16 }
 0x306   : > { %v2645_v5 = vpop.f32.mrb[182].mxu0 }
 0x307   : > { %v2710_v10 = vadd.f32 %v2645_v5, %v15794_v17  ;;  %v12369_v11 = vpop.f32.mrb[183].mxu0  ;;  %v2830_v58 = vpop.f32.mrb[188].mxu1  ;;  %v15950_v12 = vadd.f32 %v2815_v59, %v2709_v43  ;;  %v3641_v45 = vrot.slane %v3639_v50, 1  ;;  %v3648_v43 = vrot.slane %v3646_v56, 1 }
 0x308   : > { %v12414_v18 = vpop.f32.mrb[189].mxu1 }
 0x309   : > { %v2833_v36 = vpop.f32.mrb[190].mxu1  ;;  %12595 = vmatmul.mubr.msk.bf16.vlgmr.msra.gmra.mrb[32].mxu0 %vm656_vm1, %v3635_v9  ;;  %v15955_v29 = vadd.f32 %v2818_v24, %v2710_v10  ;;  %v3642_v54 = vsel %vm731_vm3, %v3638_v41, %v3641_v45 }
 0x30a   : > { %12669 = vmatpush3.bf16.msra.mxu0 %v4062_v0  ;;  %v12415_v17 = vpop.f32.mrb[191].mxu1  ;;  %12598 = vmatprep.mubr.msk.bf16.mxu0 %vm14167_vm2, %v19261_v31 }
 0x30b   : > { %12744 = vmatprep.subr.bf16.mxu0 %v19261_v31  ;;  %v3653_v17 = vshll.u32 %v15828_v19, 16 }
 0x30c   : > { %v2650_v59 = vpop.f32.mrb[184].mxu0  ;;  %12641 = vmatmul.mubr.msk.bf16.gmra.mrb[40].mxu1 %vm656_vm1, %v3850_v8 }
 0x30d   : > { %v2711_v30 = vadd.f32 %v2650_v59, %v15807_v13  ;;  %v12372_v1 = vpop.f32.mrb[185].mxu0  ;;  %12644 = vmatprep.mubr.msk.bf16.mxu1 %vm14167_vm2, %v19261_v31 }
 0x30e   : > { %v2653_v24 = vpop.f32.mrb[186].mxu0 }
 0x30f   : > { %v12373_v62 = vpop.f32.mrb[187].mxu0  ;;  %v2838_v51 = vpop.f32.mrb[192].mxu1  ;;  %v15967_v16 = vadd.f32 %v2823_v46, %v2711_v30  ;;  %v3643_v46 = vshrl.u32 %v15796_v55, 16 }
 0x310   : > { %v12418_v37 = vpop.f32.mrb[193].mxu1 }
 0x311   : > { %v2841_v61 = vpop.f32.mrb[194].mxu1  ;;  %12599 = vmatmul.mubr.msk.bf16.gmra.mrb[36].mxu0 %vm656_vm1, %v3642_v54  ;;  %v3645_v10 = vor.u32 %v3643_v46, %v3641_v45  ;;  %v3655_v45 = vrot.slane %v3653_v17, 1 }
 0x312   : > { %v12419_v13 = vpop.f32.mrb[195].mxu1  ;;  %12602 = vmatprep.mubr.msk.bf16.mxu0 %vm14167_vm2, %v19261_v31 }
 0x313   : > { %v3649_v55 = vsel %vm731_vm3, %v3645_v10, %v3648_v43  ;;  %v3660_v13 = vshll.u32 %v15845_v21, 16 }
 0x314   : > { %v2657_v35 = vpop.f32.mrb[188].mxu0  ;;  %12645 = vmatmul.mubr.msk.bf16.gmra.mrb[44].mxu1 %vm656_vm1, %v3852_v14 }
 0x315   : > { %v2712_v23 = vadd.f32 %v2657_v35, %v15822_v49  ;;  %v12376_v25 = vpop.f32.mrb[189].mxu0  ;;  %12648 = vmatprep.mubr.msk.bf16.mxu1 %vm14167_vm2, %v19261_v31 }
 0x316   : > { %v2660_v5 = vpop.f32.mrb[190].mxu0 }
 0x317   : > { %v2713_v11 = vadd.f32 %v2660_v5, %v15826_v26  ;;  %v12377_v0 = vpop.f32.mrb[191].mxu0  ;;  %v2846_v18 = vpop.f32.mrb[196].mxu1  ;;  %v15982_v9 = vadd.f32 %v2830_v58, %v2712_v23  ;;  %v3854_v26 = vsel %vm1068_vm5, %v3851_v3, %v3853_v60  ;;  %v3650_v58 = vshrl.u32 %v15811_v2, 16 }
 0x318   : > { %v12422_v50 = vpop.f32.mrb[197].mxu1  ;;  %v3855_v3 = vrot.slane %v15862_v39, 1  ;;  %v3857_v0 = vrot.slane %v15885_v15, 1 }
 0x319   : > { %v2848_v49 = vpop.f32.mrb[198].mxu1  ;;  %12603 = vmatmul.mubr.msk.bf16.gmra.mrb[40].mxu0 %vm656_vm1, %v3649_v55  ;;  %v15987_v8 = vadd.f32 %v2833_v36, %v2713_v11  ;;  %v3652_v24 = vor.u32 %v3650_v58, %v3648_v43  ;;  %v3662_v43 = vrot.slane %v3660_v13, 1  ;;  %v3667_v50 = vshll.u32 %v15862_v39, 16 }
 0x31a   : > { %v12423_v59 = vpop.f32.mrb[199].mxu1  ;;  %12606 = vmatprep.mubr.msk.bf16.mxu0 %vm14167_vm2, %v19261_v31 }
 0x31b   : > { %v3656_v2 = vsel %vm731_vm3, %v3652_v24, %v3655_v45 }
 0x31c   : > { %v2665_v20 = vpop.f32.mrb[192].mxu0  ;;  %12649 = vmatmul.mubr.msk.bf16.gmra.mrb[48].mxu1 %vm656_vm1, %v3854_v26  ;;  %v3664_v26 = vshrl.u32 %v15845_v21, 16 }
 0x31d   : > { %v2714_v30 = vadd.f32 %v2665_v20, %v15839_v7  ;;  %v12380_v1 = vpop.f32.mrb[193].mxu0  ;;  %12652 = vmatprep.mubr.msk.bf16.mxu1 %vm14167_vm2, %v19261_v31  ;;  %v3669_v20 = vrot.slane %v3667_v50, 1 }
 0x31e   : > { %v2668_v36 = vpop.f32.mrb[194].mxu0 }
 0x31f   : > { %v2715_v41 = vadd.f32 %v2668_v36, %v15843_v44  ;;  %v12381_v62 = vpop.f32.mrb[195].mxu0  ;;  %v2853_v37 = vpop.f32.mrb[200].mxu1  ;;  %v15999_v54 = vadd.f32 %v2838_v51, %v2714_v30  ;;  %v3856_v44 = vsel %vm1068_vm5, %v3853_v60, %v3855_v3  ;;  %v3657_v51 = vshrl.u32 %v15828_v19, 16 }
 0x320   : > { %v12426_v56 = vpop.f32.mrb[201].mxu1  ;;  %v3666_v30 = vor.u32 %v3664_v26, %v3662_v43 }
 0x321   : > { %v2856_v7 = vpop.f32.mrb[202].mxu1  ;;  %12607 = vmatmul.mubr.msk.bf16.gmra.mrb[44].mxu0 %vm656_vm1, %v3656_v2  ;;  %v16004_v14 = vadd.f32 %v2841_v61, %v2715_v41  ;;  %v3659_v5 = vor.u32 %v3657_v51, %v3655_v45  ;;  %v3859_v41 = vrot.slane %v15899_v40, 1  ;;  %v3671_v56 = vshrl.u32 %v15862_v39, 16 }
 0x322   : > { %v12427_v35 = vpop.f32.mrb[203].mxu1  ;;  %12610 = vmatprep.mubr.msk.bf16.mxu0 %vm14167_vm2, %v19261_v31  ;;  %v3670_v21 = vsel %vm731_vm3, %v3666_v30, %v3669_v20 }
 0x323   : > { %v3663_v60 = vsel %vm731_vm3, %v3659_v5, %v3662_v43 }
 0x324   : > { %v2673_v46 = vpop.f32.mrb[196].mxu0  ;;  %12653 = vmatmul.mubr.msk.bf16.gmra.mrb[52].mxu1 %vm656_vm1, %v3856_v44  ;;  %v3673_v44 = vor.u32 %v3671_v56, %v3669_v20 }
 0x325   : > { %v12384_v23 = vpop.f32.mrb[197].mxu0  ;;  %12656 = vmatprep.mubr.msk.bf16.mxu1 %vm14167_vm2, %v19261_v31 }
 0x326   : > { %v2675_v25 = vpop.f32.mrb[198].mxu0 }
 0x327   : > { %v2716_v61 = vadd.f32 %v2675_v25, %v15859_v53  ;;  %v12385_v10 = vpop.f32.mrb[199].mxu0  ;;  %v2861_v11 = vpop.f32.mrb[204].mxu1  ;;  %v3858_v53 = vsel %vm1068_vm5, %v3855_v3, %v3857_v0 }
 0x328   : > { %v12430_v18 = vpop.f32.mrb[205].mxu1  ;;  %v3681_v10 = vshll.u32 %v15899_v40, 16 }
 0x329   : > { %v2863_v55 = vpop.f32.mrb[206].mxu1  ;;  %12611 = vmatmul.mubr.msk.bf16.gmra.mrb[48].mxu0 %vm656_vm1, %v3663_v60  ;;  %v16018_v19 = vadd.f32 %v2848_v49, %v2716_v61  ;;  %v3678_v61 = vshrl.u32 %v15885_v15, 16 }
 0x32a   : > { %v12431_v17 = vpop.f32.mrb[207].mxu1  ;;  %12614 = vmatprep.mubr.msk.bf16.mxu0 %vm14167_vm2, %v19261_v31 }
 0x32c   : > { %v2680_v59 = vpop.f32.mrb[200].mxu0  ;;  %12657 = vmatmul.mubr.msk.bf16.gmra.mrb[56].mxu1 %vm656_vm1, %v3858_v53 }
 0x32d   : > { %v2717_v58 = vadd.f32 %v2680_v59, %v15875_v22  ;;  %v12388_v45 = vpop.f32.mrb[201].mxu0  ;;  %12660 = vmatprep.mubr.msk.bf16.mxu1 %vm14167_vm2, %v19261_v31  ;;  %v3674_v22 = vshll.u32 %v15885_v15, 16  ;;  %v3683_v15 = vrot.slane %v3681_v10, 1 }
 0x32e   : > { %v2683_v49 = vpop.f32.mrb[202].mxu0 }
 0x32f   : > { %v2718_v1 = vadd.f32 %v2683_v49, %v15881_v38  ;;  %v12389_v36 = vpop.f32.mrb[203].mxu0  ;;  %v2868_v24 = vpop.f32.mrb[208].mxu1  ;;  %v16030_v62 = vadd.f32 %v2853_v37, %v2717_v58  ;;  %v3860_v38 = vsel %vm1068_vm5, %v3857_v0, %v3859_v41  ;;  %v3676_v46 = vrot.slane %v3674_v22, 1 }
 0x330   : > { %v12434_v3 = vpop.f32.mrb[209].mxu1  ;;  %v4183_v0 = vshll.u32 %v14908_v34, 16  ;;  %v4181_v49 = vshrl.u32 %v14908_v34, 16  ;;  %v11087_v36 = vld [vmem:[%s19222_s1 + $0x2a] sm:$0x3] }
 0x331   : > { %v2871_v2 = vpop.f32.mrb[210].mxu1  ;;  %12615 = vmatmul.mubr.msk.bf16.gmra.mrb[52].mxu0 %vm656_vm1, %v3670_v21  ;;  %v16036_v13 = vadd.f32 %v2856_v7, %v2718_v1  ;;  %v3677_v5 = vsel %vm731_vm3, %v3673_v44, %v3676_v46  ;;  %v3680_v17 = vor.u32 %v3678_v61, %v3676_v46  ;;  %v3685_v21 = vshrl.u32 %v15899_v40, 16 }
 0x332   : > { %v12435_v35 = vpop.f32.mrb[211].mxu1  ;;  %12618 = vmatprep.mubr.msk.bf16.mxu0 %vm14167_vm2, %v19261_v31  ;;  %v4185_v26 = vrot.slane %v4183_v0, 1  ;;  %v4201_v0 = vshll.u32 %v14951_v27, 16 }
 0x333   : > { %v3687_v44 = vor.u32 %v3685_v21, %v3683_v15 }
 0x334   : > { %v2688_v37 = vpop.f32.mrb[204].mxu0  ;;  %12661 = vmatmul.mubr.msk.bf16.gmra.mrb[60].mxu1 %vm656_vm1, %v3860_v38  ;;  %v4194_v38 = vshll.u32 %v14949_v42, 16 }
 0x335   : > { %v12392_v51 = vpop.f32.mrb[205].mxu0  ;;  %12664 = vmatprep.mubr.msk.bf16.mxu1 %vm14167_vm2, %v19261_v31 }
 0x336   : > { %v2690_v39 = vpop.f32.mrb[206].mxu0 }
 0x337   : > { %v2719_v43 = vadd.f32 %v2690_v39, %v15897_v52  ;;  %v12393_v7 = vpop.f32.mrb[207].mxu0  ;;  %v2876_v23 = vpop.f32.mrb[212].mxu1  ;;  %v4187_v52 = vshll.u32 %v14941_v63, 16 }
 0x338   : > { %v12438_v25 = vpop.f32.mrb[213].mxu1  ;;  %v4196_v7 = vrot.slane %v4194_v38, 1 }
 0x339   : > { %v2879_v11 = vpop.f32.mrb[214].mxu1  ;;  %12619 = vmatmul.mubr.msk.bf16.gmra.mrb[56].mxu0 %vm656_vm1, %v3677_v5  ;;  %v16050_v18 = vadd.f32 %v2863_v55, %v2719_v43  ;;  %v4189_v30 = vrot.slane %v4187_v52, 1  ;;  %v4191_v43 = vshrl.u32 %v14941_v63, 16 }
 0x33a   : > { %v12439_v60 = vpop.f32.mrb[215].mxu1  ;;  %12622 = vmatprep.mubr.msk.bf16.mxu0 %vm14167_vm2, %v19261_v31 }
 0x33c   : > { %v2695_v50 = vpop.f32.mrb[208].mxu0  ;;  %12665 = vmatmul.mubr.msk.bf16.gmra.mrb[64].mxu1 %vm656_vm1, %v3859_v41  ;;  %v3684_v41 = vsel %vm731_vm3, %v3680_v17, %v3683_v15  ;;  %v4198_v15 = vshrl.u32 %v14949_v42, 16 }
 0x33d   : > { %v2720_v53 = vadd.f32 %v2695_v50, %v15911_v32  ;;  %v12396_v59 = vpop.f32.mrb[209].mxu0  ;;  %12708 = vmatprep.mubr.msk.bf16.mxu1 %vm14167_vm2, %v19261_v31 }
 0x33e   : > { %v2698_v55 = vpop.f32.mrb[210].mxu0 }
 0x33f   : > { %v2721_v20 = vadd.f32 %v2698_v55, %v15919_v47  ;;  %v12397_v58 = vpop.f32.mrb[211].mxu0  ;;  %v3197_v45 = vpop.f32.mrb[216].mxu1  ;;  %v16061_v1 = vadd.f32 %v2868_v24, %v2720_v53  ;;  %v4186_v47 = vor.u32 %v4185_v26, %v4181_v49  ;;  %v4617_v24 = vsel %vm830_vm0, %v11087_v36, 0 }
 0x340   : > { %v12482_v32 = vpop.f32.mrb[217].mxu1 }
 0x341   : > { %v3200_v3 = vpop.f32.mrb[218].mxu1  ;;  %12623 = vmatmul.mubr.msk.bf16.gmra.mrb[60].mxu0 %vm656_vm1, %v3684_v41  ;;  %v16069_v56 = vadd.f32 %v2871_v2, %v2721_v20  ;;  %v4190_v35 = vsel %vm731_vm3, %v4186_v47, %v4189_v30  ;;  %v4203_v20 = vrot.slane %v4201_v0, 1  ;;  %v4208_v41 = vshll.u32 %v14953_v57, 16 }
 0x342   : > { %v12483_v22 = vpop.f32.mrb[219].mxu1  ;;  %12626 = vmatprep.mubr.msk.bf16.mxu0 %vm14167_vm2, %v19261_v31 }
 0x343   : > { %v4210_v38 = vrot.slane %v4208_v41, 1 }
 0x344   : > { %v2703_v37 = vpop.f32.mrb[212].mxu0  ;;  %12709 = vmatmul.mubr.msk.bf16.vlgmr.msra.gmra.mrb[68].mxu1 %vm656_vm1, %v4190_v35  ;;  %v4205_v35 = vshrl.u32 %v14951_v27, 16 }
 0x345   : > { %v2722_v40 = vadd.f32 %v2703_v37, %v15932_v6  ;;  %v12400_v46 = vpop.f32.mrb[213].mxu0  ;;  %12712 = vmatprep.mubr.msk.bf16.mxu1 %vm14167_vm2, %v19261_v31  ;;  %12783 = vmatpush3.bf16.msra.mxu1 %v4617_v24  ;;  %v4193_v6 = vor.u32 %v4191_v43, %v4189_v30  ;;  %v16117_v37 = vpack.c.bf16 %v15879_v4, %v15855_v28  ;;  %v4019_v4 = vld [vmem:[#allocation2 + $0xb0] sm:$0xff] }
 0x346   : > { %v2706_v2 = vpop.f32.mrb[214].mxu0  ;;  %12858 = vmatprep.subr.bf16.mxu1 %v19261_v31 }
 0x347   : > { %v12401_v51 = vpop.f32.mrb[215].mxu0  ;;  %v3205_v39 = vpop.f32.mrb[220].mxu1  ;;  %v16082_v25 = vadd.f32 %v2876_v23, %v2722_v40  ;;  %v4197_v11 = vsel %vm731_vm3, %v4193_v6, %v4196_v7  ;;  %v11077_v23 = vld [vmem:[%s19222_s1 + $0x28] sm:$0x3] }
 0x348   : > { %v12486_v5 = vpop.f32.mrb[221].mxu1  ;;  %v4444_v55 = vsel %vm830_vm0, %v11077_v23, 0  ;;  %v4212_v51 = vshrl.u32 %v14953_v57, 16  ;;  %v16134_v23 = vpack.c.bf16 %v4019_v4, %v15873_v33 }
 0x349   : > { %v3208_v61 = vpop.f32.mrb[222].mxu1  ;;  %12627 = vmatmul.mubr.msk.bf16.gmra.mrb[64].mxu0 %vm656_vm1, %v3687_v44 }
 0x34a   : > { %v12487_v10 = vpop.f32.mrb[223].mxu1  ;;  %12670 = vmatprep.mubr.msk.bf16.mxu0 %vm14167_vm2, %v19261_v31  ;;  %v4214_v6 = vor.u32 %v4212_v51, %v4210_v38  ;;  %v4222_v33 = vshll.u32 %v16134_v23, 16 }
 0x34c   : > { %v2988_v60 = vpop.f32.mrb[216].mxu0  ;;  %12713 = vmatmul.mubr.msk.bf16.gmra.mrb[72].mxu1 %vm656_vm1, %v4197_v11 }
 0x34d   : > { %v3055_v52 = vadd.f32 %v2988_v60, %v15950_v12  ;;  %v12444_v50 = vpop.f32.mrb[217].mxu0  ;;  %12716 = vmatprep.mubr.msk.bf16.mxu1 %vm14167_vm2, %v19261_v31  ;;  %v4200_v12 = vor.u32 %v4198_v15, %v4196_v7  ;;  %v4215_v7 = vshll.u32 %v16117_v37, 16 }
 0x34e   : > { %v2991_v17 = vpop.f32.mrb[218].mxu0 }
 0x34f   : > { %v3056_v53 = vadd.f32 %v2991_v17, %v15955_v29  ;;  %v12445_v59 = vpop.f32.mrb[219].mxu0  ;;  %v3212_v26 = vpop.f32.mrb[224].mxu1  ;;  %v16099_v58 = vadd.f32 %v3197_v45, %v3055_v52  ;;  %v4204_v29 = vsel %vm731_vm3, %v4200_v12, %v4203_v20  ;;  %v4217_v60 = vrot.slane %v4215_v7, 1 }
 0x350   : > { %v12490_v49 = vpop.f32.mrb[225].mxu1 }
 0x351   : > { %v3215_v30 = vpop.f32.mrb[226].mxu1  ;;  %12671 = vmatmul.mubr.msk.bf16.vlgmr.msra.gmra.mrb[68].mxu0 %vm656_vm1, %v14908_v34  ;;  %v16103_v36 = vadd.f32 %v3200_v3, %v3056_v53  ;;  %v4218_v53 = vsel %vm731_vm3, %v4214_v6, %v4217_v60 }
 0x352   : > { %12745 = vmatpush3.bf16.msra.mxu0 %v4444_v55  ;;  %v12491_v32 = vpop.f32.mrb[227].mxu1  ;;  %12674 = vmatprep.mubr.msk.bf16.mxu0 %vm14167_vm2, %v19261_v31  ;;  %v4021_v55 = vld [vmem:[#allocation2 + $0xc0] sm:$0xff] }
 0x353   : > { %12820 = vmatprep.subr.bf16.mxu0 %v19261_v31 }
 0x354   : > { %v2996_v45 = vpop.f32.mrb[220].mxu0  ;;  %12717 = vmatmul.mubr.msk.bf16.gmra.mrb[76].mxu1 %vm656_vm1, %v4204_v29 }
 0x355   : > { %v3057_v21 = vadd.f32 %v2996_v45, %v15967_v16  ;;  %v12448_v47 = vpop.f32.mrb[221].mxu0  ;;  %12720 = vmatprep.mubr.msk.bf16.mxu1 %vm14167_vm2, %v19261_v31  ;;  %v4207_v16 = vor.u32 %v4205_v35, %v4203_v20  ;;  %v4224_v45 = vrot.slane %v4222_v33, 1 }
 0x356   : > { %v2999_v3 = vpop.f32.mrb[222].mxu0 }
 0x357   : > { %v12449_v22 = vpop.f32.mrb[223].mxu0  ;;  %v3220_v24 = vpop.f32.mrb[228].mxu1  ;;  %v16119_v44 = vadd.f32 %v3205_v39, %v3057_v21  ;;  %v4211_v43 = vsel %vm731_vm3, %v4207_v16, %v4210_v38  ;;  %v4022_v38 = vld [vmem:[#allocation2 + $0xc8] sm:$0xf] }
 0x358   : > { %v12494_v40 = vpop.f32.mrb[229].mxu1 }
 0x359   : > { %v3223_v46 = vpop.f32.mrb[230].mxu1  ;;  %12675 = vmatmul.mubr.msk.bf16.gmra.mrb[72].mxu0 %vm656_vm1, %v14941_v63  ;;  %v4226_v40 = vshrl.u32 %v16134_v23, 16 }
 0x35a   : > { %v12495_v2 = vpop.f32.mrb[231].mxu1  ;;  %12678 = vmatprep.mubr.msk.bf16.mxu0 %vm14167_vm2, %v19261_v31 }
 0x35b   : > { %v4228_v4 = vor.u32 %v4226_v40, %v4224_v45 }
 0x35c   : > { %v3003_v28 = vpop.f32.mrb[224].mxu0  ;;  %12721 = vmatmul.mubr.msk.bf16.gmra.mrb[80].mxu1 %vm656_vm1, %v4211_v43 }
 0x35d   : > { %v3058_v39 = vadd.f32 %v3003_v28, %v15982_v9  ;;  %v12452_v5 = vpop.f32.mrb[225].mxu0  ;;  %12724 = vmatprep.mubr.msk.bf16.mxu1 %vm14167_vm2, %v19261_v31 }
 0x35e   : > { %v3006_v61 = vpop.f32.mrb[226].mxu0 }
 0x35f   : > { %v3059_v10 = vadd.f32 %v3006_v61, %v15987_v8  ;;  %v12453_v11 = vpop.f32.mrb[227].mxu0  ;;  %v3228_v0 = vpop.f32.mrb[232].mxu1  ;;  %v16136_v52 = vadd.f32 %v3212_v26, %v3058_v39  ;;  %v4219_v8 = vshrl.u32 %v16117_v37, 16  ;;  %v4020_v26 = vld [vmem:[#allocation2 + $0xb8] sm:$0xff] }
 0x360   : > { %v12498_v50 = vpop.f32.mrb[233].mxu1  ;;  %v16152_v21 = vpack.c.bf16 %v4021_v55, %v4020_v26 }
 0x361   : > { %v3230_v17 = vpop.f32.mrb[234].mxu1  ;;  %12679 = vmatmul.mubr.msk.bf16.gmra.mrb[76].mxu0 %vm656_vm1, %v14949_v42  ;;  %v16140_v9 = vadd.f32 %v3215_v30, %v3059_v10  ;;  %v4221_v12 = vor.u32 %v4219_v8, %v4217_v60 }
 0x362   : > { %v12499_v15 = vpop.f32.mrb[235].mxu1  ;;  %12682 = vmatprep.mubr.msk.bf16.mxu0 %vm14167_vm2, %v19261_v31  ;;  %v4229_v16 = vshll.u32 %v16152_v21, 16  ;;  %v4233_v6 = vshrl.u32 %v16152_v21, 16 }
 0x364   : > { %v3011_v59 = vpop.f32.mrb[228].mxu0  ;;  %12725 = vmatmul.mubr.msk.bf16.gmra.mrb[84].mxu1 %vm656_vm1, %v4218_v53  ;;  %v4231_v39 = vrot.slane %v4229_v16, 1 }
 0x365   : > { %v3060_v20 = vadd.f32 %v3011_v59, %v15999_v54  ;;  %v12456_v49 = vpop.f32.mrb[229].mxu0  ;;  %12728 = vmatprep.mubr.msk.bf16.mxu1 %vm14167_vm2, %v19261_v31 }
 0x366   : > { %v3014_v30 = vpop.f32.mrb[230].mxu0  ;;  %v4235_v8 = vor.u32 %v4233_v6, %v4231_v39 }
 0x367   : > { %v3061_v32 = vadd.f32 %v3014_v30, %v16004_v14  ;;  %v12457_v29 = vpop.f32.mrb[231].mxu0  ;;  %v3235_v41 = vpop.f32.mrb[236].mxu1  ;;  %v16154_v47 = vadd.f32 %v3220_v24, %v3060_v20  ;;  %v4225_v14 = vsel %vm731_vm3, %v4221_v12, %v4224_v45 }
 0x368   : > { %v12502_v3 = vpop.f32.mrb[237].mxu1 }
 0x369   : > { %v3238_v22 = vpop.f32.mrb[238].mxu1  ;;  %12683 = vmatmul.mubr.msk.bf16.gmra.mrb[80].mxu0 %vm656_vm1, %v14951_v27  ;;  %v16158_v54 = vadd.f32 %v3223_v46, %v3061_v32  ;;  %v16168_v46 = vpack.c.bf16 %v4022_v38, %v4022_v38 }
 0x36a   : > { %v12503_v35 = vpop.f32.mrb[239].mxu1  ;;  %12686 = vmatprep.mubr.msk.bf16.mxu0 %vm14167_vm2, %v19261_v31 }
 0x36b   : > { %v4236_v10 = vshll.u32 %v16168_v46, 16 }
 0x36c   : > { %v3019_v24 = vpop.f32.mrb[232].mxu0  ;;  %12729 = vmatmul.mubr.msk.bf16.gmra.mrb[88].mxu1 %vm656_vm1, %v4225_v14 }
 0x36d   : > { %v12460_v2 = vpop.f32.mrb[233].mxu0  ;;  %12732 = vmatprep.mubr.msk.bf16.mxu1 %vm14167_vm2, %v19261_v31  ;;  %v4238_v53 = vrot.slane %v4236_v10, 1 }
 0x36e   : > { %v3021_v51 = vpop.f32.mrb[234].mxu0 }
 0x36f   : > { %v3062_v43 = vadd.f32 %v3021_v51, %v16018_v19  ;;  %v12461_v7 = vpop.f32.mrb[235].mxu0  ;;  %v3243_v28 = vpop.f32.mrb[240].mxu1  ;;  %v4232_v19 = vsel %vm731_vm3, %v4228_v4, %v4231_v39  ;;  %v11107_v39 = vld [vmem:[%s19222_s1 + $0x2e] sm:$0x3] }
 0x370   : > { %v12506_v5 = vpop.f32.mrb[241].mxu1 }
 0x371   : > { %v3245_v61 = vpop.f32.mrb[242].mxu1  ;;  %12687 = vmatmul.mubr.msk.bf16.gmra.mrb[84].mxu0 %vm656_vm1, %v14953_v57  ;;  %v16175_v11 = vadd.f32 %v3230_v17, %v3062_v43 }
 0x372   : > { %v12507_v0 = vpop.f32.mrb[243].mxu1  ;;  %12690 = vmatprep.mubr.msk.bf16.mxu0 %vm14167_vm2, %v19261_v31 }
 0x374   : > { %v3026_v60 = vpop.f32.mrb[236].mxu0  ;;  %12733 = vmatmul.mubr.msk.bf16.gmra.mrb[92].mxu1 %vm656_vm1, %v4232_v19 }
 0x375   : > { %v3063_v50 = vadd.f32 %v3026_v60, %v16030_v62  ;;  %v12464_v15 = vpop.f32.mrb[237].mxu0  ;;  %12736 = vmatprep.mubr.msk.bf16.mxu1 %vm14167_vm2, %v19261_v31  ;;  %v4239_v62 = vsel %vm731_vm3, %v4235_v8, %v4238_v53  ;;  %v4563_v8 = vld [vmem:[#allocation2 + $0x5e] sm:$0xff] }
 0x376   : > { %v3029_v33 = vpop.f32.mrb[238].mxu0 }
 0x377   : > { %v3064_v17 = vadd.f32 %v3029_v33, %v16036_v13  ;;  %v12465_v59 = vpop.f32.mrb[239].mxu0  ;;  %v3250_v26 = vpop.f32.mrb[244].mxu1  ;;  %v16185_v55 = vadd.f32 %v3235_v41, %v3063_v50  ;;  %v4240_v13 = vshrl.u32 %v16168_v46, 16 }
 0x378   : > { %v12510_v20 = vpop.f32.mrb[245].mxu1  ;;  %v4575_v59 = vld [vmem:[#allocation2 + $0xbe] sm:$0xff] }
 0x379   : > { %v3253_v49 = vpop.f32.mrb[246].mxu1  ;;  %12691 = vmatmul.mubr.msk.bf16.gmra.mrb[88].mxu0 %vm656_vm1, %v16117_v37  ;;  %v16190_v30 = vadd.f32 %v3238_v22, %v3064_v17  ;;  %v4242_v22 = vor.u32 %v4240_v13, %v4238_v53  ;;  %v4564_v53 = vld [vmem:[#allocation2 + $0x66] sm:$0xff] }
 0x37a   : > { %v12511_v12 = vpop.f32.mrb[247].mxu1  ;;  %12694 = vmatprep.mubr.msk.bf16.mxu0 %vm14167_vm2, %v19261_v31  ;;  %v11097_v13 = vld [vmem:[%s19222_s1 + $0x2c] sm:$0x3] }
 0x37c   : > { %v3034_v32 = vpop.f32.mrb[240].mxu0  ;;  %12737 = vmatmul.mubr.msk.bf16.gmra.mrb[96].mxu1 %vm656_vm1, %v4239_v62 }
 0x37d   : > { %v12468_v29 = vpop.f32.mrb[241].mxu0  ;;  %12740 = vmatprep.mubr.msk.bf16.mxu1 %vm14167_vm2, %v19261_v31  ;;  %v4400_v32 = vrot.slane %v14941_v63, 1 }
 0x37e   : > { %v3036_v41 = vpop.f32.mrb[242].mxu0  ;;  %v4577_v29 = vld [vmem:[#allocation2 + $0xce] sm:$0xf] }
 0x37f   : > { %v3065_v45 = vadd.f32 %v3036_v41, %v16050_v18  ;;  %v12469_v3 = vpop.f32.mrb[243].mxu0  ;;  %v3258_v35 = vpop.f32.mrb[248].mxu1 }
 0x380   : > { %v12514_v38 = vpop.f32.mrb[249].mxu1 }
 0x381   : > { %12695 = vmatmul.mubr.msk.bf16.gmra.mrb[92].mxu0 %vm656_vm1, %v16134_v23  ;;  %v3261_v14 = vpop.f32.mrb[250].mxu1  ;;  %v16201_v40 = vadd.f32 %v3245_v61, %v3065_v45 }
 0x382   : > { %v12515_v16 = vpop.f32.mrb[251].mxu1  ;;  %12698 = vmatprep.mubr.msk.bf16.mxu0 %vm14167_vm2, %v19261_v31 }
 0x383   : > { %v4826_v16 = vsel %vm830_vm0, %v11097_v13, 0 }
 0x384   : > { %v3041_v24 = vpop.f32.mrb[244].mxu0  ;;  %12741 = vmatmul.mubr.msk.bf16.gmra.mrb[100].mxu1 %vm656_vm1, %v4242_v22  ;;  %v4399_v22 = vrot.slane %v14908_v34, 1 }
 0x385   : > { %v3066_v2 = vadd.f32 %v3041_v24, %v16061_v1  ;;  %v12472_v18 = vpop.f32.mrb[245].mxu0  ;;  %12784 = vmatprep.mubr.msk.bf16.mxu1 %vm14167_vm2, %v19261_v31  ;;  %v4566_v24 = vld [vmem:[#allocation2 + $0x76] sm:$0xff] }
 0x386   : > { %v3044_v51 = vpop.f32.mrb[246].mxu0 }
 0x387   : > { %v3067_v43 = vadd.f32 %v3044_v51, %v16069_v56  ;;  %v12473_v7 = vpop.f32.mrb[247].mxu0  ;;  %v3543_v28 = vpop.f32.mrb[252].mxu1  ;;  %v16210_v4 = vadd.f32 %v3250_v26, %v3066_v2  ;;  %v4999_v56 = vsel %vm830_vm0, %v11107_v39, 0  ;;  %v4576_v26 = vld [vmem:[#allocation2 + $0xc6] sm:$0xff]  ;;  %v16251_v2 = vpack.c.bf16 %v4577_v29, %v4577_v29 }
 0x388   : > { %v12558_v5 = vpop.f32.mrb[253].mxu1  ;;  %v16236_v62 = vpack.c.bf16 %v4576_v26, %v4575_v59  ;;  %v4401_v51 = vsel %vm1068_vm5, %v4399_v22, %v4400_v32  ;;  %v4565_v7 = vld [vmem:[#allocation2 + $0x6e] sm:$0xff]  ;;  %v4567_v59 = vld [vmem:[#allocation2 + $0x7e] sm:$0xff]  ;;  %v4568_v26 = vld [vmem:[#allocation2 + $0x86] sm:$0xff] }
 0x389   : > { %v3546_v61 = vpop.f32.mrb[254].mxu1  ;;  %12699 = vmatmul.mubr.msk.bf16.gmra.mrb[96].mxu0 %vm656_vm1, %v16152_v21  ;;  %v16217_v1 = vadd.f32 %v3253_v49, %v3067_v43  ;;  %v16232_v49 = vpack.c.bf16 %v4564_v53, %v4563_v8  ;;  %v4791_v5 = vshll.u32 %v16251_v2, 16  ;;  %v16285_v13 = vpack.c.bf16 %v4568_v26, %v4567_v59 }
 0x38a   : > { %v12559_v6 = vpop.f32.mrb[255].mxu1  ;;  %12702 = vmatprep.mubr.msk.bf16.mxu0 %vm14167_vm2, %v19261_v31  ;;  %v4784_v3 = vshll.u32 %v16236_v62, 16 }
 0x38c   : > { %v3049_v10 = vpop.f32.mrb[248].mxu0  ;;  %12785 = vmatmul.mubr.msk.bf16.vlgmr.msra.gmra.mrb[104].mxu1 %vm656_vm1, %v14775_v48  ;;  %v16259_v34 = vrot.slane %v4784_v3, 1 }
 0x38d   : > { %v3068_v0 = vadd.f32 %v3049_v10, %v16082_v25  ;;  %v12476_v19 = vpop.f32.mrb[249].mxu0  ;;  %12788 = vmatprep.mubr.msk.bf16.mxu1 %vm14167_vm2, %v19261_v31  ;;  %12859 = vmatpush3.bf16.msra.mxu1 %v4999_v56  ;;  %v16263_v56 = vpack.c.bf16 %v4566_v24, %v4565_v7  ;;  %v16269_v10 = vrot.slane %v4791_v5, 1 }
 0x38e   : > { %v3052_v60 = vpop.f32.mrb[250].mxu0  ;;  %12934 = vmatprep.subr.bf16.mxu1 %v19261_v31 }
 0x38f   : > { %v12477_v50 = vpop.f32.mrb[251].mxu0  ;;  %v3551_v15 = vpop.f32.mrb[0].mxu1  ;;  %v16228_v33 = vadd.f32 %v3258_v35, %v3068_v0  ;;  %v4402_v0 = vrot.slane %v14949_v42, 1 }
 0x390   : > { %v12562_v17 = vpop.f32.mrb[1].mxu1 }
 0x391   : > { %v3554_v20 = vpop.f32.mrb[2].mxu1  ;;  %12703 = vmatmul.mubr.msk.bf16.gmra.mrb[100].mxu0 %vm656_vm1, %v16168_v46  ;;  %v4403_v42 = vsel %vm1068_vm5, %v4400_v32, %v4402_v0 }
 0x392   : > { %v12563_v25 = vpop.f32.mrb[3].mxu1  ;;  %12746 = vmatprep.mubr.msk.bf16.mxu0 %vm14167_vm2, %v19261_v31 }
 0x394   : > { %v3370_v12 = vpop.f32.mrb[252].mxu0  ;;  %12789 = vmatmul.mubr.msk.bf16.gmra.mrb[108].mxu1 %vm656_vm1, %v16232_v49 }
 0x395   : > { %v3437_v41 = vadd.f32 %v3370_v12, %v16099_v58  ;;  %v12520_v45 = vpop.f32.mrb[253].mxu0  ;;  %12792 = vmatprep.mubr.msk.bf16.mxu1 %vm14167_vm2, %v19261_v31 }
 0x396   : > { %v3373_v35 = vpop.f32.mrb[254].mxu0 }
 0x397   : > { %v3438_v38 = vadd.f32 %v3373_v35, %v16103_v36  ;;  %v12521_v14 = vpop.f32.mrb[255].mxu0  ;;  %v3558_v63 = vpop.f32.mrb[4].mxu1  ;;  %v16253_v18 = vadd.f32 %v3543_v28, %v3437_v41  ;;  %v4788_v36 = vshrl.u32 %v16236_v62, 16  ;;  %v4404_v41 = vrot.slane %v14951_v27, 1 }
 0x398   : > { %v12566_v58 = vpop.f32.mrb[5].mxu1  ;;  %v4570_v14 = vld [vmem:[#allocation2 + $0x96] sm:$0xff] }
 0x399   : > { %v3561_v43 = vpop.f32.mrb[6].mxu1  ;;  %12747 = vmatmul.mubr.msk.bf16.vlgmr.msra.gmra.mrb[104].mxu0 %vm656_vm1, %v4401_v51  ;;  %v16257_v39 = vadd.f32 %v3546_v61, %v3438_v38  ;;  %v4790_v28 = vor.u32 %v4788_v36, %v16259_v34  ;;  %v4569_v38 = vld [vmem:[#allocation2 + $0x8e] sm:$0xff]  ;;  %v4405_v58 = vsel %vm1068_vm5, %v4402_v0, %v4404_v41  ;;  %v4571_v0 = vld [vmem:[#allocation2 + $0x9e] sm:$0xff] }
 0x39a   : > { %12821 = vmatpush3.bf16.msra.mxu0 %v4826_v16  ;;  %v12567_v6 = vpop.f32.mrb[7].mxu1  ;;  %12750 = vmatprep.mubr.msk.bf16.mxu0 %vm14167_vm2, %v19261_v31  ;;  %v16302_v7 = vpack.c.bf16 %v4570_v14, %v4569_v38 }
 0x39b   : > { %12896 = vmatprep.subr.bf16.mxu0 %v19261_v31  ;;  %v16279_v50 = vsel %vm731_vm3, %v4790_v28, %v16269_v10 }
 0x39c   : > { %v3378_v61 = vpop.f32.mrb[0].mxu0  ;;  %12793 = vmatmul.mubr.msk.bf16.gmra.mrb[112].mxu1 %vm656_vm1, %v16263_v56 }
 0x39d   : > { %v3439_v19 = vadd.f32 %v3378_v61, %v16119_v44  ;;  %v12524_v60 = vpop.f32.mrb[1].mxu0  ;;  %12796 = vmatprep.mubr.msk.bf16.mxu1 %vm14167_vm2, %v19261_v31 }
 0x39e   : > { %v3381_v8 = vpop.f32.mrb[2].mxu0 }
 0x39f   : > { %v12525_v53 = vpop.f32.mrb[3].mxu0  ;;  %v3566_v17 = vpop.f32.mrb[8].mxu1  ;;  %v16281_v20 = vadd.f32 %v3551_v15, %v3439_v19  ;;  %v4572_v19 = vld [vmem:[#allocation2 + $0xa6] sm:$0xff] }
 0x3a0   : > { %v12570_v25 = vpop.f32.mrb[9].mxu1  ;;  %v16319_v26 = vpack.c.bf16 %v4572_v19, %v4571_v0 }
 0x3a1   : > { %v3569_v12 = vpop.f32.mrb[10].mxu1  ;;  %12751 = vmatmul.mubr.msk.bf16.gmra.mrb[108].mxu0 %vm656_vm1, %v4403_v42 }
 0x3a2   : > { %v12571_v44 = vpop.f32.mrb[11].mxu1  ;;  %12754 = vmatprep.mubr.msk.bf16.mxu0 %vm14167_vm2, %v19261_v31 }
 0x3a4   : > { %v3385_v29 = vpop.f32.mrb[4].mxu0  ;;  %12797 = vmatmul.mubr.msk.bf16.gmra.mrb[116].mxu1 %vm656_vm1, %v16285_v13 }
 0x3a5   : > { %v3440_v15 = vadd.f32 %v3385_v29, %v16136_v52  ;;  %v12528_v45 = vpop.f32.mrb[5].mxu0  ;;  %12800 = vmatprep.mubr.msk.bf16.mxu1 %vm14167_vm2, %v19261_v31 }
 0x3a6   : > { %v3388_v32 = vpop.f32.mrb[6].mxu0 }
 0x3a7   : > { %v3441_v3 = vadd.f32 %v3388_v32, %v16140_v9  ;;  %v12529_v35 = vpop.f32.mrb[7].mxu0  ;;  %v3574_v22 = vpop.f32.mrb[12].mxu1  ;;  %v16296_v16 = vadd.f32 %v3558_v63, %v3440_v15  ;;  %v4406_v63 = vrot.slane %v14953_v57, 1  ;;  %v4574_v15 = vld [vmem:[#allocation2 + $0xb6] sm:$0xff] }
 0x3a8   : > { %v12574_v24 = vpop.f32.mrb[13].mxu1 }
 0x3a9   : > { %v3576_v51 = vpop.f32.mrb[14].mxu1  ;;  %12755 = vmatmul.mubr.msk.bf16.gmra.mrb[112].mxu0 %vm656_vm1, %v4405_v58  ;;  %v16300_v27 = vadd.f32 %v3561_v43, %v3441_v3  ;;  %v4407_v53 = vsel %vm1068_vm5, %v4404_v41, %v4406_v63  ;;  %v4573_v41 = vld [vmem:[#allocation2 + $0xae] sm:$0xff] }
 0x3aa   : > { %v12575_v52 = vpop.f32.mrb[15].mxu1  ;;  %12758 = vmatprep.mubr.msk.bf16.mxu0 %vm14167_vm2, %v19261_v31  ;;  %v16333_v22 = vpack.c.bf16 %v4574_v15, %v4573_v41 }
 0x3ac   : > { %v3393_v9 = vpop.f32.mrb[8].mxu0  ;;  %12801 = vmatmul.mubr.msk.bf16.gmra.mrb[120].mxu1 %vm656_vm1, %v16302_v7 }
 0x3ad   : > { %v3442_v36 = vadd.f32 %v3393_v9, %v16154_v47  ;;  %v12532_v5 = vpop.f32.mrb[9].mxu0  ;;  %12804 = vmatprep.mubr.msk.bf16.mxu1 %vm14167_vm2, %v19261_v31 }
 0x3ae   : > { %v3396_v43 = vpop.f32.mrb[10].mxu0 }
 0x3af   : > { %v3443_v6 = vadd.f32 %v3396_v43, %v16158_v54  ;;  %v12533_v28 = vpop.f32.mrb[11].mxu0  ;;  %v3581_v61 = vpop.f32.mrb[16].mxu1  ;;  %v16313_v60 = vadd.f32 %v3566_v17, %v3442_v36  ;;  %v4408_v17 = vrot.slane %v16117_v37, 1 }
 0x3b0   : > { %v12578_v8 = vpop.f32.mrb[17].mxu1 }
 0x3b1   : > { %v3584_v59 = vpop.f32.mrb[18].mxu1  ;;  %12759 = vmatmul.mubr.msk.bf16.gmra.mrb[116].mxu0 %vm656_vm1, %v4407_v53  ;;  %v16317_v57 = vadd.f32 %v3569_v12, %v3443_v6  ;;  %v4409_v32 = vsel %vm1068_vm5, %v4406_v63, %v4408_v17 }
 0x3b2   : > { %v12579_v47 = vpop.f32.mrb[19].mxu1  ;;  %12762 = vmatprep.mubr.msk.bf16.mxu0 %vm14167_vm2, %v19261_v31 }
 0x3b4   : > { %v3401_v54 = vpop.f32.mrb[12].mxu0  ;;  %12805 = vmatmul.mubr.msk.bf16.gmra.mrb[124].mxu1 %vm656_vm1, %v16319_v26 }
 0x3b5   : > { %v12536_v25 = vpop.f32.mrb[13].mxu0  ;;  %12808 = vmatprep.mubr.msk.bf16.mxu1 %vm14167_vm2, %v19261_v31 }
 0x3b6   : > { %v3403_v42 = vpop.f32.mrb[14].mxu0 }
 0x3b7   : > { %v3444_v12 = vadd.f32 %v3403_v42, %v16175_v11  ;;  %v12537_v44 = vpop.f32.mrb[15].mxu0  ;;  %v3589_v29 = vpop.f32.mrb[20].mxu1  ;;  %v4410_v11 = vrot.slane %v16134_v23, 1 }
 0x3b8   : > { %v12582_v45 = vpop.f32.mrb[21].mxu1 }
 0x3b9   : > { %v3591_v3 = vpop.f32.mrb[22].mxu1  ;;  %12763 = vmatmul.mubr.msk.bf16.gmra.mrb[120].mxu0 %vm656_vm1, %v4409_v32  ;;  %v16331_v35 = vadd.f32 %v3576_v51, %v3444_v12  ;;  %v4411_v5 = vsel %vm1068_vm5, %v4408_v17, %v4410_v11  ;;  %v4955_v45 = vrot.slane %v16232_v49, 1  ;;  %v11127_v32 = vld [vmem:[%s19222_s1 + $0x32] sm:$0x3] }
 0x3ba   : > { %v12583_v37 = vpop.f32.mrb[23].mxu1  ;;  %12766 = vmatprep.mubr.msk.bf16.mxu0 %vm14167_vm2, %v19261_v31 }
 0x3bb   : > { %v4954_v37 = vrot.slane %v14775_v48, 1 }
 0x3bc   : > { %v3408_v38 = vpop.f32.mrb[16].mxu0  ;;  %12809 = vmatmul.mubr.msk.bf16.gmra.mrb[128].mxu1 %vm656_vm1, %v16333_v22 }
 0x3bd   : > { %v3445_v14 = vadd.f32 %v3408_v38, %v16185_v55  ;;  %v12540_v24 = vpop.f32.mrb[17].mxu0  ;;  %12812 = vmatprep.mubr.msk.bf16.mxu1 %vm14167_vm2, %v19261_v31 }
 0x3be   : > { %v3411_v58 = vpop.f32.mrb[18].mxu0 }
 0x3bf   : > { %v3446_v51 = vadd.f32 %v3411_v58, %v16190_v30  ;;  %v12541_v52 = vpop.f32.mrb[19].mxu0  ;;  %v3596_v9 = vpop.f32.mrb[24].mxu1  ;;  %v16344_v63 = vadd.f32 %v3581_v61, %v3445_v14  ;;  %v4412_v30 = vrot.slane %v16152_v21, 1  ;;  %v4414_v21 = vrot.slane %v16168_v46, 1 }
 0x3c0   : > { %v12586_v36 = vpop.f32.mrb[25].mxu1  ;;  %v4956_v14 = vsel %vm1068_vm5, %v4954_v37, %v4955_v45 }
 0x3c1   : > { %v3599_v43 = vpop.f32.mrb[26].mxu1  ;;  %12767 = vmatmul.mubr.msk.bf16.gmra.mrb[124].mxu0 %vm656_vm1, %v4411_v5  ;;  %v16348_v23 = vadd.f32 %v3584_v59, %v3446_v51  ;;  %v4413_v53 = vsel %vm1068_vm5, %v4410_v11, %v4412_v30  ;;  %v4415_v44 = vsel %vm1068_vm5, %v4412_v30, %v4414_v21  ;;  %v4742_v30 = vshll.u32 %v16232_v49, 16 }
 0x3c2   : > { %v12587_v55 = vpop.f32.mrb[27].mxu1  ;;  %12770 = vmatprep.mubr.msk.bf16.mxu0 %vm14167_vm2, %v19261_v31 }
 0x3c4   : > { %v3416_v6 = vpop.f32.mrb[20].mxu0  ;;  %12813 = vmatmul.mubr.msk.bf16.gmra.mrb[132].mxu1 %vm656_vm1, %v16236_v62 }
 0x3c5   : > { %v12544_v28 = vpop.f32.mrb[21].mxu0  ;;  %12816 = vmatprep.mubr.msk.bf16.mxu1 %vm14167_vm2, %v19261_v31 }
 0x3c6   : > { %v3418_v61 = vpop.f32.mrb[22].mxu0 }
 0x3c7   : > { %v3447_v0 = vadd.f32 %v3418_v61, %v16201_v40  ;;  %v12545_v19 = vpop.f32.mrb[23].mxu0  ;;  %v3604_v8 = vpop.f32.mrb[28].mxu1 }
 0x3c8   : > { %v12590_v59 = vpop.f32.mrb[29].mxu1 }
 0x3c9   : > { %12771 = vmatmul.mubr.msk.bf16.gmra.mrb[128].mxu0 %vm656_vm1, %v4413_v53  ;;  %v3607_v47 = vpop.f32.mrb[30].mxu1  ;;  %v16360_v54 = vadd.f32 %v3591_v3, %v3447_v0  ;;  %v4736_v53 = vshrl.u32 %v14775_v48, 16  ;;  %v11117_v59 = vld [vmem:[%s19222_s1 + $0x30] sm:$0x3] }
 0x3ca   : > { %v12591_v17 = vpop.f32.mrb[31].mxu1  ;;  %12774 = vmatprep.mubr.msk.bf16.mxu0 %vm14167_vm2, %v19261_v31 }
 0x3cc   : > { %v3423_v25 = vpop.f32.mrb[24].mxu0  ;;  %12817 = vmatmul.mubr.msk.bf16.gmra.mrb[136].mxu1 %vm656_vm1, %v16251_v2 }
 0x3cd   : > { %v3448_v40 = vadd.f32 %v3423_v25, %v16210_v4  ;;  %v12548_v42 = vpop.f32.mrb[25].mxu0  ;;  %12860 = vmatprep.mubr.msk.bf16.mxu1 %vm14167_vm2, %v19261_v31 }
 0x3ce   : > { %v3426_v12 = vpop.f32.mrb[26].mxu0 }
 0x3cf   : > { %v3449_v29 = vadd.f32 %v3426_v12, %v16217_v1  ;;  %v12549_v41 = vpop.f32.mrb[27].mxu0  ;;  %v3925_v15 = vpop.f32.mrb[32].mxu1  ;;  %v16373_v46 = vadd.f32 %v3596_v9, %v3448_v40  ;;  %v5381_v1 = vsel %vm830_vm0, %v11127_v32, 0  ;;  %v4738_v9 = vshll.u32 %v14775_v48, 16 }
 0x3d0   : > { %v12634_v4 = vpop.f32.mrb[33].mxu1  ;;  %v4959_v48 = vrot.slane %v16285_v13, 1 }
 0x3d1   : > { %v3928_v3 = vpop.f32.mrb[34].mxu1  ;;  %12775 = vmatmul.mubr.msk.bf16.gmra.mrb[132].mxu0 %vm656_vm1, %v4415_v44  ;;  %v16380_v38 = vadd.f32 %v3599_v43, %v3449_v29  ;;  %v4957_v43 = vrot.slane %v16263_v56, 1  ;;  %v4740_v61 = vrot.slane %v4738_v9, 1  ;;  %v5172_v44 = vsel %vm830_vm0, %v11117_v59, 0 }
 0x3d2   : > { %v12635_v11 = vpop.f32.mrb[35].mxu1  ;;  %12778 = vmatprep.mubr.msk.bf16.mxu0 %vm14167_vm2, %v19261_v31  ;;  %v4961_v9 = vrot.slane %v16302_v7, 1 }
 0x3d3   : > { %v4958_v0 = vsel %vm1068_vm5, %v4955_v45, %v4957_v43  ;;  %v4741_v25 = vor.u32 %v4740_v61, %v4736_v53  ;;  %v4960_v37 = vsel %vm1068_vm5, %v4957_v43, %v4959_v48  ;;  %v4746_v11 = vshrl.u32 %v16232_v49, 16 }
 0x3d4   : > { %v3431_v24 = vpop.f32.mrb[28].mxu0  ;;  %12861 = vmatmul.mubr.msk.bf16.vlgmr.msra.gmra.mrb[140].mxu1 %vm656_vm1, %v4956_v14  ;;  %v4756_v49 = vshll.u32 %v16285_v13, 16 }
 0x3d5   : > { %v3450_v58 = vadd.f32 %v3431_v24, %v16228_v33  ;;  %v12552_v51 = vpop.f32.mrb[29].mxu0  ;;  %12864 = vmatprep.mubr.msk.bf16.mxu1 %vm14167_vm2, %v19261_v31  ;;  %12935 = vmatpush3.bf16.msra.mxu1 %v5381_v1 }
 0x3d6   : > { %v3434_v52 = vpop.f32.mrb[30].mxu0  ;;  %13010 = vmatprep.subr.bf16.mxu1 %v19261_v31  ;;  %v4758_v61 = vrot.slane %v4756_v49, 1 }
 0x3d7   : > { %v12553_v36 = vpop.f32.mrb[31].mxu0  ;;  %v3933_v5 = vpop.f32.mrb[36].mxu1  ;;  %v16393_v55 = vadd.f32 %v3604_v8, %v3450_v58  ;;  %v4744_v8 = vrot.slane %v4742_v30, 1 }
 0x3d8   : > { %v12638_v6 = vpop.f32.mrb[37].mxu1 }
 0x3d9   : > { %v3936_v33 = vpop.f32.mrb[38].mxu1  ;;  %12779 = vmatmul.mubr.msk.bf16.gmra.mrb[136].mxu0 %vm656_vm1, %v4414_v21  ;;  %v4745_v45 = vsel %vm731_vm3, %v4741_v25, %v4744_v8  ;;  %v4748_v58 = vor.u32 %v4746_v11, %v4744_v8 }
 0x3da   : > { %v12639_v28 = vpop.f32.mrb[39].mxu1  ;;  %12822 = vmatprep.mubr.msk.bf16.mxu0 %vm14167_vm2, %v19261_v31  ;;  %v4962_v33 = vsel %vm1068_vm5, %v4959_v48, %v4961_v9 }
 0x3dc   : > { %v3752_v19 = vpop.f32.mrb[32].mxu0  ;;  %12865 = vmatmul.mubr.msk.bf16.gmra.mrb[144].mxu1 %vm656_vm1, %v4958_v0 }
 0x3dd   : > { %v3819_v47 = vadd.f32 %v3752_v19, %v16253_v18  ;;  %v12596_v17 = vpop.f32.mrb[33].mxu0  ;;  %12868 = vmatprep.mubr.msk.bf16.mxu1 %vm14167_vm2, %v19261_v31  ;;  %v4749_v18 = vshll.u32 %v16263_v56, 16 }
 0x3de   : > { %v3755_v21 = vpop.f32.mrb[34].mxu0 }
 0x3df   : > { %v3820_v40 = vadd.f32 %v3755_v21, %v16257_v39  ;;  %v12597_v42 = vpop.f32.mrb[35].mxu0  ;;  %v3940_v12 = vpop.f32.mrb[40].mxu1  ;;  %v16411_v29 = vadd.f32 %v3925_v15, %v3819_v47  ;;  %v4751_v1 = vrot.slane %v4749_v18, 1  ;;  %v4963_v21 = vrot.slane %v16319_v26, 1 }
 0x3e0   : > { %v12642_v41 = vpop.f32.mrb[41].mxu1  ;;  %v4763_v42 = vshll.u32 %v16302_v7, 16 }
 0x3e1   : > { %v3943_v32 = vpop.f32.mrb[42].mxu1  ;;  %12823 = vmatmul.mubr.msk.bf16.vlgmr.msra.gmra.mrb[140].mxu0 %vm656_vm1, %v4745_v45  ;;  %v16416_v4 = vadd.f32 %v3928_v3, %v3820_v40  ;;  %v4752_v6 = vsel %vm731_vm3, %v4748_v58, %v4751_v1  ;;  %v4767_v58 = vshrl.u32 %v16302_v7, 16  ;;  %v4967_v7 = vrot.slane %v16236_v62, 1 }
 0x3e2   : > { %12897 = vmatpush3.bf16.msra.mxu0 %v5172_v44  ;;  %v12643_v39 = vpop.f32.mrb[43].mxu1  ;;  %12826 = vmatprep.mubr.msk.bf16.mxu0 %vm14167_vm2, %v19261_v31  ;;  %v4765_v45 = vrot.slane %v4763_v42, 1 }
 0x3e3   : > { %12972 = vmatprep.subr.bf16.mxu0 %v19261_v31 }
 0x3e4   : > { %v3760_v15 = vpop.f32.mrb[36].mxu0  ;;  %12869 = vmatmul.mubr.msk.bf16.gmra.mrb[148].mxu1 %vm656_vm1, %v4960_v37 }
 0x3e5   : > { %v3821_v14 = vadd.f32 %v3760_v15, %v16281_v20  ;;  %v12600_v24 = vpop.f32.mrb[37].mxu0  ;;  %12872 = vmatprep.mubr.msk.bf16.mxu1 %vm14167_vm2, %v19261_v31 }
 0x3e6   : > { %v3763_v3 = vpop.f32.mrb[38].mxu0 }
 0x3e7   : > { %v12601_v51 = vpop.f32.mrb[39].mxu0  ;;  %v3948_v52 = vpop.f32.mrb[44].mxu1  ;;  %v16428_v36 = vadd.f32 %v3933_v5, %v3821_v14  ;;  %v4753_v5 = vshrl.u32 %v16263_v56, 16  ;;  %v4965_v14 = vrot.slane %v16333_v22, 1 }
 0x3e8   : > { %v12646_v43 = vpop.f32.mrb[45].mxu1 }
 0x3e9   : > { %v3951_v30 = vpop.f32.mrb[46].mxu1  ;;  %12827 = vmatmul.mubr.msk.bf16.gmra.mrb[144].mxu0 %vm656_vm1, %v4752_v6  ;;  %v4755_v8 = vor.u32 %v4753_v5, %v4751_v1  ;;  %v4769_v6 = vor.u32 %v4767_v58, %v4765_v45 }
 0x3ea   : > { %v12647_v20 = vpop.f32.mrb[47].mxu1  ;;  %12830 = vmatprep.mubr.msk.bf16.mxu0 %vm14167_vm2, %v19261_v31 }
 0x3eb   : > { %v4759_v56 = vsel %vm731_vm3, %v4755_v8, %v4758_v61 }
 0x3ec   : > { %v3767_v28 = vpop.f32.mrb[40].mxu0  ;;  %12873 = vmatmul.mubr.msk.bf16.gmra.mrb[152].mxu1 %vm656_vm1, %v4962_v33 }
 0x3ed   : > { %v3822_v0 = vadd.f32 %v3767_v28, %v16296_v16  ;;  %v12604_v19 = vpop.f32.mrb[41].mxu0  ;;  %12876 = vmatprep.mubr.msk.bf16.mxu1 %vm14167_vm2, %v19261_v31 }
 0x3ee   : > { %v3770_v53 = vpop.f32.mrb[42].mxu0  ;;  %v4774_v19 = vshrl.u32 %v16319_v26, 16 }
 0x3ef   : > { %v3823_v59 = vadd.f32 %v3770_v53, %v16300_v27  ;;  %v12605_v47 = vpop.f32.mrb[43].mxu0  ;;  %v3956_v17 = vpop.f32.mrb[48].mxu1  ;;  %v16443_v25 = vadd.f32 %v3940_v12, %v3822_v0  ;;  %v4964_v27 = vsel %vm1068_vm5, %v4961_v9, %v4963_v21  ;;  %v4760_v12 = vshrl.u32 %v16285_v13, 16 }
 0x3f0   : > { %v12650_v40 = vpop.f32.mrb[49].mxu1  ;;  %v4777_v53 = vshll.u32 %v16333_v22, 16 }
 0x3f1   : > { %v3958_v16 = vpop.f32.mrb[50].mxu1  ;;  %12831 = vmatmul.mubr.msk.bf16.gmra.mrb[148].mxu0 %vm656_vm1, %v4759_v56  ;;  %v16448_v44 = vadd.f32 %v3943_v32, %v3823_v59  ;;  %v4762_v37 = vor.u32 %v4760_v12, %v4758_v61  ;;  %v4968_v59 = vsel %vm1068_vm5, %v4965_v14, %v4967_v7  ;;  %v4969_v56 = vrot.slane %v16251_v2, 1 }
 0x3f2   : > { %v12651_v48 = vpop.f32.mrb[51].mxu1  ;;  %12834 = vmatprep.mubr.msk.bf16.mxu0 %vm14167_vm2, %v19261_v31 }
 0x3f3   : > { %v4766_v13 = vsel %vm731_vm3, %v4762_v37, %v4765_v45 }
 0x3f4   : > { %v3775_v41 = vpop.f32.mrb[44].mxu0  ;;  %12877 = vmatmul.mubr.msk.bf16.gmra.mrb[156].mxu1 %vm656_vm1, %v4964_v27 }
 0x3f5   : > { %v3824_v18 = vadd.f32 %v3775_v41, %v16313_v60  ;;  %v12608_v39 = vpop.f32.mrb[45].mxu0  ;;  %12880 = vmatprep.mubr.msk.bf16.mxu1 %vm14167_vm2, %v19261_v31  ;;  %v4770_v60 = vshll.u32 %v16319_v26, 16 }
 0x3f6   : > { %v3778_v32 = vpop.f32.mrb[46].mxu0 }
 0x3f7   : > { %v3825_v15 = vadd.f32 %v3778_v32, %v16317_v57  ;;  %v12609_v11 = vpop.f32.mrb[47].mxu0  ;;  %v3963_v1 = vpop.f32.mrb[52].mxu1  ;;  %v16460_v24 = vadd.f32 %v3948_v52, %v3824_v18  ;;  %v4966_v57 = vsel %vm1068_vm5, %v4963_v21, %v4965_v14  ;;  %v4772_v49 = vrot.slane %v4770_v60, 1  ;;  %v5118_v60 = vld [vmem:[#allocation2 + $0x64] sm:$0xff] }
 0x3f8   : > { %v12654_v3 = vpop.f32.mrb[53].mxu1  ;;  %v4779_v21 = vrot.slane %v4777_v53, 1  ;;  %v5116_v11 = vld [vmem:[#allocation2 + $0x54] sm:$0xff] }
 0x3f9   : > { %v3966_v51 = vpop.f32.mrb[54].mxu1  ;;  %12835 = vmatmul.mubr.msk.bf16.gmra.mrb[152].mxu0 %vm656_vm1, %v4766_v13  ;;  %v16466_v9 = vadd.f32 %v3951_v30, %v3825_v15  ;;  %v4773_v0 = vsel %vm731_vm3, %v4769_v6, %v4772_v49  ;;  %v4776_v17 = vor.u32 %v4774_v19, %v4772_v49 }
 0x3fa   : > { %v12655_v43 = vpop.f32.mrb[55].mxu1  ;;  %12838 = vmatprep.mubr.msk.bf16.mxu0 %vm14167_vm2, %v19261_v31 }
 0x3fb   : > { %v4780_v18 = vsel %vm731_vm3, %v4776_v17, %v4779_v21 }
 0x3fc   : > { %v3783_v52 = vpop.f32.mrb[48].mxu0  ;;  %12881 = vmatmul.mubr.msk.bf16.gmra.mrb[160].mxu1 %vm656_vm1, %v4966_v57 }
 0x3fd   : > { %v12612_v20 = vpop.f32.mrb[49].mxu0  ;;  %12884 = vmatprep.mubr.msk.bf16.mxu1 %vm14167_vm2, %v19261_v31 }
 0x3fe   : > { %v3785_v33 = vpop.f32.mrb[50].mxu0 }
 0x3ff   : > { %v3826_v30 = vadd.f32 %v3785_v33, %v16331_v35  ;;  %v12613_v28 = vpop.f32.mrb[51].mxu0  ;;  %v3971_v5 = vpop.f32.mrb[56].mxu1 }
 0x400   : > { %v12658_v61 = vpop.f32.mrb[57].mxu1 }
 0x401   : > { %v3973_v8 = vpop.f32.mrb[58].mxu1  ;;  %12839 = vmatmul.mubr.msk.bf16.gmra.mrb[156].mxu0 %vm656_vm1, %v4773_v0  ;;  %v16481_v47 = vadd.f32 %v3958_v16, %v3826_v30  ;;  %v4781_v16 = vshrl.u32 %v16333_v22, 16  ;;  %v5121_v30 = vld [vmem:[#allocation2 + $0x7c] sm:$0xff]  ;;  %v5120_v0 = vld [vmem:[#allocation2 + $0x74] sm:$0xff] }
 0x402   : > { %v12659_v62 = vpop.f32.mrb[59].mxu1  ;;  %12842 = vmatprep.mubr.msk.bf16.mxu0 %vm14167_vm2, %v19261_v31  ;;  %v16522_v53 = vpack.c.bf16 %v5121_v30, %v5120_v0 }
 0x403   : > { %v4783_v22 = vor.u32 %v4781_v16, %v4779_v21 }
 0x404   : > { %v3790_v35 = vpop.f32.mrb[52].mxu0  ;;  %12885 = vmatmul.mubr.msk.bf16.gmra.mrb[164].mxu1 %vm656_vm1, %v4968_v59 }
 0x405   : > { %v3827_v26 = vadd.f32 %v3790_v35, %v16344_v63  ;;  %v12616_v40 = vpop.f32.mrb[53].mxu0  ;;  %12888 = vmatprep.mubr.msk.bf16.mxu1 %vm14167_vm2, %v19261_v31  ;;  %v4970_v63 = vsel %vm1068_vm5, %v4967_v7, %v4969_v56  ;;  %v4787_v58 = vsel %vm731_vm3, %v4783_v22, %v16259_v34 }
 0x406   : > { %v3793_v42 = vpop.f32.mrb[54].mxu0  ;;  %v4795_v40 = vshrl.u32 %v16251_v2, 16 }
 0x407   : > { %v3828_v48 = vadd.f32 %v3793_v42, %v16348_v23  ;;  %v12617_v27 = vpop.f32.mrb[55].mxu0  ;;  %v3978_v41 = vpop.f32.mrb[60].mxu1  ;;  %v16492_v12 = vadd.f32 %v3963_v1, %v3827_v26  ;;  %v5117_v23 = vld [vmem:[#allocation2 + $0x5c] sm:$0xff]  ;;  %v5119_v1 = vld [vmem:[#allocation2 + $0x6c] sm:$0xff] }
 0x408   : > { %v12662_v45 = vpop.f32.mrb[61].mxu1  ;;  %v16504_v3 = vpack.c.bf16 %v5117_v23, %v5116_v11  ;;  %v16509_v52 = vpack.c.bf16 %v5119_v1, %v5118_v60  ;;  %v5122_v27 = vld [vmem:[#allocation2 + $0x84] sm:$0xff]  ;;  %v4797_v2 = vor.u32 %v4795_v40, %v16269_v10 }
 0x409   : > { %v3981_v39 = vpop.f32.mrb[62].mxu1  ;;  %12843 = vmatmul.mubr.msk.bf16.gmra.mrb[160].mxu0 %vm656_vm1, %v4780_v18  ;;  %v16497_v32 = vadd.f32 %v3966_v51, %v3828_v48  ;;  %v5304_v48 = vshll.u32 %v16522_v53, 16  ;;  %v5126_v40 = vld [vmem:[#allocation2 + $0xa4] sm:$0xff] }
 0x40a   : > { %v12663_v37 = vpop.f32.mrb[63].mxu1  ;;  %12846 = vmatprep.mubr.msk.bf16.mxu0 %vm14167_vm2, %v19261_v31  ;;  %v5293_v20 = vshll.u32 %v16504_v3, 16  ;;  %v5297_v34 = vshll.u32 %v16509_v52, 16  ;;  %v5291_v35 = vshrl.u32 %v16504_v3, 16  ;;  %v5301_v23 = vshrl.u32 %v16509_v52, 16 }
 0x40c   : > { %v3798_v15 = vpop.f32.mrb[56].mxu0  ;;  %12889 = vmatmul.mubr.msk.bf16.gmra.mrb[168].mxu1 %vm656_vm1, %v4970_v63  ;;  %v5295_v61 = vrot.slane %v5293_v20, 1  ;;  %v5299_v17 = vrot.slane %v5297_v34, 1 }
 0x40d   : > { %v12620_v14 = vpop.f32.mrb[57].mxu0  ;;  %12892 = vmatprep.mubr.msk.bf16.mxu1 %vm14167_vm2, %v19261_v31  ;;  %v5306_v15 = vrot.slane %v5304_v48, 1 }
 0x40e   : > { %v3800_v13 = vpop.f32.mrb[58].mxu0  ;;  %v5303_v10 = vor.u32 %v5301_v23, %v5299_v17 }
 0x40f   : > { %v3829_v51 = vadd.f32 %v3800_v13, %v16360_v54  ;;  %v12621_v43 = vpop.f32.mrb[59].mxu0  ;;  %v3986_v57 = vpop.f32.mrb[64].mxu1 }
 0x410   : > { %v12666_v6 = vpop.f32.mrb[65].mxu1  ;;  %v5124_v43 = vld [vmem:[#allocation2 + $0x94] sm:$0xff] }
 0x411   : > { %12847 = vmatmul.mubr.msk.bf16.gmra.mrb[164].mxu0 %vm656_vm1, %v4787_v58  ;;  %v3989_v49 = vpop.f32.mrb[66].mxu1  ;;  %v16513_v7 = vadd.f32 %v3973_v8, %v3829_v51  ;;  %v5307_v58 = vsel %vm731_vm3, %v5303_v10, %v5306_v15  ;;  %v11137_v51 = vld [vmem:[%s19222_s1 + $0x34] sm:$0x3] }
 0x412   : > { %v12667_v33 = vpop.f32.mrb[67].mxu1  ;;  %12850 = vmatprep.mubr.msk.bf16.mxu0 %vm14167_vm2, %v19261_v31 }
 0x413   : > { %v5308_v33 = vshrl.u32 %v16522_v53, 16 }
 0x414   : > { %v3805_v54 = vpop.f32.mrb[60].mxu0  ;;  %12893 = vmatmul.mubr.msk.bf16.gmra.mrb[172].mxu1 %vm656_vm1, %v4969_v56  ;;  %v5296_v56 = vor.u32 %v5295_v61, %v5291_v35 }
 0x415   : > { %v3830_v28 = vadd.f32 %v3805_v54, %v16373_v46  ;;  %v12624_v5 = vpop.f32.mrb[61].mxu0  ;;  %12936 = vmatprep.mubr.msk.bf16.mxu1 %vm14167_vm2, %v19261_v31 }
 0x416   : > { %v3808_v19 = vpop.f32.mrb[62].mxu0  ;;  %v5554_v5 = vsel %vm830_vm0, %v11137_v51, 0 }
 0x417   : > { %v3831_v8 = vadd.f32 %v3808_v19, %v16380_v38  ;;  %v12625_v59 = vpop.f32.mrb[63].mxu0  ;;  %v4307_v62 = vpop.f32.mrb[68].mxu1  ;;  %v16526_v21 = vadd.f32 %v3978_v41, %v3830_v28  ;;  %v5300_v38 = vsel %vm731_vm3, %v5296_v56, %v5299_v17  ;;  %v5123_v41 = vld [vmem:[#allocation2 + $0x8c] sm:$0xff] }
 0x418   : > { %v12710_v26 = vpop.f32.mrb[69].mxu1  ;;  %v16542_v63 = vpack.c.bf16 %v5123_v41, %v5122_v27  ;;  %v5127_v56 = vld [vmem:[#allocation2 + $0xac] sm:$0xff] }
 0x419   : > { %v4310_v46 = vpop.f32.mrb[70].mxu1  ;;  %12851 = vmatmul.mubr.msk.bf16.gmra.mrb[168].mxu0 %vm656_vm1, %v16279_v50  ;;  %v16531_v42 = vadd.f32 %v3981_v39, %v3831_v8  ;;  %v5310_v8 = vor.u32 %v5308_v33, %v5306_v15 }
 0x41a   : > { %v12711_v16 = vpop.f32.mrb[71].mxu1  ;;  %12854 = vmatprep.mubr.msk.bf16.mxu0 %vm14167_vm2, %v19261_v31  ;;  %v5311_v13 = vshll.u32 %v16542_v63, 16  ;;  %v5315_v17 = vshrl.u32 %v16542_v63, 16 }
 0x41c   : > { %v3813_v45 = vpop.f32.mrb[64].mxu0  ;;  %12937 = vmatmul.mubr.msk.bf16.vlgmr.msra.gmra.mrb[176].mxu1 %vm656_vm1, %v5300_v38  ;;  %v5313_v34 = vrot.slane %v5311_v13, 1 }
 0x41d   : > { %v3832_v50 = vadd.f32 %v3813_v45, %v16393_v55  ;;  %v12628_v18 = vpop.f32.mrb[65].mxu0  ;;  %12940 = vmatprep.mubr.msk.bf16.mxu1 %vm14167_vm2, %v19261_v31 }
 0x41e   : > { %v3816_v39 = vpop.f32.mrb[66].mxu0  ;;  %v5317_v41 = vor.u32 %v5315_v17, %v5313_v34 }
 0x41f   : > { %v12629_v37 = vpop.f32.mrb[67].mxu0  ;;  %v4315_v22 = vpop.f32.mrb[72].mxu1  ;;  %v16545_v11 = vadd.f32 %v3986_v57, %v3832_v50  ;;  %v5125_v57 = vld [vmem:[#allocation2 + $0x9c] sm:$0xff] }
 0x420   : > { %v12714_v1 = vpop.f32.mrb[73].mxu1  ;;  %v16562_v61 = vpack.c.bf16 %v5125_v57, %v5124_v43 }
 0x421   : > { %v4318_v14 = vpop.f32.mrb[74].mxu1  ;;  %12855 = vmatmul.mubr.msk.bf16.gmra.mrb[172].mxu0 %vm656_vm1, %v4797_v2  ;;  %v16580_v2 = vpack.c.bf16 %v5127_v56, %v5126_v40 }
 0x422   : > { %v12715_v55 = vpop.f32.mrb[75].mxu1  ;;  %12898 = vmatprep.mubr.msk.bf16.mxu0 %vm14167_vm2, %v19261_v31  ;;  %v5129_v14 = vld [vmem:[#allocation2 + $0xbc] sm:$0xff] }
 0x423   : > { %v5325_v15 = vshll.u32 %v16580_v2, 16 }
 0x424   : > { %v4098_v60 = vpop.f32.mrb[68].mxu0  ;;  %12941 = vmatmul.mubr.msk.bf16.gmra.mrb[180].mxu1 %vm656_vm1, %v5307_v58 }
 0x425   : > { %v4165_v6 = vadd.f32 %v4098_v60, %v16411_v29  ;;  %v12672_v49 = vpop.f32.mrb[69].mxu0  ;;  %12944 = vmatprep.mubr.msk.bf16.mxu1 %vm14167_vm2, %v19261_v31  ;;  %v5327_v57 = vrot.slane %v5325_v15, 1 }
 0x426   : > { %v4101_v20 = vpop.f32.mrb[70].mxu0 }
 0x427   : > { %v4166_v30 = vadd.f32 %v4101_v20, %v16416_v4  ;;  %v12673_v54 = vpop.f32.mrb[71].mxu0  ;;  %v4322_v28 = vpop.f32.mrb[76].mxu1  ;;  %v16564_v0 = vadd.f32 %v4307_v62, %v4165_v6  ;;  %v5314_v4 = vsel %vm731_vm3, %v5310_v8, %v5313_v34  ;;  %v5318_v62 = vshll.u32 %v16562_v61, 16 }
 0x428   : > { %v12718_v19 = vpop.f32.mrb[77].mxu1 }
 0x429   : > { %v4325_v29 = vpop.f32.mrb[78].mxu1  ;;  %12899 = vmatmul.mubr.msk.bf16.vlgmr.msra.gmra.mrb[176].mxu0 %vm656_vm1, %v16504_v3  ;;  %v16568_v59 = vadd.f32 %v4310_v46, %v4166_v30  ;;  %v5320_v45 = vrot.slane %v5318_v62, 1  ;;  %v5130_v30 = vld [vmem:[#allocation2 + $0xc4] sm:$0xff] }
 0x42a   : > { %12973 = vmatpush3.bf16.msra.mxu0 %v5554_v5  ;;  %v12719_v35 = vpop.f32.mrb[79].mxu1  ;;  %12902 = vmatprep.mubr.msk.bf16.mxu0 %vm14167_vm2, %v19261_v31  ;;  %v5329_v5 = vshrl.u32 %v16580_v2, 16 }
 0x42b   : > { %13048 = vmatprep.subr.bf16.mxu0 %v19261_v31  ;;  %v5321_v23 = vsel %vm731_vm3, %v5317_v41, %v5320_v45 }
 0x42c   : > { %v4106_v26 = vpop.f32.mrb[72].mxu0  ;;  %12945 = vmatmul.mubr.msk.bf16.gmra.mrb[184].mxu1 %vm656_vm1, %v5314_v4  ;;  %v5331_v40 = vor.u32 %v5329_v5, %v5327_v57 }
 0x42d   : > { %v4167_v46 = vadd.f32 %v4106_v26, %v16428_v36  ;;  %v12676_v16 = vpop.f32.mrb[73].mxu0  ;;  %12948 = vmatprep.mubr.msk.bf16.mxu1 %vm14167_vm2, %v19261_v31  ;;  %v5322_v36 = vshrl.u32 %v16562_v61, 16 }
 0x42e   : > { %v4109_v38 = vpop.f32.mrb[74].mxu0 }
 0x42f   : > { %v12677_v48 = vpop.f32.mrb[75].mxu0  ;;  %v4330_v27 = vpop.f32.mrb[80].mxu1  ;;  %v16582_v50 = vadd.f32 %v4315_v22, %v4167_v46  ;;  %v5128_v22 = vld [vmem:[#allocation2 + $0xb4] sm:$0xff]  ;;  %v5324_v58 = vor.u32 %v5322_v36, %v5320_v45 }
 0x430   : > { %v12722_v18 = vpop.f32.mrb[81].mxu1  ;;  %v16596_v6 = vpack.c.bf16 %v5129_v14, %v5128_v22 }
 0x431   : > { %v4333_v39 = vpop.f32.mrb[82].mxu1  ;;  %12903 = vmatmul.mubr.msk.bf16.gmra.mrb[180].mxu0 %vm656_vm1, %v16509_v52  ;;  %v5328_v54 = vsel %vm731_vm3, %v5324_v58, %v5327_v57 }
 0x432   : > { %v12723_v37 = vpop.f32.mrb[83].mxu1  ;;  %12906 = vmatprep.mubr.msk.bf16.mxu0 %vm14167_vm2, %v19261_v31 }
 0x434   : > { %v4113_v1 = vpop.f32.mrb[76].mxu0  ;;  %12949 = vmatmul.mubr.msk.bf16.gmra.mrb[188].mxu1 %vm656_vm1, %v5321_v23 }
 0x435   : > { %v4168_v10 = vadd.f32 %v4113_v1, %v16443_v25  ;;  %v12680_v55 = vpop.f32.mrb[77].mxu0  ;;  %12952 = vmatprep.mubr.msk.bf16.mxu1 %vm14167_vm2, %v19261_v31 }
 0x436   : > { %v4116_v13 = vpop.f32.mrb[78].mxu0 }
 0x437   : > { %v4169_v60 = vadd.f32 %v4116_v13, %v16448_v44  ;;  %v12681_v51 = vpop.f32.mrb[79].mxu0  ;;  %v4338_v43 = vpop.f32.mrb[84].mxu1  ;;  %v16598_v49 = vadd.f32 %v4322_v28, %v4168_v10  ;;  %v5131_v44 = vld [vmem:[#allocation2 + $0xcc] sm:$0xff]  ;;  %v5332_v28 = vshll.u32 %v16596_v6, 16 }
 0x438   : > { %v12726_v20 = vpop.f32.mrb[85].mxu1 }
 0x439   : > { %v4340_v33 = vpop.f32.mrb[86].mxu1  ;;  %12907 = vmatmul.mubr.msk.bf16.gmra.mrb[184].mxu0 %vm656_vm1, %v16522_v53  ;;  %v16602_v25 = vadd.f32 %v4325_v29, %v4169_v60  ;;  %v16613_v29 = vpack.c.bf16 %v5131_v44, %v5130_v30  ;;  %v5334_v56 = vrot.slane %v5332_v28, 1 }
 0x43a   : > { %v12727_v34 = vpop.f32.mrb[87].mxu1  ;;  %12910 = vmatprep.mubr.msk.bf16.mxu0 %vm14167_vm2, %v19261_v31 }
 0x43b   : > { %v5339_v48 = vshll.u32 %v16613_v29, 16  ;;  %v5335_v18 = vsel %vm731_vm3, %v5331_v40, %v5334_v56  ;;  %v5343_v58 = vshrl.u32 %v16613_v29, 16 }
 0x43c   : > { %v4121_v19 = vpop.f32.mrb[80].mxu0  ;;  %12953 = vmatmul.mubr.msk.bf16.gmra.mrb[192].mxu1 %vm656_vm1, %v5328_v54 }
 0x43d   : > { %v4170_v8 = vadd.f32 %v4121_v19, %v16460_v24  ;;  %v12684_v35 = vpop.f32.mrb[81].mxu0  ;;  %12956 = vmatprep.mubr.msk.bf16.mxu1 %vm14167_vm2, %v19261_v31  ;;  %v5336_v24 = vshrl.u32 %v16596_v6, 16  ;;  %v5341_v23 = vrot.slane %v5339_v48, 1 }
 0x43e   : > { %v4124_v4 = vpop.f32.mrb[82].mxu0 }
 0x43f   : > { %v4171_v17 = vadd.f32 %v4124_v4, %v16466_v9  ;;  %v12685_v62 = vpop.f32.mrb[83].mxu0  ;;  %v4345_v26 = vpop.f32.mrb[88].mxu1  ;;  %v16616_v46 = vadd.f32 %v4330_v27, %v4170_v8  ;;  %v5132_v9 = vld [vmem:[#allocation2 + $0xd4] sm:$0xf]  ;;  %v5338_v36 = vor.u32 %v5336_v24, %v5334_v56  ;;  %v5345_v34 = vor.u32 %v5343_v58, %v5341_v23 }
 0x440   : > { %v12730_v16 = vpop.f32.mrb[89].mxu1  ;;  %v16630_v15 = vpack.c.bf16 %v5132_v9, %v5132_v9 }
 0x441   : > { %v4348_v38 = vpop.f32.mrb[90].mxu1  ;;  %12911 = vmatmul.mubr.msk.bf16.gmra.mrb[188].mxu0 %vm656_vm1, %v16542_v63  ;;  %v16622_v41 = vadd.f32 %v4333_v39, %v4171_v17  ;;  %v5342_v13 = vsel %vm731_vm3, %v5338_v36, %v5341_v23 }
 0x442   : > { %v12731_v45 = vpop.f32.mrb[91].mxu1  ;;  %12914 = vmatprep.mubr.msk.bf16.mxu0 %vm14167_vm2, %v19261_v31  ;;  %v5346_v60 = vshll.u32 %v16630_v15, 16 }
 0x444   : > { %v4129_v27 = vpop.f32.mrb[84].mxu0  ;;  %12957 = vmatmul.mubr.msk.bf16.gmra.mrb[196].mxu1 %vm656_vm1, %v5335_v18  ;;  %v5348_v30 = vrot.slane %v5346_v60, 1 }
 0x445   : > { %v12688_v37 = vpop.f32.mrb[85].mxu0  ;;  %12960 = vmatprep.mubr.msk.bf16.mxu1 %vm14167_vm2, %v19261_v31 }
 0x446   : > { %v4131_v39 = vpop.f32.mrb[86].mxu0 }
 0x447   : > { %v4172_v1 = vadd.f32 %v4131_v39, %v16481_v47  ;;  %v12689_v22 = vpop.f32.mrb[87].mxu0  ;;  %v4353_v14 = vpop.f32.mrb[92].mxu1 }
 0x448   : > { %v12734_v10 = vpop.f32.mrb[93].mxu1 }
 0x449   : > { %v4355_v55 = vpop.f32.mrb[94].mxu1  ;;  %12915 = vmatmul.mubr.msk.bf16.gmra.mrb[192].mxu0 %vm656_vm1, %v16562_v61  ;;  %v16638_v51 = vadd.f32 %v4340_v33, %v4172_v1 }
 0x44a   : > { %v12735_v43 = vpop.f32.mrb[95].mxu1  ;;  %12918 = vmatprep.mubr.msk.bf16.mxu0 %vm14167_vm2, %v19261_v31 }
 0x44c   : > { %v4136_v47 = vpop.f32.mrb[88].mxu0  ;;  %12961 = vmatmul.mubr.msk.bf16.gmra.mrb[200].mxu1 %vm656_vm1, %v5342_v13 }
 0x44d   : > { %v4173_v57 = vadd.f32 %v4136_v47, %v16492_v12  ;;  %v12692_v20 = vpop.f32.mrb[89].mxu0  ;;  %12964 = vmatprep.mubr.msk.bf16.mxu1 %vm14167_vm2, %v19261_v31  ;;  %v5349_v12 = vsel %vm731_vm3, %v5345_v34, %v5348_v30 }
 0x44e   : > { %v4139_v44 = vpop.f32.mrb[90].mxu0 }
 0x44f   : > { %v4174_v54 = vadd.f32 %v4139_v44, %v16497_v32  ;;  %v12693_v33 = vpop.f32.mrb[91].mxu0  ;;  %v4360_v5 = vpop.f32.mrb[96].mxu1  ;;  %v16647_v28 = vadd.f32 %v4345_v26, %v4173_v57  ;;  %v5350_v32 = vshrl.u32 %v16630_v15, 16  ;;  %v5510_v44 = vrot.slane %v16509_v52, 1 }
 0x450   : > { %v12738_v19 = vpop.f32.mrb[97].mxu1 }
 0x451   : > { %12919 = vmatmul.mubr.msk.bf16.gmra.mrb[196].mxu0 %vm656_vm1, %v16580_v2  ;;  %v4363_v8 = vpop.f32.mrb[98].mxu1  ;;  %v16652_v35 = vadd.f32 %v4348_v38, %v4174_v54  ;;  %v5352_v24 = vor.u32 %v5350_v32, %v5348_v30 }
 0x452   : > { %12922 = vmatprep.mubr.msk.bf16.mxu0 %vm14167_vm2, %v19261_v31  ;;  %v12739_v4 = vpop.f32.mrb[99].mxu1 }
 0x454   : > { %v4144_v17 = vpop.f32.mrb[92].mxu0  ;;  %12965 = vmatmul.mubr.msk.bf16.gmra.mrb[204].mxu1 %vm656_vm1, %v5349_v12 }
 0x455   : > { %v12696_v62 = vpop.f32.mrb[93].mxu0  ;;  %12968 = vmatprep.mubr.msk.bf16.mxu1 %vm14167_vm2, %v19261_v31 }
 0x456   : > { %v4146_v26 = vpop.f32.mrb[94].mxu0 }
 0x457   : > { %v4175_v40 = vadd.f32 %v4146_v26, %v16513_v7  ;;  %v12697_v56 = vpop.f32.mrb[95].mxu0  ;;  %v4368_v16 = vpop.f32.mrb[100].mxu1 }
 0x458   : > { %v12742_v38 = vpop.f32.mrb[101].mxu1 }
 0x459   : > { %12923 = vmatmul.mubr.msk.bf16.gmra.mrb[200].mxu0 %vm656_vm1, %v16596_v6  ;;  %v4371_v48 = vpop.f32.mrb[102].mxu1  ;;  %v16663_v45 = vadd.f32 %v4355_v55, %v4175_v40 }
 0x45a   : > { %v12743_v9 = vpop.f32.mrb[103].mxu1  ;;  %12926 = vmatprep.mubr.msk.bf16.mxu0 %vm14167_vm2, %v19261_v31 }
 0x45c   : > { %v4151_v18 = vpop.f32.mrb[96].mxu0  ;;  %12969 = vmatmul.mubr.msk.bf16.gmra.mrb[208].mxu1 %vm656_vm1, %v5352_v24 }
 0x45d   : > { %v4176_v27 = vadd.f32 %v4151_v18, %v16526_v21  ;;  %v12700_v7 = vpop.f32.mrb[97].mxu0  ;;  %13012 = vmatprep.mubr.msk.bf16.mxu1 %vm14167_vm2, %v19261_v31 }
 0x45e   : > { %v4154_v37 = vpop.f32.mrb[98].mxu0 }
 0x45f   : > { %v4177_v36 = vadd.f32 %v4154_v37, %v16531_v42  ;;  %v12701_v23 = vpop.f32.mrb[99].mxu0  ;;  %v4653_v39 = vpop.f32.mrb[104].mxu1  ;;  %v16672_v1 = vadd.f32 %v4360_v5, %v4176_v27  ;;  %v5509_v5 = vrot.slane %v16504_v3, 1  ;;  %v5512_v3 = vrot.slane %v16522_v53, 1 }
 0x460   : > { %v12786_v22 = vpop.f32.mrb[105].mxu1  ;;  %v5514_v53 = vrot.slane %v16542_v63, 1 }
 0x461   : > { %v4656_v14 = vpop.f32.mrb[106].mxu1  ;;  %12927 = vmatmul.mubr.msk.bf16.gmra.mrb[204].mxu0 %vm656_vm1, %v16613_v29  ;;  %v16676_v10 = vadd.f32 %v4363_v8, %v4177_v36  ;;  %v5511_v32 = vsel %vm1068_vm5, %v5509_v5, %v5510_v44  ;;  %v5513_v9 = vsel %vm1068_vm5, %v5510_v44, %v5512_v3 }
 0x462   : > { %v12787_v55 = vpop.f32.mrb[107].mxu1  ;;  %12930 = vmatprep.mubr.msk.bf16.mxu0 %vm14167_vm2, %v19261_v31 }
 0x464   : > { %v4159_v21 = vpop.f32.mrb[100].mxu0 }
 0x465   : > { %v4178_v13 = vadd.f32 %v4159_v21, %v16545_v11  ;;  %v12704_v58 = vpop.f32.mrb[101].mxu0  ;;  %v5515_v21 = vsel %vm1068_vm5, %v5512_v3, %v5514_v53 }
 0x466   : > { %v4162_v42 = vpop.f32.mrb[102].mxu0 }
 0x467   : > { %v12705_v60 = vpop.f32.mrb[103].mxu0  ;;  %v4661_v43 = vpop.f32.mrb[108].mxu1  ;;  %v16681_v47 = vadd.f32 %v4368_v16, %v4178_v13 }
 0x468   : > { %v12790_v57 = vpop.f32.mrb[109].mxu1 }
 0x469   : > { %v4664_v20 = vpop.f32.mrb[110].mxu1  ;;  %12931 = vmatmul.mubr.msk.bf16.gmra.mrb[208].mxu0 %vm656_vm1, %v16630_v15 }
 0x46a   : > { %v12791_v34 = vpop.f32.mrb[111].mxu1  ;;  %12974 = vmatprep.mubr.msk.bf16.mxu0 %vm14167_vm2, %v19261_v31 }
 0x46c   : > { %v4480_v30 = vpop.f32.mrb[104].mxu0 }
 0x46d   : > { %v4547_v11 = vadd.f32 %v4480_v30, %v16564_v0  ;;  %v12748_v54 = vpop.f32.mrb[105].mxu0 }
 0x46e   : > { %v4483_v33 = vpop.f32.mrb[106].mxu0 }
 0x46f   : > { %v4548_v19 = vadd.f32 %v4483_v33, %v16568_v59  ;;  %v12749_v8 = vpop.f32.mrb[107].mxu0  ;;  %v4668_v12 = vpop.f32.mrb[112].mxu1  ;;  %v16691_v4 = vadd.f32 %v4653_v39, %v4547_v11 }
 0x470   : > { %v12794_v17 = vpop.f32.mrb[113].mxu1 }
 0x471   : > { %v4671_v62 = vpop.f32.mrb[114].mxu1  ;;  %12975 = vmatmul.mubr.msk.bf16.vlgmr.msra.gmra.mrb[212].mxu0 %vm656_vm1, %v5511_v32  ;;  %v16695_v26 = vadd.f32 %v4656_v14, %v4548_v19  ;;  %v5518_v19 = vrot.slane %v16580_v2, 1 }
 0x472   : > { %v12795_v52 = vpop.f32.mrb[115].mxu1  ;;  %12978 = vmatprep.mubr.msk.bf16.mxu0 %vm14167_vm2, %v19261_v31 }
 0x474   : > { %v4488_v0 = vpop.f32.mrb[108].mxu0 }
 0x475   : > { %v4549_v59 = vadd.f32 %v4488_v0, %v16582_v50  ;;  %v12752_v40 = vpop.f32.mrb[109].mxu0 }
 0x476   : > { %v4491_v56 = vpop.f32.mrb[110].mxu0 }
 0x477   : > { %v12753_v16 = vpop.f32.mrb[111].mxu0  ;;  %v4676_v38 = vpop.f32.mrb[116].mxu1  ;;  %v16701_v24 = vadd.f32 %v4661_v43, %v4549_v59  ;;  %v5520_v56 = vrot.slane %v16596_v6, 1  ;;  %v5522_v6 = vrot.slane %v16613_v29, 1  ;;  %v5524_v29 = vrot.slane %v16630_v15, 1 }
 0x478   : > { %v12798_v48 = vpop.f32.mrb[117].mxu1 }
 0x479   : > { %v4679_v18 = vpop.f32.mrb[118].mxu1  ;;  %12979 = vmatmul.mubr.msk.bf16.gmra.mrb[216].mxu0 %vm656_vm1, %v5513_v9 }
 0x47a   : > { %v12799_v27 = vpop.f32.mrb[119].mxu1  ;;  %12982 = vmatprep.mubr.msk.bf16.mxu0 %vm14167_vm2, %v19261_v31 }
 0x47c   : > { %v4495_v7 = vpop.f32.mrb[112].mxu0 }
 0x47d   : > { %v4550_v50 = vadd.f32 %v4495_v7, %v16598_v49  ;;  %v12756_v37 = vpop.f32.mrb[113].mxu0  ;;  %v5516_v49 = vrot.slane %v16562_v61, 1  ;;  %v11148_v61 = vld [vmem:[%s19224_s3 + $0x4] sm:$0xf]  ;;  %v5521_v7 = vsel %vm1068_vm5, %v5518_v19, %v5520_v56 }
 0x47e   : > { %v4498_v36 = vpop.f32.mrb[114].mxu0 }
 0x47f   : > { %v4551_v23 = vadd.f32 %v4498_v36, %v16602_v25  ;;  %v12757_v39 = vpop.f32.mrb[115].mxu0  ;;  %v4684_v22 = vpop.f32.mrb[120].mxu1  ;;  %v16710_v14 = vadd.f32 %v4668_v12, %v4550_v50  ;;  %v5517_v11 = vsel %vm1068_vm5, %v5514_v53, %v5516_v49  ;;  %v5519_v52 = vsel %vm1068_vm5, %v5516_v49, %v5518_v19 }
 0x480   : > { %v12802_v55 = vpop.f32.mrb[121].mxu1  ;;  %v5523_v39 = vsel %vm1068_vm5, %v5520_v56, %v5522_v6 }
 0x481   : > { %v4686_v13 = vpop.f32.mrb[122].mxu1  ;;  %12983 = vmatmul.mubr.msk.bf16.gmra.mrb[220].mxu0 %vm656_vm1, %v5515_v21  ;;  %v16714_v58 = vadd.f32 %v4671_v62, %v4551_v23 }
 0x482   : > { %v12803_v42 = vpop.f32.mrb[123].mxu1  ;;  %12986 = vmatprep.mubr.msk.bf16.mxu0 %vm14167_vm2, %v19261_v31 }
 0x484   : > { %v4503_v63 = vpop.f32.mrb[116].mxu0 }
 0x485   : > { %v4552_v25 = vadd.f32 %v4503_v63, %v16616_v46  ;;  %v12760_v60 = vpop.f32.mrb[117].mxu0  ;;  %v5888_v46 = vsel %vm5886_vm6, %v11148_v61, 0 }
 0x486   : > { %v4506_v43 = vpop.f32.mrb[118].mxu0  ;;  %13011 = vmatpush3.bf16.msra.mxu1 %v5888_v46 }
 0x487   : > { %v4553_v57 = vadd.f32 %v4506_v43, %v16622_v41  ;;  %v12761_v20 = vpop.f32.mrb[119].mxu0  ;;  %v4691_v34 = vpop.f32.mrb[124].mxu1  ;;  %v16721_v30 = vadd.f32 %v4676_v38, %v4552_v25  ;;  %13086 = vmatprep.subr.bf16.mxu1 %v19261_v31 }
 0x488   : > { %v12806_v44 = vpop.f32.mrb[125].mxu1 }
 0x489   : > { %v4694_v54 = vpop.f32.mrb[126].mxu1  ;;  %12987 = vmatmul.mubr.msk.bf16.gmra.mrb[224].mxu0 %vm656_vm1, %v5517_v11  ;;  %v16725_v33 = vadd.f32 %v4679_v18, %v4553_v57 }
 0x48a   : > { %v12807_v5 = vpop.f32.mrb[127].mxu1  ;;  %12990 = vmatprep.mubr.msk.bf16.mxu0 %vm14167_vm2, %v19261_v31 }
 0x48c   : > { %v4511_v41 = vpop.f32.mrb[120].mxu0 }
 0x48d   : > { %v12764_v8 = vpop.f32.mrb[121].mxu0 }
 0x48e   : > { %v4513_v12 = vpop.f32.mrb[122].mxu0 }
 0x48f   : > { %v4554_v17 = vadd.f32 %v4513_v12, %v16638_v51  ;;  %v12765_v32 = vpop.f32.mrb[123].mxu0  ;;  %v4699_v62 = vpop.f32.mrb[128].mxu1 }
 0x490   : > { %v12810_v0 = vpop.f32.mrb[129].mxu1 }
 0x491   : > { %12991 = vmatmul.mubr.msk.bf16.gmra.mrb[228].mxu0 %vm656_vm1, %v5519_v52  ;;  %v4701_v3 = vpop.f32.mrb[130].mxu1  ;;  %v16738_v59 = vadd.f32 %v4686_v13, %v4554_v17 }
 0x492   : > { %12994 = vmatprep.mubr.msk.bf16.mxu0 %vm14167_vm2, %v19261_v31  ;;  %v12811_v2 = vpop.f32.mrb[131].mxu1 }
 0x494   : > { %v4518_v40 = vpop.f32.mrb[124].mxu0 }
 0x495   : > { %v4555_v16 = vadd.f32 %v4518_v40, %v16647_v28  ;;  %v12768_v51 = vpop.f32.mrb[125].mxu0 }
 0x496   : > { %v4521_v38 = vpop.f32.mrb[126].mxu0 }
 0x497   : > { %v4556_v48 = vadd.f32 %v4521_v38, %v16652_v35  ;;  %v12769_v9 = vpop.f32.mrb[127].mxu0  ;;  %v4706_v18 = vpop.f32.mrb[132].mxu1  ;;  %v16745_v27 = vadd.f32 %v4691_v34, %v4555_v16 }
 0x498   : > { %v12814_v53 = vpop.f32.mrb[133].mxu1 }
 0x499   : > { %12995 = vmatmul.mubr.msk.bf16.gmra.mrb[232].mxu0 %vm656_vm1, %v5521_v7  ;;  %v4709_v50 = vpop.f32.mrb[134].mxu1  ;;  %v16749_v37 = vadd.f32 %v4694_v54, %v4556_v48 }
 0x49a   : > { %12998 = vmatprep.mubr.msk.bf16.mxu0 %vm14167_vm2, %v19261_v31  ;;  %v12815_v28 = vpop.f32.mrb[135].mxu1 }
 0x49c   : > { %v4526_v36 = vpop.f32.mrb[128].mxu0 }
 0x49d   : > { %v12772_v35 = vpop.f32.mrb[129].mxu0 }
 0x49e   : > { %v4528_v23 = vpop.f32.mrb[130].mxu0 }
 0x49f   : > { %v4557_v22 = vadd.f32 %v4528_v23, %v16663_v45  ;;  %v12773_v55 = vpop.f32.mrb[131].mxu0  ;;  %v4714_v21 = vpop.f32.mrb[136].mxu1  ;;  %v5525_v45 = vsel %vm1068_vm5, %v5522_v6, %v5524_v29 }
 0x4a0   : > { %v12818_v13 = vpop.f32.mrb[137].mxu1 }
 0x4a1   : > { %12999 = vmatmul.mubr.msk.bf16.gmra.mrb[236].mxu0 %vm656_vm1, %v5523_v39  ;;  %v4717_v42 = vpop.f32.mrb[138].mxu1  ;;  %v16757_v63 = vadd.f32 %v4701_v3, %v4557_v22 }
 0x4a2   : > { %v12819_v49 = vpop.f32.mrb[139].mxu1  ;;  %13002 = vmatprep.mubr.msk.bf16.mxu0 %vm14167_vm2, %v19261_v31 }
 0x4a4   : > { %v4533_v25 = vpop.f32.mrb[132].mxu0 }
 0x4a5   : > { %v4558_v60 = vadd.f32 %v4533_v25, %v16672_v1  ;;  %v12776_v43 = vpop.f32.mrb[133].mxu0 }
 0x4a6   : > { %v4536_v57 = vpop.f32.mrb[134].mxu0 }
 0x4a7   : > { %v4559_v20 = vadd.f32 %v4536_v57, %v16676_v10  ;;  %v12777_v34 = vpop.f32.mrb[135].mxu0  ;;  %v5035_v44 = vpop.f32.mrb[140].mxu1  ;;  %v16765_v11 = vadd.f32 %v4706_v18, %v4558_v60 }
 0x4a8   : > { %v12862_v54 = vpop.f32.mrb[141].mxu1 }
 0x4a9   : > { %v5038_v5 = vpop.f32.mrb[142].mxu1  ;;  %13003 = vmatmul.mubr.msk.bf16.gmra.mrb[240].mxu0 %vm656_vm1, %v5525_v45  ;;  %v16768_v61 = vadd.f32 %v4709_v50, %v4559_v20 }
 0x4aa   : > { %v12863_v15 = vpop.f32.mrb[143].mxu1  ;;  %13006 = vmatprep.mubr.msk.bf16.mxu0 %vm14167_vm2, %v19261_v31 }
 0x4ac   : > { %v4541_v1 = vpop.f32.mrb[136].mxu0 }
 0x4ad   : > { %v4560_v46 = vadd.f32 %v4541_v1, %v16681_v47  ;;  %v12780_v41 = vpop.f32.mrb[137].mxu0 }
 0x4ae   : > { %v4544_v19 = vpop.f32.mrb[138].mxu0 }
 0x4af   : > { %v12781_v10 = vpop.f32.mrb[139].mxu0  ;;  %v5043_v8 = vpop.f32.mrb[144].mxu1  ;;  %v16773_v12 = vadd.f32 %v4714_v21, %v4560_v46  ;;  %v5759_v19 = vld [vmem:[#allocation3] sm:$0xff] }
 0x4b0   : > { %v12866_v17 = vpop.f32.mrb[145].mxu1  ;;  %v5760_v10 = vld [vmem:[#allocation3 + $0x8] sm:$0xff] }
 0x4b1   : > { %v5046_v32 = vpop.f32.mrb[146].mxu1  ;;  %13007 = vmatmul.mubr.msk.bf16.gmra.mrb[244].mxu0 %vm656_vm1, %v5524_v29 }
 0x4b2   : > { %v12867_v62 = vpop.f32.mrb[147].mxu1  ;;  %13050 = vmatprep.mubr.msk.bf16.mxu0 %vm14167_vm2, %v19261_v31 }
 0x4b4   : > { %v4862_v52 = vpop.f32.mrb[140].mxu0 }
 0x4b5   : > { %v4929_v0 = vadd.f32 %v4862_v52, %v16691_v4  ;;  %v12824_v3 = vpop.f32.mrb[141].mxu0 }
 0x4b6   : > { %v4865_v2 = vpop.f32.mrb[142].mxu0 }
 0x4b7   : > { %v4930_v47 = vadd.f32 %v4865_v2, %v16695_v26  ;;  %v12825_v40 = vpop.f32.mrb[143].mxu0  ;;  %v5050_v56 = vpop.f32.mrb[148].mxu1  ;;  %v16780_v16 = vadd.f32 %v5035_v44, %v4929_v0  ;;  %v5785_v26 = vld [vmem:[%s19224_s3] sm:$0xf] }
 0x4b8   : > { %v12870_v51 = vpop.f32.mrb[149].mxu1  ;;  %v6010_v35 = vsel %vm5886_vm6, %v5785_v26, 0  ;;  %v5761_v40 = vld [vmem:[#allocation3 + $0x10] sm:$0xff] }
 0x4b9   : > { %v5053_v38 = vpop.f32.mrb[150].mxu1  ;;  %v16782_v48 = vadd.f32 %v5038_v5, %v4930_v47  ;;  %13049 = vmatpush3.bf16.msra.mxu0 %v6010_v35 }
 0x4ba   : > { %v12871_v9 = vpop.f32.mrb[151].mxu1  ;;  %13124 = vmatprep.subr.bf16.mxu0 %v19261_v31 }
 0x4bc   : > { %v4870_v18 = vpop.f32.mrb[144].mxu0 }
 0x4bd   : > { %v4931_v7 = vadd.f32 %v4870_v18, %v16701_v24  ;;  %v12828_v53 = vpop.f32.mrb[145].mxu0 }
 0x4be   : > { %v4873_v50 = vpop.f32.mrb[146].mxu0 }
 0x4bf   : > { %v12829_v6 = vpop.f32.mrb[147].mxu0  ;;  %v5058_v4 = vpop.f32.mrb[152].mxu1  ;;  %v16785_v28 = vadd.f32 %v5043_v8, %v4931_v7  ;;  %v16858_v8 = vpack.c.bf16 %v5760_v10, %v5759_v19 }
 0x4c0   : > { %v12874_v36 = vpop.f32.mrb[153].mxu1 }
 0x4c1   : > { %v5061_v23 = vpop.f32.mrb[154].mxu1  ;;  %13051 = vmatmul.mubr.msk.bf16.vlgmr.msra.gmra.mrb[248].mxu0 %vm5705_vm7, %v16858_v8  ;;  %v5789_v51 = vshrl.u32 %v16858_v8, 16 }
 0x4c2   : > { %v12875_v39 = vpop.f32.mrb[155].mxu1  ;;  %13054 = vmatprep.mubr.msk.bf16.mxu0 %vm14167_vm2, %v19261_v31 }
 0x4c4   : > { %v4877_v22 = vpop.f32.mrb[148].mxu0 }
 0x4c5   : > { %v4932_v24 = vadd.f32 %v4877_v22, %v16710_v14  ;;  %v12832_v55 = vpop.f32.mrb[149].mxu0 }
 0x4c6   : > { %v4880_v21 = vpop.f32.mrb[150].mxu0 }
 0x4c7   : > { %v4933_v13 = vadd.f32 %v4880_v21, %v16714_v58  ;;  %v12833_v42 = vpop.f32.mrb[151].mxu0  ;;  %v5066_v49 = vpop.f32.mrb[156].mxu1  ;;  %v16794_v29 = vadd.f32 %v5050_v56, %v4932_v24  ;;  %v5762_v56 = vld [vmem:[#allocation3 + $0x18] sm:$0xff] }
 0x4c8   : > { %v12878_v25 = vpop.f32.mrb[157].mxu1  ;;  %v16869_v18 = vpack.c.bf16 %v5762_v56, %v5761_v40 }
 0x4c9   : > { %v5068_v60 = vpop.f32.mrb[158].mxu1  ;;  %v16796_v43 = vadd.f32 %v5053_v38, %v4933_v13  ;;  %v5791_v38 = vshll.u32 %v16858_v8, 16 }
 0x4ca   : > { %v12879_v57 = vpop.f32.mrb[159].mxu1  ;;  %13055 = vmatmul.mubr.msk.bf16.gmra.mrb[252].mxu0 %vm5705_vm7, %v16869_v18  ;;  %v5796_v6 = vshll.u32 %v16869_v18, 16  ;;  %v5800_v26 = vshrl.u32 %v16869_v18, 16 }
 0x4cb   : > { %13058 = vmatprep.mubr.msk.bf16.mxu0 %vm14167_vm2, %v19261_v31 }
 0x4cc   : > { %v4885_v14 = vpop.f32.mrb[152].mxu0  ;;  %v5798_v24 = vrot.slane %v5796_v6, 1 }
 0x4cd   : > { %v4934_v58 = vadd.f32 %v4885_v14, %v16721_v30  ;;  %v12836_v45 = vpop.f32.mrb[153].mxu0 }
 0x4ce   : > { %v4888_v20 = vpop.f32.mrb[154].mxu0  ;;  %v16888_v25 = vor.u32 %v5800_v26, %v5798_v24 }
 0x4cf   : > { %v4935_v34 = vadd.f32 %v4888_v20, %v16725_v33  ;;  %v12837_v44 = vpop.f32.mrb[155].mxu0  ;;  %v5073_v54 = vpop.f32.mrb[160].mxu1  ;;  %v16854_v5 = vadd.f32 %v5058_v4, %v4934_v58  ;;  %v11167_v4 = vld [vmem:[%s19224_s3 + $0x8] sm:$0xf] }
 0x4d0   : > { %v12882_v15 = vpop.f32.mrb[161].mxu1  ;;  %v6169_v13 = vsel %vm5886_vm6, %v11167_v4, 0 }
 0x4d1   : > { %v5076_v1 = vpop.f32.mrb[162].mxu1  ;;  %v16856_v46 = vadd.f32 %v5061_v23, %v4935_v34 }
 0x4d2   : > { %v12883_v41 = vpop.f32.mrb[163].mxu1 }
 0x4d4   : > { %v4893_v17 = vpop.f32.mrb[156].mxu0 }
 0x4d5   : > { %v12840_v32 = vpop.f32.mrb[157].mxu0 }
 0x4d6   : > { %v4895_v30 = vpop.f32.mrb[158].mxu0 }
 0x4d7   : > { %v4936_v33 = vadd.f32 %v4895_v30, %v16738_v59  ;;  %v12841_v62 = vpop.f32.mrb[159].mxu0  ;;  %v5081_v52 = vpop.f32.mrb[164].mxu1  ;;  %v5793_v59 = vrot.slane %v5791_v38, 1 }
 0x4d8   : > { %v12886_v0 = vpop.f32.mrb[165].mxu1 }
 0x4d9   : > { %v5083_v3 = vpop.f32.mrb[166].mxu1  ;;  %v16865_v2 = vadd.f32 %v5068_v60, %v4936_v33 }
 0x4da   : > { %v12887_v47 = vpop.f32.mrb[167].mxu1 }
 0x4dc   : > { %v4900_v9 = vpop.f32.mrb[160].mxu0 }
 0x4dd   : > { %v4937_v7 = vadd.f32 %v4900_v9, %v16745_v27  ;;  %v12844_v53 = vpop.f32.mrb[161].mxu0  ;;  %v5794_v27 = vor.u32 %v5793_v59, %v5789_v51 }
 0x4de   : > { %v4903_v50 = vpop.f32.mrb[162].mxu0 }
 0x4df   : > { %v4938_v36 = vadd.f32 %v4903_v50, %v16749_v37  ;;  %v12845_v35 = vpop.f32.mrb[163].mxu0  ;;  %v5088_v23 = vpop.f32.mrb[168].mxu1  ;;  %v16880_v39 = vadd.f32 %v5073_v54, %v4937_v7  ;;  %v5799_v49 = vsel %vm731_vm3, %v5794_v27, %v5798_v24 }
 0x4e0   : > { %v12890_v22 = vpop.f32.mrb[169].mxu1  ;;  %13013 = vmatmul.mubr.msk.bf16.vlgmr.msra.gmra.mrb[212].mxu1 %vm5705_vm7, %v5799_v49 }
 0x4e1   : > { %v5091_v55 = vpop.f32.mrb[170].mxu1  ;;  %v16884_v21 = vadd.f32 %v5076_v1, %v4938_v36  ;;  %13087 = vmatpush3.bf16.msra.mxu1 %v6169_v13  ;;  %13016 = vmatprep.mubr.msk.bf16.mxu1 %vm14167_vm2, %v19261_v31 }
 0x4e2   : > { %v12891_v42 = vpop.f32.mrb[171].mxu1  ;;  %13162 = vmatprep.subr.bf16.mxu1 %v19261_v31 }
 0x4e4   : > { %v4908_v37 = vpop.f32.mrb[164].mxu0 }
 0x4e5   : > { %v12848_v60 = vpop.f32.mrb[165].mxu0 }
 0x4e6   : > { %v4910_v57 = vpop.f32.mrb[166].mxu0 }
 0x4e7   : > { %v4939_v14 = vadd.f32 %v4910_v57, %v16757_v63  ;;  %v12849_v58 = vpop.f32.mrb[167].mxu0  ;;  %v5096_v45 = vpop.f32.mrb[172].mxu1  ;;  %v11177_v57 = vld [vmem:[%s19224_s3 + $0xc] sm:$0xf] }
 0x4e8   : > { %v12894_v20 = vpop.f32.mrb[173].mxu1  ;;  %v6342_v58 = vsel %vm5886_vm6, %v11177_v57, 0 }
 0x4e9   : > { %v5099_v34 = vpop.f32.mrb[174].mxu1  ;;  %v16895_v44 = vadd.f32 %v5083_v3, %v4939_v14  ;;  %13125 = vmatpush3.bf16.msra.mxu0 %v6342_v58 }
 0x4ea   : > { %v12895_v54 = vpop.f32.mrb[175].mxu1  ;;  %13200 = vmatprep.subr.bf16.mxu0 %v19261_v31 }
 0x4ec   : > { %v4915_v15 = vpop.f32.mrb[168].mxu0 }
 0x4ed   : > { %v4940_v1 = vadd.f32 %v4915_v15, %v16765_v11  ;;  %v12852_v41 = vpop.f32.mrb[169].mxu0 }
 0x4ee   : > { %v4918_v19 = vpop.f32.mrb[170].mxu0 }
 0x4ef   : > { %v4941_v10 = vadd.f32 %v4918_v19, %v16768_v61  ;;  %v12853_v17 = vpop.f32.mrb[171].mxu0  ;;  %v5417_v32 = vpop.f32.mrb[176].mxu1  ;;  %v16899_v30 = vadd.f32 %v5088_v23, %v4940_v1 }
 0x4f0   : > { %v12938_v33 = vpop.f32.mrb[177].mxu1 }
 0x4f1   : > { %v5420_v63 = vpop.f32.mrb[178].mxu1  ;;  %v16901_v62 = vadd.f32 %v5091_v55, %v4941_v10 }
 0x4f2   : > { %v12939_v52 = vpop.f32.mrb[179].mxu1 }
 0x4f3   : > { %v6125_v52 = vrot.slane %v16869_v18, 1 }
 0x4f4   : > { %v4923_v0 = vpop.f32.mrb[172].mxu0 }
 0x4f5   : > { %v4942_v3 = vadd.f32 %v4923_v0, %v16773_v12  ;;  %v12856_v47 = vpop.f32.mrb[173].mxu0 }
 0x4f6   : > { %v4926_v40 = vpop.f32.mrb[174].mxu0 }
 0x4f7   : > { %v12857_v56 = vpop.f32.mrb[175].mxu0  ;;  %v5425_v11 = vpop.f32.mrb[180].mxu1  ;;  %v16904_v51 = vadd.f32 %v5096_v45, %v4942_v3 }
 0x4f8   : > { %v12942_v38 = vpop.f32.mrb[181].mxu1 }
 0x4f9   : > { %v5428_v61 = vpop.f32.mrb[182].mxu1 }
 0x4fa   : > { %v12943_v9 = vpop.f32.mrb[183].mxu1 }
 0x4fc   : > { %v5208_v7 = vpop.f32.mrb[176].mxu0 }
 0x4fd   : > { %v5275_v53 = vadd.f32 %v5208_v7, %v16780_v16  ;;  %v12900_v59 = vpop.f32.mrb[177].mxu0 }
 0x4fe   : > { %v5211_v50 = vpop.f32.mrb[178].mxu0 }
 0x4ff   : > { %v5276_v6 = vadd.f32 %v5211_v50, %v16782_v48  ;;  %v12901_v4 = vpop.f32.mrb[179].mxu0  ;;  %v5432_v26 = vpop.f32.mrb[184].mxu1  ;;  %v16908_v36 = vadd.f32 %v5417_v32, %v5275_v53 }
 0x500   : > { %v12946_v12 = vpop.f32.mrb[185].mxu1 }
 0x501   : > { %v5435_v35 = vpop.f32.mrb[186].mxu1  ;;  %v16910_v23 = vadd.f32 %v5420_v63, %v5276_v6  ;;  %v6124_v63 = vrot.slane %v16858_v8, 1 }
 0x502   : > { %v12947_v27 = vpop.f32.mrb[187].mxu1 }
 0x503   : > { %v16935_v56 = vsel %vm1068_vm5, %v6124_v63, %v6125_v52 }
 0x504   : > { %v5216_v22 = vpop.f32.mrb[180].mxu0 }
 0x505   : > { %v5277_v24 = vadd.f32 %v5216_v22, %v16785_v28  ;;  %v12904_v55 = vpop.f32.mrb[181].mxu0 }
 0x506   : > { %v5219_v13 = vpop.f32.mrb[182].mxu0 }
 0x507   : > { %v12905_v42 = vpop.f32.mrb[183].mxu0  ;;  %v5440_v16 = vpop.f32.mrb[188].mxu1  ;;  %v16913_v49 = vadd.f32 %v5425_v11, %v5277_v24 }
 0x508   : > { %v12950_v37 = vpop.f32.mrb[189].mxu1 }
 0x509   : > { %v5443_v48 = vpop.f32.mrb[190].mxu1 }
 0x50a   : > { %v12951_v60 = vpop.f32.mrb[191].mxu1 }
 0x50c   : > { %v5223_v14 = vpop.f32.mrb[184].mxu0 }
 0x50d   : > { %v5278_v45 = vadd.f32 %v5223_v14, %v16794_v29  ;;  %v12908_v20 = vpop.f32.mrb[185].mxu0 }
 0x50e   : > { %v5226_v28 = vpop.f32.mrb[186].mxu0 }
 0x50f   : > { %v5279_v34 = vadd.f32 %v5226_v28, %v16796_v43  ;;  %v12909_v54 = vpop.f32.mrb[187].mxu0  ;;  %v5448_v15 = vpop.f32.mrb[192].mxu1  ;;  %v16922_v1 = vadd.f32 %v5432_v26, %v5278_v45 }
 0x510   : > { %v12954_v41 = vpop.f32.mrb[193].mxu1 }
 0x511   : > { %v5450_v19 = vpop.f32.mrb[194].mxu1  ;;  %v16924_v10 = vadd.f32 %v5435_v35, %v5279_v34 }
 0x512   : > { %v12955_v17 = vpop.f32.mrb[195].mxu1 }
 0x514   : > { %v5231_v32 = vpop.f32.mrb[188].mxu0 }
 0x515   : > { %v5280_v33 = vadd.f32 %v5231_v32, %v16854_v5  ;;  %v12912_v29 = vpop.f32.mrb[189].mxu0 }
 0x516   : > { %v5234_v0 = vpop.f32.mrb[190].mxu0 }
 0x517   : > { %v5281_v43 = vadd.f32 %v5234_v0, %v16856_v46  ;;  %v12913_v3 = vpop.f32.mrb[191].mxu0  ;;  %v5455_v47 = vpop.f32.mrb[196].mxu1  ;;  %v16930_v40 = vadd.f32 %v5440_v16, %v5280_v33 }
 0x518   : > { %v12958_v11 = vpop.f32.mrb[197].mxu1 }
 0x519   : > { %v5458_v38 = vpop.f32.mrb[198].mxu1  ;;  %v16937_v5 = vadd.f32 %v5443_v48, %v5281_v43 }
 0x51a   : > { %v12959_v61 = vpop.f32.mrb[199].mxu1 }
 0x51c   : > { %v5239_v8 = vpop.f32.mrb[192].mxu0 }
 0x51d   : > { %v12916_v9 = vpop.f32.mrb[193].mxu0 }
 0x51e   : > { %v5241_v7 = vpop.f32.mrb[194].mxu0 }
 0x51f   : > { %v5282_v53 = vadd.f32 %v5241_v7, %v16865_v2  ;;  %v12917_v46 = vpop.f32.mrb[195].mxu0  ;;  %v5463_v59 = vpop.f32.mrb[200].mxu1 }
 0x520   : > { %v12962_v50 = vpop.f32.mrb[201].mxu1 }
 0x521   : > { %v5465_v6 = vpop.f32.mrb[202].mxu1  ;;  %v16940_v4 = vadd.f32 %v5450_v19, %v5282_v53 }
 0x522   : > { %v12963_v26 = vpop.f32.mrb[203].mxu1 }
 0x524   : > { %v5246_v12 = vpop.f32.mrb[196].mxu0 }
 0x525   : > { %v5283_v35 = vadd.f32 %v5246_v12, %v16880_v39  ;;  %v12920_v27 = vpop.f32.mrb[197].mxu0  ;;  %v5763_v12 = vld [vmem:[#allocation3 + $0x20] sm:$0xff] }
 0x526   : > { %v5249_v22 = vpop.f32.mrb[198].mxu0 }
 0x527   : > { %v5284_v24 = vadd.f32 %v5249_v22, %v16884_v21  ;;  %v12921_v55 = vpop.f32.mrb[199].mxu0  ;;  %v5470_v13 = vpop.f32.mrb[204].mxu1  ;;  %v16944_v42 = vadd.f32 %v5455_v47, %v5283_v35 }
 0x528   : > { %v12966_v16 = vpop.f32.mrb[205].mxu1 }
 0x529   : > { %v5473_v2 = vpop.f32.mrb[206].mxu1  ;;  %v16946_v37 = vadd.f32 %v5458_v38, %v5284_v24 }
 0x52a   : > { %v12967_v48 = vpop.f32.mrb[207].mxu1 }
 0x52c   : > { %v5254_v60 = vpop.f32.mrb[200].mxu0 }
 0x52d   : > { %v12924_v57 = vpop.f32.mrb[201].mxu0 }
 0x52e   : > { %v5256_v14 = vpop.f32.mrb[202].mxu0 }
 0x52f   : > { %v5285_v58 = vadd.f32 %v5256_v14, %v16895_v44  ;;  %v12925_v45 = vpop.f32.mrb[203].mxu0  ;;  %v5478_v39 = vpop.f32.mrb[208].mxu1 }
 0x530   : > { %v12970_v20 = vpop.f32.mrb[209].mxu1 }
 0x531   : > { %v16949_v28 = vadd.f32 %v5465_v6, %v5285_v58  ;;  %v5481_v21 = vpop.f32.mrb[210].mxu1 }
 0x532   : > { %v12971_v34 = vpop.f32.mrb[211].mxu1 }
 0x534   : > { %v5261_v54 = vpop.f32.mrb[204].mxu0 }
 0x535   : > { %v5286_v15 = vadd.f32 %v5261_v54, %v16899_v30  ;;  %v12928_v41 = vpop.f32.mrb[205].mxu0  ;;  %v16963_v30 = vld [vmem:[%s19223_s2] ss:$0 sm:$0xff] }
 0x536   : > { %v5264_v19 = vpop.f32.mrb[206].mxu0 }
 0x537   : > { %v5287_v17 = vadd.f32 %v5264_v19, %v16901_v62  ;;  %v16953_v32 = vadd.f32 %v5470_v13, %v5286_v15  ;;  %v12929_v33 = vpop.f32.mrb[207].mxu0 }
 0x539   : > { %v16955_v29 = vadd.f32 %v5473_v2, %v5287_v17 }
 0x53c   : > { %v5269_v44 = vpop.f32.mrb[208].mxu0 }
 0x53d   : > { %v5288_v63 = vadd.f32 %v5269_v44, %v16904_v51  ;;  %v12932_v0 = vpop.f32.mrb[209].mxu0 }
 0x53e   : > { %v5272_v43 = vpop.f32.mrb[210].mxu0 }
 0x53f   : > { %v16958_v3 = vadd.f32 %v5478_v39, %v5288_v63  ;;  %v12933_v47 = vpop.f32.mrb[211].mxu0 }
 0x544   : > { %v5590_v11 = vpop.f32.mrb[212].mxu0 }
 0x545   : > { %v5657_v62 = vadd.f32 %v5590_v11, %v16908_v36  ;;  %v12976_v38 = vpop.f32.mrb[213].mxu0 }
 0x546   : > { %v5593_v61 = vpop.f32.mrb[214].mxu0 }
 0x547   : > { %v5677_v8 = vadd.f32 %v16963_v30, %v5657_v62  ;;  %v5658_v9 = vadd.f32 %v5593_v61, %v16910_v23  ;;  %v12977_v51 = vpop.f32.mrb[215].mxu0 }
 0x549   : > { %v5691_v7 = vmax.f32 %v5677_v8, 0.0  ;;  %v5678_v53 = vadd.f32 %v16963_v30, %v5658_v9 }
 0x54b   : > { %5734 = vst.msk [vmem:[#allocation3 + $0x2b] sm:$0xf] %vm5733_vm8, %v5691_v7  ;;  %v5692_v46 = vmax.f32 %v5678_v53, 0.0 }
 0x54c   : > { %5736 = vst.msk [vmem:[#allocation3 + $0x2b] sm:$0xc0] %vm5735_vm9, %v5691_v7  ;;  %v5598_v36 = vpop.f32.mrb[216].mxu0 }
 0x54d   : > { %5738 = vst.msk [vmem:[#allocation3 + $0x33] sm:$0x3] %vm5737_vm10, %v5692_v46  ;;  %v5659_v23 = vadd.f32 %v5598_v36, %v16913_v49  ;;  %v12980_v59 = vpop.f32.mrb[217].mxu0 }
 0x54e   : > { %5740 = vst.msk [vmem:[#allocation3 + $0x33] sm:$0xf0] %vm5739_vm11, %v5692_v46  ;;  %v5601_v50 = vpop.f32.mrb[218].mxu0 }
 0x54f   : > { %v5679_v6 = vadd.f32 %v16963_v30, %v5659_v23  ;;  %v12981_v26 = vpop.f32.mrb[219].mxu0 }
 0x551   : > { %v5693_v35 = vmax.f32 %v5679_v6, 0.0 }
 0x552   : > { %v5764_v27 = vld [vmem:[#allocation3 + $0x28] sm:$0xff] }
 0x553   : > { %5742 = vst.msk [vmem:[#allocation3 + $0x3b] sm:$0x3c] %vm5741_vm12, %v5693_v35  ;;  %v16976_v22 = vpack.c.bf16 %v5764_v27, %v5763_v12  ;;  %v16978_v24 = vld [vmem:[#allocation3 + $0x24] sm:$0xff] }
 0x554   : > { %v16980_v55 = vld [vmem:[#allocation3 + $0x2c] sm:$0xff]  ;;  %v5605_v13 = vpop.f32.mrb[220].mxu0 }
 0x555   : > { %v16984_v49 = vpack.c.bf16 %v16980_v55, %v16978_v24  ;;  %v5660_v16 = vadd.f32 %v5605_v13, %v16922_v1  ;;  %v12984_v2 = vpop.f32.mrb[221].mxu0  ;;  %13059 = vmatmul.mubr.msk.bf16.gmra.mrb[0].mxu0 %vm5705_vm7, %v16976_v22  ;;  %v5804_v48 = vshll.u32 %v16976_v22, 16  ;;  %v6127_v57 = vrot.slane %v16976_v22, 1  ;;  %v8506_v54 = vld [vmem:[#allocation3 + $0x30] sm:$0xff] }
 0x556   : > { %v5608_v60 = vpop.f32.mrb[222].mxu0  ;;  %13062 = vmatprep.mubr.msk.bf16.mxu0 %vm14167_vm2, %v19261_v31  ;;  %v17032_v51 = vld [vmem:[#allocation3 + $0x34] sm:$0xff]  ;;  %v5772_v2 = vld [vmem:[#allocation3 + $0x68] sm:$0xff] }
 0x557   : > { %v5680_v14 = vadd.f32 %v16963_v30, %v5660_v16  ;;  %v5661_v58 = vadd.f32 %v5608_v60, %v16924_v10  ;;  %v12985_v45 = vpop.f32.mrb[223].mxu0  ;;  %v5806_v39 = vrot.slane %v5804_v48, 1  ;;  %v17000_v1 = vsel %vm1068_vm5, %v6125_v52, %v6127_v57  ;;  %v17055_v48 = vld [vmem:[#allocation3 + $0x44] sm:$0xff] }
 0x559   : > { %v5694_v20 = vmax.f32 %v5680_v14, 0.0  ;;  %v5681_v21 = vadd.f32 %v16963_v30, %v5661_v58  ;;  %v5807_v34 = vsel %vm731_vm3, %v16888_v25, %v5806_v39  ;;  %v5808_v25 = vshrl.u32 %v16976_v22, 16 }
 0x55a   : > { %v8507_v15 = vld [vmem:[#allocation3 + $0x38] sm:$0xff]  ;;  %13017 = vmatmul.mubr.msk.bf16.gmra.mrb[216].mxu1 %vm5705_vm7, %v5807_v34  ;;  %v5767_v61 = vld [vmem:[#allocation3 + $0x40] sm:$0xff] }
 0x55b   : > { %v17006_v10 = vpack.c.bf16 %v8507_v15, %v8506_v54  ;;  %5743 = vst.msk [vmem:[#allocation3 + $0x4b] sm:$0xf0] %vm5739_vm11, %v5694_v20  ;;  %v5695_v41 = vmax.f32 %v5681_v21, 0.0  ;;  %13020 = vmatprep.mubr.msk.bf16.mxu1 %vm14167_vm2, %v19261_v31  ;;  %v5810_v43 = vor.u32 %v5808_v25, %v5806_v39  ;;  %v17023_v38 = vld [vmem:[#allocation3 + $0x3c] sm:$0xff] }
 0x55c   : > { %v5613_v18 = vpop.f32.mrb[224].mxu0  ;;  %v17036_v53 = vpack.c.bf16 %v17023_v38, %v17032_v51 }
 0x55d   : > { %5744 = vst.msk [vmem:[#allocation3 + $0x53] sm:$0x3c] %vm5741_vm12, %v5695_v41  ;;  %v5662_v52 = vadd.f32 %v5613_v18, %v16930_v40  ;;  %v12988_v19 = vpop.f32.mrb[225].mxu0  ;;  %13063 = vmatmul.mubr.msk.bf16.gmra.mrb[4].mxu0 %vm5705_vm7, %v17006_v10  ;;  %v5812_v17 = vshll.u32 %v17006_v10, 16  ;;  %v5816_v36 = vshrl.u32 %v17006_v10, 16 }
 0x55e   : > { %v5616_v33 = vpop.f32.mrb[226].mxu0  ;;  %13066 = vmatprep.mubr.msk.bf16.mxu0 %vm14167_vm2, %v19261_v31 }
 0x55f   : > { %v5682_v44 = vadd.f32 %v16963_v30, %v5662_v52  ;;  %v5663_v63 = vadd.f32 %v5616_v33, %v16937_v5  ;;  %v12989_v0 = vpop.f32.mrb[227].mxu0  ;;  %v5814_v47 = vrot.slane %v5812_v17, 1 }
 0x561   : > { %v5696_v40 = vmax.f32 %v5682_v44, 0.0  ;;  %v5683_v11 = vadd.f32 %v16963_v30, %v5663_v63  ;;  %v5815_v62 = vsel %vm731_vm3, %v5810_v43, %v5814_v47  ;;  %v17046_v26 = vor.u32 %v5816_v36, %v5814_v47 }
 0x562   : > { %13021 = vmatmul.mubr.msk.bf16.gmra.mrb[220].mxu1 %vm5705_vm7, %v5815_v62  ;;  %v5768_v8 = vld [vmem:[#allocation3 + $0x48] sm:$0xff] }
 0x563   : > { %5745 = vst.msk [vmem:[#allocation3 + $0x5b] sm:$0xf] %vm5733_vm8, %v5696_v40  ;;  %v5697_v9 = vmax.f32 %v5683_v11, 0.0  ;;  %v17028_v5 = vpack.c.bf16 %v5768_v8, %v5767_v61  ;;  %13024 = vmatprep.mubr.msk.bf16.mxu1 %vm14167_vm2, %v19261_v31  ;;  %v17048_v35 = vld [vmem:[#allocation3 + $0x4c] sm:$0xff] }
 0x564   : > { %5746 = vst.msk [vmem:[#allocation3 + $0x5b] sm:$0xc0] %vm5735_vm9, %v5696_v40  ;;  %v5621_v7 = vpop.f32.mrb[228].mxu0  ;;  %v17050_v27 = vld [vmem:[#allocation3 + $0x4e] sm:$0xff]  ;;  %v17062_v58 = vpack.c.bf16 %v17048_v35, %v17055_v48 }
 0x565   : > { %5747 = vst.msk [vmem:[#allocation3 + $0x63] sm:$0x3] %vm5737_vm10, %v5697_v9  ;;  %v12992_v46 = vpop.f32.mrb[229].mxu0  ;;  %13067 = vmatmul.mubr.msk.bf16.gmra.mrb[8].mxu0 %vm5705_vm7, %v17028_v5  ;;  %v5820_v23 = vshll.u32 %v17028_v5, 16  ;;  %v5824_v41 = vshrl.u32 %v17028_v5, 16  ;;  %v6131_v25 = vrot.slane %v17028_v5, 1 }
 0x566   : > { %v5623_v59 = vpop.f32.mrb[230].mxu0  ;;  %13070 = vmatprep.mubr.msk.bf16.mxu0 %vm14167_vm2, %v19261_v31 }
 0x567   : > { %v5664_v50 = vadd.f32 %v5623_v59, %v16940_v4  ;;  %v12993_v6 = vpop.f32.mrb[231].mxu0  ;;  %v5822_v12 = vrot.slane %v5820_v23, 1  ;;  %v5769_v4 = vld [vmem:[#allocation3 + $0x50] sm:$0xff] }
 0x569   : > { %v5684_v13 = vadd.f32 %v16963_v30, %v5664_v50  ;;  %v5823_v16 = vsel %vm731_vm3, %v17046_v26, %v5822_v12  ;;  %v5826_v63 = vor.u32 %v5824_v41, %v5822_v12 }
 0x56a   : > { %v17057_v60 = vld [vmem:[#allocation3 + $0x56] sm:$0xff]  ;;  %13025 = vmatmul.mubr.msk.bf16.gmra.mrb[224].mxu1 %vm5705_vm7, %v5823_v16 }
 0x56b   : > { %v5770_v14 = vld [vmem:[#allocation3 + $0x58] sm:$0xff]  ;;  %v17066_v45 = vpack.c.bf16 %v17057_v60, %v17050_v27  ;;  %v5698_v39 = vmax.f32 %v5684_v13, 0.0  ;;  %13028 = vmatprep.mubr.msk.bf16.mxu1 %vm14167_vm2, %v19261_v31 }
 0x56c   : > { %v5781_v20 = vpack.c.bf16 %v5770_v14, %v5769_v4  ;;  %v5628_v21 = vpop.f32.mrb[232].mxu0  ;;  %v5771_v34 = vld [vmem:[#allocation3 + $0x60] sm:$0xff]  ;;  %v17109_v16 = vld [vmem:[#allocation3 + $0x54] sm:$0xff] }
 0x56d   : > { %5748 = vst.msk [vmem:[#allocation3 + $0x73] sm:$0xf] %vm5733_vm8, %v5698_v39  ;;  %v5665_v54 = vadd.f32 %v5628_v21, %v16944_v42  ;;  %v12996_v15 = vpop.f32.mrb[233].mxu0  ;;  %v17075_v52 = vpack.c.bf16 %v5772_v2, %v5771_v34  ;;  %v17102_v59 = vld [vmem:[#allocation3 + $0x5c] sm:$0xff]  ;;  %v17111_v2 = vld [vmem:[#allocation3 + $0x64] sm:$0xff] }
 0x56e   : > { %5749 = vst.msk [vmem:[#allocation3 + $0x73] sm:$0xc0] %vm5735_vm9, %v5698_v39  ;;  %13071 = vmatmul.mubr.msk.bf16.gmra.mrb[12].mxu0 %vm5705_vm7, %v5781_v20  ;;  %v5828_v18 = vshll.u32 %v5781_v20, 16  ;;  %v5631_v19 = vpop.f32.mrb[234].mxu0  ;;  %v6133_v17 = vrot.slane %v5781_v20, 1  ;;  %v5832_v9 = vshrl.u32 %v5781_v20, 16  ;;  %v17115_v4 = vpack.c.bf16 %v17102_v59, %v17109_v16 }
 0x56f   : > { %13074 = vmatprep.mubr.msk.bf16.mxu0 %vm14167_vm2, %v19261_v31  ;;  %v5685_v33 = vadd.f32 %v16963_v30, %v5665_v54  ;;  %v5666_v44 = vadd.f32 %v5631_v19, %v16946_v37  ;;  %v12997_v42 = vpop.f32.mrb[235].mxu0  ;;  %v6135_v47 = vrot.slane %v17075_v52, 1  ;;  %v5836_v61 = vshll.u32 %v17075_v52, 16  ;;  %v6297_v22 = vld [vmem:[#allocation3 + $0x5e] sm:$0xff] }
 0x570   : > { %v5830_v0 = vrot.slane %v5828_v18, 1  ;;  %v17085_v43 = vsel %vm1068_vm5, %v6131_v25, %v6133_v17 }
 0x571   : > { %v5699_v40 = vmax.f32 %v5685_v33, 0.0  ;;  %v5686_v11 = vadd.f32 %v16963_v30, %v5666_v44  ;;  %v17093_v37 = vsel %vm1068_vm5, %v6133_v17, %v6135_v47  ;;  %v5838_v23 = vrot.slane %v5836_v61, 1 }
 0x572   : > { %v5831_v62 = vsel %vm731_vm3, %v5826_v63, %v5830_v0  ;;  %v5834_v36 = vor.u32 %v5832_v9, %v5830_v0  ;;  %v5840_v63 = vshrl.u32 %v17075_v52, 16 }
 0x573   : > { %13029 = vmatmul.mubr.msk.bf16.gmra.mrb[228].mxu1 %vm5705_vm7, %v5831_v62  ;;  %5750 = vst.msk [vmem:[#allocation3 + $0x7b] sm:$0x3] %vm5737_vm10, %v5699_v40  ;;  %v5700_v8 = vmax.f32 %v5686_v11, 0.0 }
 0x574   : > { %5751 = vst.msk [vmem:[#allocation3 + $0x7b] sm:$0xf0] %vm5739_vm11, %v5699_v40  ;;  %13032 = vmatprep.mubr.msk.bf16.mxu1 %vm14167_vm2, %v19261_v31  ;;  %v5636_v7 = vpop.f32.mrb[236].mxu0  ;;  %v17106_v6 = vld [vmem:[#allocation3 + $0x6c] sm:$0xff]  ;;  %v5839_v39 = vsel %vm731_vm3, %v5834_v36, %v5838_v23 }
 0x575   : > { %5752 = vst.msk [vmem:[#allocation3 + $0x83] sm:$0x3c] %vm5741_vm12, %v5700_v8  ;;  %v13000_v46 = vpop.f32.mrb[237].mxu0  ;;  %v17121_v20 = vpack.c.bf16 %v17106_v6, %v17111_v2  ;;  %v5842_v8 = vor.u32 %v5840_v63, %v5838_v23 }
 0x576   : > { %13075 = vmatmul.mubr.msk.bf16.gmra.mrb[16].mxu0 %vm5705_vm7, %v17075_v52  ;;  %v5638_v50 = vpop.f32.mrb[238].mxu0 }
 0x577   : > { %13078 = vmatprep.mubr.msk.bf16.mxu0 %vm14167_vm2, %v19261_v31  ;;  %v5667_v12 = vadd.f32 %v5638_v50, %v16949_v28  ;;  %v13001_v13 = vpop.f32.mrb[239].mxu0  ;;  %v5773_v28 = vld [vmem:[#allocation3 + $0x70] sm:$0xff] }
 0x579   : > { %v5687_v14 = vadd.f32 %v16963_v30, %v5667_v12 }
 0x57a   : > { %v17126_v41 = vld [vmem:[#allocation3 + $0x74] sm:$0xff] }
 0x57b   : > { %13033 = vmatmul.mubr.msk.bf16.gmra.mrb[232].mxu1 %vm5705_vm7, %v5839_v39  ;;  %v5774_v21 = vld [vmem:[#allocation3 + $0x78] sm:$0xff]  ;;  %v5775_v34 = vld [vmem:[#allocation3 + $0x80] sm:$0xf]  ;;  %v5701_v54 = vmax.f32 %v5687_v14, 0.0 }
 0x57c   : > { %v5783_v15 = vpack.c.bf16 %v5774_v21, %v5773_v28  ;;  %13036 = vmatprep.mubr.msk.bf16.mxu1 %vm14167_vm2, %v19261_v31  ;;  %v17128_v18 = vld [vmem:[#allocation3 + $0x7c] sm:$0xff]  ;;  %v5643_v19 = vpop.f32.mrb[240].mxu0  ;;  %v17130_v17 = vpack.c.bf16 %v5775_v34, %v5775_v34  ;;  %v6286_v21 = vld [vmem:[#allocation3 + $0x6] sm:$0xff]  ;;  %v6287_v34 = vld [vmem:[#allocation3 + $0xe] sm:$0xff] }
 0x57d   : > { %v17134_v33 = vpack.c.bf16 %v17128_v18, %v17126_v41  ;;  %5753 = vst.msk [vmem:[#allocation3 + $0x93] sm:$0xf0] %vm5739_vm11, %v5701_v54  ;;  %v5668_v44 = vadd.f32 %v5643_v19, %v16953_v32  ;;  %v13004_v42 = vpop.f32.mrb[241].mxu0 }
 0x57e   : > { %13079 = vmatmul.mubr.msk.bf16.gmra.mrb[20].mxu0 %vm5705_vm7, %v5783_v15  ;;  %v5844_v0 = vshll.u32 %v5783_v15, 16  ;;  %v5646_v40 = vpop.f32.mrb[242].mxu0  ;;  %v6137_v11 = vrot.slane %v5783_v15, 1  ;;  %v6139_v46 = vrot.slane %v17130_v17, 1  ;;  %v5852_v23 = vshll.u32 %v17130_v17, 16 }
 0x57f   : > { %13082 = vmatprep.mubr.msk.bf16.mxu0 %vm14167_vm2, %v19261_v31  ;;  %v5688_v62 = vadd.f32 %v16963_v30, %v5668_v44  ;;  %v5669_v61 = vadd.f32 %v5646_v40, %v16955_v29  ;;  %v13005_v7 = vpop.f32.mrb[243].mxu0  ;;  %v11197_v42 = vld [vmem:[%s19224_s3 + $0x14] sm:$0xf]  ;;  %v5856_v40 = vshrl.u32 %v17130_v17, 16 }
 0x580   : > { %v5846_v9 = vrot.slane %v5844_v0, 1  ;;  %v17145_v32 = vsel %vm1068_vm5, %v6135_v47, %v6137_v11  ;;  %v17154_v12 = vsel %vm1068_vm5, %v6137_v11, %v6139_v46  ;;  %v5848_v47 = vshrl.u32 %v5783_v15, 16 }
 0x581   : > { %v5702_v36 = vmax.f32 %v5688_v62, 0.0  ;;  %v5689_v52 = vadd.f32 %v16963_v30, %v5669_v61  ;;  %v5854_v19 = vrot.slane %v5852_v23, 1  ;;  %v17172_v0 = vpack.c.bf16 %v6287_v34, %v6286_v21  ;;  %v6288_v62 = vld [vmem:[#allocation3 + $0x16] sm:$0xff]  ;;  %v6289_v61 = vld [vmem:[#allocation3 + $0x1e] sm:$0xff] }
 0x582   : > { %v5847_v50 = vsel %vm731_vm3, %v5842_v8, %v5846_v9  ;;  %v5850_v39 = vor.u32 %v5848_v47, %v5846_v9  ;;  %v17186_v8 = vpack.c.bf16 %v6289_v61, %v6288_v62  ;;  %v11187_v9 = vld [vmem:[%s19224_s3 + $0x10] sm:$0xf]  ;;  %v6293_v47 = vld [vmem:[#allocation3 + $0x3e] sm:$0xff]  ;;  %v17218_v23 = vrot.slane %v17006_v10, 1  ;;  %v8514_v61 = vld [vmem:[#allocation3 + $0x70] sm:$0xff] }
 0x583   : > { %13037 = vmatmul.mubr.msk.bf16.gmra.mrb[236].mxu1 %vm5705_vm7, %v5847_v50  ;;  %5754 = vst.msk [vmem:[#allocation3 + $0x9b] sm:$0x3c] %vm5741_vm12, %v5702_v36  ;;  %v5703_v29 = vmax.f32 %v5689_v52, 0.0  ;;  %v5858_v11 = vor.u32 %v5856_v40, %v5854_v19  ;;  %v6551_v7 = vsel %vm5886_vm6, %v11187_v9, 0  ;;  %v6291_v36 = vld [vmem:[#allocation3 + $0x2e] sm:$0xff]  ;;  %v6290_v52 = vld [vmem:[#allocation3 + $0x26] sm:$0xff] }
 0x584   : > { %13040 = vmatprep.mubr.msk.bf16.mxu1 %vm14167_vm2, %v19261_v31  ;;  %v5651_v13 = vpop.f32.mrb[244].mxu0  ;;  %v5855_v63 = vsel %vm731_vm3, %v5850_v39, %v5854_v19  ;;  %v17200_v50 = vpack.c.bf16 %v6291_v36, %v6290_v52  ;;  %v8512_v62 = vld [vmem:[#allocation3 + $0x60] sm:$0xff]  ;;  %v8509_v36 = vld [vmem:[#allocation3 + $0x48] sm:$0xff]  ;;  %v8511_v52 = vld [vmem:[#allocation3 + $0x58] sm:$0xff] }
 0x585   : > { %5755 = vst.msk [vmem:[#allocation3 + $0xa3] sm:$0xf] %vm5733_vm8, %v5703_v29  ;;  %v5670_v14 = vadd.f32 %v5651_v13, %v16958_v3  ;;  %v13008_v28 = vpop.f32.mrb[245].mxu0  ;;  %v6294_v13 = vld [vmem:[#allocation3 + $0x46] sm:$0xff] }
 0x586   : > { %5756 = vst.msk [vmem:[#allocation3 + $0xa3] sm:$0xc0] %vm5735_vm9, %v5703_v29  ;;  %13083 = vmatmul.mubr.msk.bf16.gmra.mrb[24].mxu0 %vm5705_vm7, %v17130_v17  ;;  %v5654_v54 = vpop.f32.mrb[246].mxu0  ;;  %v6292_v29 = vld [vmem:[#allocation3 + $0x36] sm:$0xff]  ;;  %v17228_v21 = vpack.c.bf16 %v17050_v27, %v6294_v13  ;;  %v8516_v9 = vld [vmem:[#allocation3 + $0x80] sm:$0xff] }
 0x587   : > { %13126 = vmatprep.mubr.msk.bf16.mxu0 %vm14167_vm2, %v19261_v31  ;;  %v5690_v15 = vadd.f32 %v16963_v30, %v5670_v14  ;;  %v13009_v44 = vpop.f32.mrb[247].mxu0  ;;  %v6724_v30 = vsel %vm5886_vm6, %v11197_v42, 0 }
 0x589   : > { %v5704_v3 = vmax.f32 %v5690_v15, 0.0  ;;  %v17244_v15 = vpack.c.bf16 %v6297_v22, %v17057_v60  ;;  %v8517_v22 = vld [vmem:[#allocation3 + $0x88] sm:$0xff] }
 0x58b   : > { %13041 = vmatmul.mubr.msk.bf16.gmra.mrb[240].mxu1 %vm5705_vm7, %v5855_v63  ;;  %5757 = vst.msk [vmem:[#allocation3 + $0xab] sm:$0x3] %vm5737_vm10, %v5704_v3  ;;  %v6298_v3 = vld [vmem:[#allocation3 + $0x66] sm:$0xff]  ;;  %v6299_v63 = vld [vmem:[#allocation3 + $0x6e] sm:$0xff] }
 0x58c   : > { %13044 = vmatprep.mubr.msk.bf16.mxu1 %vm14167_vm2, %v19261_v31 }
 0x58e   : > { %13127 = vmatmul.mubr.msk.bf16.vlgmr.msra.gmra.mrb[28].mxu0 %vm5705_vm7, %v17172_v0 }
 0x58f   : > { %13130 = vmatprep.mubr.msk.bf16.mxu0 %vm14167_vm2, %v19261_v31  ;;  %13201 = vmatpush3.bf16.msra.mxu0 %v6724_v30 }
 0x590   : > { %13276 = vmatprep.subr.bf16.mxu0 %v19261_v31 }
 0x593   : > { %13045 = vmatmul.mubr.msk.bf16.gmra.mrb[244].mxu1 %vm5705_vm7, %v5858_v11  ;;  %v8510_v11 = vld [vmem:[#allocation3 + $0x50] sm:$0xff] }
 0x594   : > { %13088 = vmatprep.mubr.msk.bf16.mxu1 %vm14167_vm2, %v19261_v31  ;;  %v6046_v14 = vpop.f32.mrb[248].mxu0  ;;  %v17262_v13 = vpack.c.bf16 %v8510_v11, %v8509_v36 }
 0x595   : > { %v13052_v39 = vpop.f32.mrb[249].mxu0 }
 0x596   : > { %13131 = vmatmul.mubr.msk.bf16.gmra.mrb[32].mxu0 %vm5705_vm7, %v17186_v8  ;;  %v6049_v28 = vpop.f32.mrb[250].mxu0  ;;  %v8518_v39 = vld [vmem:[#allocation3 + $0x90] sm:$0xff] }
 0x597   : > { %13134 = vmatprep.mubr.msk.bf16.mxu0 %vm14167_vm2, %v19261_v31  ;;  %v13053_v34 = vpop.f32.mrb[251].mxu0 }
 0x598   : > { %v6301_v34 = vld [vmem:[#allocation3 + $0x7e] sm:$0xff] }
 0x59b   : > { %13089 = vmatmul.mubr.msk.bf16.vlgmr.msra.gmra.mrb[248].mxu1 %vm5705_vm7, %v16935_v56  ;;  %v17211_v56 = vpack.c.bf16 %v6293_v47, %v6292_v29  ;;  %v8513_v29 = vld [vmem:[#allocation3 + $0x68] sm:$0xff]  ;;  %v8515_v47 = vld [vmem:[#allocation3 + $0x78] sm:$0xff] }
 0x59c   : > { %13163 = vmatpush3.bf16.msra.mxu1 %v6551_v7  ;;  %13092 = vmatprep.mubr.msk.bf16.mxu1 %vm14167_vm2, %v19261_v31  ;;  %v17258_v7 = vpack.c.bf16 %v6299_v63, %v6298_v3  ;;  %v6680_v63 = vrot.slane %v17186_v8, 1 }
 0x59d   : > { %13238 = vmatprep.subr.bf16.mxu1 %v19261_v31  ;;  %v17240_v54 = vpop.f32.mrb[252].mxu0 }
 0x59e   : > { %13135 = vmatmul.mubr.msk.bf16.gmra.mrb[36].mxu0 %vm5705_vm7, %v17200_v50  ;;  %v13056_v27 = vpop.f32.mrb[253].mxu0 }
 0x59f   : > { %13138 = vmatprep.mubr.msk.bf16.mxu0 %vm14167_vm2, %v19261_v31  ;;  %v6057_v19 = vpop.f32.mrb[254].mxu0  ;;  %v17274_v27 = vpack.c.bf16 %v8518_v39, %v8517_v22  ;;  %v6471_v39 = vshrl.u32 %v17186_v8, 16 }
 0x5a0   : > { %v13057_v44 = vpop.f32.mrb[255].mxu0  ;;  %v6300_v19 = vld [vmem:[#allocation3 + $0x76] sm:$0xff] }
 0x5a3   : > { %13093 = vmatmul.mubr.msk.bf16.gmra.mrb[252].mxu1 %vm5705_vm7, %v17000_v1  ;;  %v6130_v1 = vsel %vm1068_vm5, %v6127_v57, %v17218_v23  ;;  %v6132_v57 = vsel %vm1068_vm5, %v17218_v23, %v6131_v25 }
 0x5a4   : > { %13096 = vmatprep.mubr.msk.bf16.mxu1 %vm14167_vm2, %v19261_v31 }
 0x5a6   : > { %13139 = vmatmul.mubr.msk.bf16.gmra.mrb[40].mxu0 %vm5705_vm7, %v17211_v56 }
 0x5a7   : > { %13142 = vmatprep.mubr.msk.bf16.mxu0 %vm14167_vm2, %v19261_v31 }
 0x5ab   : > { %13097 = vmatmul.mubr.msk.bf16.gmra.mrb[0].mxu1 %vm5705_vm7, %v6130_v1  ;;  %v17268_v1 = vpack.c.bf16 %v8514_v61, %v8513_v29  ;;  %v11207_v29 = vld [vmem:[%s19224_s3 + $0x18] sm:$0xf] }
 0x5ac   : > { %13100 = vmatprep.mubr.msk.bf16.mxu1 %vm14167_vm2, %v19261_v31 }
 0x5ae   : > { %13143 = vmatmul.mubr.msk.bf16.gmra.mrb[44].mxu0 %vm5705_vm7, %v17228_v21 }
 0x5af   : > { %13146 = vmatprep.mubr.msk.bf16.mxu0 %vm14167_vm2, %v19261_v31 }
 0x5b3   : > { %13101 = vmatmul.mubr.msk.bf16.gmra.mrb[4].mxu1 %vm5705_vm7, %v6132_v57  ;;  %v5924_v5 = vpop.f32.mrb[212].mxu1  ;;  %v8519_v57 = vld [vmem:[#allocation3 + $0x98] sm:$0xff] }
 0x5b4   : > { %13104 = vmatprep.mubr.msk.bf16.mxu1 %vm14167_vm2, %v19261_v31  ;;  %v17252_v25 = vadd.f32 %v6046_v14, %v5924_v5  ;;  %v13014_v42 = vpop.f32.mrb[213].mxu1  ;;  %v17264_v14 = vpack.c.bf16 %v8512_v62, %v8511_v52  ;;  %v17280_v5 = vpack.c.bf16 %v6301_v34, %v6300_v19  ;;  %v6461_v62 = vshrl.u32 %v17172_v0, 16 }
 0x5b5   : > { %v5927_v30 = vpop.f32.mrb[214].mxu1  ;;  %v6302_v42 = vld [vmem:[#allocation3 + $0x86] sm:$0xf] }
 0x5b6   : > { %13147 = vmatmul.mubr.msk.bf16.gmra.mrb[48].mxu0 %vm5705_vm7, %v17244_v15  ;;  %v17254_v60 = vadd.f32 %v6049_v28, %v5927_v30  ;;  %v13015_v40 = vpop.f32.mrb[215].mxu1  ;;  %v8520_v28 = vld [vmem:[#allocation3 + $0xa0] sm:$0xff]  ;;  %v17290_v3 = vpack.c.bf16 %v6302_v42, %v6302_v42  ;;  %v6481_v42 = vshll.u32 %v17211_v56, 16 }
 0x5b7   : > { %13150 = vmatprep.mubr.msk.bf16.mxu0 %vm14167_vm2, %v19261_v31  ;;  %v17278_v44 = vpack.c.bf16 %v8520_v28, %v8519_v57  ;;  %v11217_v30 = vld [vmem:[%s19224_s3 + $0x1c] sm:$0xf]  ;;  %v6463_v40 = vshll.u32 %v17172_v0, 16  ;;  %v6474_v28 = vshll.u32 %v17200_v50, 16 }
 0x5b8   : > { %v7106_v11 = vsel %vm5886_vm6, %v11217_v30, 0  ;;  %v6483_v30 = vrot.slane %v6481_v42, 1  ;;  %v6509_v42 = vshll.u32 %v17280_v5, 16 }
 0x5b9   : > { %v6465_v61 = vrot.slane %v6463_v40, 1  ;;  %v6476_v57 = vrot.slane %v6474_v28, 1  ;;  %v6688_v40 = vrot.slane %v17244_v15, 1  ;;  %v6502_v28 = vshll.u32 %v17258_v7, 16 }
 0x5bb   : > { %13105 = vmatmul.mubr.msk.bf16.gmra.mrb[8].mxu1 %vm5705_vm7, %v17085_v43  ;;  %v17270_v43 = vpack.c.bf16 %v8516_v9, %v8515_v47  ;;  %v6467_v9 = vshll.u32 %v17186_v8, 16  ;;  %v6466_v36 = vor.u32 %v6465_v61, %v6461_v62  ;;  %v6684_v47 = vrot.slane %v17211_v56, 1 }
 0x5bc   : > { %13108 = vmatprep.mubr.msk.bf16.mxu1 %vm14167_vm2, %v19261_v31  ;;  %v6686_v8 = vrot.slane %v17228_v21, 1  ;;  %v6488_v62 = vshll.u32 %v17228_v21, 16 }
 0x5be   : > { %13151 = vmatmul.mubr.msk.bf16.gmra.mrb[52].mxu0 %vm5705_vm7, %v17258_v7  ;;  %v6689_v61 = vsel %vm1068_vm5, %v6686_v8, %v6688_v40 }
 0x5bf   : > { %13154 = vmatprep.mubr.msk.bf16.mxu0 %vm14167_vm2, %v19261_v31 }
 0x5c3   : > { %13109 = vmatmul.mubr.msk.bf16.gmra.mrb[12].mxu1 %vm5705_vm7, %v17093_v37  ;;  %v6679_v37 = vrot.slane %v17172_v0, 1  ;;  %v6469_v0 = vrot.slane %v6467_v9, 1 }
 0x5c4   : > { %13112 = vmatprep.mubr.msk.bf16.mxu1 %vm14167_vm2, %v19261_v31 }
 0x5c5   : > { %v6470_v17 = vsel %vm731_vm3, %v6466_v36, %v6469_v0  ;;  %v6473_v22 = vor.u32 %v6471_v39, %v6469_v0  ;;  %v6690_v36 = vrot.slane %v17258_v7, 1  ;;  %v6495_v0 = vshll.u32 %v17244_v15, 16 }
 0x5c6   : > { %13155 = vmatmul.mubr.msk.bf16.gmra.mrb[56].mxu0 %vm5705_vm7, %v17280_v5 }
 0x5c7   : > { %13158 = vmatprep.mubr.msk.bf16.mxu0 %vm14167_vm2, %v19261_v31  ;;  %v6477_v19 = vsel %vm731_vm3, %v6473_v22, %v6476_v57  ;;  %v6504_v22 = vrot.slane %v6502_v28, 1 }
 0x5cb   : > { %13113 = vmatmul.mubr.msk.bf16.gmra.mrb[16].mxu1 %vm5705_vm7, %v17145_v32  ;;  %v6681_v32 = vsel %vm1068_vm5, %v6679_v37, %v6680_v63  ;;  %v6687_v37 = vsel %vm1068_vm5, %v6684_v47, %v6686_v8  ;;  %v6694_v8 = vrot.slane %v17290_v3, 1 }
 0x5cc   : > { %13116 = vmatprep.mubr.msk.bf16.mxu1 %vm14167_vm2, %v19261_v31 }
 0x5ce   : > { %13159 = vmatmul.mubr.msk.bf16.gmra.mrb[60].mxu0 %vm5705_vm7, %v17290_v3 }
 0x5cf   : > { %13202 = vmatprep.mubr.msk.bf16.mxu0 %vm14167_vm2, %v19261_v31 }
 0x5d3   : > { %13117 = vmatmul.mubr.msk.bf16.gmra.mrb[20].mxu1 %vm5705_vm7, %v17154_v12  ;;  %v6682_v12 = vrot.slane %v17200_v50, 1 }
 0x5d4   : > { %13120 = vmatprep.mubr.msk.bf16.mxu1 %vm14167_vm2, %v19261_v31 }
 0x5d5   : > { %v6683_v52 = vsel %vm1068_vm5, %v6680_v63, %v6682_v12  ;;  %v6685_v34 = vsel %vm1068_vm5, %v6682_v12, %v6684_v47  ;;  %v6478_v63 = vshrl.u32 %v17200_v50, 16  ;;  %v6485_v50 = vshrl.u32 %v17211_v56, 16 }
 0x5d6   : > { %13203 = vmatmul.mubr.msk.bf16.vlgmr.msra.gmra.mrb[64].mxu0 %vm5705_vm7, %v6681_v32  ;;  %v6490_v12 = vrot.slane %v6488_v62, 1  ;;  %v6492_v56 = vshrl.u32 %v17228_v21, 16  ;;  %v6692_v47 = vrot.slane %v17280_v5, 1  ;;  %v6499_v21 = vshrl.u32 %v17244_v15, 16 }
 0x5d7   : > { %13206 = vmatprep.mubr.msk.bf16.mxu0 %vm14167_vm2, %v19261_v31  ;;  %13277 = vmatpush3.bf16.msra.mxu0 %v7106_v11  ;;  %v6480_v32 = vor.u32 %v6478_v63, %v6476_v57  ;;  %v6487_v9 = vor.u32 %v6485_v50, %v6483_v30  ;;  %v6842_v63 = vld [vmem:[#allocation3 + $0x14] sm:$0xff] }
 0x5d8   : > { %13352 = vmatprep.subr.bf16.mxu0 %v19261_v31  ;;  %v6695_v15 = vsel %vm1068_vm5, %v6692_v47, %v6694_v8 }
 0x5d9   : > { %v6484_v11 = vsel %vm731_vm3, %v6480_v32, %v6483_v30  ;;  %v6506_v32 = vshrl.u32 %v17258_v7, 16  ;;  %v6513_v7 = vshrl.u32 %v17280_v5, 16  ;;  %v11237_v5 = vld [vmem:[%s19224_s3 + $0x24] sm:$0xf] }
 0x5db   : > { %13121 = vmatmul.mubr.msk.bf16.gmra.mrb[24].mxu1 %vm5705_vm7, %v6139_v46  ;;  %v6897_v46 = vsel %vm5886_vm6, %v11207_v29, 0  ;;  %v6691_v29 = vsel %vm1068_vm5, %v6688_v40, %v6690_v36  ;;  %v6511_v40 = vrot.slane %v6509_v42, 1  ;;  %v6508_v62 = vor.u32 %v6506_v32, %v6504_v22  ;;  %v11227_v42 = vld [vmem:[%s19224_s3 + $0x20] sm:$0xf] }
 0x5dc   : > { %13164 = vmatprep.mubr.msk.bf16.mxu1 %vm14167_vm2, %v19261_v31 }
 0x5de   : > { %13207 = vmatmul.mubr.msk.bf16.gmra.mrb[68].mxu0 %vm5705_vm7, %v6683_v52  ;;  %v6491_v52 = vsel %vm731_vm3, %v6487_v9, %v6490_v12  ;;  %v6516_v9 = vshll.u32 %v17290_v3, 16 }
 0x5df   : > { %13210 = vmatprep.mubr.msk.bf16.mxu0 %vm14167_vm2, %v19261_v31 }
 0x5e3   : > { %13165 = vmatmul.mubr.msk.bf16.vlgmr.msra.gmra.mrb[28].mxu1 %vm5705_vm7, %v6470_v17  ;;  %v6497_v17 = vrot.slane %v6495_v0, 1 }
 0x5e4   : > { %13239 = vmatpush3.bf16.msra.mxu1 %v6897_v46  ;;  %13168 = vmatprep.mubr.msk.bf16.mxu1 %vm14167_vm2, %v19261_v31  ;;  %v6494_v46 = vor.u32 %v6492_v56, %v6490_v12  ;;  %v6512_v12 = vsel %vm731_vm3, %v6508_v62, %v6511_v40 }
 0x5e5   : > { %13314 = vmatprep.subr.bf16.mxu1 %v19261_v31  ;;  %v6501_v57 = vor.u32 %v6499_v21, %v6497_v17 }
 0x5e6   : > { %13211 = vmatmul.mubr.msk.bf16.gmra.mrb[72].mxu0 %vm5705_vm7, %v6685_v34  ;;  %v6498_v39 = vsel %vm731_vm3, %v6494_v46, %v6497_v17  ;;  %v6693_v34 = vsel %vm1068_vm5, %v6690_v36, %v6692_v47  ;;  %v17416_v46 = vpack.c.bf16 %v17032_v51, %v16980_v55  ;;  %v6520_v55 = vshrl.u32 %v17290_v3, 16 }
 0x5e7   : > { %13214 = vmatprep.mubr.msk.bf16.mxu0 %vm14167_vm2, %v19261_v31 }
 0x5eb   : > { %13169 = vmatmul.mubr.msk.bf16.gmra.mrb[32].mxu1 %vm5705_vm7, %v6477_v19  ;;  %v6505_v19 = vsel %vm731_vm3, %v6501_v57, %v6504_v22 }
 0x5ec   : > { %13172 = vmatprep.mubr.msk.bf16.mxu1 %vm14167_vm2, %v19261_v31 }
 0x5ee   : > { %13215 = vmatmul.mubr.msk.bf16.gmra.mrb[76].mxu0 %vm5705_vm7, %v6687_v37  ;;  %v6841_v37 = vld [vmem:[#allocation3 + $0xc] sm:$0xff] }
 0x5ef   : > { %13218 = vmatprep.mubr.msk.bf16.mxu0 %vm14167_vm2, %v19261_v31  ;;  %v17393_v30 = vpack.c.bf16 %v6842_v63, %v6841_v37  ;;  %v7033_v37 = vshrl.u32 %v17416_v46, 16 }
 0x5f1   : > { %v7018_v50 = vshll.u32 %v17393_v30, 16  ;;  %v7016_v36 = vshrl.u32 %v17393_v30, 16 }
 0x5f3   : > { %13173 = vmatmul.mubr.msk.bf16.gmra.mrb[36].mxu1 %vm5705_vm7, %v6484_v11  ;;  %v6843_v11 = vld [vmem:[#allocation3 + $0x1c] sm:$0xff] }
 0x5f4   : > { %13176 = vmatprep.mubr.msk.bf16.mxu1 %vm14167_vm2, %v19261_v31 }
 0x5f6   : > { %13219 = vmatmul.mubr.msk.bf16.gmra.mrb[80].mxu0 %vm5705_vm7, %v6689_v61  ;;  %v17400_v61 = vpack.c.bf16 %v16978_v24, %v6843_v11  ;;  %v6515_v24 = vor.u32 %v6513_v7, %v6511_v40 }
 0x5f7   : > { %13222 = vmatprep.mubr.msk.bf16.mxu0 %vm14167_vm2, %v19261_v31 }
 0x5f8   : > { %v7022_v0 = vshll.u32 %v17400_v61, 16  ;;  %v7026_v51 = vshrl.u32 %v17400_v61, 16 }
 0x5fa   : > { %v7024_v17 = vrot.slane %v7022_v0, 1 }
 0x5fb   : > { %13177 = vmatmul.mubr.msk.bf16.gmra.mrb[40].mxu1 %vm5705_vm7, %v6491_v52  ;;  %v7020_v52 = vrot.slane %v7018_v50, 1 }
 0x5fc   : > { %13180 = vmatprep.mubr.msk.bf16.mxu1 %vm14167_vm2, %v19261_v31  ;;  %v7028_v22 = vor.u32 %v7026_v51, %v7024_v17 }
 0x5fd   : > { %v7021_v56 = vor.u32 %v7020_v52, %v7016_v36 }
 0x5fe   : > { %13223 = vmatmul.mubr.msk.bf16.gmra.mrb[84].mxu0 %vm5705_vm7, %v6691_v29  ;;  %v6518_v29 = vrot.slane %v6516_v9, 1 }
 0x5ff   : > { %13226 = vmatprep.mubr.msk.bf16.mxu0 %vm14167_vm2, %v19261_v31  ;;  %v7025_v28 = vsel %vm731_vm3, %v7021_v56, %v7024_v17 }
 0x600   : > { %v6519_v47 = vsel %vm731_vm3, %v6515_v24, %v6518_v29  ;;  %v6522_v21 = vor.u32 %v6520_v55, %v6518_v29  ;;  %v17471_v29 = vpack.c.bf16 %v17111_v2, %v17102_v59 }
 0x603   : > { %13181 = vmatmul.mubr.msk.bf16.gmra.mrb[44].mxu1 %vm5705_vm7, %v6498_v39  ;;  %v7452_v39 = vsel %vm5886_vm6, %v11237_v5, 0 }
 0x604   : > { %13184 = vmatprep.mubr.msk.bf16.mxu1 %vm14167_vm2, %v19261_v31 }
 0x606   : > { %13227 = vmatmul.mubr.msk.bf16.gmra.mrb[88].mxu0 %vm5705_vm7, %v6693_v34  ;;  %v7029_v34 = vshll.u32 %v17416_v46, 16 }
 0x607   : > { %13230 = vmatprep.mubr.msk.bf16.mxu0 %vm14167_vm2, %v19261_v31 }
 0x608   : > { %v7031_v57 = vrot.slane %v7029_v34, 1 }
 0x60a   : > { %v7032_v3 = vsel %vm731_vm3, %v7028_v22, %v7031_v57  ;;  %v7035_v11 = vor.u32 %v7033_v37, %v7031_v57 }
 0x60b   : > { %13185 = vmatmul.mubr.msk.bf16.gmra.mrb[48].mxu1 %vm5705_vm7, %v6505_v19 }
 0x60c   : > { %13188 = vmatprep.mubr.msk.bf16.mxu1 %vm14167_vm2, %v19261_v31 }
 0x60e   : > { %13231 = vmatmul.mubr.msk.bf16.gmra.mrb[92].mxu0 %vm5705_vm7, %v6695_v15  ;;  %v17453_v15 = vpack.c.bf16 %v17109_v16, %v17048_v35 }
 0x60f   : > { %13234 = vmatprep.mubr.msk.bf16.mxu0 %vm14167_vm2, %v19261_v31 }
 0x610   : > { %v7047_v2 = vshrl.u32 %v17453_v15, 16 }
 0x613   : > { %13189 = vmatmul.mubr.msk.bf16.gmra.mrb[52].mxu1 %vm5705_vm7, %v6512_v12  ;;  %v7043_v12 = vshll.u32 %v17453_v15, 16 }
 0x614   : > { %13192 = vmatprep.mubr.msk.bf16.mxu1 %vm14167_vm2, %v19261_v31 }
 0x615   : > { %v7045_v24 = vrot.slane %v7043_v12, 1 }
 0x616   : > { %13235 = vmatmul.mubr.msk.bf16.gmra.mrb[96].mxu0 %vm5705_vm7, %v6694_v8  ;;  %v17436_v8 = vpack.c.bf16 %v17055_v48, %v17023_v38  ;;  %v7279_v48 = vsel %vm5886_vm6, %v11227_v42, 0 }
 0x617   : > { %13278 = vmatprep.mubr.msk.bf16.mxu0 %vm14167_vm2, %v19261_v31  ;;  %v7049_v57 = vor.u32 %v7047_v2, %v7045_v24 }
 0x618   : > { %v7036_v19 = vshll.u32 %v17436_v8, 16  ;;  %v7040_v0 = vshrl.u32 %v17436_v8, 16 }
 0x61a   : > { %v7038_v63 = vrot.slane %v7036_v19, 1  ;;  %v17489_v19 = vpack.c.bf16 %v17126_v41, %v17106_v6 }
 0x61b   : > { %13193 = vmatmul.mubr.msk.bf16.gmra.mrb[56].mxu1 %vm5705_vm7, %v6519_v47 }
 0x61c   : > { %13196 = vmatprep.mubr.msk.bf16.mxu1 %vm14167_vm2, %v19261_v31  ;;  %v7039_v50 = vsel %vm731_vm3, %v7035_v11, %v7038_v63 }
 0x61e   : > { %13279 = vmatmul.mubr.msk.bf16.vlgmr.msra.gmra.mrb[100].mxu0 %vm5705_vm7, %v7025_v28 }
 0x61f   : > { %13282 = vmatprep.mubr.msk.bf16.mxu0 %vm14167_vm2, %v19261_v31  ;;  %13353 = vmatpush3.bf16.msra.mxu0 %v7452_v39  ;;  %v7050_v39 = vshll.u32 %v17471_v29, 16 }
 0x620   : > { %13428 = vmatprep.subr.bf16.mxu0 %v19261_v31 }
 0x623   : > { %13197 = vmatmul.mubr.msk.bf16.gmra.mrb[60].mxu1 %vm5705_vm7, %v6522_v21 }
 0x624   : > { %13240 = vmatprep.mubr.msk.bf16.mxu1 %vm14167_vm2, %v19261_v31 }
 0x626   : > { %13283 = vmatmul.mubr.msk.bf16.gmra.mrb[104].mxu0 %vm5705_vm7, %v7032_v3  ;;  %v7052_v3 = vrot.slane %v7050_v39, 1  ;;  %v6857_v39 = vld [vmem:[#allocation3 + $0x8c] sm:$0xf] }
 0x627   : > { %13286 = vmatprep.mubr.msk.bf16.mxu0 %vm14167_vm2, %v19261_v31 }
 0x628   : > { %v6061_v38 = vpop.f32.mrb[0].mxu0  ;;  %v7053_v37 = vsel %vm731_vm3, %v7049_v57, %v7052_v3 }
 0x629   : > { %v13060_v32 = vpop.f32.mrb[1].mxu0 }
 0x62a   : > { %v6064_v40 = vpop.f32.mrb[2].mxu0 }
 0x62b   : > { %13241 = vmatmul.mubr.msk.bf16.vlgmr.msra.gmra.mrb[64].mxu1 %vm5705_vm7, %v17393_v30  ;;  %v13061_v62 = vpop.f32.mrb[3].mxu0 }
 0x62c   : > { %13315 = vmatpush3.bf16.msra.mxu1 %v7279_v48  ;;  %13244 = vmatprep.mubr.msk.bf16.mxu1 %vm14167_vm2, %v19261_v31 }
 0x62d   : > { %13390 = vmatprep.subr.bf16.mxu1 %v19261_v31  ;;  %v5932_v7 = vpop.f32.mrb[216].mxu1 }
 0x62e   : > { %13287 = vmatmul.mubr.msk.bf16.gmra.mrb[108].mxu0 %vm5705_vm7, %v7039_v50  ;;  %v17464_v35 = vadd.f32 %v17240_v54, %v5932_v7  ;;  %v13018_v16 = vpop.f32.mrb[217].mxu1  ;;  %v7042_v54 = vor.u32 %v7040_v0, %v7038_v63  ;;  %v7057_v63 = vshll.u32 %v17489_v19, 16  ;;  %v7054_v7 = vshrl.u32 %v17471_v29, 16 }
 0x62f   : > { %13290 = vmatprep.mubr.msk.bf16.mxu0 %vm14167_vm2, %v19261_v31  ;;  %v5935_v9 = vpop.f32.mrb[218].mxu1 }
 0x630   : > { %v13019_v36 = vpop.f32.mrb[219].mxu1  ;;  %v6069_v52 = vpop.f32.mrb[4].mxu0  ;;  %v7046_v47 = vsel %vm731_vm3, %v7042_v54, %v7045_v24  ;;  %v7059_v16 = vrot.slane %v7057_v63, 1 }
 0x631   : > { %v13064_v56 = vpop.f32.mrb[5].mxu0 }
 0x632   : > { %v6072_v17 = vpop.f32.mrb[6].mxu0 }
 0x633   : > { %13245 = vmatmul.mubr.msk.bf16.gmra.mrb[68].mxu1 %vm5705_vm7, %v17400_v61  ;;  %v13065_v5 = vpop.f32.mrb[7].mxu0 }
 0x634   : > { %13248 = vmatprep.mubr.msk.bf16.mxu1 %vm14167_vm2, %v19261_v31 }
 0x635   : > { %v5939_v28 = vpop.f32.mrb[220].mxu1 }
 0x636   : > { %13291 = vmatmul.mubr.msk.bf16.gmra.mrb[112].mxu0 %vm5705_vm7, %v7046_v47  ;;  %v17480_v34 = vadd.f32 %v6061_v38, %v5939_v28  ;;  %v13022_v59 = vpop.f32.mrb[221].mxu1 }
 0x637   : > { %13294 = vmatprep.mubr.msk.bf16.mxu0 %vm14167_vm2, %v19261_v31  ;;  %v5942_v55 = vpop.f32.mrb[222].mxu1 }
 0x638   : > { %v17485_v51 = vadd.f32 %v6064_v40, %v5942_v55  ;;  %v13023_v21 = vpop.f32.mrb[223].mxu1  ;;  %v6077_v22 = vpop.f32.mrb[8].mxu0  ;;  %v17498_v40 = vld [vmem:[#allocation3 + $0x84] sm:$0xff] }
 0x639   : > { %v13068_v42 = vpop.f32.mrb[9].mxu0  ;;  %v17509_v9 = vpack.c.bf16 %v17498_v40, %v17128_v18  ;;  %v7061_v18 = vshrl.u32 %v17489_v19, 16 }
 0x63a   : > { %v6079_v38 = vpop.f32.mrb[10].mxu0 }
 0x63b   : > { %13249 = vmatmul.mubr.msk.bf16.gmra.mrb[72].mxu1 %vm5705_vm7, %v17416_v46  ;;  %v13069_v48 = vpop.f32.mrb[11].mxu0  ;;  %v7063_v55 = vor.u32 %v7061_v18, %v7059_v16 }
 0x63c   : > { %13252 = vmatprep.mubr.msk.bf16.mxu1 %vm14167_vm2, %v19261_v31 }
 0x63d   : > { %v5947_v32 = vpop.f32.mrb[224].mxu1 }
 0x63e   : > { %13295 = vmatmul.mubr.msk.bf16.gmra.mrb[116].mxu0 %vm5705_vm7, %v7053_v37  ;;  %v17500_v6 = vadd.f32 %v6069_v52, %v5947_v32  ;;  %v13026_v41 = vpop.f32.mrb[225].mxu1  ;;  %v7056_v52 = vor.u32 %v7054_v7, %v7052_v3  ;;  %v17525_v3 = vpack.c.bf16 %v6857_v39, %v6857_v39 }
 0x63f   : > { %13298 = vmatprep.mubr.msk.bf16.mxu0 %vm14167_vm2, %v19261_v31  ;;  %v5950_v11 = vpop.f32.mrb[226].mxu1  ;;  %v7068_v41 = vshrl.u32 %v17509_v9, 16 }
 0x640   : > { %v17504_v62 = vadd.f32 %v6072_v17, %v5950_v11  ;;  %v13027_v50 = vpop.f32.mrb[227].mxu1  ;;  %v7060_v56 = vsel %vm731_vm3, %v7056_v52, %v7059_v16  ;;  %v7064_v17 = vshll.u32 %v17509_v9, 16 }
 0x641   : > { %v6084_v12 = vpop.f32.mrb[12].mxu0 }
 0x642   : > { %v13072_v36 = vpop.f32.mrb[13].mxu0  ;;  %v7066_v21 = vrot.slane %v7064_v17, 1 }
 0x643   : > { %v6087_v0 = vpop.f32.mrb[14].mxu0  ;;  %13253 = vmatmul.mubr.msk.bf16.gmra.mrb[76].mxu1 %vm5705_vm7, %v17436_v8 }
 0x644   : > { %v13073_v24 = vpop.f32.mrb[15].mxu0  ;;  %13256 = vmatprep.mubr.msk.bf16.mxu1 %vm14167_vm2, %v19261_v31  ;;  %v7067_v48 = vsel %vm731_vm3, %v7063_v55, %v7066_v21  ;;  %v7070_v36 = vor.u32 %v7068_v41, %v7066_v21 }
 0x646   : > { %v5955_v54 = vpop.f32.mrb[228].mxu1  ;;  %13299 = vmatmul.mubr.msk.bf16.gmra.mrb[120].mxu0 %vm5705_vm7, %v7060_v56 }
 0x647   : > { %v13030_v5 = vpop.f32.mrb[229].mxu1  ;;  %13302 = vmatprep.mubr.msk.bf16.mxu0 %vm14167_vm2, %v19261_v31 }
 0x648   : > { %v5957_v47 = vpop.f32.mrb[230].mxu1  ;;  %v7075_v5 = vshrl.u32 %v17525_v3, 16 }
 0x649   : > { %v17521_v28 = vadd.f32 %v6079_v38, %v5957_v47  ;;  %v13031_v59 = vpop.f32.mrb[231].mxu1  ;;  %v6092_v2 = vpop.f32.mrb[16].mxu0  ;;  %v7071_v38 = vshll.u32 %v17525_v3, 16 }
 0x64a   : > { %v13076_v22 = vpop.f32.mrb[17].mxu0 }
 0x64b   : > { %v6094_v57 = vpop.f32.mrb[18].mxu0  ;;  %13257 = vmatmul.mubr.msk.bf16.gmra.mrb[80].mxu1 %vm5705_vm7, %v17453_v15  ;;  %v7073_v52 = vrot.slane %v7071_v38, 1 }
 0x64c   : > { %v13077_v42 = vpop.f32.mrb[19].mxu0  ;;  %13260 = vmatprep.mubr.msk.bf16.mxu1 %vm14167_vm2, %v19261_v31 }
 0x64d   : > { %v7074_v17 = vsel %vm731_vm3, %v7070_v36, %v7073_v52  ;;  %v7077_v2 = vor.u32 %v7075_v5, %v7073_v52 }
 0x64e   : > { %v5962_v37 = vpop.f32.mrb[232].mxu1  ;;  %13303 = vmatmul.mubr.msk.bf16.gmra.mrb[124].mxu0 %vm5705_vm7, %v7067_v48 }
 0x64f   : > { %v17532_v63 = vadd.f32 %v6084_v12, %v5962_v37  ;;  %v13034_v32 = vpop.f32.mrb[233].mxu1  ;;  %13306 = vmatprep.mubr.msk.bf16.mxu0 %vm14167_vm2, %v19261_v31 }
 0x650   : > { %v5965_v11 = vpop.f32.mrb[234].mxu1 }
 0x651   : > { %v17537_v50 = vadd.f32 %v6087_v0, %v5965_v11  ;;  %v13035_v7 = vpop.f32.mrb[235].mxu1  ;;  %v6099_v16 = vpop.f32.mrb[20].mxu0  ;;  %v11257_v11 = vld [vmem:[%s19224_s3 + $0x2c] sm:$0xf] }
 0x652   : > { %v13080_v24 = vpop.f32.mrb[21].mxu0  ;;  %v7834_v52 = vsel %vm5886_vm6, %v11257_v11, 0 }
 0x653   : > { %v6102_v56 = vpop.f32.mrb[22].mxu0  ;;  %13261 = vmatmul.mubr.msk.bf16.gmra.mrb[84].mxu1 %vm5705_vm7, %v17471_v29 }
 0x654   : > { %v13081_v12 = vpop.f32.mrb[23].mxu0  ;;  %13264 = vmatprep.mubr.msk.bf16.mxu1 %vm14167_vm2, %v19261_v31 }
 0x656   : > { %v5970_v54 = vpop.f32.mrb[236].mxu1  ;;  %13307 = vmatmul.mubr.msk.bf16.gmra.mrb[128].mxu0 %vm5705_vm7, %v7074_v17 }
 0x657   : > { %v13038_v0 = vpop.f32.mrb[237].mxu1  ;;  %13310 = vmatprep.mubr.msk.bf16.mxu0 %vm14167_vm2, %v19261_v31 }
 0x658   : > { %v5972_v18 = vpop.f32.mrb[238].mxu1 }
 0x659   : > { %v17548_v47 = vadd.f32 %v6094_v57, %v5972_v18  ;;  %v13039_v39 = vpop.f32.mrb[239].mxu1  ;;  %v6107_v59 = vpop.f32.mrb[24].mxu0 }
 0x65a   : > { %v13084_v55 = vpop.f32.mrb[25].mxu0 }
 0x65b   : > { %v6110_v21 = vpop.f32.mrb[26].mxu0  ;;  %13265 = vmatmul.mubr.msk.bf16.gmra.mrb[88].mxu1 %vm5705_vm7, %v17489_v19  ;;  %v7235_v55 = vrot.slane %v17400_v61, 1 }
 0x65c   : > { %v13085_v22 = vpop.f32.mrb[27].mxu0  ;;  %13268 = vmatprep.mubr.msk.bf16.mxu1 %vm14167_vm2, %v19261_v31  ;;  %v11247_v21 = vld [vmem:[%s19224_s3 + $0x28] sm:$0xf] }
 0x65e   : > { %v5977_v42 = vpop.f32.mrb[240].mxu1  ;;  %13311 = vmatmul.mubr.msk.bf16.gmra.mrb[132].mxu0 %vm5705_vm7, %v7077_v2  ;;  %v7234_v2 = vrot.slane %v17393_v30, 1 }
 0x65f   : > { %v17555_v48 = vadd.f32 %v6099_v16, %v5977_v42  ;;  %v13042_v38 = vpop.f32.mrb[241].mxu1  ;;  %13354 = vmatprep.mubr.msk.bf16.mxu0 %vm14167_vm2, %v19261_v31 }
 0x660   : > { %v5980_v57 = vpop.f32.mrb[242].mxu1 }
 0x661   : > { %v17559_v37 = vadd.f32 %v6102_v56, %v5980_v57  ;;  %v13043_v32 = vpop.f32.mrb[243].mxu1  ;;  %v6378_v41 = vpop.f32.mrb[28].mxu0 }
 0x662   : > { %v13128_v7 = vpop.f32.mrb[29].mxu0 }
 0x663   : > { %13269 = vmatmul.mubr.msk.bf16.gmra.mrb[92].mxu1 %vm5705_vm7, %v17509_v9  ;;  %v6381_v36 = vpop.f32.mrb[30].mxu0  ;;  %v7661_v7 = vsel %vm5886_vm6, %v11247_v21, 0 }
 0x664   : > { %13272 = vmatprep.mubr.msk.bf16.mxu1 %vm14167_vm2, %v19261_v31  ;;  %v13129_v16 = vpop.f32.mrb[31].mxu0 }
 0x665   : > { %v7236_v16 = vsel %vm1068_vm5, %v7234_v2, %v7235_v55 }
 0x666   : > { %v5985_v24 = vpop.f32.mrb[244].mxu1  ;;  %13355 = vmatmul.mubr.msk.bf16.vlgmr.msra.gmra.mrb[136].mxu0 %vm5705_vm7, %v16984_v49 }
 0x667   : > { %v17571_v56 = vadd.f32 %v6107_v59, %v5985_v24  ;;  %v13046_v12 = vpop.f32.mrb[245].mxu1  ;;  %13358 = vmatprep.mubr.msk.bf16.mxu0 %vm14167_vm2, %v19261_v31  ;;  %13429 = vmatpush3.bf16.msra.mxu0 %v7834_v52 }
 0x668   : > { %v5988_v17 = vpop.f32.mrb[246].mxu1  ;;  %13504 = vmatprep.subr.bf16.mxu0 %v19261_v31 }
 0x669   : > { %v13047_v54 = vpop.f32.mrb[247].mxu1  ;;  %v6386_v5 = vpop.f32.mrb[32].mxu0 }
 0x66a   : > { %v13132_v0 = vpop.f32.mrb[33].mxu0 }
 0x66b   : > { %13273 = vmatmul.mubr.msk.bf16.gmra.mrb[96].mxu1 %vm5705_vm7, %v17525_v3  ;;  %v6389_v18 = vpop.f32.mrb[34].mxu0 }
 0x66c   : > { %v13133_v39 = vpop.f32.mrb[35].mxu0  ;;  %13316 = vmatprep.mubr.msk.bf16.mxu1 %vm14167_vm2, %v19261_v31 }
 0x66e   : > { %v6205_v59 = vpop.f32.mrb[248].mxu1  ;;  %13359 = vmatmul.mubr.msk.bf16.gmra.mrb[140].mxu0 %vm5705_vm7, %v17036_v53 }
 0x66f   : > { %v6272_v22 = vadd.f32 %v6205_v59, %v17252_v25  ;;  %v13090_v42 = vpop.f32.mrb[249].mxu1  ;;  %13362 = vmatprep.mubr.msk.bf16.mxu0 %vm14167_vm2, %v19261_v31 }
 0x670   : > { %v6208_v38 = vpop.f32.mrb[250].mxu1 }
 0x671   : > { %v6273_v57 = vadd.f32 %v6208_v38, %v17254_v60  ;;  %v13091_v32 = vpop.f32.mrb[251].mxu1  ;;  %v6393_v11 = vpop.f32.mrb[36].mxu0  ;;  %v17592_v30 = vadd.f32 %v6378_v41, %v6272_v22  ;;  %v7237_v41 = vrot.slane %v17416_v46, 1 }
 0x672   : > { %v13136_v61 = vpop.f32.mrb[37].mxu0 }
 0x673   : > { %v6396_v52 = vpop.f32.mrb[38].mxu0  ;;  %13317 = vmatmul.mubr.msk.bf16.vlgmr.msra.gmra.mrb[100].mxu1 %vm5705_vm7, %v7236_v16  ;;  %v17596_v25 = vadd.f32 %v6381_v36, %v6273_v57  ;;  %v7238_v59 = vsel %vm1068_vm5, %v7235_v55, %v7237_v41 }
 0x674   : > { %13391 = vmatpush3.bf16.msra.mxu1 %v7661_v7  ;;  %v13137_v24 = vpop.f32.mrb[39].mxu0  ;;  %13320 = vmatprep.mubr.msk.bf16.mxu1 %vm14167_vm2, %v19261_v31 }
 0x675   : > { %13466 = vmatprep.subr.bf16.mxu1 %v19261_v31 }
 0x676   : > { %v6213_v60 = vpop.f32.mrb[252].mxu1  ;;  %13363 = vmatmul.mubr.msk.bf16.gmra.mrb[144].mxu0 %vm5705_vm7, %v17062_v58 }
 0x677   : > { %v6274_v12 = vadd.f32 %v6213_v60, %v17464_v35  ;;  %v13094_v17 = vpop.f32.mrb[253].mxu1  ;;  %13366 = vmatprep.mubr.msk.bf16.mxu0 %vm14167_vm2, %v19261_v31  ;;  %v7239_v35 = vrot.slane %v17436_v8, 1 }
 0x678   : > { %v6216_v36 = vpop.f32.mrb[254].mxu1 }
 0x679   : > { %v13095_v54 = vpop.f32.mrb[255].mxu1  ;;  %v6401_v0 = vpop.f32.mrb[40].mxu0  ;;  %v17607_v18 = vadd.f32 %v6386_v5, %v6274_v12  ;;  %v7240_v61 = vsel %vm1068_vm5, %v7237_v41, %v7239_v35 }
 0x67a   : > { %v13140_v39 = vpop.f32.mrb[41].mxu0 }
 0x67b   : > { %v6404_v2 = vpop.f32.mrb[42].mxu0  ;;  %13321 = vmatmul.mubr.msk.bf16.gmra.mrb[104].mxu1 %vm5705_vm7, %v7238_v59 }
 0x67c   : > { %v13141_v21 = vpop.f32.mrb[43].mxu0  ;;  %13324 = vmatprep.mubr.msk.bf16.mxu1 %vm14167_vm2, %v19261_v31 }
 0x67e   : > { %v6220_v46 = vpop.f32.mrb[0].mxu1  ;;  %13367 = vmatmul.mubr.msk.bf16.gmra.mrb[148].mxu0 %vm5705_vm7, %v17115_v4 }
 0x67f   : > { %v6275_v22 = vadd.f32 %v6220_v46, %v17480_v34  ;;  %v13098_v5 = vpop.f32.mrb[1].mxu1  ;;  %13370 = vmatprep.mubr.msk.bf16.mxu0 %vm14167_vm2, %v19261_v31 }
 0x680   : > { %v6223_v55 = vpop.f32.mrb[2].mxu1  ;;  %v7409_v5 = vld [vmem:[#allocation3 + $0x8c] sm:$0xff] }
 0x681   : > { %v6276_v42 = vadd.f32 %v6223_v55, %v17485_v51  ;;  %v13099_v38 = vpop.f32.mrb[3].mxu1  ;;  %v6409_v57 = vpop.f32.mrb[44].mxu0  ;;  %v17620_v32 = vadd.f32 %v6393_v11, %v6275_v22  ;;  %v7241_v51 = vrot.slane %v17453_v15, 1 }
 0x682   : > { %v13144_v7 = vpop.f32.mrb[45].mxu0 }
 0x683   : > { %v6411_v16 = vpop.f32.mrb[46].mxu0  ;;  %13325 = vmatmul.mubr.msk.bf16.gmra.mrb[108].mxu1 %vm5705_vm7, %v7240_v61  ;;  %v17624_v8 = vadd.f32 %v6396_v52, %v6276_v42  ;;  %v7242_v39 = vsel %vm1068_vm5, %v7239_v35, %v7241_v51 }
 0x684   : > { %v13145_v34 = vpop.f32.mrb[47].mxu0  ;;  %13328 = vmatprep.mubr.msk.bf16.mxu1 %vm14167_vm2, %v19261_v31 }
 0x686   : > { %v6228_v24 = vpop.f32.mrb[4].mxu1  ;;  %13371 = vmatmul.mubr.msk.bf16.gmra.mrb[152].mxu0 %vm5705_vm7, %v17121_v20 }
 0x687   : > { %v6277_v11 = vadd.f32 %v6228_v24, %v17500_v6  ;;  %v13102_v60 = vpop.f32.mrb[5].mxu1  ;;  %13374 = vmatprep.mubr.msk.bf16.mxu0 %vm14167_vm2, %v19261_v31 }
 0x688   : > { %v6231_v41 = vpop.f32.mrb[6].mxu1  ;;  %v7411_v60 = vld [vmem:[#allocation3 + $0x9c] sm:$0xff] }
 0x689   : > { %v6278_v52 = vadd.f32 %v6231_v41, %v17504_v62  ;;  %v13103_v12 = vpop.f32.mrb[7].mxu1  ;;  %v6416_v17 = vpop.f32.mrb[48].mxu0  ;;  %v17635_v36 = vadd.f32 %v6401_v0, %v6277_v11  ;;  %v7243_v62 = vrot.slane %v17471_v29, 1  ;;  %v17654_v29 = vpack.c.bf16 %v7409_v5, %v17498_v40 }
 0x68a   : > { %v13148_v54 = vpop.f32.mrb[49].mxu0 }
 0x68b   : > { %v6419_v59 = vpop.f32.mrb[50].mxu0  ;;  %13329 = vmatmul.mubr.msk.bf16.gmra.mrb[112].mxu1 %vm5705_vm7, %v7242_v39  ;;  %v17639_v15 = vadd.f32 %v6404_v2, %v6278_v52  ;;  %v7244_v42 = vsel %vm1068_vm5, %v7241_v51, %v7243_v62 }
 0x68c   : > { %v13149_v6 = vpop.f32.mrb[51].mxu0  ;;  %13332 = vmatprep.mubr.msk.bf16.mxu1 %vm14167_vm2, %v19261_v31 }
 0x68e   : > { %v6236_v21 = vpop.f32.mrb[8].mxu1  ;;  %13375 = vmatmul.mubr.msk.bf16.gmra.mrb[156].mxu0 %vm5705_vm7, %v17134_v33 }
 0x68f   : > { %v13106_v0 = vpop.f32.mrb[9].mxu1  ;;  %13378 = vmatprep.mubr.msk.bf16.mxu0 %vm14167_vm2, %v19261_v31 }
 0x690   : > { %v6238_v46 = vpop.f32.mrb[10].mxu1 }
 0x691   : > { %v6279_v35 = vadd.f32 %v6238_v46, %v17521_v28  ;;  %v13107_v22 = vpop.f32.mrb[11].mxu1  ;;  %v6424_v2 = vpop.f32.mrb[52].mxu0  ;;  %v7245_v28 = vrot.slane %v17489_v19, 1  ;;  %v7410_v19 = vld [vmem:[#allocation3 + $0x94] sm:$0xff] }
 0x692   : > { %v13152_v55 = vpop.f32.mrb[53].mxu0  ;;  %v17671_v6 = vpack.c.bf16 %v7411_v60, %v7410_v19  ;;  %v11277_v60 = vld [vmem:[%s19224_s3 + $0x34] sm:$0xf] }
 0x693   : > { %v6426_v38 = vpop.f32.mrb[54].mxu0  ;;  %13333 = vmatmul.mubr.msk.bf16.gmra.mrb[116].mxu1 %vm5705_vm7, %v7244_v42  ;;  %v17651_v57 = vadd.f32 %v6411_v16, %v6279_v35  ;;  %v7246_v12 = vsel %vm1068_vm5, %v7243_v62, %v7245_v28  ;;  %v7412_v35 = vld [vmem:[#allocation3 + $0xa4] sm:$0xf] }
 0x694   : > { %v13153_v7 = vpop.f32.mrb[55].mxu0  ;;  %13336 = vmatprep.mubr.msk.bf16.mxu1 %vm14167_vm2, %v19261_v31 }
 0x696   : > { %v6243_v61 = vpop.f32.mrb[12].mxu1  ;;  %13379 = vmatmul.mubr.msk.bf16.gmra.mrb[160].mxu0 %vm5705_vm7, %v17654_v29 }
 0x697   : > { %v6280_v34 = vadd.f32 %v6243_v61, %v17532_v63  ;;  %v13110_v24 = vpop.f32.mrb[13].mxu1  ;;  %13382 = vmatprep.mubr.msk.bf16.mxu0 %vm14167_vm2, %v19261_v31 }
 0x698   : > { %v6246_v16 = vpop.f32.mrb[14].mxu1 }
 0x699   : > { %v6281_v51 = vadd.f32 %v6246_v16, %v17537_v50  ;;  %v13111_v40 = vpop.f32.mrb[15].mxu1  ;;  %v6431_v11 = vpop.f32.mrb[56].mxu0  ;;  %v17665_v41 = vadd.f32 %v6416_v17, %v6280_v34  ;;  %v7247_v17 = vrot.slane %v17509_v9, 1  ;;  %v17685_v9 = vpack.c.bf16 %v7412_v35, %v7412_v35 }
 0x69a   : > { %v13156_v52 = vpop.f32.mrb[57].mxu0  ;;  %v7792_v35 = vrot.slane %v17062_v58, 1 }
 0x69b   : > { %v6434_v54 = vpop.f32.mrb[58].mxu0  ;;  %13337 = vmatmul.mubr.msk.bf16.gmra.mrb[120].mxu1 %vm5705_vm7, %v7246_v12  ;;  %v17669_v63 = vadd.f32 %v6419_v59, %v6281_v51  ;;  %v7248_v2 = vsel %vm1068_vm5, %v7245_v28, %v7247_v17  ;;  %v7790_v51 = vrot.slane %v17036_v53, 1  ;;  %v7789_v52 = vrot.slane %v16984_v49, 1 }
 0x69c   : > { %v13157_v39 = vpop.f32.mrb[59].mxu0  ;;  %13340 = vmatprep.mubr.msk.bf16.mxu1 %vm14167_vm2, %v19261_v31 }
 0x69d   : > { %v7791_v39 = vsel %vm1068_vm5, %v7789_v52, %v7790_v51 }
 0x69e   : > { %v6251_v50 = vpop.f32.mrb[16].mxu1  ;;  %13383 = vmatmul.mubr.msk.bf16.gmra.mrb[164].mxu0 %vm5705_vm7, %v17671_v6 }
 0x69f   : > { %v13114_v21 = vpop.f32.mrb[17].mxu1  ;;  %13386 = vmatprep.mubr.msk.bf16.mxu0 %vm14167_vm2, %v19261_v31 }
 0x6a0   : > { %v6253_v62 = vpop.f32.mrb[18].mxu1 }
 0x6a1   : > { %v6282_v59 = vadd.f32 %v6253_v62, %v17548_v47  ;;  %v13115_v0 = vpop.f32.mrb[19].mxu1  ;;  %v6439_v46 = vpop.f32.mrb[60].mxu0  ;;  %v7249_v47 = vrot.slane %v17525_v3, 1  ;;  %v7573_v62 = vshll.u32 %v16984_v49, 16 }
 0x6a2   : > { %v13160_v22 = vpop.f32.mrb[61].mxu0 }
 0x6a3   : > { %v6442_v5 = vpop.f32.mrb[62].mxu0  ;;  %13341 = vmatmul.mubr.msk.bf16.gmra.mrb[124].mxu1 %vm5705_vm7, %v7248_v2  ;;  %v17683_v55 = vadd.f32 %v6426_v38, %v6282_v59  ;;  %v7250_v3 = vsel %vm1068_vm5, %v7247_v17, %v7249_v47 }
 0x6a4   : > { %v13161_v42 = vpop.f32.mrb[63].mxu0  ;;  %13344 = vmatprep.mubr.msk.bf16.mxu1 %vm14167_vm2, %v19261_v31  ;;  %v7577_v5 = vshll.u32 %v17036_v53, 16 }
 0x6a6   : > { %v6258_v7 = vpop.f32.mrb[20].mxu1  ;;  %13387 = vmatmul.mubr.msk.bf16.gmra.mrb[168].mxu0 %vm5705_vm7, %v17685_v9 }
 0x6a7   : > { %v6283_v61 = vadd.f32 %v6258_v7, %v17555_v48  ;;  %v13118_v28 = vpop.f32.mrb[21].mxu1  ;;  %13430 = vmatprep.mubr.msk.bf16.mxu0 %vm14167_vm2, %v19261_v31  ;;  %v7575_v7 = vrot.slane %v7573_v62, 1  ;;  %v7581_v62 = vshrl.u32 %v17036_v53, 16  ;;  %v7591_v53 = vshll.u32 %v17115_v4, 16 }
 0x6a8   : > { %v6261_v38 = vpop.f32.mrb[22].mxu1 }
 0x6a9   : > { %v6284_v34 = vadd.f32 %v6261_v38, %v17559_v37  ;;  %v13119_v24 = vpop.f32.mrb[23].mxu1  ;;  %v6760_v16 = vpop.f32.mrb[64].mxu0  ;;  %v17697_v40 = vadd.f32 %v6431_v11, %v6283_v61  ;;  %v8216_v11 = vsel %vm5886_vm6, %v11277_v60, 0  ;;  %v7793_v61 = vsel %vm1068_vm5, %v7790_v51, %v7792_v35 }
 0x6aa   : > { %v13204_v48 = vpop.f32.mrb[65].mxu0  ;;  %v7571_v38 = vshrl.u32 %v16984_v49, 16  ;;  %v7794_v49 = vrot.slane %v17115_v4, 1 }
 0x6ab   : > { %13345 = vmatmul.mubr.msk.bf16.gmra.mrb[128].mxu1 %vm5705_vm7, %v7250_v3  ;;  %v6763_v12 = vpop.f32.mrb[66].mxu0  ;;  %v17705_v19 = vadd.f32 %v6434_v54, %v6284_v34  ;;  %v11267_v34 = vld [vmem:[%s19224_s3 + $0x30] sm:$0xf] }
 0x6ac   : > { %v13205_v37 = vpop.f32.mrb[67].mxu0  ;;  %13348 = vmatprep.mubr.msk.bf16.mxu1 %vm14167_vm2, %v19261_v31  ;;  %v7576_v3 = vor.u32 %v7575_v7, %v7571_v38 }
 0x6ad   : > { %v8007_v37 = vsel %vm5886_vm6, %v11267_v34, 0 }
 0x6ae   : > { %v6266_v50 = vpop.f32.mrb[24].mxu1  ;;  %13431 = vmatmul.mubr.msk.bf16.vlgmr.msra.gmra.mrb[172].mxu0 %vm5705_vm7, %v7791_v39 }
 0x6af   : > { %v6285_v17 = vadd.f32 %v6266_v50, %v17571_v56  ;;  %v13122_v21 = vpop.f32.mrb[25].mxu1  ;;  %13434 = vmatprep.mubr.msk.bf16.mxu0 %vm14167_vm2, %v19261_v31  ;;  %13505 = vmatpush3.bf16.msra.mxu0 %v8216_v11 }
 0x6b0   : > { %v6269_v54 = vpop.f32.mrb[26].mxu1  ;;  %13580 = vmatprep.subr.bf16.mxu0 %v19261_v31 }
 0x6b1   : > { %v13123_v59 = vpop.f32.mrb[27].mxu1  ;;  %v6768_v0 = vpop.f32.mrb[68].mxu0  ;;  %v17718_v22 = vadd.f32 %v6439_v46, %v6285_v17  ;;  %v7579_v46 = vrot.slane %v7577_v5, 1  ;;  %v7795_v54 = vsel %vm1068_vm5, %v7792_v35, %v7794_v49  ;;  %v7796_v35 = vrot.slane %v17121_v20, 1 }
 0x6b2   : > { %v13208_v2 = vpop.f32.mrb[69].mxu0 }
 0x6b3   : > { %v6771_v56 = vpop.f32.mrb[70].mxu0  ;;  %13349 = vmatmul.mubr.msk.bf16.gmra.mrb[132].mxu1 %vm5705_vm7, %v7249_v47  ;;  %v7580_v50 = vsel %vm731_vm3, %v7576_v3, %v7579_v46 }
 0x6b4   : > { %v13209_v42 = vpop.f32.mrb[71].mxu0  ;;  %13392 = vmatprep.mubr.msk.bf16.mxu1 %vm14167_vm2, %v19261_v31  ;;  %v7583_v56 = vor.u32 %v7581_v62, %v7579_v46  ;;  %v7797_v46 = vsel %vm1068_vm5, %v7794_v49, %v7796_v35  ;;  %v7798_v49 = vrot.slane %v17134_v33, 1 }
 0x6b6   : > { %v6587_v28 = vpop.f32.mrb[28].mxu1  ;;  %13435 = vmatmul.mubr.msk.bf16.gmra.mrb[176].mxu0 %vm5705_vm7, %v7793_v61 }
 0x6b7   : > { %v6654_v24 = vadd.f32 %v6587_v28, %v17592_v30  ;;  %v13166_v47 = vpop.f32.mrb[29].mxu1  ;;  %13438 = vmatprep.mubr.msk.bf16.mxu0 %vm14167_vm2, %v19261_v31  ;;  %v7584_v30 = vshll.u32 %v17062_v58, 16 }
 0x6b8   : > { %v6590_v60 = vpop.f32.mrb[30].mxu1  ;;  %v7593_v47 = vrot.slane %v7591_v53, 1 }
 0x6b9   : > { %v6655_v51 = vadd.f32 %v6590_v60, %v17596_v25  ;;  %v13167_v48 = vpop.f32.mrb[31].mxu1  ;;  %v6775_v52 = vpop.f32.mrb[72].mxu0  ;;  %v17736_v11 = vadd.f32 %v6760_v16, %v6654_v24  ;;  %v7586_v59 = vrot.slane %v7584_v30, 1 }
 0x6ba   : > { %v13212_v39 = vpop.f32.mrb[73].mxu0 }
 0x6bb   : > { %v6778_v17 = vpop.f32.mrb[74].mxu0  ;;  %13393 = vmatmul.mubr.msk.bf16.vlgmr.msra.gmra.mrb[136].mxu1 %vm5705_vm7, %v7580_v50  ;;  %v17741_v21 = vadd.f32 %v6763_v12, %v6655_v51  ;;  %v7587_v38 = vsel %vm731_vm3, %v7583_v56, %v7586_v59 }
 0x6bc   : > { %13467 = vmatpush3.bf16.msra.mxu1 %v8007_v37  ;;  %v13213_v25 = vpop.f32.mrb[75].mxu0  ;;  %13396 = vmatprep.mubr.msk.bf16.mxu1 %vm14167_vm2, %v19261_v31 }
 0x6bd   : > { %13542 = vmatprep.subr.bf16.mxu1 %v19261_v31 }
 0x6be   : > { %v6595_v16 = vpop.f32.mrb[32].mxu1  ;;  %13439 = vmatmul.mubr.msk.bf16.gmra.mrb[180].mxu0 %vm5705_vm7, %v7795_v54  ;;  %v7598_v54 = vshll.u32 %v17121_v20, 16 }
 0x6bf   : > { %v6656_v2 = vadd.f32 %v6595_v16, %v17607_v18  ;;  %v13170_v5 = vpop.f32.mrb[33].mxu1  ;;  %13442 = vmatprep.mubr.msk.bf16.mxu0 %vm14167_vm2, %v19261_v31 }
 0x6c0   : > { %v6598_v12 = vpop.f32.mrb[34].mxu1 }
 0x6c1   : > { %v13171_v42 = vpop.f32.mrb[35].mxu1  ;;  %v6783_v7 = vpop.f32.mrb[76].mxu0  ;;  %v17753_v61 = vadd.f32 %v6768_v0, %v6656_v2  ;;  %v7588_v0 = vshrl.u32 %v17062_v58, 16  ;;  %v7600_v2 = vrot.slane %v7598_v54, 1 }
 0x6c2   : > { %v13216_v28 = vpop.f32.mrb[77].mxu0 }
 0x6c3   : > { %v6786_v34 = vpop.f32.mrb[78].mxu0  ;;  %13397 = vmatmul.mubr.msk.bf16.gmra.mrb[140].mxu1 %vm5705_vm7, %v7587_v38  ;;  %v7590_v48 = vor.u32 %v7588_v0, %v7586_v59 }
 0x6c4   : > { %v13217_v18 = vpop.f32.mrb[79].mxu0  ;;  %13400 = vmatprep.mubr.msk.bf16.mxu1 %vm14167_vm2, %v19261_v31 }
 0x6c5   : > { %v7594_v58 = vsel %vm731_vm3, %v7590_v48, %v7593_v47 }
 0x6c6   : > { %v6602_v24 = vpop.f32.mrb[36].mxu1  ;;  %13443 = vmatmul.mubr.msk.bf16.gmra.mrb[184].mxu0 %vm5705_vm7, %v7797_v46  ;;  %v7605_v46 = vshll.u32 %v17134_v33, 16 }
 0x6c7   : > { %v6657_v60 = vadd.f32 %v6602_v24, %v17620_v32  ;;  %v13174_v3 = vpop.f32.mrb[37].mxu1  ;;  %13446 = vmatprep.mubr.msk.bf16.mxu0 %vm14167_vm2, %v19261_v31 }
 0x6c8   : > { %v6605_v51 = vpop.f32.mrb[38].mxu1 }
 0x6c9   : > { %v6658_v37 = vadd.f32 %v6605_v51, %v17624_v8  ;;  %v13175_v39 = vpop.f32.mrb[39].mxu1  ;;  %v6791_v50 = vpop.f32.mrb[80].mxu0  ;;  %v17768_v30 = vadd.f32 %v6775_v52, %v6657_v60  ;;  %v7799_v8 = vsel %vm1068_vm5, %v7796_v35, %v7798_v49  ;;  %v7595_v52 = vshrl.u32 %v17115_v4, 16 }
 0x6ca   : > { %v13220_v25 = vpop.f32.mrb[81].mxu0  ;;  %v7800_v35 = vrot.slane %v17654_v29, 1  ;;  %v7607_v60 = vrot.slane %v7605_v46, 1  ;;  %v7802_v50 = vrot.slane %v17671_v6, 1 }
 0x6cb   : > { %v6793_v32 = vpop.f32.mrb[82].mxu0  ;;  %13401 = vmatmul.mubr.msk.bf16.gmra.mrb[144].mxu1 %vm5705_vm7, %v7594_v58  ;;  %v17773_v16 = vadd.f32 %v6778_v17, %v6658_v37  ;;  %v7597_v56 = vor.u32 %v7595_v52, %v7593_v47  ;;  %v7612_v58 = vshll.u32 %v17654_v29, 16 }
 0x6cc   : > { %v13221_v62 = vpop.f32.mrb[83].mxu0  ;;  %13404 = vmatprep.mubr.msk.bf16.mxu1 %vm14167_vm2, %v19261_v31 }
 0x6cd   : > { %v7601_v4 = vsel %vm731_vm3, %v7597_v56, %v7600_v2 }
 0x6ce   : > { %v6610_v59 = vpop.f32.mrb[40].mxu1  ;;  %13447 = vmatmul.mubr.msk.bf16.gmra.mrb[188].mxu0 %vm5705_vm7, %v7799_v8  ;;  %v7803_v8 = vsel %vm1068_vm5, %v7800_v35, %v7802_v50 }
 0x6cf   : > { %v6659_v5 = vadd.f32 %v6610_v59, %v17635_v36  ;;  %v13178_v12 = vpop.f32.mrb[41].mxu1  ;;  %13450 = vmatprep.mubr.msk.bf16.mxu0 %vm14167_vm2, %v19261_v31 }
 0x6d0   : > { %v6613_v17 = vpop.f32.mrb[42].mxu1 }
 0x6d1   : > { %v6660_v42 = vadd.f32 %v6613_v17, %v17639_v15  ;;  %v13179_v28 = vpop.f32.mrb[43].mxu1  ;;  %v6798_v38 = vpop.f32.mrb[84].mxu0  ;;  %v17785_v53 = vadd.f32 %v6783_v7, %v6659_v5  ;;  %v7801_v15 = vsel %vm1068_vm5, %v7798_v49, %v7800_v35  ;;  %v7602_v7 = vshrl.u32 %v17121_v20, 16 }
 0x6d2   : > { %v13224_v18 = vpop.f32.mrb[85].mxu0 }
 0x6d3   : > { %v6801_v36 = vpop.f32.mrb[86].mxu0  ;;  %13405 = vmatmul.mubr.msk.bf16.gmra.mrb[148].mxu1 %vm5705_vm7, %v7601_v4  ;;  %v17790_v24 = vadd.f32 %v6786_v34, %v6660_v42  ;;  %v7604_v48 = vor.u32 %v7602_v7, %v7600_v2  ;;  %v7614_v2 = vrot.slane %v7612_v58, 1  ;;  %v7619_v4 = vshll.u32 %v17671_v6, 16 }
 0x6d4   : > { %v13225_v0 = vpop.f32.mrb[87].mxu0  ;;  %13408 = vmatprep.mubr.msk.bf16.mxu1 %vm14167_vm2, %v19261_v31 }
 0x6d5   : > { %v7608_v49 = vsel %vm731_vm3, %v7604_v48, %v7607_v60  ;;  %v7621_v7 = vrot.slane %v7619_v4, 1  ;;  %v7955_v4 = vld [vmem:[#allocation3 + $0x4a] sm:$0xff] }
 0x6d6   : > { %v6618_v47 = vpop.f32.mrb[44].mxu1  ;;  %13451 = vmatmul.mubr.msk.bf16.gmra.mrb[192].mxu0 %vm5705_vm7, %v7801_v15 }
 0x6d7   : > { %v13182_v3 = vpop.f32.mrb[45].mxu1  ;;  %13454 = vmatprep.mubr.msk.bf16.mxu0 %vm14167_vm2, %v19261_v31 }
 0x6d8   : > { %v6620_v51 = vpop.f32.mrb[46].mxu1  ;;  %v7953_v3 = vld [vmem:[#allocation3 + $0x3a] sm:$0xff] }
 0x6d9   : > { %v6661_v34 = vadd.f32 %v6620_v51, %v17651_v57  ;;  %v13183_v37 = vpop.f32.mrb[47].mxu1  ;;  %v6806_v39 = vpop.f32.mrb[88].mxu0  ;;  %v7609_v57 = vshrl.u32 %v17134_v33, 16  ;;  %v7804_v33 = vrot.slane %v17685_v9, 1  ;;  %v7954_v51 = vld [vmem:[#allocation3 + $0x42] sm:$0xff] }
 0x6da   : > { %v13228_v25 = vpop.f32.mrb[89].mxu0 }
 0x6db   : > { %v6808_v54 = vpop.f32.mrb[90].mxu0  ;;  %13409 = vmatmul.mubr.msk.bf16.gmra.mrb[152].mxu1 %vm5705_vm7, %v7608_v49  ;;  %v17804_v20 = vadd.f32 %v6793_v32, %v6661_v34  ;;  %v7611_v52 = vor.u32 %v7609_v57, %v7607_v60  ;;  %v7805_v15 = vsel %vm1068_vm5, %v7802_v50, %v7804_v33  ;;  %v7951_v60 = vld [vmem:[#allocation3 + $0x2a] sm:$0xff]  ;;  %v17833_v49 = vpack.c.bf16 %v7954_v51, %v7953_v3 }
 0x6dc   : > { %v13229_v62 = vpop.f32.mrb[91].mxu0  ;;  %13412 = vmatprep.mubr.msk.bf16.mxu1 %vm14167_vm2, %v19261_v31 }
 0x6dd   : > { %v7615_v18 = vsel %vm731_vm3, %v7611_v52, %v7614_v2  ;;  %v7626_v52 = vshll.u32 %v17685_v9, 16 }
 0x6de   : > { %v6625_v59 = vpop.f32.mrb[48].mxu1  ;;  %13455 = vmatmul.mubr.msk.bf16.gmra.mrb[196].mxu0 %vm5705_vm7, %v7803_v8 }
 0x6df   : > { %v6662_v5 = vadd.f32 %v6625_v59, %v17665_v41  ;;  %v13186_v12 = vpop.f32.mrb[49].mxu1  ;;  %13458 = vmatprep.mubr.msk.bf16.mxu0 %vm14167_vm2, %v19261_v31 }
 0x6e0   : > { %v6628_v32 = vpop.f32.mrb[50].mxu1 }
 0x6e1   : > { %v6663_v17 = vadd.f32 %v6628_v32, %v17669_v63  ;;  %v13187_v56 = vpop.f32.mrb[51].mxu1  ;;  %v6813_v42 = vpop.f32.mrb[92].mxu0  ;;  %v17816_v28 = vadd.f32 %v6798_v38, %v6662_v5  ;;  %v7952_v63 = vld [vmem:[#allocation3 + $0x32] sm:$0xff]  ;;  %v7616_v38 = vshrl.u32 %v17654_v29, 16 }
 0x6e2   : > { %v13232_v35 = vpop.f32.mrb[93].mxu0  ;;  %v7956_v32 = vld [vmem:[#allocation3 + $0x52] sm:$0xff] }
 0x6e3   : > { %v6816_v46 = vpop.f32.mrb[94].mxu0  ;;  %13413 = vmatmul.mubr.msk.bf16.gmra.mrb[156].mxu1 %vm5705_vm7, %v7615_v18  ;;  %v17821_v41 = vadd.f32 %v6801_v36, %v6663_v17  ;;  %v17830_v36 = vpack.c.bf16 %v7952_v63, %v7951_v60  ;;  %v7618_v37 = vor.u32 %v7616_v38, %v7614_v2  ;;  %v8132_v2 = vshll.u32 %v17833_v49, 16 }
 0x6e4   : > { %v13233_v0 = vpop.f32.mrb[95].mxu0  ;;  %13416 = vmatprep.mubr.msk.bf16.mxu1 %vm14167_vm2, %v19261_v31  ;;  %v7628_v18 = vrot.slane %v7626_v52, 1 }
 0x6e5   : > { %v7622_v29 = vsel %vm731_vm3, %v7618_v37, %v7621_v7  ;;  %v8128_v57 = vshll.u32 %v17830_v36, 16 }
 0x6e6   : > { %v6633_v47 = vpop.f32.mrb[52].mxu1  ;;  %13459 = vmatmul.mubr.msk.bf16.gmra.mrb[200].mxu0 %vm5705_vm7, %v7805_v15 }
 0x6e7   : > { %v13190_v48 = vpop.f32.mrb[53].mxu1  ;;  %13462 = vmatprep.mubr.msk.bf16.mxu0 %vm14167_vm2, %v19261_v31  ;;  %v8134_v47 = vrot.slane %v8132_v2, 1 }
 0x6e8   : > { %v6635_v34 = vpop.f32.mrb[54].mxu1 }
 0x6e9   : > { %v6664_v39 = vadd.f32 %v6635_v34, %v17683_v55  ;;  %v13191_v50 = vpop.f32.mrb[55].mxu1  ;;  %v6821_v25 = vpop.f32.mrb[96].mxu0  ;;  %v7623_v55 = vshrl.u32 %v17671_v6, 16  ;;  %v8126_v6 = vshrl.u32 %v17830_v36, 16 }
 0x6ea   : > { %v13236_v58 = vpop.f32.mrb[97].mxu0 }
 0x6eb   : > { %v6824_v62 = vpop.f32.mrb[98].mxu0  ;;  %13417 = vmatmul.mubr.msk.bf16.gmra.mrb[160].mxu1 %vm5705_vm7, %v7622_v29  ;;  %v17838_v8 = vadd.f32 %v6808_v54, %v6664_v39  ;;  %v7625_v12 = vor.u32 %v7623_v55, %v7621_v7  ;;  %v8130_v54 = vrot.slane %v8128_v57, 1  ;;  %v7630_v39 = vshrl.u32 %v17685_v9, 16  ;;  %v7958_v58 = vld [vmem:[#allocation3 + $0x62] sm:$0xff] }
 0x6ec   : > { %v13237_v59 = vpop.f32.mrb[99].mxu0  ;;  %13420 = vmatprep.mubr.msk.bf16.mxu1 %vm14167_vm2, %v19261_v31  ;;  %v8136_v9 = vshrl.u32 %v17833_v49, 16 }
 0x6ed   : > { %v7629_v60 = vsel %vm731_vm3, %v7625_v12, %v7628_v18  ;;  %v8131_v51 = vor.u32 %v8130_v54, %v8126_v6  ;;  %v7632_v62 = vor.u32 %v7630_v39, %v7628_v18  ;;  %v7957_v59 = vld [vmem:[#allocation3 + $0x5a] sm:$0xff]  ;;  %v7959_v18 = vld [vmem:[#allocation3 + $0x6a] sm:$0xff]  ;;  %v7960_v6 = vld [vmem:[#allocation3 + $0x72] sm:$0xff] }
 0x6ee   : > { %v6640_v5 = vpop.f32.mrb[56].mxu1  ;;  %13463 = vmatmul.mubr.msk.bf16.gmra.mrb[204].mxu0 %vm5705_vm7, %v7804_v33  ;;  %v17851_v33 = vpack.c.bf16 %v7956_v32, %v7955_v4 }
 0x6ef   : > { %v6665_v17 = vadd.f32 %v6640_v5, %v17697_v40  ;;  %v13194_v56 = vpop.f32.mrb[57].mxu1  ;;  %13506 = vmatprep.mubr.msk.bf16.mxu0 %vm14167_vm2, %v19261_v31  ;;  %v11297_v40 = vld [vmem:[%s19224_s3 + $0x3c] sm:$0xf]  ;;  %v8135_v34 = vsel %vm731_vm3, %v8131_v51, %v8134_v47  ;;  %v17874_v5 = vpack.c.bf16 %v7958_v58, %v7957_v59 }
 0x6f0   : > { %v6643_v35 = vpop.f32.mrb[58].mxu1  ;;  %v8139_v37 = vshll.u32 %v17851_v33, 16 }
 0x6f1   : > { %v6666_v0 = vadd.f32 %v6643_v35, %v17705_v19  ;;  %v13195_v63 = vpop.f32.mrb[59].mxu1  ;;  %v7142_v15 = vpop.f32.mrb[100].mxu0  ;;  %v17853_v38 = vadd.f32 %v6813_v42, %v6665_v17  ;;  %v8562_v42 = vsel %vm5886_vm6, %v11297_v40, 0  ;;  %v8138_v17 = vor.u32 %v8136_v9, %v8134_v47 }
 0x6f2   : > { %v13280_v7 = vpop.f32.mrb[101].mxu0  ;;  %v8141_v2 = vrot.slane %v8139_v37, 1  ;;  %v8146_v35 = vshll.u32 %v17874_v5, 16  ;;  %v8143_v40 = vshrl.u32 %v17851_v33, 16 }
 0x6f3   : > { %v7145_v3 = vpop.f32.mrb[102].mxu0  ;;  %13421 = vmatmul.mubr.msk.bf16.gmra.mrb[164].mxu1 %vm5705_vm7, %v7629_v60  ;;  %v17860_v48 = vadd.f32 %v6816_v46, %v6666_v0  ;;  %v17891_v7 = vpack.c.bf16 %v7960_v6, %v7959_v18 }
 0x6f4   : > { %v13281_v19 = vpop.f32.mrb[103].mxu0  ;;  %13424 = vmatprep.mubr.msk.bf16.mxu1 %vm14167_vm2, %v19261_v31  ;;  %v8142_v54 = vsel %vm731_vm3, %v8138_v17, %v8141_v2 }
 0x6f6   : > { %v6648_v50 = vpop.f32.mrb[60].mxu1  ;;  %13507 = vmatmul.mubr.msk.bf16.vlgmr.msra.gmra.mrb[208].mxu0 %vm5705_vm7, %v8135_v34  ;;  %v8148_v34 = vrot.slane %v8146_v35, 1 }
 0x6f7   : > { %v6667_v29 = vadd.f32 %v6648_v50, %v17718_v22  ;;  %v13198_v46 = vpop.f32.mrb[61].mxu1  ;;  %13510 = vmatprep.mubr.msk.bf16.mxu0 %vm14167_vm2, %v19261_v31  ;;  %13581 = vmatpush3.bf16.msra.mxu0 %v8562_v42  ;;  %v8145_v50 = vor.u32 %v8143_v40, %v8141_v2 }
 0x6f8   : > { %v6651_v57 = vpop.f32.mrb[62].mxu1  ;;  %13656 = vmatprep.subr.bf16.mxu0 %v19261_v31  ;;  %v8153_v46 = vshll.u32 %v17891_v7, 16 }
 0x6f9   : > { %v13199_v55 = vpop.f32.mrb[63].mxu1  ;;  %v7150_v52 = vpop.f32.mrb[104].mxu0  ;;  %v17876_v12 = vadd.f32 %v6821_v25, %v6667_v29  ;;  %v11287_v25 = vld [vmem:[%s19224_s3 + $0x38] sm:$0xf] }
 0x6fa   : > { %v13284_v22 = vpop.f32.mrb[105].mxu0  ;;  %v8389_v42 = vsel %vm5886_vm6, %v11287_v25, 0  ;;  %v7961_v55 = vld [vmem:[#allocation3 + $0x7a] sm:$0xff]  ;;  %v7963_v25 = vld [vmem:[#allocation3 + $0x8a] sm:$0xff] }
 0x6fb   : > { %v7153_v32 = vpop.f32.mrb[106].mxu0  ;;  %13425 = vmatmul.mubr.msk.bf16.gmra.mrb[168].mxu1 %vm5705_vm7, %v7632_v62  ;;  %v7962_v62 = vld [vmem:[#allocation3 + $0x82] sm:$0xff]  ;;  %v8150_v22 = vshrl.u32 %v17874_v5, 16 }
 0x6fc   : > { %v13285_v56 = vpop.f32.mrb[107].mxu0  ;;  %13468 = vmatprep.mubr.msk.bf16.mxu1 %vm14167_vm2, %v19261_v31  ;;  %v8155_v32 = vrot.slane %v8153_v46, 1  ;;  %v17911_v17 = vpack.c.bf16 %v7962_v62, %v7961_v55 }
 0x6fe   : > { %v6933_v4 = vpop.f32.mrb[64].mxu1  ;;  %13511 = vmatmul.mubr.msk.bf16.gmra.mrb[212].mxu0 %vm5705_vm7, %v8142_v54 }
 0x6ff   : > { %v7000_v0 = vadd.f32 %v6933_v4, %v17736_v11  ;;  %v13242_v63 = vpop.f32.mrb[65].mxu1  ;;  %13514 = vmatprep.mubr.msk.bf16.mxu0 %vm14167_vm2, %v19261_v31  ;;  %v8160_v4 = vshll.u32 %v17911_v17, 16 }
 0x700   : > { %v6936_v47 = vpop.f32.mrb[66].mxu1 }
 0x701   : > { %v7001_v60 = vadd.f32 %v6936_v47, %v17741_v21  ;;  %v13243_v51 = vpop.f32.mrb[67].mxu1  ;;  %v7157_v19 = vpop.f32.mrb[108].mxu0  ;;  %v17895_v37 = vadd.f32 %v7142_v15, %v7000_v0  ;;  %v8149_v21 = vsel %vm731_vm3, %v8145_v50, %v8148_v34  ;;  %v7964_v0 = vld [vmem:[#allocation3 + $0x92] sm:$0xff]  ;;  %v8162_v50 = vrot.slane %v8160_v4, 1 }
 0x702   : > { %v13288_v39 = vpop.f32.mrb[109].mxu0 }
 0x703   : > { %v7160_v11 = vpop.f32.mrb[110].mxu0  ;;  %13469 = vmatmul.mubr.msk.bf16.vlgmr.msra.gmra.mrb[172].mxu1 %vm5705_vm7, %v17830_v36  ;;  %v17899_v58 = vadd.f32 %v7145_v3, %v7001_v60  ;;  %v17925_v60 = vpack.c.bf16 %v7964_v0, %v7963_v25  ;;  %v8157_v39 = vshrl.u32 %v17891_v7, 16 }
 0x704   : > { %13543 = vmatpush3.bf16.msra.mxu1 %v8389_v42  ;;  %v13289_v29 = vpop.f32.mrb[111].mxu0  ;;  %13472 = vmatprep.mubr.msk.bf16.mxu1 %vm14167_vm2, %v19261_v31 }
 0x705   : > { %13618 = vmatprep.subr.bf16.mxu1 %v19261_v31 }
 0x706   : > { %v6941_v15 = vpop.f32.mrb[68].mxu1  ;;  %13515 = vmatmul.mubr.msk.bf16.gmra.mrb[216].mxu0 %vm5705_vm7, %v8149_v21 }
 0x707   : > { %v7002_v57 = vadd.f32 %v6941_v15, %v17753_v61  ;;  %v13246_v59 = vpop.f32.mrb[69].mxu1  ;;  %13518 = vmatprep.mubr.msk.bf16.mxu0 %vm14167_vm2, %v19261_v31  ;;  %v8152_v61 = vor.u32 %v8150_v22, %v8148_v34  ;;  %v7965_v22 = vld [vmem:[#allocation3 + $0x9a] sm:$0xff] }
 0x708   : > { %v6944_v3 = vpop.f32.mrb[70].mxu1 }
 0x709   : > { %v13247_v9 = vpop.f32.mrb[71].mxu1  ;;  %v7165_v2 = vpop.f32.mrb[112].mxu0  ;;  %v17913_v56 = vadd.f32 %v7150_v52, %v7002_v57  ;;  %v8156_v6 = vsel %vm731_vm3, %v8152_v61, %v8155_v32  ;;  %v8167_v57 = vshll.u32 %v17925_v60, 16 }
 0x70a   : > { %v13292_v54 = vpop.f32.mrb[113].mxu0  ;;  %v8164_v9 = vshrl.u32 %v17911_v17, 16 }
 0x70b   : > { %v7168_v35 = vpop.f32.mrb[114].mxu0  ;;  %13473 = vmatmul.mubr.msk.bf16.gmra.mrb[176].mxu1 %vm5705_vm7, %v17833_v49 }
 0x70c   : > { %v13293_v18 = vpop.f32.mrb[115].mxu0  ;;  %13476 = vmatprep.mubr.msk.bf16.mxu1 %vm14167_vm2, %v19261_v31 }
 0x70d   : > { %v8169_v18 = vrot.slane %v8167_v57, 1 }
 0x70e   : > { %v6948_v63 = vpop.f32.mrb[72].mxu1  ;;  %13519 = vmatmul.mubr.msk.bf16.gmra.mrb[220].mxu0 %vm5705_vm7, %v8156_v6 }
 0x70f   : > { %v7003_v52 = vadd.f32 %v6948_v63, %v17768_v30  ;;  %v13250_v47 = vpop.f32.mrb[73].mxu1  ;;  %13522 = vmatprep.mubr.msk.bf16.mxu0 %vm14167_vm2, %v19261_v31  ;;  %v8159_v30 = vor.u32 %v8157_v39, %v8155_v32 }
 0x710   : > { %v6951_v40 = vpop.f32.mrb[74].mxu1 }
 0x711   : > { %v7004_v51 = vadd.f32 %v6951_v40, %v17773_v16  ;;  %v13251_v42 = vpop.f32.mrb[75].mxu1  ;;  %v7173_v34 = vpop.f32.mrb[116].mxu0  ;;  %v17929_v29 = vadd.f32 %v7157_v19, %v7003_v52  ;;  %v8163_v16 = vsel %vm731_vm3, %v8159_v30, %v8162_v50  ;;  %v7966_v19 = vld [vmem:[#allocation3 + $0xa2] sm:$0xff] }
 0x712   : > { %v13296_v21 = vpop.f32.mrb[117].mxu0  ;;  %v17945_v6 = vpack.c.bf16 %v7966_v19, %v7965_v22 }
 0x713   : > { %v7175_v46 = vpop.f32.mrb[118].mxu0  ;;  %13477 = vmatmul.mubr.msk.bf16.gmra.mrb[180].mxu1 %vm5705_vm7, %v17851_v33  ;;  %v17933_v15 = vadd.f32 %v7160_v11, %v7004_v51 }
 0x714   : > { %v13297_v62 = vpop.f32.mrb[119].mxu0  ;;  %13480 = vmatprep.mubr.msk.bf16.mxu1 %vm14167_vm2, %v19261_v31  ;;  %v8174_v47 = vshll.u32 %v17945_v6, 16 }
 0x716   : > { %v6956_v59 = vpop.f32.mrb[76].mxu1  ;;  %13523 = vmatmul.mubr.msk.bf16.gmra.mrb[224].mxu0 %vm5705_vm7, %v8163_v16  ;;  %v8176_v21 = vrot.slane %v8174_v47, 1 }
 0x717   : > { %v7005_v3 = vadd.f32 %v6956_v59, %v17785_v53  ;;  %v13254_v55 = vpop.f32.mrb[77].mxu1  ;;  %13526 = vmatprep.mubr.msk.bf16.mxu0 %vm14167_vm2, %v19261_v31  ;;  %v8166_v53 = vor.u32 %v8164_v9, %v8162_v50  ;;  %v8171_v50 = vshrl.u32 %v17925_v60, 16 }
 0x718   : > { %v6959_v11 = vpop.f32.mrb[78].mxu1 }
 0x719   : > { %v7006_v32 = vadd.f32 %v6959_v11, %v17790_v24  ;;  %v13255_v54 = vpop.f32.mrb[79].mxu1  ;;  %v7180_v61 = vpop.f32.mrb[120].mxu0  ;;  %v17947_v4 = vadd.f32 %v7165_v2, %v7005_v3  ;;  %v8170_v24 = vsel %vm731_vm3, %v8166_v53, %v8169_v18  ;;  %v7967_v2 = vld [vmem:[#allocation3 + $0xaa] sm:$0xf]  ;;  %v8173_v57 = vor.u32 %v8171_v50, %v8169_v18 }
 0x71a   : > { %v13300_v25 = vpop.f32.mrb[121].mxu0  ;;  %v17962_v30 = vpack.c.bf16 %v7967_v2, %v7967_v2  ;;  %v8178_v18 = vshrl.u32 %v17945_v6, 16 }
 0x71b   : > { %v7183_v0 = vpop.f32.mrb[122].mxu0  ;;  %13481 = vmatmul.mubr.msk.bf16.gmra.mrb[184].mxu1 %vm5705_vm7, %v17874_v5  ;;  %v17951_v63 = vadd.f32 %v7168_v35, %v7006_v32 }
 0x71c   : > { %v13301_v52 = vpop.f32.mrb[123].mxu0  ;;  %13484 = vmatprep.mubr.msk.bf16.mxu1 %vm14167_vm2, %v19261_v31  ;;  %v8181_v3 = vshll.u32 %v17962_v30, 16 }
 0x71e   : > { %v6964_v40 = vpop.f32.mrb[80].mxu1  ;;  %13527 = vmatmul.mubr.msk.bf16.gmra.mrb[228].mxu0 %vm5705_vm7, %v8170_v24  ;;  %v8183_v25 = vrot.slane %v8181_v3, 1 }
 0x71f   : > { %v13258_v51 = vpop.f32.mrb[81].mxu1  ;;  %13530 = vmatprep.mubr.msk.bf16.mxu0 %vm14167_vm2, %v19261_v31 }
 0x720   : > { %v6966_v42 = vpop.f32.mrb[82].mxu1 }
 0x721   : > { %v7007_v35 = vadd.f32 %v6966_v42, %v17804_v20  ;;  %v13259_v34 = vpop.f32.mrb[83].mxu1  ;;  %v7188_v39 = vpop.f32.mrb[124].mxu0  ;;  %v8177_v20 = vsel %vm731_vm3, %v8173_v57, %v8176_v21 }
 0x722   : > { %v13304_v62 = vpop.f32.mrb[125].mxu0 }
 0x723   : > { %v7190_v16 = vpop.f32.mrb[126].mxu0  ;;  %13485 = vmatmul.mubr.msk.bf16.gmra.mrb[188].mxu1 %vm5705_vm7, %v17891_v7  ;;  %v17966_v59 = vadd.f32 %v7175_v46, %v7007_v35 }
 0x724   : > { %v13305_v19 = vpop.f32.mrb[127].mxu0  ;;  %13488 = vmatprep.mubr.msk.bf16.mxu1 %vm14167_vm2, %v19261_v31 }
 0x726   : > { %v6971_v55 = vpop.f32.mrb[84].mxu1  ;;  %13531 = vmatmul.mubr.msk.bf16.gmra.mrb[232].mxu0 %vm5705_vm7, %v8177_v20 }
 0x727   : > { %v7008_v11 = vadd.f32 %v6971_v55, %v17816_v28  ;;  %v13262_v9 = vpop.f32.mrb[85].mxu1  ;;  %13534 = vmatprep.mubr.msk.bf16.mxu0 %vm14167_vm2, %v19261_v31  ;;  %v8180_v28 = vor.u32 %v8178_v18, %v8176_v21 }
 0x728   : > { %v6974_v22 = vpop.f32.mrb[86].mxu1 }
 0x729   : > { %v7009_v46 = vadd.f32 %v6974_v22, %v17821_v41  ;;  %v13263_v32 = vpop.f32.mrb[87].mxu1  ;;  %v7195_v54 = vpop.f32.mrb[128].mxu0  ;;  %v17978_v53 = vadd.f32 %v7180_v61, %v7008_v11  ;;  %v8184_v41 = vsel %vm731_vm3, %v8180_v28, %v8183_v25  ;;  %v11317_v22 = vld [vmem:[%s19224_s3 + $0x44] sm:$0xf] }
 0x72a   : > { %v13308_v52 = vpop.f32.mrb[129].mxu0 }
 0x72b   : > { %v7198_v24 = vpop.f32.mrb[130].mxu0  ;;  %13489 = vmatmul.mubr.msk.bf16.gmra.mrb[192].mxu1 %vm5705_vm7, %v17911_v17  ;;  %v17982_v47 = vadd.f32 %v7183_v0, %v7009_v46  ;;  %v8185_v0 = vshrl.u32 %v17962_v30, 16 }
 0x72c   : > { %v13309_v40 = vpop.f32.mrb[131].mxu0  ;;  %13492 = vmatprep.mubr.msk.bf16.mxu1 %vm14167_vm2, %v19261_v31 }
 0x72d   : > { %v8187_v62 = vor.u32 %v8185_v0, %v8183_v25  ;;  %v11307_v0 = vld [vmem:[%s19224_s3 + $0x40] sm:$0xf] }
 0x72e   : > { %v6979_v2 = vpop.f32.mrb[88].mxu1  ;;  %13535 = vmatmul.mubr.msk.bf16.gmra.mrb[236].mxu0 %vm5705_vm7, %v8184_v41 }
 0x72f   : > { %v13266_v51 = vpop.f32.mrb[89].mxu1  ;;  %13538 = vmatprep.mubr.msk.bf16.mxu0 %vm14167_vm2, %v19261_v31 }
 0x730   : > { %v6981_v61 = vpop.f32.mrb[90].mxu1 }
 0x731   : > { %v7010_v42 = vadd.f32 %v6981_v61, %v17838_v8  ;;  %v13267_v35 = vpop.f32.mrb[91].mxu1  ;;  %v7203_v34 = vpop.f32.mrb[132].mxu0 }
 0x732   : > { %v13312_v39 = vpop.f32.mrb[133].mxu0 }
 0x733   : > { %13493 = vmatmul.mubr.msk.bf16.gmra.mrb[196].mxu1 %vm5705_vm7, %v17925_v60  ;;  %v7206_v50 = vpop.f32.mrb[134].mxu0  ;;  %v17994_v21 = vadd.f32 %v7190_v16, %v7010_v42 }
 0x734   : > { %v13313_v57 = vpop.f32.mrb[135].mxu0  ;;  %13496 = vmatprep.mubr.msk.bf16.mxu1 %vm14167_vm2, %v19261_v31 }
 0x735   : > { %v8344_v57 = vrot.slane %v17830_v36, 1  ;;  %v14092_v36 = vld [vmem:[#allocation3 + $0x58] sm:$0xff] }
 0x736   : > { %v6986_v19 = vpop.f32.mrb[92].mxu1  ;;  %13539 = vmatmul.mubr.msk.bf16.gmra.mrb[240].mxu0 %vm5705_vm7, %v8187_v62 }
 0x737   : > { %v7011_v8 = vadd.f32 %v6986_v19, %v17853_v38  ;;  %v13270_v20 = vpop.f32.mrb[93].mxu1  ;;  %13582 = vmatprep.mubr.msk.bf16.mxu0 %vm14167_vm2, %v19261_v31 }
 0x738   : > { %v6989_v3 = vpop.f32.mrb[94].mxu1 }
 0x739   : > { %v7012_v55 = vadd.f32 %v6989_v3, %v17860_v48  ;;  %v13271_v11 = vpop.f32.mrb[95].mxu1  ;;  %v7488_v16 = vpop.f32.mrb[136].mxu0  ;;  %v18003_v9 = vadd.f32 %v7195_v54, %v7011_v8  ;;  %v8944_v48 = vsel %vm5886_vm6, %v11317_v22, 0  ;;  %v8771_v3 = vsel %vm5886_vm6, %v11307_v0, 0 }
 0x73a   : > { %v13356_v46 = vpop.f32.mrb[137].mxu0 }
 0x73b   : > { %v7491_v32 = vpop.f32.mrb[138].mxu0  ;;  %13497 = vmatmul.mubr.msk.bf16.gmra.mrb[200].mxu1 %vm5705_vm7, %v17945_v6  ;;  %v18010_v38 = vadd.f32 %v7198_v24, %v7012_v55 }
 0x73c   : > { %v13357_v18 = vpop.f32.mrb[139].mxu0  ;;  %13500 = vmatprep.mubr.msk.bf16.mxu1 %vm14167_vm2, %v19261_v31 }
 0x73d   : > { %v14091_v18 = vld [vmem:[#allocation3 + $0x50] sm:$0xff] }
 0x73e   : > { %v6994_v25 = vpop.f32.mrb[96].mxu1  ;;  %13583 = vmatmul.mubr.msk.bf16.vlgmr.msra.gmra.mrb[244].mxu0 %vm5705_vm7, %v17006_v10  ;;  %v8508_v10 = vld [vmem:[#allocation3 + $0x40] sm:$0xff] }
 0x73f   : > { %v7013_v54 = vadd.f32 %v6994_v25, %v17876_v12  ;;  %v13274_v52 = vpop.f32.mrb[97].mxu1  ;;  %13586 = vmatprep.mubr.msk.bf16.mxu0 %vm14167_vm2, %v19261_v31  ;;  %13657 = vmatpush3.bf16.msra.mxu0 %v8944_v48  ;;  %v14090_v12 = vld [vmem:[#allocation3 + $0x48] sm:$0xff]  ;;  %v18047_v48 = vpack.c.bf16 %v14092_v36, %v14091_v18 }
 0x740   : > { %v6997_v28 = vpop.f32.mrb[98].mxu1  ;;  %13732 = vmatprep.subr.bf16.mxu0 %v19261_v31  ;;  %v18025_v42 = vpack.c.bf16 %v14090_v12, %v8508_v10  ;;  %v14093_v12 = vld [vmem:[#allocation3 + $0x60] sm:$0xff] }
 0x741   : > { %v13275_v24 = vpop.f32.mrb[99].mxu1  ;;  %v7496_v40 = vpop.f32.mrb[140].mxu0  ;;  %v18021_v41 = vadd.f32 %v7203_v34, %v7013_v54  ;;  %v8345_v34 = vrot.slane %v17833_v49, 1 }
 0x742   : > { %v13360_v2 = vpop.f32.mrb[141].mxu0 }
 0x743   : > { %v7499_v51 = vpop.f32.mrb[142].mxu0  ;;  %13501 = vmatmul.mubr.msk.bf16.gmra.mrb[204].mxu1 %vm5705_vm7, %v17962_v30  ;;  %v8346_v11 = vsel %vm1068_vm5, %v8344_v57, %v8345_v34 }
 0x744   : > { %v13361_v61 = vpop.f32.mrb[143].mxu0  ;;  %13544 = vmatprep.mubr.msk.bf16.mxu1 %vm14167_vm2, %v19261_v31 }
 0x746   : > { %v7315_v35 = vpop.f32.mrb[100].mxu1  ;;  %13587 = vmatmul.mubr.msk.bf16.gmra.mrb[248].mxu0 %vm5705_vm7, %v18025_v42 }
 0x747   : > { %v7382_v39 = vadd.f32 %v7315_v35, %v17895_v37  ;;  %v13318_v50 = vpop.f32.mrb[101].mxu1  ;;  %13590 = vmatprep.mubr.msk.bf16.mxu0 %vm14167_vm2, %v19261_v31 }
 0x748   : > { %v7318_v62 = vpop.f32.mrb[102].mxu1 }
 0x749   : > { %v7383_v19 = vadd.f32 %v7318_v62, %v17899_v58  ;;  %v13319_v8 = vpop.f32.mrb[103].mxu1  ;;  %v7503_v20 = vpop.f32.mrb[144].mxu0  ;;  %v18041_v49 = vadd.f32 %v7488_v16, %v7382_v39  ;;  %v8347_v16 = vrot.slane %v17851_v33, 1  ;;  %v14094_v33 = vld [vmem:[#allocation3 + $0x68] sm:$0xff] }
 0x74a   : > { %v13364_v55 = vpop.f32.mrb[145].mxu0  ;;  %v18062_v35 = vpack.c.bf16 %v14094_v33, %v14093_v12  ;;  %v14098_v12 = vld [vmem:[#allocation3 + $0x88] sm:$0xff] }
 0x74b   : > { %v7506_v22 = vpop.f32.mrb[146].mxu0  ;;  %13545 = vmatmul.mubr.msk.bf16.vlgmr.msra.gmra.mrb[208].mxu1 %vm5705_vm7, %v8346_v11  ;;  %v18045_v37 = vadd.f32 %v7491_v32, %v7383_v19  ;;  %v8348_v51 = vsel %vm1068_vm5, %v8345_v34, %v8347_v16  ;;  %v14095_v11 = vld [vmem:[#allocation3 + $0x70] sm:$0xff] }
 0x74c   : > { %13619 = vmatpush3.bf16.msra.mxu1 %v8771_v3  ;;  %v13365_v46 = vpop.f32.mrb[147].mxu0  ;;  %13548 = vmatprep.mubr.msk.bf16.mxu1 %vm14167_vm2, %v19261_v31 }
 0x74d   : > { %13694 = vmatprep.subr.bf16.mxu1 %v19261_v31  ;;  %v14096_v46 = vld [vmem:[#allocation3 + $0x78] sm:$0xff] }
 0x74e   : > { %v7323_v58 = vpop.f32.mrb[104].mxu1  ;;  %13591 = vmatmul.mubr.msk.bf16.gmra.mrb[252].mxu0 %vm5705_vm7, %v18047_v48  ;;  %v18079_v18 = vpack.c.bf16 %v14096_v46, %v14095_v11 }
 0x74f   : > { %v7384_v32 = vadd.f32 %v7323_v58, %v17913_v56  ;;  %v13322_v25 = vpop.f32.mrb[105].mxu1  ;;  %13594 = vmatprep.mubr.msk.bf16.mxu0 %vm14167_vm2, %v19261_v31 }
 0x750   : > { %v7326_v54 = vpop.f32.mrb[106].mxu1 }
 0x751   : > { %v13323_v52 = vpop.f32.mrb[107].mxu1  ;;  %v7511_v28 = vpop.f32.mrb[148].mxu0  ;;  %v18058_v24 = vadd.f32 %v7496_v40, %v7384_v32  ;;  %v8349_v40 = vrot.slane %v17874_v5, 1 }
 0x752   : > { %v13368_v2 = vpop.f32.mrb[149].mxu0 }
 0x753   : > { %v7514_v10 = vpop.f32.mrb[150].mxu0  ;;  %13549 = vmatmul.mubr.msk.bf16.gmra.mrb[212].mxu1 %vm5705_vm7, %v8348_v51  ;;  %v8350_v3 = vsel %vm1068_vm5, %v8347_v16, %v8349_v40 }
 0x754   : > { %v13369_v61 = vpop.f32.mrb[151].mxu0  ;;  %13552 = vmatprep.mubr.msk.bf16.mxu1 %vm14167_vm2, %v19261_v31 }
 0x755   : > { %v14097_v61 = vld [vmem:[#allocation3 + $0x80] sm:$0xff] }
 0x756   : > { %v7330_v56 = vpop.f32.mrb[108].mxu1  ;;  %13595 = vmatmul.mubr.msk.bf16.gmra.mrb[0].mxu0 %vm5705_vm7, %v18062_v35  ;;  %v18096_v33 = vpack.c.bf16 %v14098_v12, %v14097_v61 }
 0x757   : > { %v7385_v0 = vadd.f32 %v7330_v56, %v17929_v29  ;;  %v13326_v34 = vpop.f32.mrb[109].mxu1  ;;  %13598 = vmatprep.mubr.msk.bf16.mxu0 %vm14167_vm2, %v19261_v31 }
 0x758   : > { %v7333_v39 = vpop.f32.mrb[110].mxu1 }
 0x759   : > { %v7386_v50 = vadd.f32 %v7333_v39, %v17933_v15  ;;  %v13327_v62 = vpop.f32.mrb[111].mxu1  ;;  %v7519_v57 = vpop.f32.mrb[152].mxu0  ;;  %v18073_v19 = vadd.f32 %v7503_v20, %v7385_v0  ;;  %v8351_v20 = vrot.slane %v17891_v7, 1 }
 0x75a   : > { %v13372_v8 = vpop.f32.mrb[153].mxu0 }
 0x75b   : > { %v7521_v55 = vpop.f32.mrb[154].mxu0  ;;  %13553 = vmatmul.mubr.msk.bf16.gmra.mrb[216].mxu1 %vm5705_vm7, %v8350_v3  ;;  %v18077_v5 = vadd.f32 %v7506_v22, %v7386_v50  ;;  %v8352_v2 = vsel %vm1068_vm5, %v8349_v40, %v8351_v20  ;;  %v14099_v3 = vld [vmem:[#allocation3 + $0x90] sm:$0xff] }
 0x75c   : > { %v13373_v29 = vpop.f32.mrb[155].mxu0  ;;  %13556 = vmatprep.mubr.msk.bf16.mxu1 %vm14167_vm2, %v19261_v31 }
 0x75e   : > { %v7338_v15 = vpop.f32.mrb[112].mxu1  ;;  %13599 = vmatmul.mubr.msk.bf16.gmra.mrb[4].mxu0 %vm5705_vm7, %v18079_v18 }
 0x75f   : > { %v7387_v36 = vadd.f32 %v7338_v15, %v17947_v4  ;;  %v13330_v58 = vpop.f32.mrb[113].mxu1  ;;  %13602 = vmatprep.mubr.msk.bf16.mxu0 %vm14167_vm2, %v19261_v31 }
 0x760   : > { %v7341_v22 = vpop.f32.mrb[114].mxu1 }
 0x761   : > { %v7388_v16 = vadd.f32 %v7341_v22, %v17951_v63  ;;  %v13331_v32 = vpop.f32.mrb[115].mxu1  ;;  %v7526_v25 = vpop.f32.mrb[156].mxu0  ;;  %v18090_v54 = vadd.f32 %v7511_v28, %v7387_v36  ;;  %v8353_v28 = vrot.slane %v17911_v17, 1  ;;  %v14100_v17 = vld [vmem:[#allocation3 + $0x98] sm:$0xff]  ;;  %v18121_v22 = vld [vmem:[#allocation3 + $0xa8] sm:$0xff] }
 0x762   : > { %v13376_v52 = vpop.f32.mrb[157].mxu0  ;;  %v18110_v29 = vpack.c.bf16 %v14100_v17, %v14099_v3 }
 0x763   : > { %v7529_v51 = vpop.f32.mrb[158].mxu0  ;;  %13557 = vmatmul.mubr.msk.bf16.gmra.mrb[220].mxu1 %vm5705_vm7, %v8352_v2  ;;  %v18094_v7 = vadd.f32 %v7514_v10, %v7388_v16  ;;  %v8354_v50 = vsel %vm1068_vm5, %v8351_v20, %v8353_v28 }
 0x764   : > { %v13377_v4 = vpop.f32.mrb[159].mxu0  ;;  %13560 = vmatprep.mubr.msk.bf16.mxu1 %vm14167_vm2, %v19261_v31 }
 0x765   : > { %v14101_v4 = vld [vmem:[#allocation3 + $0xa0] sm:$0xff] }
 0x766   : > { %v7346_v63 = vpop.f32.mrb[116].mxu1  ;;  %13603 = vmatmul.mubr.msk.bf16.gmra.mrb[8].mxu0 %vm5705_vm7, %v18096_v33  ;;  %v18130_v61 = vpack.c.bf16 %v18121_v22, %v14101_v4 }
 0x767   : > { %v13334_v56 = vpop.f32.mrb[117].mxu1  ;;  %13606 = vmatprep.mubr.msk.bf16.mxu0 %vm14167_vm2, %v19261_v31 }
 0x768   : > { %v7348_v10 = vpop.f32.mrb[118].mxu1 }
 0x769   : > { %v7389_v40 = vadd.f32 %v7348_v10, %v17966_v59  ;;  %v13335_v0 = vpop.f32.mrb[119].mxu1  ;;  %v7534_v34 = vpop.f32.mrb[160].mxu0  ;;  %v8355_v59 = vrot.slane %v17925_v60, 1  ;;  %v8522_v10 = vld [vmem:[#allocation3 + $0xb0] sm:$0xf] }
 0x76a   : > { %v13380_v39 = vpop.f32.mrb[161].mxu0 }
 0x76b   : > { %v7536_v62 = vpop.f32.mrb[162].mxu0  ;;  %13561 = vmatmul.mubr.msk.bf16.gmra.mrb[224].mxu1 %vm5705_vm7, %v8354_v50  ;;  %v18108_v57 = vadd.f32 %v7521_v55, %v7389_v40  ;;  %v8356_v52 = vsel %vm1068_vm5, %v8353_v28, %v8355_v59 }
 0x76c   : > { %v13381_v8 = vpop.f32.mrb[163].mxu0  ;;  %13564 = vmatprep.mubr.msk.bf16.mxu1 %vm14167_vm2, %v19261_v31 }
 0x76e   : > { %v7353_v11 = vpop.f32.mrb[120].mxu1  ;;  %13607 = vmatmul.mubr.msk.bf16.gmra.mrb[12].mxu0 %vm5705_vm7, %v18110_v29 }
 0x76f   : > { %v7390_v46 = vadd.f32 %v7353_v11, %v17978_v53  ;;  %v13338_v15 = vpop.f32.mrb[121].mxu1  ;;  %13610 = vmatprep.mubr.msk.bf16.mxu0 %vm14167_vm2, %v19261_v31 }
 0x770   : > { %v7356_v55 = vpop.f32.mrb[122].mxu1  ;;  %v8900_v15 = vrot.slane %v18025_v42, 1 }
 0x771   : > { %v7391_v20 = vadd.f32 %v7356_v55, %v17982_v47  ;;  %v13339_v36 = vpop.f32.mrb[123].mxu1  ;;  %v7541_v58 = vpop.f32.mrb[164].mxu0  ;;  %v18123_v16 = vadd.f32 %v7526_v25, %v7390_v46  ;;  %v8357_v25 = vrot.slane %v17945_v6, 1  ;;  %v18144_v6 = vpack.c.bf16 %v8522_v10, %v8522_v10 }
 0x772   : > { %v13384_v32 = vpop.f32.mrb[165].mxu0 }
 0x773   : > { %v7544_v2 = vpop.f32.mrb[166].mxu0  ;;  %13565 = vmatmul.mubr.msk.bf16.gmra.mrb[228].mxu1 %vm5705_vm7, %v8356_v52  ;;  %v18127_v60 = vadd.f32 %v7529_v51, %v7391_v20  ;;  %v8358_v0 = vsel %vm1068_vm5, %v8355_v59, %v8357_v25  ;;  %v11337_v20 = vld [vmem:[%s19224_s3 + $0x4c] sm:$0xf] }
 0x774   : > { %v13385_v53 = vpop.f32.mrb[167].mxu0  ;;  %13568 = vmatprep.mubr.msk.bf16.mxu1 %vm14167_vm2, %v19261_v31 }
 0x776   : > { %v7361_v47 = vpop.f32.mrb[124].mxu1  ;;  %13611 = vmatmul.mubr.msk.bf16.gmra.mrb[16].mxu0 %vm5705_vm7, %v18130_v61 }
 0x777   : > { %v13342_v12 = vpop.f32.mrb[125].mxu1  ;;  %13614 = vmatprep.mubr.msk.bf16.mxu0 %vm14167_vm2, %v19261_v31 }
 0x778   : > { %v7363_v51 = vpop.f32.mrb[126].mxu1 }
 0x779   : > { %v7392_v63 = vadd.f32 %v7363_v51, %v17994_v21  ;;  %v13343_v28 = vpop.f32.mrb[127].mxu1  ;;  %v7549_v56 = vpop.f32.mrb[168].mxu0  ;;  %v8359_v21 = vrot.slane %v17962_v30, 1  ;;  %v8902_v51 = vrot.slane %v18047_v48, 1 }
 0x77a   : > { %v13388_v40 = vpop.f32.mrb[169].mxu0  ;;  %v8687_v28 = vshll.u32 %v18025_v42, 16 }
 0x77b   : > { %v7552_v34 = vpop.f32.mrb[170].mxu0  ;;  %13569 = vmatmul.mubr.msk.bf16.gmra.mrb[232].mxu1 %vm5705_vm7, %v8358_v0  ;;  %v18142_v39 = vadd.f32 %v7536_v62, %v7392_v63  ;;  %v8903_v40 = vsel %vm1068_vm5, %v8900_v15, %v8902_v51 }
 0x77c   : > { %v13389_v50 = vpop.f32.mrb[171].mxu0  ;;  %13572 = vmatprep.mubr.msk.bf16.mxu1 %vm14167_vm2, %v19261_v31  ;;  %v8689_v34 = vrot.slane %v8687_v28, 1 }
 0x77e   : > { %v7368_v8 = vpop.f32.mrb[128].mxu1  ;;  %13615 = vmatmul.mubr.msk.bf16.gmra.mrb[20].mxu0 %vm5705_vm7, %v18144_v6 }
 0x77f   : > { %v7393_v3 = vadd.f32 %v7368_v8, %v18003_v9  ;;  %v13346_v17 = vpop.f32.mrb[129].mxu1  ;;  %13658 = vmatprep.mubr.msk.bf16.mxu0 %vm14167_vm2, %v19261_v31  ;;  %v8360_v9 = vsel %vm1068_vm5, %v8357_v25, %v8359_v21 }
 0x780   : > { %v7371_v62 = vpop.f32.mrb[130].mxu1 }
 0x781   : > { %v7394_v11 = vadd.f32 %v7371_v62, %v18010_v38  ;;  %v13347_v59 = vpop.f32.mrb[131].mxu1  ;;  %v7870_v46 = vpop.f32.mrb[172].mxu0  ;;  %v18156_v55 = vadd.f32 %v7541_v58, %v7393_v3  ;;  %v9326_v38 = vsel %vm5886_vm6, %v11337_v20, 0  ;;  %v8901_v58 = vsel %vm1068_vm5, %v17218_v23, %v8900_v15 }
 0x782   : > { %v13432_v30 = vpop.f32.mrb[173].mxu0  ;;  %v8904_v59 = vrot.slane %v18062_v35, 1 }
 0x783   : > { %v7873_v36 = vpop.f32.mrb[174].mxu0  ;;  %13573 = vmatmul.mubr.msk.bf16.gmra.mrb[236].mxu1 %vm5705_vm7, %v8360_v9  ;;  %v18163_v32 = vadd.f32 %v7544_v2, %v7394_v11  ;;  %v8690_v30 = vsel %vm731_vm3, %v17046_v26, %v8689_v34  ;;  %v8691_v26 = vshrl.u32 %v18025_v42, 16  ;;  %v8701_v42 = vshll.u32 %v18062_v35, 16 }
 0x784   : > { %v13433_v52 = vpop.f32.mrb[175].mxu0  ;;  %13576 = vmatprep.mubr.msk.bf16.mxu1 %vm14167_vm2, %v19261_v31 }
 0x786   : > { %v7376_v53 = vpop.f32.mrb[132].mxu1  ;;  %13659 = vmatmul.mubr.msk.bf16.vlgmr.msra.gmra.mrb[24].mxu0 %vm5705_vm7, %v8901_v58 }
 0x787   : > { %v7395_v4 = vadd.f32 %v7376_v53, %v18021_v41  ;;  %v13350_v47 = vpop.f32.mrb[133].mxu1  ;;  %13662 = vmatprep.mubr.msk.bf16.mxu0 %vm14167_vm2, %v19261_v31  ;;  %13733 = vmatpush3.bf16.msra.mxu0 %v9326_v38  ;;  %v8905_v38 = vsel %vm1068_vm5, %v8902_v51, %v8904_v59  ;;  %v8906_v51 = vrot.slane %v18079_v18, 1 }
 0x788   : > { %v7379_v2 = vpop.f32.mrb[134].mxu1  ;;  %13808 = vmatprep.subr.bf16.mxu0 %v19261_v31  ;;  %v8693_v47 = vor.u32 %v8691_v26, %v8689_v34 }
 0x789   : > { %v13351_v25 = vpop.f32.mrb[135].mxu1  ;;  %v7878_v12 = vpop.f32.mrb[176].mxu0  ;;  %v18176_v63 = vadd.f32 %v7549_v56, %v7395_v4  ;;  %v11327_v56 = vld [vmem:[%s19224_s3 + $0x48] sm:$0xf] }
 0x78a   : > { %v13436_v23 = vpop.f32.mrb[177].mxu0  ;;  %v9117_v11 = vsel %vm5886_vm6, %v11327_v56, 0  ;;  %v8703_v56 = vrot.slane %v8701_v42, 1  ;;  %v8715_v42 = vshll.u32 %v18096_v33, 16 }
 0x78b   : > { %v7881_v10 = vpop.f32.mrb[178].mxu0  ;;  %13577 = vmatmul.mubr.msk.bf16.gmra.mrb[240].mxu1 %vm5705_vm7, %v8359_v21 }
 0x78c   : > { %v13437_v41 = vpop.f32.mrb[179].mxu0  ;;  %13620 = vmatprep.mubr.msk.bf16.mxu1 %vm14167_vm2, %v19261_v31 }
 0x78e   : > { %v7697_v0 = vpop.f32.mrb[136].mxu1  ;;  %13663 = vmatmul.mubr.msk.bf16.gmra.mrb[28].mxu0 %vm5705_vm7, %v8903_v40  ;;  %v8698_v40 = vshrl.u32 %v18047_v48, 16 }
 0x78f   : > { %v7764_v50 = vadd.f32 %v7697_v0, %v18041_v49  ;;  %v13394_v8 = vpop.f32.mrb[137].mxu1  ;;  %13666 = vmatprep.mubr.msk.bf16.mxu0 %vm14167_vm2, %v19261_v31  ;;  %v8694_v49 = vshll.u32 %v18047_v48, 16  ;;  %v8907_v0 = vsel %vm1068_vm5, %v8904_v59, %v8906_v51  ;;  %v8908_v48 = vrot.slane %v18096_v33, 1 }
 0x790   : > { %v7700_v21 = vpop.f32.mrb[138].mxu1 }
 0x791   : > { %v7765_v3 = vadd.f32 %v7700_v21, %v18045_v37  ;;  %v13395_v17 = vpop.f32.mrb[139].mxu1  ;;  %v7885_v62 = vpop.f32.mrb[180].mxu0  ;;  %v18193_v15 = vadd.f32 %v7870_v46, %v7764_v50  ;;  %v8696_v58 = vrot.slane %v8694_v49, 1  ;;  %v8708_v49 = vshll.u32 %v18079_v18, 16 }
 0x792   : > { %v13440_v20 = vpop.f32.mrb[181].mxu0 }
 0x793   : > { %v7888_v9 = vpop.f32.mrb[182].mxu0  ;;  %13621 = vmatmul.mubr.msk.bf16.vlgmr.msra.gmra.mrb[244].mxu1 %vm5705_vm7, %v8690_v30  ;;  %v18199_v52 = vadd.f32 %v7873_v36, %v7765_v3  ;;  %v8697_v10 = vsel %vm731_vm3, %v8693_v47, %v8696_v58  ;;  %v8710_v26 = vrot.slane %v8708_v49, 1 }
 0x794   : > { %13695 = vmatpush3.bf16.msra.mxu1 %v9117_v11  ;;  %v13441_v37 = vpop.f32.mrb[183].mxu0  ;;  %13624 = vmatprep.mubr.msk.bf16.mxu1 %vm14167_vm2, %v19261_v31 }
 0x795   : > { %13770 = vmatprep.subr.bf16.mxu1 %v19261_v31 }
 0x796   : > { %v7705_v46 = vpop.f32.mrb[140].mxu1  ;;  %13667 = vmatmul.mubr.msk.bf16.gmra.mrb[32].mxu0 %vm5705_vm7, %v8905_v38 }
 0x797   : > { %v7766_v53 = vadd.f32 %v7705_v46, %v18058_v24  ;;  %v13398_v4 = vpop.f32.mrb[141].mxu1  ;;  %13670 = vmatprep.mubr.msk.bf16.mxu0 %vm14167_vm2, %v19261_v31 }
 0x798   : > { %v7708_v36 = vpop.f32.mrb[142].mxu1 }
 0x799   : > { %v13399_v2 = vpop.f32.mrb[143].mxu1  ;;  %v7893_v25 = vpop.f32.mrb[184].mxu0  ;;  %v18211_v23 = vadd.f32 %v7878_v12, %v7766_v53  ;;  %v8700_v12 = vor.u32 %v8698_v40, %v8696_v58 }
 0x79a   : > { %v13444_v28 = vpop.f32.mrb[185].mxu0 }
 0x79b   : > { %v7896_v41 = vpop.f32.mrb[186].mxu0  ;;  %13625 = vmatmul.mubr.msk.bf16.gmra.mrb[248].mxu1 %vm5705_vm7, %v8697_v10  ;;  %v8704_v30 = vsel %vm731_vm3, %v8700_v12, %v8703_v56  ;;  %v8717_v12 = vrot.slane %v8715_v42, 1 }
 0x79c   : > { %v13445_v24 = vpop.f32.mrb[187].mxu0  ;;  %13628 = vmatprep.mubr.msk.bf16.mxu1 %vm14167_vm2, %v19261_v31 }
 0x79e   : > { %v7712_v34 = vpop.f32.mrb[144].mxu1  ;;  %13671 = vmatmul.mubr.msk.bf16.gmra.mrb[36].mxu0 %vm5705_vm7, %v8907_v0 }
 0x79f   : > { %v7767_v50 = vadd.f32 %v7712_v34, %v18073_v19  ;;  %v13402_v8 = vpop.f32.mrb[145].mxu1  ;;  %13674 = vmatprep.mubr.msk.bf16.mxu0 %vm14167_vm2, %v19261_v31 }
 0x7a0   : > { %v7715_v21 = vpop.f32.mrb[146].mxu1 }
 0x7a1   : > { %v7768_v3 = vadd.f32 %v7715_v21, %v18077_v5  ;;  %v13403_v17 = vpop.f32.mrb[147].mxu1  ;;  %v7901_v11 = vpop.f32.mrb[188].mxu0  ;;  %v18226_v20 = vadd.f32 %v7885_v62, %v7767_v50  ;;  %v8909_v5 = vsel %vm1068_vm5, %v8906_v51, %v8908_v48  ;;  %v8705_v62 = vshrl.u32 %v18062_v35, 16 }
 0x7a2   : > { %v13448_v59 = vpop.f32.mrb[189].mxu0  ;;  %v8910_v51 = vrot.slane %v18110_v29, 1  ;;  %v8722_v11 = vshll.u32 %v18110_v29, 16 }
 0x7a3   : > { %v7903_v37 = vpop.f32.mrb[190].mxu0  ;;  %13629 = vmatmul.mubr.msk.bf16.gmra.mrb[252].mxu1 %vm5705_vm7, %v8704_v30  ;;  %v18231_v19 = vadd.f32 %v7888_v9, %v7768_v3  ;;  %v8707_v4 = vor.u32 %v8705_v62, %v8703_v56  ;;  %v8912_v3 = vrot.slane %v18130_v61, 1 }
 0x7a4   : > { %v13449_v38 = vpop.f32.mrb[191].mxu0  ;;  %13632 = vmatprep.mubr.msk.bf16.mxu1 %vm14167_vm2, %v19261_v31  ;;  %v8911_v0 = vsel %vm1068_vm5, %v8908_v48, %v8910_v51 }
 0x7a5   : > { %v8711_v35 = vsel %vm731_vm3, %v8707_v4, %v8710_v26  ;;  %v8719_v38 = vshrl.u32 %v18096_v33, 16  ;;  %v8914_v4 = vrot.slane %v18144_v6, 1 }
 0x7a6   : > { %v7720_v46 = vpop.f32.mrb[148].mxu1  ;;  %13675 = vmatmul.mubr.msk.bf16.gmra.mrb[40].mxu0 %vm5705_vm7, %v8909_v5  ;;  %v8724_v5 = vrot.slane %v8722_v11, 1 }
 0x7a7   : > { %v7769_v58 = vadd.f32 %v7720_v46, %v18090_v54  ;;  %v13406_v53 = vpop.f32.mrb[149].mxu1  ;;  %13678 = vmatprep.mubr.msk.bf16.mxu0 %vm14167_vm2, %v19261_v31 }
 0x7a8   : > { %v7723_v9 = vpop.f32.mrb[150].mxu1 }
 0x7a9   : > { %v7770_v36 = vadd.f32 %v7723_v9, %v18094_v7  ;;  %v13407_v47 = vpop.f32.mrb[151].mxu1  ;;  %v7908_v2 = vpop.f32.mrb[192].mxu0  ;;  %v18243_v28 = vadd.f32 %v7893_v25, %v7769_v58  ;;  %v8712_v7 = vshrl.u32 %v18079_v18, 16 }
 0x7aa   : > { %v13452_v10 = vpop.f32.mrb[193].mxu0 }
 0x7ab   : > { %v7911_v54 = vpop.f32.mrb[194].mxu0  ;;  %13633 = vmatmul.mubr.msk.bf16.gmra.mrb[0].mxu1 %vm5705_vm7, %v8711_v35  ;;  %v18248_v24 = vadd.f32 %v7896_v41, %v7770_v36  ;;  %v8714_v34 = vor.u32 %v8712_v7, %v8710_v26  ;;  %v8721_v26 = vor.u32 %v8719_v38, %v8717_v12 }
 0x7ac   : > { %v13453_v40 = vpop.f32.mrb[195].mxu0  ;;  %13636 = vmatprep.mubr.msk.bf16.mxu1 %vm14167_vm2, %v19261_v31 }
 0x7ad   : > { %v8718_v18 = vsel %vm731_vm3, %v8714_v34, %v8717_v12  ;;  %v8725_v33 = vsel %vm731_vm3, %v8721_v26, %v8724_v5 }
 0x7ae   : > { %v7728_v25 = vpop.f32.mrb[152].mxu1  ;;  %13679 = vmatmul.mubr.msk.bf16.gmra.mrb[44].mxu0 %vm5705_vm7, %v8911_v0 }
 0x7af   : > { %v13410_v56 = vpop.f32.mrb[153].mxu1  ;;  %13682 = vmatprep.mubr.msk.bf16.mxu0 %vm14167_vm2, %v19261_v31 }
 0x7b0   : > { %v7730_v50 = vpop.f32.mrb[154].mxu1 }
 0x7b1   : > { %v7771_v41 = vadd.f32 %v7730_v50, %v18108_v57  ;;  %v13411_v8 = vpop.f32.mrb[155].mxu1  ;;  %v7916_v21 = vpop.f32.mrb[196].mxu0  ;;  %v8913_v57 = vsel %vm1068_vm5, %v8910_v51, %v8912_v3  ;;  %v8729_v51 = vshll.u32 %v18130_v61, 16 }
 0x7b2   : > { %v13456_v17 = vpop.f32.mrb[197].mxu0 }
 0x7b3   : > { %v7918_v48 = vpop.f32.mrb[198].mxu0  ;;  %13637 = vmatmul.mubr.msk.bf16.gmra.mrb[4].mxu1 %vm5705_vm7, %v8718_v18  ;;  %v18262_v59 = vadd.f32 %v7903_v37, %v7771_v41  ;;  %v8731_v40 = vrot.slane %v8729_v51, 1  ;;  %v8736_v41 = vshll.u32 %v18144_v6, 16  ;;  %v9242_v17 = vshll.u32 %v17264_v14, 16 }
 0x7b4   : > { %v13457_v30 = vpop.f32.mrb[199].mxu0  ;;  %13640 = vmatprep.mubr.msk.bf16.mxu1 %vm14167_vm2, %v19261_v31 }
 0x7b5   : > { %v8738_v30 = vrot.slane %v8736_v41, 1 }
 0x7b6   : > { %v7735_v49 = vpop.f32.mrb[156].mxu1  ;;  %13683 = vmatmul.mubr.msk.bf16.gmra.mrb[48].mxu0 %vm5705_vm7, %v8913_v57 }
 0x7b7   : > { %v7772_v46 = vadd.f32 %v7735_v49, %v18123_v16  ;;  %v13414_v62 = vpop.f32.mrb[157].mxu1  ;;  %13686 = vmatprep.mubr.msk.bf16.mxu0 %vm14167_vm2, %v19261_v31 }
 0x7b8   : > { %v7738_v37 = vpop.f32.mrb[158].mxu1 }
 0x7b9   : > { %v7773_v58 = vadd.f32 %v7738_v37, %v18127_v60  ;;  %v13415_v53 = vpop.f32.mrb[159].mxu1  ;;  %v7923_v9 = vpop.f32.mrb[200].mxu0  ;;  %v18274_v36 = vadd.f32 %v7908_v2, %v7772_v46  ;;  %v8915_v60 = vsel %vm1068_vm5, %v8912_v3, %v8914_v4  ;;  %v8726_v2 = vshrl.u32 %v18110_v29, 16 }
 0x7ba   : > { %v13460_v47 = vpop.f32.mrb[201].mxu0  ;;  %v9238_v29 = vshll.u32 %v17262_v13, 16  ;;  %v9244_v37 = vrot.slane %v9242_v17, 1 }
 0x7bb   : > { %v7926_v16 = vpop.f32.mrb[202].mxu0  ;;  %13641 = vmatmul.mubr.msk.bf16.gmra.mrb[8].mxu1 %vm5705_vm7, %v8725_v33  ;;  %v18279_v10 = vadd.f32 %v7911_v54, %v7773_v58  ;;  %v8728_v25 = vor.u32 %v8726_v2, %v8724_v5  ;;  %v11357_v58 = vld [vmem:[%s19224_s3 + $0x54] sm:$0xf]  ;;  %v8740_v47 = vshrl.u32 %v18144_v6, 16 }
 0x7bc   : > { %v13461_v35 = vpop.f32.mrb[203].mxu0  ;;  %13644 = vmatprep.mubr.msk.bf16.mxu1 %vm14167_vm2, %v19261_v31 }
 0x7bd   : > { %v8732_v50 = vsel %vm731_vm3, %v8728_v25, %v8731_v40  ;;  %v8742_v2 = vor.u32 %v8740_v47, %v8738_v30  ;;  %v9246_v25 = vshrl.u32 %v17264_v14, 16 }
 0x7be   : > { %v7743_v42 = vpop.f32.mrb[160].mxu1  ;;  %13687 = vmatmul.mubr.msk.bf16.gmra.mrb[52].mxu0 %vm5705_vm7, %v8915_v60  ;;  %v9249_v60 = vshll.u32 %v17268_v1, 16 }
 0x7bf   : > { %v13418_v7 = vpop.f32.mrb[161].mxu1  ;;  %13690 = vmatprep.mubr.msk.bf16.mxu0 %vm14167_vm2, %v19261_v31 }
 0x7c0   : > { %v7745_v0 = vpop.f32.mrb[162].mxu1 }
 0x7c1   : > { %v7774_v54 = vadd.f32 %v7745_v0, %v18142_v39  ;;  %v13419_v34 = vpop.f32.mrb[163].mxu1  ;;  %v7931_v12 = vpop.f32.mrb[204].mxu0  ;;  %v8733_v39 = vshrl.u32 %v18130_v61, 16  ;;  %v9236_v61 = vshrl.u32 %v17262_v13, 16 }
 0x7c2   : > { %v13464_v56 = vpop.f32.mrb[205].mxu0 }
 0x7c3   : > { %v7934_v8 = vpop.f32.mrb[206].mxu0  ;;  %13645 = vmatmul.mubr.msk.bf16.gmra.mrb[12].mxu1 %vm5705_vm7, %v8732_v50  ;;  %v18293_v21 = vadd.f32 %v7918_v48, %v7774_v54  ;;  %v8735_v11 = vor.u32 %v8733_v39, %v8731_v40  ;;  %v9240_v48 = vrot.slane %v9238_v29, 1  ;;  %v9251_v54 = vrot.slane %v9249_v60, 1 }
 0x7c4   : > { %v13465_v3 = vpop.f32.mrb[207].mxu0  ;;  %13648 = vmatprep.mubr.msk.bf16.mxu1 %vm14167_vm2, %v19261_v31  ;;  %v9256_v29 = vshll.u32 %v17270_v43, 16 }
 0x7c5   : > { %v8739_v53 = vsel %vm731_vm3, %v8735_v11, %v8738_v30  ;;  %v9253_v11 = vshrl.u32 %v17268_v1, 16 }
 0x7c6   : > { %v7750_v18 = vpop.f32.mrb[164].mxu1  ;;  %13691 = vmatmul.mubr.msk.bf16.gmra.mrb[56].mxu0 %vm5705_vm7, %v8914_v4 }
 0x7c7   : > { %v7775_v57 = vadd.f32 %v7750_v18, %v18156_v55  ;;  %v13422_v49 = vpop.f32.mrb[165].mxu1  ;;  %13734 = vmatprep.mubr.msk.bf16.mxu0 %vm14167_vm2, %v19261_v31 }
 0x7c8   : > { %v7753_v38 = vpop.f32.mrb[166].mxu1 }
 0x7c9   : > { %v7776_v5 = vadd.f32 %v7753_v38, %v18163_v32  ;;  %v13423_v46 = vpop.f32.mrb[167].mxu1  ;;  %v8252_v62 = vpop.f32.mrb[208].mxu0  ;;  %v18305_v26 = vadd.f32 %v7923_v9, %v7775_v57  ;;  %v9241_v32 = vor.u32 %v9240_v48, %v9236_v61  ;;  %v9672_v9 = vsel %vm5886_vm6, %v11357_v58, 0 }
 0x7ca   : > { %v13508_v55 = vpop.f32.mrb[209].mxu0  ;;  %v9258_v38 = vrot.slane %v9256_v29, 1  ;;  %v9267_v29 = vshrl.u32 %v17274_v27, 16 }
 0x7cb   : > { %v8255_v4 = vpop.f32.mrb[210].mxu0  ;;  %13649 = vmatmul.mubr.msk.bf16.gmra.mrb[16].mxu1 %vm5705_vm7, %v8739_v53  ;;  %v18313_v33 = vadd.f32 %v7926_v16, %v7776_v5  ;;  %v9245_v35 = vsel %vm731_vm3, %v9241_v32, %v9244_v37  ;;  %v9263_v55 = vshll.u32 %v17274_v27, 16 }
 0x7cc   : > { %v13509_v51 = vpop.f32.mrb[211].mxu0  ;;  %13652 = vmatprep.mubr.msk.bf16.mxu1 %vm14167_vm2, %v19261_v31 }
 0x7ce   : > { %v7758_v42 = vpop.f32.mrb[168].mxu1  ;;  %13735 = vmatmul.mubr.msk.bf16.vlgmr.msra.gmra.mrb[60].mxu0 %vm5705_vm7, %v9245_v35  ;;  %v9265_v35 = vrot.slane %v9263_v55, 1 }
 0x7cf   : > { %v7777_v6 = vadd.f32 %v7758_v42, %v18176_v63  ;;  %v13426_v40 = vpop.f32.mrb[169].mxu1  ;;  %13738 = vmatprep.mubr.msk.bf16.mxu0 %vm14167_vm2, %v19261_v31  ;;  %13809 = vmatpush3.bf16.msra.mxu0 %v9672_v9  ;;  %v9248_v63 = vor.u32 %v9246_v25, %v9244_v37  ;;  %v9260_v9 = vshrl.u32 %v17270_v43, 16 }
 0x7d0   : > { %v7761_v16 = vpop.f32.mrb[170].mxu1  ;;  %13884 = vmatprep.subr.bf16.mxu0 %v19261_v31 }
 0x7d1   : > { %v13427_v7 = vpop.f32.mrb[171].mxu1  ;;  %v8260_v0 = vpop.f32.mrb[212].mxu0  ;;  %v18326_v34 = vadd.f32 %v7931_v12, %v7777_v6  ;;  %v9252_v8 = vsel %vm731_vm3, %v9248_v63, %v9251_v54  ;;  %v11347_v12 = vld [vmem:[%s19224_s3 + $0x50] sm:$0xf]  ;;  %v9262_v6 = vor.u32 %v9260_v9, %v9258_v38  ;;  %v9270_v16 = vshll.u32 %v17278_v44, 16 }
 0x7d2   : > { %v13512_v56 = vpop.f32.mrb[213].mxu0  ;;  %v9499_v48 = vsel %vm5886_vm6, %v11347_v12, 0  ;;  %v9074_v7 = vld [vmem:[#allocation3 + $0xb0] sm:$0xff] }
 0x7d3   : > { %v8263_v50 = vpop.f32.mrb[214].mxu0  ;;  %13653 = vmatmul.mubr.msk.bf16.gmra.mrb[20].mxu1 %vm5705_vm7, %v8742_v2 }
 0x7d4   : > { %v13513_v41 = vpop.f32.mrb[215].mxu0  ;;  %13696 = vmatprep.mubr.msk.bf16.mxu1 %vm14167_vm2, %v19261_v31  ;;  %v18372_v50 = vpack.c.bf16 %v9074_v7, %v18121_v22 }
 0x7d6   : > { %v8043_v3 = vpop.f32.mrb[172].mxu1  ;;  %13739 = vmatmul.mubr.msk.bf16.gmra.mrb[64].mxu0 %vm5705_vm7, %v9252_v8 }
 0x7d7   : > { %v8110_v39 = vadd.f32 %v8043_v3, %v18193_v15  ;;  %v13470_v17 = vpop.f32.mrb[173].mxu1  ;;  %13742 = vmatprep.mubr.msk.bf16.mxu0 %vm14167_vm2, %v19261_v31  ;;  %v9255_v15 = vor.u32 %v9253_v11, %v9251_v54  ;;  %v9272_v3 = vrot.slane %v9270_v16, 1 }
 0x7d8   : > { %v8046_v18 = vpop.f32.mrb[174].mxu1 }
 0x7d9   : > { %v8111_v30 = vadd.f32 %v8046_v18, %v18199_v52  ;;  %v13471_v57 = vpop.f32.mrb[175].mxu1  ;;  %v8267_v49 = vpop.f32.mrb[216].mxu0  ;;  %v18343_v5 = vadd.f32 %v8252_v62, %v8110_v39  ;;  %v9259_v52 = vsel %vm731_vm3, %v9255_v15, %v9258_v38  ;;  %v9075_v38 = vld [vmem:[#allocation3 + $0xb8] sm:$0xff] }
 0x7da   : > { %v13516_v46 = vpop.f32.mrb[217].mxu0 }
 0x7db   : > { %v8270_v61 = vpop.f32.mrb[218].mxu0  ;;  %13697 = vmatmul.mubr.msk.bf16.vlgmr.msra.gmra.mrb[24].mxu1 %vm5705_vm7, %v17262_v13  ;;  %v18347_v37 = vadd.f32 %v8255_v4, %v8111_v30  ;;  %v9076_v46 = vld [vmem:[#allocation3 + $0xc0] sm:$0xff] }
 0x7dc   : > { %13771 = vmatpush3.bf16.msra.mxu1 %v9499_v48  ;;  %v13517_v58 = vpop.f32.mrb[219].mxu0  ;;  %13700 = vmatprep.mubr.msk.bf16.mxu1 %vm14167_vm2, %v19261_v31 }
 0x7dd   : > { %13846 = vmatprep.subr.bf16.mxu1 %v19261_v31 }
 0x7de   : > { %v8051_v62 = vpop.f32.mrb[176].mxu1  ;;  %13743 = vmatmul.mubr.msk.bf16.gmra.mrb[68].mxu0 %vm5705_vm7, %v9259_v52  ;;  %v9274_v52 = vshrl.u32 %v17278_v44, 16 }
 0x7df   : > { %v8112_v53 = vadd.f32 %v8051_v62, %v18211_v23  ;;  %v13474_v47 = vpop.f32.mrb[177].mxu1  ;;  %13746 = vmatprep.mubr.msk.bf16.mxu0 %vm14167_vm2, %v19261_v31  ;;  %v9266_v23 = vsel %vm731_vm3, %v9262_v6, %v9265_v35 }
 0x7e0   : > { %v8054_v4 = vpop.f32.mrb[178].mxu1 }
 0x7e1   : > { %v13475_v32 = vpop.f32.mrb[179].mxu1  ;;  %v8275_v51 = vpop.f32.mrb[220].mxu0  ;;  %v18359_v60 = vadd.f32 %v8260_v0, %v8112_v53  ;;  %v18396_v4 = vpack.c.bf16 %v9076_v46, %v9075_v38 }
 0x7e2   : > { %v13520_v42 = vpop.f32.mrb[221].mxu0 }
 0x7e3   : > { %v8278_v2 = vpop.f32.mrb[222].mxu0  ;;  %13701 = vmatmul.mubr.msk.bf16.gmra.mrb[28].mxu1 %vm5705_vm7, %v17264_v14 }
 0x7e4   : > { %v13521_v40 = vpop.f32.mrb[223].mxu0  ;;  %13704 = vmatprep.mubr.msk.bf16.mxu1 %vm14167_vm2, %v19261_v31 }
 0x7e5   : > { %v9281_v40 = vshrl.u32 %v18372_v50, 16 }
 0x7e6   : > { %v8058_v25 = vpop.f32.mrb[180].mxu1  ;;  %13747 = vmatmul.mubr.msk.bf16.gmra.mrb[72].mxu0 %vm5705_vm7, %v9266_v23 }
 0x7e7   : > { %v8113_v0 = vadd.f32 %v8058_v25, %v18226_v20  ;;  %v13478_v54 = vpop.f32.mrb[181].mxu1  ;;  %13750 = vmatprep.mubr.msk.bf16.mxu0 %vm14167_vm2, %v19261_v31  ;;  %v9269_v20 = vor.u32 %v9267_v29, %v9265_v35 }
 0x7e8   : > { %v8061_v56 = vpop.f32.mrb[182].mxu1 }
 0x7e9   : > { %v8114_v63 = vadd.f32 %v8061_v56, %v18231_v19  ;;  %v13479_v41 = vpop.f32.mrb[183].mxu1  ;;  %v8283_v8 = vpop.f32.mrb[224].mxu0  ;;  %v18376_v12 = vadd.f32 %v8267_v49, %v8113_v0  ;;  %v9273_v22 = vsel %vm731_vm3, %v9269_v20, %v9272_v3  ;;  %v9277_v19 = vshll.u32 %v18372_v50, 16 }
 0x7ea   : > { %v13524_v39 = vpop.f32.mrb[225].mxu0  ;;  %v9288_v41 = vshrl.u32 %v18396_v4, 16 }
 0x7eb   : > { %v8285_v17 = vpop.f32.mrb[226].mxu0  ;;  %13705 = vmatmul.mubr.msk.bf16.gmra.mrb[32].mxu1 %vm5705_vm7, %v17268_v1  ;;  %v18380_v18 = vadd.f32 %v8270_v61, %v8114_v63  ;;  %v9279_v55 = vrot.slane %v9277_v19, 1 }
 0x7ec   : > { %v13525_v11 = vpop.f32.mrb[227].mxu0  ;;  %13708 = vmatprep.mubr.msk.bf16.mxu1 %vm14167_vm2, %v19261_v31 }
 0x7ed   : > { %v9283_v0 = vor.u32 %v9281_v40, %v9279_v55 }
 0x7ee   : > { %v8066_v30 = vpop.f32.mrb[184].mxu1  ;;  %13751 = vmatmul.mubr.msk.bf16.gmra.mrb[76].mxu0 %vm5705_vm7, %v9273_v22 }
 0x7ef   : > { %v8115_v57 = vadd.f32 %v8066_v30, %v18243_v28  ;;  %v13482_v49 = vpop.f32.mrb[185].mxu1  ;;  %13754 = vmatprep.mubr.msk.bf16.mxu0 %vm14167_vm2, %v19261_v31  ;;  %v9276_v28 = vor.u32 %v9274_v52, %v9272_v3 }
 0x7f0   : > { %v8069_v48 = vpop.f32.mrb[186].mxu1 }
 0x7f1   : > { %v8116_v61 = vadd.f32 %v8069_v48, %v18248_v24  ;;  %v13483_v15 = vpop.f32.mrb[187].mxu1  ;;  %v8290_v58 = vpop.f32.mrb[228].mxu0  ;;  %v18392_v62 = vadd.f32 %v8275_v51, %v8115_v57  ;;  %v9077_v24 = vld [vmem:[#allocation3 + $0xc8] sm:$0xf]  ;;  %v9280_v35 = vsel %vm731_vm3, %v9276_v28, %v9279_v55  ;;  %v9284_v51 = vshll.u32 %v18396_v4, 16 }
 0x7f2   : > { %v13528_v53 = vpop.f32.mrb[229].mxu0 }
 0x7f3   : > { %v8293_v47 = vpop.f32.mrb[230].mxu0  ;;  %13709 = vmatmul.mubr.msk.bf16.gmra.mrb[36].mxu1 %vm5705_vm7, %v17270_v43  ;;  %v18398_v32 = vadd.f32 %v8278_v2, %v8116_v61  ;;  %v18408_v2 = vpack.c.bf16 %v9077_v24, %v9077_v24  ;;  %v9286_v54 = vrot.slane %v9284_v51, 1 }
 0x7f4   : > { %v13529_v9 = vpop.f32.mrb[231].mxu0  ;;  %13712 = vmatprep.mubr.msk.bf16.mxu1 %vm14167_vm2, %v19261_v31 }
 0x7f5   : > { %v9291_v8 = vshll.u32 %v18408_v2, 16  ;;  %v9290_v22 = vor.u32 %v9288_v41, %v9286_v54 }
 0x7f6   : > { %v8074_v42 = vpop.f32.mrb[188].mxu1  ;;  %13755 = vmatmul.mubr.msk.bf16.gmra.mrb[80].mxu0 %vm5705_vm7, %v9280_v35 }
 0x7f7   : > { %v13486_v6 = vpop.f32.mrb[189].mxu1  ;;  %13758 = vmatprep.mubr.msk.bf16.mxu0 %vm14167_vm2, %v19261_v31  ;;  %v9293_v19 = vrot.slane %v9291_v8, 1 }
 0x7f8   : > { %v8076_v23 = vpop.f32.mrb[190].mxu1 }
 0x7f9   : > { %v8117_v16 = vadd.f32 %v8076_v23, %v18262_v59  ;;  %v13487_v7 = vpop.f32.mrb[191].mxu1  ;;  %v8298_v25 = vpop.f32.mrb[232].mxu0  ;;  %v9287_v59 = vsel %vm731_vm3, %v9283_v0, %v9286_v54  ;;  %v11377_v54 = vld [vmem:[%s19224_s3 + $0x5c] sm:$0xf] }
 0x7fa   : > { %v13532_v56 = vpop.f32.mrb[233].mxu0 }
 0x7fb   : > { %v8300_v63 = vpop.f32.mrb[234].mxu0  ;;  %13713 = vmatmul.mubr.msk.bf16.gmra.mrb[40].mxu1 %vm5705_vm7, %v17274_v27  ;;  %v18415_v29 = vadd.f32 %v8285_v17, %v8117_v16 }
 0x7fc   : > { %v13533_v3 = vpop.f32.mrb[235].mxu0  ;;  %13716 = vmatprep.mubr.msk.bf16.mxu1 %vm14167_vm2, %v19261_v31 }
 0x7fe   : > { %v8081_v39 = vpop.f32.mrb[192].mxu1  ;;  %13759 = vmatmul.mubr.msk.bf16.gmra.mrb[84].mxu0 %vm5705_vm7, %v9287_v59 }
 0x7ff   : > { %v8118_v20 = vadd.f32 %v8081_v39, %v18274_v36  ;;  %v13490_v11 = vpop.f32.mrb[193].mxu1  ;;  %13762 = vmatprep.mubr.msk.bf16.mxu0 %vm14167_vm2, %v19261_v31  ;;  %v9294_v36 = vsel %vm731_vm3, %v9290_v22, %v9293_v19  ;;  %v9618_v22 = vld [vmem:[#allocation3 + $0x5e] sm:$0xff] }
 0x800   : > { %v8084_v30 = vpop.f32.mrb[194].mxu1 }
 0x801   : > { %v8119_v17 = vadd.f32 %v8084_v30, %v18279_v10  ;;  %v13491_v57 = vpop.f32.mrb[195].mxu1  ;;  %v8305_v49 = vpop.f32.mrb[236].mxu0  ;;  %v18425_v48 = vadd.f32 %v8290_v58, %v8118_v20  ;;  %v9295_v10 = vshrl.u32 %v18408_v2, 16 }
 0x802   : > { %v13536_v38 = vpop.f32.mrb[237].mxu0  ;;  %v9630_v57 = vld [vmem:[#allocation3 + $0xbe] sm:$0xff] }
 0x803   : > { %v8308_v46 = vpop.f32.mrb[238].mxu0  ;;  %13717 = vmatmul.mubr.msk.bf16.gmra.mrb[44].mxu1 %vm5705_vm7, %v17278_v44  ;;  %v18430_v61 = vadd.f32 %v8293_v47, %v8119_v17  ;;  %v9297_v47 = vor.u32 %v9295_v10, %v9293_v19  ;;  %v9619_v19 = vld [vmem:[#allocation3 + $0x66] sm:$0xff]  ;;  %v11367_v10 = vld [vmem:[%s19224_s3 + $0x58] sm:$0xf] }
 0x804   : > { %v13537_v15 = vpop.f32.mrb[239].mxu0  ;;  %13720 = vmatprep.mubr.msk.bf16.mxu1 %vm14167_vm2, %v19261_v31 }
 0x806   : > { %v8089_v52 = vpop.f32.mrb[196].mxu1  ;;  %13763 = vmatmul.mubr.msk.bf16.gmra.mrb[88].mxu0 %vm5705_vm7, %v9294_v36 }
 0x807   : > { %v13494_v58 = vpop.f32.mrb[197].mxu1  ;;  %13766 = vmatprep.mubr.msk.bf16.mxu0 %vm14167_vm2, %v19261_v31  ;;  %v9455_v52 = vrot.slane %v17264_v14, 1 }
 0x808   : > { %v8091_v55 = vpop.f32.mrb[198].mxu1  ;;  %v9632_v58 = vld [vmem:[#allocation3 + $0xce] sm:$0xf] }
 0x809   : > { %v8120_v53 = vadd.f32 %v8091_v55, %v18293_v21  ;;  %v13495_v28 = vpop.f32.mrb[199].mxu1  ;;  %v8313_v9 = vpop.f32.mrb[240].mxu0 }
 0x80a   : > { %v13540_v24 = vpop.f32.mrb[241].mxu0 }
 0x80b   : > { %v8316_v35 = vpop.f32.mrb[242].mxu0  ;;  %13721 = vmatmul.mubr.msk.bf16.gmra.mrb[48].mxu1 %vm5705_vm7, %v18372_v50  ;;  %v18441_v51 = vadd.f32 %v8300_v63, %v8120_v53 }
 0x80c   : > { %v13541_v42 = vpop.f32.mrb[243].mxu0  ;;  %13724 = vmatprep.mubr.msk.bf16.mxu1 %vm14167_vm2, %v19261_v31 }
 0x80d   : > { %v9881_v42 = vsel %vm5886_vm6, %v11367_v10, 0 }
 0x80e   : > { %v8096_v6 = vpop.f32.mrb[200].mxu1  ;;  %13767 = vmatmul.mubr.msk.bf16.gmra.mrb[92].mxu0 %vm5705_vm7, %v9297_v47  ;;  %v9454_v47 = vrot.slane %v17262_v13, 1 }
 0x80f   : > { %v8121_v40 = vadd.f32 %v8096_v6, %v18305_v26  ;;  %v13498_v21 = vpop.f32.mrb[201].mxu1  ;;  %13810 = vmatprep.mubr.msk.bf16.mxu0 %vm14167_vm2, %v19261_v31  ;;  %v9621_v6 = vld [vmem:[#allocation3 + $0x76] sm:$0xff] }
 0x810   : > { %v8099_v23 = vpop.f32.mrb[202].mxu1 }
 0x811   : > { %v8122_v16 = vadd.f32 %v8099_v23, %v18313_v33  ;;  %v13499_v7 = vpop.f32.mrb[203].mxu1  ;;  %v8598_v25 = vpop.f32.mrb[244].mxu0  ;;  %v18450_v0 = vadd.f32 %v8305_v49, %v8121_v40  ;;  %v10054_v33 = vsel %vm5886_vm6, %v11377_v54, 0  ;;  %v9631_v49 = vld [vmem:[#allocation3 + $0xc6] sm:$0xff]  ;;  %v18491_v40 = vpack.c.bf16 %v9632_v58, %v9632_v58 }
 0x812   : > { %v13584_v56 = vpop.f32.mrb[245].mxu0  ;;  %v18476_v36 = vpack.c.bf16 %v9631_v49, %v9630_v57  ;;  %v9456_v23 = vsel %vm1068_vm5, %v9454_v47, %v9455_v52  ;;  %v9620_v7 = vld [vmem:[#allocation3 + $0x6e] sm:$0xff]  ;;  %v9622_v57 = vld [vmem:[#allocation3 + $0x7e] sm:$0xff]  ;;  %v9623_v49 = vld [vmem:[#allocation3 + $0x86] sm:$0xff] }
 0x813   : > { %v8601_v63 = vpop.f32.mrb[246].mxu0  ;;  %13725 = vmatmul.mubr.msk.bf16.gmra.mrb[52].mxu1 %vm5705_vm7, %v18396_v4  ;;  %v18457_v26 = vadd.f32 %v8308_v46, %v8122_v16  ;;  %v18472_v46 = vpack.c.bf16 %v9619_v19, %v9618_v22  ;;  %v9846_v56 = vshll.u32 %v18491_v40, 16  ;;  %v18525_v10 = vpack.c.bf16 %v9623_v49, %v9622_v57 }
 0x814   : > { %v13585_v41 = vpop.f32.mrb[247].mxu0  ;;  %13728 = vmatprep.mubr.msk.bf16.mxu1 %vm14167_vm2, %v19261_v31  ;;  %v9839_v28 = vshll.u32 %v18476_v36, 16 }
 0x816   : > { %v8104_v8 = vpop.f32.mrb[204].mxu1  ;;  %13811 = vmatmul.mubr.msk.bf16.vlgmr.msra.gmra.mrb[96].mxu0 %vm5705_vm7, %v17066_v45  ;;  %v18499_v13 = vrot.slane %v9839_v28, 1 }
 0x817   : > { %v8123_v3 = vadd.f32 %v8104_v8, %v18326_v34  ;;  %v13502_v59 = vpop.f32.mrb[205].mxu1  ;;  %13814 = vmatprep.mubr.msk.bf16.mxu0 %vm14167_vm2, %v19261_v31  ;;  %13885 = vmatpush3.bf16.msra.mxu0 %v10054_v33  ;;  %v18503_v33 = vpack.c.bf16 %v9621_v6, %v9620_v7  ;;  %v18509_v8 = vrot.slane %v9846_v56, 1 }
 0x818   : > { %v8107_v39 = vpop.f32.mrb[206].mxu1  ;;  %13960 = vmatprep.subr.bf16.mxu0 %v19261_v31 }
 0x819   : > { %v13503_v20 = vpop.f32.mrb[207].mxu1  ;;  %v8606_v11 = vpop.f32.mrb[248].mxu0  ;;  %v18468_v30 = vadd.f32 %v8313_v9, %v8123_v3  ;;  %v9457_v3 = vrot.slane %v17268_v1, 1 }
 0x81a   : > { %v13588_v17 = vpop.f32.mrb[249].mxu0 }
 0x81b   : > { %v8609_v38 = vpop.f32.mrb[250].mxu0  ;;  %13729 = vmatmul.mubr.msk.bf16.gmra.mrb[56].mxu1 %vm5705_vm7, %v18408_v2  ;;  %v9458_v1 = vsel %vm1068_vm5, %v9455_v52, %v9457_v3 }
 0x81c   : > { %v13589_v34 = vpop.f32.mrb[251].mxu0  ;;  %13772 = vmatprep.mubr.msk.bf16.mxu1 %vm14167_vm2, %v19261_v31 }
 0x81e   : > { %v8425_v15 = vpop.f32.mrb[208].mxu1  ;;  %13815 = vmatmul.mubr.msk.bf16.gmra.mrb[100].mxu0 %vm5705_vm7, %v18472_v46 }
 0x81f   : > { %v8492_v55 = vadd.f32 %v8425_v15, %v18343_v5  ;;  %v13546_v53 = vpop.f32.mrb[209].mxu1  ;;  %13818 = vmatprep.mubr.msk.bf16.mxu0 %vm14167_vm2, %v19261_v31 }
 0x820   : > { %v8428_v9 = vpop.f32.mrb[210].mxu1 }
 0x821   : > { %v8493_v24 = vadd.f32 %v8428_v9, %v18347_v37  ;;  %v13547_v35 = vpop.f32.mrb[211].mxu1  ;;  %v8613_v14 = vpop.f32.mrb[252].mxu0  ;;  %v18493_v21 = vadd.f32 %v8598_v25, %v8492_v55  ;;  %v9843_v37 = vshrl.u32 %v18476_v36, 16  ;;  %v9459_v55 = vrot.slane %v17270_v43, 1 }
 0x822   : > { %v13592_v5 = vpop.f32.mrb[253].mxu0  ;;  %v9625_v35 = vld [vmem:[#allocation3 + $0x96] sm:$0xff] }
 0x823   : > { %v8616_v16 = vpop.f32.mrb[254].mxu0  ;;  %13773 = vmatmul.mubr.msk.bf16.vlgmr.msra.gmra.mrb[60].mxu1 %vm5705_vm7, %v9456_v23  ;;  %v18497_v54 = vadd.f32 %v8601_v63, %v8493_v24  ;;  %v9845_v25 = vor.u32 %v9843_v37, %v18499_v13  ;;  %v9624_v24 = vld [vmem:[#allocation3 + $0x8e] sm:$0xff]  ;;  %v9460_v5 = vsel %vm1068_vm5, %v9457_v3, %v9459_v55  ;;  %v9627_v3 = vld [vmem:[#allocation3 + $0xa6] sm:$0xff] }
 0x824   : > { %13847 = vmatpush3.bf16.msra.mxu1 %v9881_v42  ;;  %v13593_v41 = vpop.f32.mrb[255].mxu0  ;;  %13776 = vmatprep.mubr.msk.bf16.mxu1 %vm14167_vm2, %v19261_v31  ;;  %v18542_v7 = vpack.c.bf16 %v9625_v35, %v9624_v24 }
 0x825   : > { %13922 = vmatprep.subr.bf16.mxu1 %v19261_v31  ;;  %v18519_v20 = vsel %vm731_vm3, %v9845_v25, %v18509_v8 }
 0x826   : > { %v8433_v63 = vpop.f32.mrb[212].mxu1  ;;  %13819 = vmatmul.mubr.msk.bf16.gmra.mrb[104].mxu0 %vm5705_vm7, %v18503_v33 }
 0x827   : > { %v8494_v59 = vadd.f32 %v8433_v63, %v18359_v60  ;;  %v13550_v39 = vpop.f32.mrb[213].mxu1  ;;  %13822 = vmatprep.mubr.msk.bf16.mxu0 %vm14167_vm2, %v19261_v31 }
 0x828   : > { %v8436_v22 = vpop.f32.mrb[214].mxu1 }
 0x829   : > { %v13551_v19 = vpop.f32.mrb[215].mxu1  ;;  %v8621_v17 = vpop.f32.mrb[0].mxu0  ;;  %v18521_v38 = vadd.f32 %v8606_v11, %v8494_v59 }
 0x82a   : > { %v13596_v34 = vpop.f32.mrb[1].mxu0 }
 0x82b   : > { %v8624_v15 = vpop.f32.mrb[2].mxu0  ;;  %13777 = vmatmul.mubr.msk.bf16.gmra.mrb[64].mxu1 %vm5705_vm7, %v9458_v1 }
 0x82c   : > { %v13597_v60 = vpop.f32.mrb[3].mxu0  ;;  %13780 = vmatprep.mubr.msk.bf16.mxu1 %vm14167_vm2, %v19261_v31 }
 0x82e   : > { %v8440_v58 = vpop.f32.mrb[216].mxu1  ;;  %13823 = vmatmul.mubr.msk.bf16.gmra.mrb[108].mxu0 %vm5705_vm7, %v18525_v10 }
 0x82f   : > { %v8495_v11 = vadd.f32 %v8440_v58, %v18376_v12  ;;  %v13554_v53 = vpop.f32.mrb[217].mxu1  ;;  %13826 = vmatprep.mubr.msk.bf16.mxu0 %vm14167_vm2, %v19261_v31 }
 0x830   : > { %v8443_v52 = vpop.f32.mrb[218].mxu1 }
 0x831   : > { %v8496_v28 = vadd.f32 %v8443_v52, %v18380_v18  ;;  %v13555_v9 = vpop.f32.mrb[219].mxu1  ;;  %v8629_v47 = vpop.f32.mrb[4].mxu0  ;;  %v18536_v42 = vadd.f32 %v8613_v14, %v8495_v11  ;;  %v9461_v14 = vrot.slane %v17274_v27, 1  ;;  %v9626_v27 = vld [vmem:[#allocation3 + $0x9e] sm:$0xff]  ;;  %v9629_v11 = vld [vmem:[#allocation3 + $0xb6] sm:$0xff] }
 0x832   : > { %v13600_v6 = vpop.f32.mrb[5].mxu0  ;;  %v18559_v49 = vpack.c.bf16 %v9627_v3, %v9626_v27 }
 0x833   : > { %v8631_v23 = vpop.f32.mrb[6].mxu0  ;;  %13781 = vmatmul.mubr.msk.bf16.gmra.mrb[68].mxu1 %vm5705_vm7, %v9460_v5  ;;  %v18540_v43 = vadd.f32 %v8616_v16, %v8496_v28  ;;  %v9462_v22 = vsel %vm1068_vm5, %v9459_v55, %v9461_v14  ;;  %v9628_v55 = vld [vmem:[#allocation3 + $0xae] sm:$0xff] }
 0x834   : > { %v13601_v12 = vpop.f32.mrb[7].mxu0  ;;  %13784 = vmatprep.mubr.msk.bf16.mxu1 %vm14167_vm2, %v19261_v31  ;;  %v18573_v47 = vpack.c.bf16 %v9629_v11, %v9628_v55 }
 0x836   : > { %v8448_v18 = vpop.f32.mrb[220].mxu1  ;;  %13827 = vmatmul.mubr.msk.bf16.gmra.mrb[112].mxu0 %vm5705_vm7, %v18542_v7 }
 0x837   : > { %v8497_v37 = vadd.f32 %v8448_v18, %v18392_v62  ;;  %v13558_v56 = vpop.f32.mrb[221].mxu1  ;;  %13830 = vmatprep.mubr.msk.bf16.mxu0 %vm14167_vm2, %v19261_v31 }
 0x838   : > { %v8451_v16 = vpop.f32.mrb[222].mxu1 }
 0x839   : > { %v8498_v41 = vadd.f32 %v8451_v16, %v18398_v32  ;;  %v13559_v25 = vpop.f32.mrb[223].mxu1  ;;  %v8636_v63 = vpop.f32.mrb[8].mxu0  ;;  %v18553_v59 = vadd.f32 %v8621_v17, %v8497_v37  ;;  %v9463_v17 = vrot.slane %v17278_v44, 1 }
 0x83a   : > { %v13604_v39 = vpop.f32.mrb[9].mxu0 }
 0x83b   : > { %v8639_v19 = vpop.f32.mrb[10].mxu0  ;;  %13785 = vmatmul.mubr.msk.bf16.gmra.mrb[72].mxu1 %vm5705_vm7, %v9462_v22  ;;  %v18557_v62 = vadd.f32 %v8624_v15, %v8498_v41  ;;  %v9464_v52 = vsel %vm1068_vm5, %v9461_v14, %v9463_v17 }
 0x83c   : > { %v13605_v57 = vpop.f32.mrb[11].mxu0  ;;  %13788 = vmatprep.mubr.msk.bf16.mxu1 %vm14167_vm2, %v19261_v31 }
 0x83e   : > { %v8456_v32 = vpop.f32.mrb[224].mxu1  ;;  %13831 = vmatmul.mubr.msk.bf16.gmra.mrb[116].mxu0 %vm5705_vm7, %v18559_v49 }
 0x83f   : > { %v13562_v34 = vpop.f32.mrb[225].mxu1  ;;  %13834 = vmatprep.mubr.msk.bf16.mxu0 %vm14167_vm2, %v19261_v31 }
 0x840   : > { %v8458_v1 = vpop.f32.mrb[226].mxu1 }
 0x841   : > { %v8499_v15 = vadd.f32 %v8458_v1, %v18415_v29  ;;  %v13563_v60 = vpop.f32.mrb[227].mxu1  ;;  %v8644_v58 = vpop.f32.mrb[12].mxu0  ;;  %v9465_v29 = vrot.slane %v18372_v50, 1 }
 0x842   : > { %v13608_v53 = vpop.f32.mrb[13].mxu0 }
 0x843   : > { %v8646_v28 = vpop.f32.mrb[14].mxu0  ;;  %13789 = vmatmul.mubr.msk.bf16.gmra.mrb[76].mxu1 %vm5705_vm7, %v9464_v52  ;;  %v18571_v9 = vadd.f32 %v8631_v23, %v8499_v15  ;;  %v9466_v56 = vsel %vm1068_vm5, %v9463_v17, %v9465_v29  ;;  %v10010_v53 = vrot.slane %v18472_v46, 1  ;;  %v11397_v52 = vld [vmem:[%s19224_s3 + $0x64] sm:$0xf] }
 0x844   : > { %v13609_v44 = vpop.f32.mrb[15].mxu0  ;;  %13792 = vmatprep.mubr.msk.bf16.mxu1 %vm14167_vm2, %v19261_v31 }
 0x845   : > { %v10009_v44 = vrot.slane %v17066_v45, 1 }
 0x846   : > { %v8463_v24 = vpop.f32.mrb[228].mxu1  ;;  %13835 = vmatmul.mubr.msk.bf16.gmra.mrb[120].mxu0 %vm5705_vm7, %v18573_v47 }
 0x847   : > { %v8500_v35 = vadd.f32 %v8463_v24, %v18425_v48  ;;  %v13566_v6 = vpop.f32.mrb[229].mxu1  ;;  %13838 = vmatprep.mubr.msk.bf16.mxu0 %vm14167_vm2, %v19261_v31 }
 0x848   : > { %v8466_v5 = vpop.f32.mrb[230].mxu1 }
 0x849   : > { %v8501_v23 = vadd.f32 %v8466_v5, %v18430_v61  ;;  %v13567_v12 = vpop.f32.mrb[231].mxu1  ;;  %v8651_v18 = vpop.f32.mrb[16].mxu0  ;;  %v18584_v14 = vadd.f32 %v8636_v63, %v8500_v35  ;;  %v9467_v61 = vrot.slane %v18396_v4, 1  ;;  %v9469_v4 = vrot.slane %v18408_v2, 1 }
 0x84a   : > { %v13612_v37 = vpop.f32.mrb[17].mxu0  ;;  %v10011_v35 = vsel %vm1068_vm5, %v10009_v44, %v10010_v53  ;;  %v9793_v5 = vshll.u32 %v17066_v45, 16 }
 0x84b   : > { %v8654_v16 = vpop.f32.mrb[18].mxu0  ;;  %13793 = vmatmul.mubr.msk.bf16.gmra.mrb[80].mxu1 %vm5705_vm7, %v9466_v56  ;;  %v18588_v50 = vadd.f32 %v8639_v19, %v8501_v23  ;;  %v9468_v19 = vsel %vm1068_vm5, %v9465_v29, %v9467_v61  ;;  %v9470_v60 = vsel %vm1068_vm5, %v9467_v61, %v9469_v4 }
 0x84c   : > { %v13613_v48 = vpop.f32.mrb[19].mxu0  ;;  %13796 = vmatprep.mubr.msk.bf16.mxu1 %vm14167_vm2, %v19261_v31  ;;  %v9795_v61 = vrot.slane %v9793_v5, 1 }
 0x84e   : > { %v8471_v41 = vpop.f32.mrb[232].mxu1  ;;  %13839 = vmatmul.mubr.msk.bf16.gmra.mrb[124].mxu0 %vm5705_vm7, %v18476_v36 }
 0x84f   : > { %v13570_v25 = vpop.f32.mrb[233].mxu1  ;;  %13842 = vmatprep.mubr.msk.bf16.mxu0 %vm14167_vm2, %v19261_v31 }
 0x850   : > { %v8473_v63 = vpop.f32.mrb[234].mxu1  ;;  %v9797_v25 = vshll.u32 %v18472_v46, 16 }
 0x851   : > { %v8502_v3 = vadd.f32 %v8473_v63, %v18441_v51  ;;  %v13571_v39 = vpop.f32.mrb[235].mxu1  ;;  %v8659_v22 = vpop.f32.mrb[20].mxu0 }
 0x852   : > { %v13616_v27 = vpop.f32.mrb[21].mxu0 }
 0x853   : > { %13797 = vmatmul.mubr.msk.bf16.gmra.mrb[84].mxu1 %vm5705_vm7, %v9468_v19  ;;  %v8662_v57 = vpop.f32.mrb[22].mxu0  ;;  %v18600_v32 = vadd.f32 %v8646_v28, %v8502_v3  ;;  %v9791_v3 = vshrl.u32 %v17066_v45, 16  ;;  %v9799_v27 = vrot.slane %v9797_v25, 1  ;;  %v9808_v25 = vshrl.u32 %v18503_v33, 16 }
 0x854   : > { %v13617_v17 = vpop.f32.mrb[23].mxu0  ;;  %13800 = vmatprep.mubr.msk.bf16.mxu1 %vm14167_vm2, %v19261_v31  ;;  %v11387_v57 = vld [vmem:[%s19224_s3 + $0x60] sm:$0xf] }
 0x856   : > { %v8478_v34 = vpop.f32.mrb[236].mxu1  ;;  %13843 = vmatmul.mubr.msk.bf16.gmra.mrb[128].mxu0 %vm5705_vm7, %v18491_v40 }
 0x857   : > { %v8503_v51 = vadd.f32 %v8478_v34, %v18450_v0  ;;  %v13574_v1 = vpop.f32.mrb[237].mxu1  ;;  %13886 = vmatprep.mubr.msk.bf16.mxu0 %vm14167_vm2, %v19261_v31 }
 0x858   : > { %v8481_v15 = vpop.f32.mrb[238].mxu1 }
 0x859   : > { %v8504_v58 = vadd.f32 %v8481_v15, %v18457_v26  ;;  %v13575_v55 = vpop.f32.mrb[239].mxu1  ;;  %v8980_v11 = vpop.f32.mrb[24].mxu0  ;;  %v18613_v2 = vadd.f32 %v8651_v18, %v8503_v51  ;;  %v10436_v26 = vsel %vm5886_vm6, %v11397_v52, 0  ;;  %v10227_v15 = vsel %vm5886_vm6, %v11387_v57, 0 }
 0x85a   : > { %v13660_v0 = vpop.f32.mrb[25].mxu0 }
 0x85b   : > { %v8983_v28 = vpop.f32.mrb[26].mxu0  ;;  %13801 = vmatmul.mubr.msk.bf16.gmra.mrb[88].mxu1 %vm5705_vm7, %v9470_v60  ;;  %v18620_v24 = vadd.f32 %v8654_v16, %v8504_v58  ;;  %v10012_v16 = vrot.slane %v18503_v33, 1  ;;  %v10014_v60 = vrot.slane %v18525_v10, 1 }
 0x85c   : > { %v13661_v29 = vpop.f32.mrb[27].mxu0  ;;  %13804 = vmatprep.mubr.msk.bf16.mxu1 %vm14167_vm2, %v19261_v31 }
 0x85d   : > { %v10013_v39 = vsel %vm1068_vm5, %v10010_v53, %v10012_v16  ;;  %v10015_v44 = vsel %vm1068_vm5, %v10012_v16, %v10014_v60  ;;  %v9801_v29 = vshrl.u32 %v18472_v46, 16  ;;  %v9811_v46 = vshll.u32 %v18525_v10, 16 }
 0x85e   : > { %v8486_v6 = vpop.f32.mrb[240].mxu1  ;;  %13887 = vmatmul.mubr.msk.bf16.vlgmr.msra.gmra.mrb[132].mxu0 %vm5705_vm7, %v10011_v35 }
 0x85f   : > { %v8505_v23 = vadd.f32 %v8486_v6, %v18468_v30  ;;  %v13578_v12 = vpop.f32.mrb[241].mxu1  ;;  %13890 = vmatprep.mubr.msk.bf16.mxu0 %vm14167_vm2, %v19261_v31  ;;  %13961 = vmatpush3.bf16.msra.mxu0 %v10436_v26  ;;  %v9803_v5 = vor.u32 %v9801_v29, %v9799_v27 }
 0x860   : > { %v8489_v18 = vpop.f32.mrb[242].mxu1 }
 0x861   : > { %v13579_v37 = vpop.f32.mrb[243].mxu1  ;;  %v8988_v56 = vpop.f32.mrb[28].mxu0  ;;  %v18632_v48 = vadd.f32 %v8659_v22, %v8505_v23  ;;  %v9796_v22 = vor.u32 %v9795_v61, %v9791_v3  ;;  %v10016_v18 = vrot.slane %v18542_v7, 1  ;;  %v9813_v3 = vrot.slane %v9811_v46, 1 }
 0x862   : > { %v13664_v41 = vpop.f32.mrb[29].mxu0 }
 0x863   : > { %v8991_v63 = vpop.f32.mrb[30].mxu0  ;;  %13805 = vmatmul.mubr.msk.bf16.gmra.mrb[92].mxu1 %vm5705_vm7, %v9469_v4  ;;  %v9800_v53 = vsel %vm731_vm3, %v9796_v22, %v9799_v27 }
 0x864   : > { %v13665_v30 = vpop.f32.mrb[31].mxu0  ;;  %13848 = vmatprep.mubr.msk.bf16.mxu1 %vm14167_vm2, %v19261_v31  ;;  %v10017_v63 = vsel %vm1068_vm5, %v10014_v60, %v10016_v18 }
 0x866   : > { %v8807_v19 = vpop.f32.mrb[244].mxu1  ;;  %13891 = vmatmul.mubr.msk.bf16.gmra.mrb[136].mxu0 %vm5705_vm7, %v10013_v39 }
 0x867   : > { %v8874_v17 = vadd.f32 %v8807_v19, %v18493_v21  ;;  %v13622_v4 = vpop.f32.mrb[245].mxu1  ;;  %13894 = vmatprep.mubr.msk.bf16.mxu0 %vm14167_vm2, %v19261_v31  ;;  %v9804_v21 = vshll.u32 %v18503_v33, 16  ;;  %v10018_v33 = vrot.slane %v18559_v49, 1 }
 0x868   : > { %v8810_v34 = vpop.f32.mrb[246].mxu1 }
 0x869   : > { %v8875_v45 = vadd.f32 %v8810_v34, %v18497_v54  ;;  %v13623_v51 = vpop.f32.mrb[247].mxu1  ;;  %v8995_v1 = vpop.f32.mrb[32].mxu0  ;;  %v18650_v58 = vadd.f32 %v8980_v11, %v8874_v17  ;;  %v9806_v26 = vrot.slane %v9804_v21, 1 }
 0x86a   : > { %v13668_v55 = vpop.f32.mrb[33].mxu0  ;;  %v9818_v51 = vshll.u32 %v18542_v7, 16 }
 0x86b   : > { %v8998_v52 = vpop.f32.mrb[34].mxu0  ;;  %13849 = vmatmul.mubr.msk.bf16.vlgmr.msra.gmra.mrb[96].mxu1 %vm5705_vm7, %v9800_v53  ;;  %v18655_v0 = vadd.f32 %v8983_v28, %v8875_v45  ;;  %v9807_v41 = vsel %vm731_vm3, %v9803_v5, %v9806_v26  ;;  %v9825_v5 = vshll.u32 %v18559_v49, 16 }
 0x86c   : > { %13923 = vmatpush3.bf16.msra.mxu1 %v10227_v15  ;;  %v13669_v54 = vpop.f32.mrb[35].mxu0  ;;  %13852 = vmatprep.mubr.msk.bf16.mxu1 %vm14167_vm2, %v19261_v31  ;;  %v9820_v53 = vrot.slane %v9818_v51, 1  ;;  %v10024_v51 = vrot.slane %v18491_v40, 1 }
 0x86d   : > { %13998 = vmatprep.subr.bf16.mxu1 %v19261_v31 }
 0x86e   : > { %v8815_v11 = vpop.f32.mrb[248].mxu1  ;;  %13895 = vmatmul.mubr.msk.bf16.gmra.mrb[140].mxu0 %vm5705_vm7, %v10015_v44 }
 0x86f   : > { %v8876_v35 = vadd.f32 %v8815_v11, %v18521_v38  ;;  %v13626_v6 = vpop.f32.mrb[249].mxu1  ;;  %13898 = vmatprep.mubr.msk.bf16.mxu0 %vm14167_vm2, %v19261_v31 }
 0x870   : > { %v8818_v28 = vpop.f32.mrb[250].mxu1 }
 0x871   : > { %v13627_v23 = vpop.f32.mrb[251].mxu1  ;;  %v9003_v12 = vpop.f32.mrb[36].mxu0  ;;  %v18667_v37 = vadd.f32 %v8988_v56, %v8876_v35  ;;  %v9810_v56 = vor.u32 %v9808_v25, %v9806_v26  ;;  %v10020_v35 = vrot.slane %v18573_v47, 1 }
 0x872   : > { %v13672_v16 = vpop.f32.mrb[37].mxu0 }
 0x873   : > { %v9006_v61 = vpop.f32.mrb[38].mxu0  ;;  %13853 = vmatmul.mubr.msk.bf16.gmra.mrb[100].mxu1 %vm5705_vm7, %v9807_v41  ;;  %v9814_v45 = vsel %vm731_vm3, %v9810_v56, %v9813_v3  ;;  %v9827_v41 = vrot.slane %v9825_v5, 1 }
 0x874   : > { %v13673_v38 = vpop.f32.mrb[39].mxu0  ;;  %13856 = vmatprep.mubr.msk.bf16.mxu1 %vm14167_vm2, %v19261_v31 }
 0x875   : > { %v10022_v38 = vrot.slane %v18476_v36, 1  ;;  %v9829_v36 = vshrl.u32 %v18559_v49, 16 }
 0x876   : > { %v8822_v30 = vpop.f32.mrb[252].mxu1  ;;  %13899 = vmatmul.mubr.msk.bf16.gmra.mrb[144].mxu0 %vm5705_vm7, %v10017_v63 }
 0x877   : > { %v8877_v39 = vadd.f32 %v8822_v30, %v18536_v42  ;;  %v13630_v19 = vpop.f32.mrb[253].mxu1  ;;  %13902 = vmatprep.mubr.msk.bf16.mxu0 %vm14167_vm2, %v19261_v31 }
 0x878   : > { %v8825_v22 = vpop.f32.mrb[254].mxu1  ;;  %v9832_v19 = vshll.u32 %v18573_v47, 16 }
 0x879   : > { %v8878_v27 = vadd.f32 %v8825_v22, %v18540_v43  ;;  %v13631_v57 = vpop.f32.mrb[255].mxu1  ;;  %v9011_v17 = vpop.f32.mrb[40].mxu0  ;;  %v18682_v4 = vadd.f32 %v8995_v1, %v8877_v39  ;;  %v10019_v43 = vsel %vm1068_vm5, %v10016_v18, %v10018_v33  ;;  %v9815_v1 = vshrl.u32 %v18525_v10, 16 }
 0x87a   : > { %v13676_v34 = vpop.f32.mrb[41].mxu0  ;;  %v9831_v17 = vor.u32 %v9829_v36, %v9827_v41 }
 0x87b   : > { %v9013_v15 = vpop.f32.mrb[42].mxu0  ;;  %13857 = vmatmul.mubr.msk.bf16.gmra.mrb[104].mxu1 %vm5705_vm7, %v9814_v45  ;;  %v18687_v42 = vadd.f32 %v8998_v52, %v8878_v27  ;;  %v9817_v44 = vor.u32 %v9815_v1, %v9813_v3 }
 0x87c   : > { %v13677_v60 = vpop.f32.mrb[43].mxu0  ;;  %13860 = vmatprep.mubr.msk.bf16.mxu1 %vm14167_vm2, %v19261_v31 }
 0x87d   : > { %v9821_v10 = vsel %vm731_vm3, %v9817_v44, %v9820_v53  ;;  %v9836_v60 = vshrl.u32 %v18573_v47, 16 }
 0x87e   : > { %v8830_v55 = vpop.f32.mrb[0].mxu1  ;;  %13903 = vmatmul.mubr.msk.bf16.gmra.mrb[148].mxu0 %vm5705_vm7, %v10019_v43 }
 0x87f   : > { %v8879_v21 = vadd.f32 %v8830_v55, %v18553_v59  ;;  %v13634_v54 = vpop.f32.mrb[1].mxu1  ;;  %13906 = vmatprep.mubr.msk.bf16.mxu0 %vm14167_vm2, %v19261_v31 }
 0x880   : > { %v8833_v52 = vpop.f32.mrb[2].mxu1 }
 0x881   : > { %v8880_v11 = vadd.f32 %v8833_v52, %v18557_v62  ;;  %v13635_v29 = vpop.f32.mrb[3].mxu1  ;;  %v9018_v26 = vpop.f32.mrb[44].mxu0  ;;  %v18699_v6 = vadd.f32 %v9003_v12, %v8879_v21  ;;  %v10021_v62 = vsel %vm1068_vm5, %v10018_v33, %v10020_v35  ;;  %v9822_v12 = vshrl.u32 %v18542_v7, 16 }
 0x882   : > { %v13680_v28 = vpop.f32.mrb[45].mxu0  ;;  %v10023_v7 = vsel %vm1068_vm5, %v10020_v35, %v10022_v38  ;;  %v9834_v33 = vrot.slane %v9832_v19, 1  ;;  %v10171_v29 = vld [vmem:[#allocation3 + $0x54] sm:$0xff] }
 0x883   : > { %v9021_v59 = vpop.f32.mrb[46].mxu0  ;;  %13861 = vmatmul.mubr.msk.bf16.gmra.mrb[108].mxu1 %vm5705_vm7, %v9821_v10  ;;  %v18704_v23 = vadd.f32 %v9006_v61, %v8880_v11  ;;  %v9824_v25 = vor.u32 %v9822_v12, %v9820_v53 }
 0x884   : > { %v13681_v18 = vpop.f32.mrb[47].mxu0  ;;  %13864 = vmatprep.mubr.msk.bf16.mxu1 %vm14167_vm2, %v19261_v31  ;;  %v9835_v21 = vsel %vm731_vm3, %v9831_v17, %v9834_v33  ;;  %v9838_v47 = vor.u32 %v9836_v60, %v9834_v33 }
 0x885   : > { %v9828_v39 = vsel %vm731_vm3, %v9824_v25, %v9827_v41 }
 0x886   : > { %v8838_v16 = vpop.f32.mrb[4].mxu1  ;;  %13907 = vmatmul.mubr.msk.bf16.gmra.mrb[152].mxu0 %vm5705_vm7, %v10021_v62  ;;  %v9842_v5 = vsel %vm731_vm3, %v9838_v47, %v18499_v13 }
 0x887   : > { %v13638_v46 = vpop.f32.mrb[5].mxu1  ;;  %13910 = vmatprep.mubr.msk.bf16.mxu0 %vm14167_vm2, %v19261_v31 }
 0x888   : > { %v8840_v61 = vpop.f32.mrb[6].mxu1 }
 0x889   : > { %v8881_v63 = vadd.f32 %v8840_v61, %v18571_v9  ;;  %v13639_v30 = vpop.f32.mrb[7].mxu1  ;;  %v9026_v56 = vpop.f32.mrb[48].mxu0 }
 0x88a   : > { %v13684_v3 = vpop.f32.mrb[49].mxu0 }
 0x88b   : > { %v9028_v22 = vpop.f32.mrb[50].mxu0  ;;  %13865 = vmatmul.mubr.msk.bf16.gmra.mrb[112].mxu1 %vm5705_vm7, %v9828_v39  ;;  %v18719_v27 = vadd.f32 %v9013_v15, %v8881_v63  ;;  %v10175_v63 = vld [vmem:[#allocation3 + $0x74] sm:$0xff] }
 0x88c   : > { %v13685_v57 = vpop.f32.mrb[51].mxu0  ;;  %13868 = vmatprep.mubr.msk.bf16.mxu1 %vm14167_vm2, %v19261_v31 }
 0x88e   : > { %v8845_v9 = vpop.f32.mrb[8].mxu1  ;;  %13911 = vmatmul.mubr.msk.bf16.gmra.mrb[156].mxu0 %vm5705_vm7, %v10023_v7 }
 0x88f   : > { %v8882_v34 = vadd.f32 %v8845_v9, %v18584_v14  ;;  %v13642_v45 = vpop.f32.mrb[9].mxu1  ;;  %13914 = vmatprep.mubr.msk.bf16.mxu0 %vm14167_vm2, %v19261_v31  ;;  %v10025_v14 = vsel %vm1068_vm5, %v10022_v38, %v10024_v51 }
 0x890   : > { %v8848_v15 = vpop.f32.mrb[10].mxu1 }
 0x891   : > { %v8883_v43 = vadd.f32 %v8848_v15, %v18588_v50  ;;  %v13643_v55 = vpop.f32.mrb[11].mxu1  ;;  %v9033_v49 = vpop.f32.mrb[52].mxu0  ;;  %v18731_v1 = vadd.f32 %v9018_v26, %v8882_v34  ;;  %v10172_v50 = vld [vmem:[#allocation3 + $0x5c] sm:$0xff]  ;;  %v10174_v26 = vld [vmem:[#allocation3 + $0x6c] sm:$0xff] }
 0x892   : > { %v13688_v53 = vpop.f32.mrb[53].mxu0  ;;  %v18743_v28 = vpack.c.bf16 %v10172_v50, %v10171_v29  ;;  %v10177_v55 = vld [vmem:[#allocation3 + $0x84] sm:$0xff] }
 0x893   : > { %v9036_v54 = vpop.f32.mrb[54].mxu0  ;;  %13869 = vmatmul.mubr.msk.bf16.gmra.mrb[116].mxu1 %vm5705_vm7, %v9835_v21  ;;  %v18736_v52 = vadd.f32 %v9021_v59, %v8883_v43  ;;  %v10173_v59 = vld [vmem:[#allocation3 + $0x64] sm:$0xff] }
 0x894   : > { %v13689_v44 = vpop.f32.mrb[55].mxu0  ;;  %13872 = vmatprep.mubr.msk.bf16.mxu1 %vm14167_vm2, %v19261_v31  ;;  %v18748_v12 = vpack.c.bf16 %v10174_v26, %v10173_v59  ;;  %v10348_v38 = vshll.u32 %v18743_v28, 16  ;;  %v10346_v9 = vshrl.u32 %v18743_v28, 16  ;;  %v10180_v59 = vld [vmem:[#allocation3 + $0x9c] sm:$0xff] }
 0x896   : > { %v8853_v11 = vpop.f32.mrb[12].mxu1  ;;  %13915 = vmatmul.mubr.msk.bf16.gmra.mrb[160].mxu0 %vm5705_vm7, %v10025_v14  ;;  %v10352_v13 = vshll.u32 %v18748_v12, 16  ;;  %v10350_v39 = vrot.slane %v10348_v38, 1  ;;  %v10356_v50 = vshrl.u32 %v18748_v12, 16  ;;  %v10179_v38 = vld [vmem:[#allocation3 + $0x94] sm:$0xff] }
 0x897   : > { %v13646_v35 = vpop.f32.mrb[13].mxu1  ;;  %13918 = vmatprep.mubr.msk.bf16.mxu0 %vm14167_vm2, %v19261_v31 }
 0x898   : > { %v8855_v10 = vpop.f32.mrb[14].mxu1  ;;  %v10354_v17 = vrot.slane %v10352_v13, 1 }
 0x899   : > { %v8884_v18 = vadd.f32 %v8855_v10, %v18600_v32  ;;  %v13647_v62 = vpop.f32.mrb[15].mxu1  ;;  %v9041_v16 = vpop.f32.mrb[56].mxu0  ;;  %v10176_v32 = vld [vmem:[#allocation3 + $0x7c] sm:$0xff] }
 0x89a   : > { %v13692_v41 = vpop.f32.mrb[57].mxu0  ;;  %v11407_v62 = vld [vmem:[%s19224_s3 + $0x68] sm:$0xf] }
 0x89b   : > { %13873 = vmatmul.mubr.msk.bf16.gmra.mrb[120].mxu1 %vm5705_vm7, %v9842_v5  ;;  %v9044_v46 = vpop.f32.mrb[58].mxu0  ;;  %v18752_v61 = vadd.f32 %v9028_v22, %v8884_v18  ;;  %v18761_v22 = vpack.c.bf16 %v10176_v32, %v10175_v63  ;;  %v18799_v63 = vpack.c.bf16 %v10180_v59, %v10179_v38 }
 0x89c   : > { %v13693_v25 = vpop.f32.mrb[59].mxu0  ;;  %13876 = vmatprep.mubr.msk.bf16.mxu1 %vm14167_vm2, %v19261_v31 }
 0x89d   : > { %v10359_v43 = vshll.u32 %v18761_v22, 16  ;;  %v10363_v46 = vshrl.u32 %v18761_v22, 16 }
 0x89e   : > { %v8860_v30 = vpop.f32.mrb[16].mxu1  ;;  %13919 = vmatmul.mubr.msk.bf16.gmra.mrb[164].mxu0 %vm5705_vm7, %v10024_v51  ;;  %v10351_v51 = vor.u32 %v10350_v39, %v10346_v9 }
 0x89f   : > { %v8885_v56 = vadd.f32 %v8860_v30, %v18613_v2  ;;  %v13650_v3 = vpop.f32.mrb[17].mxu1  ;;  %13962 = vmatprep.mubr.msk.bf16.mxu0 %vm14167_vm2, %v19261_v31  ;;  %v9850_v2 = vshrl.u32 %v18491_v40, 16  ;;  %v10361_v11 = vrot.slane %v10359_v43, 1 }
 0x8a0   : > { %v8863_v19 = vpop.f32.mrb[18].mxu1  ;;  %v10609_v3 = vsel %vm5886_vm6, %v11407_v62, 0 }
 0x8a1   : > { %v8886_v7 = vadd.f32 %v8863_v19, %v18620_v24  ;;  %v13651_v57 = vpop.f32.mrb[19].mxu1  ;;  %v9362_v36 = vpop.f32.mrb[60].mxu0  ;;  %v18765_v33 = vadd.f32 %v9033_v49, %v8885_v56  ;;  %v10355_v24 = vsel %vm731_vm3, %v10351_v51, %v10354_v17  ;;  %v10178_v49 = vld [vmem:[#allocation3 + $0x8c] sm:$0xff]  ;;  %v9852_v40 = vor.u32 %v9850_v2, %v18509_v8 }
 0x8a2   : > { %v13736_v34 = vpop.f32.mrb[61].mxu0  ;;  %v18781_v14 = vpack.c.bf16 %v10178_v49, %v10177_v55  ;;  %v10358_v8 = vor.u32 %v10356_v50, %v10354_v17  ;;  %v10365_v39 = vor.u32 %v10363_v46, %v10361_v11  ;;  %v10373_v17 = vshll.u32 %v18799_v63, 16  ;;  %v10182_v2 = vld [vmem:[#allocation3 + $0xac] sm:$0xff] }
 0x8a3   : > { %v9365_v45 = vpop.f32.mrb[62].mxu0  ;;  %13877 = vmatmul.mubr.msk.bf16.gmra.mrb[124].mxu1 %vm5705_vm7, %v18519_v20  ;;  %v18770_v15 = vadd.f32 %v9036_v54, %v8886_v7 }
 0x8a4   : > { %v13737_v60 = vpop.f32.mrb[63].mxu0  ;;  %13880 = vmatprep.mubr.msk.bf16.mxu1 %vm14167_vm2, %v19261_v31  ;;  %v10366_v10 = vshll.u32 %v18781_v14, 16  ;;  %v10362_v5 = vsel %vm731_vm3, %v10358_v8, %v10361_v11  ;;  %v10370_v55 = vshrl.u32 %v18781_v14, 16  ;;  %v10375_v49 = vrot.slane %v10373_v17, 1  ;;  %v10183_v8 = vld [vmem:[#allocation3 + $0xb4] sm:$0xff] }
 0x8a6   : > { %v8868_v53 = vpop.f32.mrb[20].mxu1  ;;  %13963 = vmatmul.mubr.msk.bf16.vlgmr.msra.gmra.mrb[168].mxu0 %vm5705_vm7, %v10355_v24  ;;  %v10368_v13 = vrot.slane %v10366_v10, 1 }
 0x8a7   : > { %v8887_v20 = vadd.f32 %v8868_v53, %v18632_v48  ;;  %v13654_v21 = vpop.f32.mrb[21].mxu1  ;;  %13966 = vmatprep.mubr.msk.bf16.mxu0 %vm14167_vm2, %v19261_v31 }
 0x8a8   : > { %v8871_v54 = vpop.f32.mrb[22].mxu1 }
 0x8a9   : > { %v13655_v44 = vpop.f32.mrb[23].mxu1  ;;  %v9370_v47 = vpop.f32.mrb[64].mxu0  ;;  %v18784_v29 = vadd.f32 %v9041_v16, %v8887_v20 }
 0x8aa   : > { %v13740_v26 = vpop.f32.mrb[65].mxu0 }
 0x8ab   : > { %v9373_v35 = vpop.f32.mrb[66].mxu0  ;;  %13881 = vmatmul.mubr.msk.bf16.gmra.mrb[128].mxu1 %vm5705_vm7, %v9852_v40 }
 0x8ac   : > { %v13741_v48 = vpop.f32.mrb[67].mxu0  ;;  %13924 = vmatprep.mubr.msk.bf16.mxu1 %vm14167_vm2, %v19261_v31 }
 0x8ad   : > { %v10184_v48 = vld [vmem:[#allocation3 + $0xbc] sm:$0xff] }
 0x8ae   : > { %v9153_v18 = vpop.f32.mrb[24].mxu1  ;;  %13967 = vmatmul.mubr.msk.bf16.gmra.mrb[172].mxu0 %vm5705_vm7, %v10362_v5  ;;  %v18838_v38 = vpack.c.bf16 %v10184_v48, %v10183_v8 }
 0x8af   : > { %v9220_v16 = vadd.f32 %v9153_v18, %v18650_v58  ;;  %v13698_v41 = vpop.f32.mrb[25].mxu1  ;;  %13970 = vmatprep.mubr.msk.bf16.mxu0 %vm14167_vm2, %v19261_v31  ;;  %v10377_v18 = vshrl.u32 %v18799_v63, 16 }
 0x8b0   : > { %v9156_v25 = vpop.f32.mrb[26].mxu1 }
 0x8b1   : > { %v9221_v32 = vadd.f32 %v9156_v25, %v18655_v0  ;;  %v13699_v30 = vpop.f32.mrb[27].mxu1  ;;  %v9377_v56 = vpop.f32.mrb[68].mxu0  ;;  %v18803_v19 = vadd.f32 %v9362_v36, %v9220_v16  ;;  %v10369_v0 = vsel %vm731_vm3, %v10365_v39, %v10368_v13  ;;  %v10181_v36 = vld [vmem:[#allocation3 + $0xa4] sm:$0xff] }
 0x8b2   : > { %v13744_v58 = vpop.f32.mrb[69].mxu0  ;;  %v18818_v53 = vpack.c.bf16 %v10182_v2, %v10181_v36 }
 0x8b3   : > { %v9380_v7 = vpop.f32.mrb[70].mxu0  ;;  %13925 = vmatmul.mubr.msk.bf16.vlgmr.msra.gmra.mrb[132].mxu1 %vm5705_vm7, %v18743_v28  ;;  %v18807_v57 = vadd.f32 %v9365_v45, %v9221_v32  ;;  %v10186_v32 = vld [vmem:[#allocation3 + $0xcc] sm:$0xff] }
 0x8b4   : > { %13999 = vmatpush3.bf16.msra.mxu1 %v10609_v3  ;;  %v13745_v9 = vpop.f32.mrb[71].mxu0  ;;  %13928 = vmatprep.mubr.msk.bf16.mxu1 %vm14167_vm2, %v19261_v31  ;;  %v10380_v50 = vshll.u32 %v18818_v53, 16 }
 0x8b6   : > { %v9161_v34 = vpop.f32.mrb[28].mxu1  ;;  %13971 = vmatmul.mubr.msk.bf16.gmra.mrb[176].mxu0 %vm5705_vm7, %v10369_v0  ;;  %v10382_v62 = vrot.slane %v10380_v50, 1 }
 0x8b7   : > { %v9222_v51 = vadd.f32 %v9161_v34, %v18667_v37  ;;  %v13702_v60 = vpop.f32.mrb[29].mxu1  ;;  %13974 = vmatprep.mubr.msk.bf16.mxu0 %vm14167_vm2, %v19261_v31  ;;  %v10372_v37 = vor.u32 %v10370_v55, %v10368_v13 }
 0x8b8   : > { %v9164_v45 = vpop.f32.mrb[30].mxu1 }
 0x8b9   : > { %v13703_v24 = vpop.f32.mrb[31].mxu1  ;;  %v9385_v43 = vpop.f32.mrb[72].mxu0  ;;  %v18820_v40 = vadd.f32 %v9370_v47, %v9222_v51  ;;  %v10376_v44 = vsel %vm731_vm3, %v10372_v37, %v10375_v49 }
 0x8ba   : > { %v13748_v20 = vpop.f32.mrb[73].mxu0 }
 0x8bb   : > { %v9388_v21 = vpop.f32.mrb[74].mxu0  ;;  %13929 = vmatmul.mubr.msk.bf16.gmra.mrb[136].mxu1 %vm5705_vm7, %v18748_v12 }
 0x8bc   : > { %v13749_v54 = vpop.f32.mrb[75].mxu0  ;;  %13932 = vmatprep.mubr.msk.bf16.mxu1 %vm14167_vm2, %v19261_v31 }
 0x8be   : > { %v9168_v11 = vpop.f32.mrb[32].mxu1  ;;  %13975 = vmatmul.mubr.msk.bf16.gmra.mrb[180].mxu0 %vm5705_vm7, %v10376_v44 }
 0x8bf   : > { %v9223_v47 = vadd.f32 %v9168_v11, %v18682_v4  ;;  %v13706_v26 = vpop.f32.mrb[33].mxu1  ;;  %13978 = vmatprep.mubr.msk.bf16.mxu0 %vm14167_vm2, %v19261_v31  ;;  %v10379_v4 = vor.u32 %v10377_v18, %v10375_v49 }
 0x8c0   : > { %v9171_v35 = vpop.f32.mrb[34].mxu1 }
 0x8c1   : > { %v9224_v10 = vadd.f32 %v9171_v35, %v18687_v42  ;;  %v13707_v5 = vpop.f32.mrb[35].mxu1  ;;  %v9393_v59 = vpop.f32.mrb[76].mxu0  ;;  %v18834_v16 = vadd.f32 %v9377_v56, %v9223_v47  ;;  %v10185_v42 = vld [vmem:[#allocation3 + $0xc4] sm:$0xff]  ;;  %v10383_v30 = vsel %vm731_vm3, %v10379_v4, %v10382_v62  ;;  %v10387_v56 = vshll.u32 %v18838_v38, 16 }
 0x8c2   : > { %v13752_v41 = vpop.f32.mrb[77].mxu0  ;;  %v18851_v9 = vpack.c.bf16 %v10186_v32, %v10185_v42 }
 0x8c3   : > { %v9395_v46 = vpop.f32.mrb[78].mxu0  ;;  %13933 = vmatmul.mubr.msk.bf16.gmra.mrb[140].mxu1 %vm5705_vm7, %v18761_v22  ;;  %v18840_v25 = vadd.f32 %v9380_v7, %v9224_v10  ;;  %v10384_v7 = vshrl.u32 %v18818_v53, 16  ;;  %v10389_v51 = vrot.slane %v10387_v56, 1 }
 0x8c4   : > { %v13753_v13 = vpop.f32.mrb[79].mxu0  ;;  %13936 = vmatprep.mubr.msk.bf16.mxu1 %vm14167_vm2, %v19261_v31  ;;  %v10394_v55 = vshll.u32 %v18851_v9, 16  ;;  %v10398_v5 = vshrl.u32 %v18851_v9, 16 }
 0x8c5   : > { %v10386_v2 = vor.u32 %v10384_v7, %v10382_v62 }
 0x8c6   : > { %v9176_v3 = vpop.f32.mrb[36].mxu1  ;;  %13979 = vmatmul.mubr.msk.bf16.gmra.mrb[184].mxu0 %vm5705_vm7, %v10383_v30  ;;  %v10396_v50 = vrot.slane %v10394_v55, 1 }
 0x8c7   : > { %v9225_v39 = vadd.f32 %v9176_v3, %v18699_v6  ;;  %v13710_v58 = vpop.f32.mrb[37].mxu1  ;;  %13982 = vmatprep.mubr.msk.bf16.mxu0 %vm14167_vm2, %v19261_v31  ;;  %v10391_v6 = vshrl.u32 %v18838_v38, 16  ;;  %v10390_v37 = vsel %vm731_vm3, %v10386_v2, %v10389_v51 }
 0x8c8   : > { %v9179_v0 = vpop.f32.mrb[38].mxu1  ;;  %v10400_v13 = vor.u32 %v10398_v5, %v10396_v50 }
 0x8c9   : > { %v9226_v17 = vadd.f32 %v9179_v0, %v18704_v23  ;;  %v13711_v34 = vpop.f32.mrb[39].mxu1  ;;  %v9400_v36 = vpop.f32.mrb[80].mxu0  ;;  %v18854_v60 = vadd.f32 %v9385_v43, %v9225_v39  ;;  %v10187_v23 = vld [vmem:[#allocation3 + $0xd4] sm:$0xf]  ;;  %v10393_v44 = vor.u32 %v10391_v6, %v10389_v51 }
 0x8ca   : > { %v13756_v45 = vpop.f32.mrb[81].mxu0  ;;  %v18868_v11 = vpack.c.bf16 %v10187_v23, %v10187_v23 }
 0x8cb   : > { %v9403_v24 = vpop.f32.mrb[82].mxu0  ;;  %13937 = vmatmul.mubr.msk.bf16.gmra.mrb[144].mxu1 %vm5705_vm7, %v18781_v14  ;;  %v18860_v49 = vadd.f32 %v9388_v21, %v9226_v17  ;;  %v10397_v10 = vsel %vm731_vm3, %v10393_v44, %v10396_v50 }
 0x8cc   : > { %v13757_v20 = vpop.f32.mrb[83].mxu0  ;;  %13940 = vmatprep.mubr.msk.bf16.mxu1 %vm14167_vm2, %v19261_v31  ;;  %v10401_v59 = vshll.u32 %v18868_v11, 16 }
 0x8ce   : > { %v9184_v43 = vpop.f32.mrb[40].mxu1  ;;  %13983 = vmatmul.mubr.msk.bf16.gmra.mrb[188].mxu0 %vm5705_vm7, %v10390_v37  ;;  %v10403_v42 = vrot.slane %v10401_v59, 1 }
 0x8cf   : > { %v13714_v54 = vpop.f32.mrb[41].mxu1  ;;  %13986 = vmatprep.mubr.msk.bf16.mxu0 %vm14167_vm2, %v19261_v31 }
 0x8d0   : > { %v9186_v21 = vpop.f32.mrb[42].mxu1 }
 0x8d1   : > { %v9227_v47 = vadd.f32 %v9186_v21, %v18719_v27  ;;  %v13715_v26 = vpop.f32.mrb[43].mxu1  ;;  %v9408_v35 = vpop.f32.mrb[84].mxu0 }
 0x8d2   : > { %v13760_v8 = vpop.f32.mrb[85].mxu0 }
 0x8d3   : > { %v9410_v48 = vpop.f32.mrb[86].mxu0  ;;  %13941 = vmatmul.mubr.msk.bf16.gmra.mrb[148].mxu1 %vm5705_vm7, %v18799_v63  ;;  %v18876_v18 = vadd.f32 %v9395_v46, %v9227_v47 }
 0x8d4   : > { %v13761_v62 = vpop.f32.mrb[87].mxu0  ;;  %13944 = vmatprep.mubr.msk.bf16.mxu1 %vm14167_vm2, %v19261_v31 }
 0x8d6   : > { %v9191_v27 = vpop.f32.mrb[44].mxu1  ;;  %13987 = vmatmul.mubr.msk.bf16.gmra.mrb[192].mxu0 %vm5705_vm7, %v10397_v10 }
 0x8d7   : > { %v9228_v41 = vadd.f32 %v9191_v27, %v18731_v1  ;;  %v13718_v4 = vpop.f32.mrb[45].mxu1  ;;  %13990 = vmatprep.mubr.msk.bf16.mxu0 %vm14167_vm2, %v19261_v31  ;;  %v10404_v1 = vsel %vm731_vm3, %v10400_v13, %v10403_v42 }
 0x8d8   : > { %v9194_v32 = vpop.f32.mrb[46].mxu1 }
 0x8d9   : > { %v9229_v30 = vadd.f32 %v9194_v32, %v18736_v52  ;;  %v13719_v46 = vpop.f32.mrb[47].mxu1  ;;  %v9415_v56 = vpop.f32.mrb[88].mxu0  ;;  %v18885_v3 = vadd.f32 %v9400_v36, %v9228_v41  ;;  %v10405_v52 = vshrl.u32 %v18868_v11, 16  ;;  %v10565_v32 = vrot.slane %v18748_v12, 1 }
 0x8da   : > { %v13764_v39 = vpop.f32.mrb[89].mxu0 }
 0x8db   : > { %13945 = vmatmul.mubr.msk.bf16.gmra.mrb[152].mxu1 %vm5705_vm7, %v18818_v53  ;;  %v9418_v58 = vpop.f32.mrb[90].mxu0  ;;  %v18890_v7 = vadd.f32 %v9403_v24, %v9229_v30  ;;  %v10407_v6 = vor.u32 %v10405_v52, %v10403_v42 }
 0x8dc   : > { %13948 = vmatprep.mubr.msk.bf16.mxu1 %vm14167_vm2, %v19261_v31  ;;  %v13765_v0 = vpop.f32.mrb[91].mxu0 }
 0x8de   : > { %v9199_v17 = vpop.f32.mrb[48].mxu1  ;;  %13991 = vmatmul.mubr.msk.bf16.gmra.mrb[196].mxu0 %vm5705_vm7, %v10404_v1 }
 0x8df   : > { %v13722_v34 = vpop.f32.mrb[49].mxu1  ;;  %13994 = vmatprep.mubr.msk.bf16.mxu0 %vm14167_vm2, %v19261_v31 }
 0x8e0   : > { %v9201_v36 = vpop.f32.mrb[50].mxu1 }
 0x8e1   : > { %v9230_v2 = vadd.f32 %v9201_v36, %v18752_v61  ;;  %v13723_v51 = vpop.f32.mrb[51].mxu1  ;;  %v9423_v45 = vpop.f32.mrb[92].mxu0 }
 0x8e2   : > { %v13768_v24 = vpop.f32.mrb[93].mxu0 }
 0x8e3   : > { %13949 = vmatmul.mubr.msk.bf16.gmra.mrb[156].mxu1 %vm5705_vm7, %v18838_v38  ;;  %v9426_v55 = vpop.f32.mrb[94].mxu0  ;;  %v18901_v20 = vadd.f32 %v9410_v48, %v9230_v2 }
 0x8e4   : > { %v13769_v23 = vpop.f32.mrb[95].mxu0  ;;  %13952 = vmatprep.mubr.msk.bf16.mxu1 %vm14167_vm2, %v19261_v31 }
 0x8e6   : > { %v9206_v37 = vpop.f32.mrb[52].mxu1  ;;  %13995 = vmatmul.mubr.msk.bf16.gmra.mrb[200].mxu0 %vm5705_vm7, %v10407_v6 }
 0x8e7   : > { %v9231_v43 = vadd.f32 %v9206_v37, %v18765_v33  ;;  %v13726_v61 = vpop.f32.mrb[53].mxu1 }
 0x8e8   : > { %v9209_v54 = vpop.f32.mrb[54].mxu1 }
 0x8e9   : > { %v9232_v44 = vadd.f32 %v9209_v54, %v18770_v15  ;;  %v13727_v50 = vpop.f32.mrb[55].mxu1  ;;  %v9708_v21 = vpop.f32.mrb[96].mxu0  ;;  %v18908_v47 = vadd.f32 %v9415_v56, %v9231_v43  ;;  %v10564_v56 = vrot.slane %v18743_v28, 1  ;;  %v10567_v28 = vrot.slane %v18761_v22, 1 }
 0x8ea   : > { %v13812_v26 = vpop.f32.mrb[97].mxu0  ;;  %v10569_v22 = vrot.slane %v18781_v14, 1 }
 0x8eb   : > { %v9711_v35 = vpop.f32.mrb[98].mxu0  ;;  %13953 = vmatmul.mubr.msk.bf16.gmra.mrb[160].mxu1 %vm5705_vm7, %v18851_v9  ;;  %v18912_v8 = vadd.f32 %v9418_v58, %v9232_v44  ;;  %v10566_v52 = vsel %vm1068_vm5, %v10564_v56, %v10565_v32  ;;  %v10568_v23 = vsel %vm1068_vm5, %v10565_v32, %v10567_v28 }
 0x8ec   : > { %v13813_v48 = vpop.f32.mrb[99].mxu0  ;;  %13956 = vmatprep.mubr.msk.bf16.mxu1 %vm14167_vm2, %v19261_v31 }
 0x8ee   : > { %v9214_v33 = vpop.f32.mrb[56].mxu1 }
 0x8ef   : > { %v9233_v10 = vadd.f32 %v9214_v33, %v18784_v29  ;;  %v13730_v5 = vpop.f32.mrb[57].mxu1  ;;  %v10570_v33 = vsel %vm1068_vm5, %v10567_v28, %v10569_v22 }
 0x8f0   : > { %v9217_v15 = vpop.f32.mrb[58].mxu1 }
 0x8f1   : > { %v13731_v59 = vpop.f32.mrb[59].mxu1  ;;  %v9716_v62 = vpop.f32.mrb[100].mxu0  ;;  %v18917_v27 = vadd.f32 %v9423_v45, %v9233_v10 }
 0x8f2   : > { %v13816_v41 = vpop.f32.mrb[101].mxu0 }
 0x8f3   : > { %v9719_v4 = vpop.f32.mrb[102].mxu0  ;;  %13957 = vmatmul.mubr.msk.bf16.gmra.mrb[164].mxu1 %vm5705_vm7, %v18868_v11 }
 0x8f4   : > { %v13817_v13 = vpop.f32.mrb[103].mxu0  ;;  %14000 = vmatprep.mubr.msk.bf16.mxu1 %vm14167_vm2, %v19261_v31 }
 0x8f6   : > { %v9535_v42 = vpop.f32.mrb[60].mxu1 }
 0x8f7   : > { %v9602_v29 = vadd.f32 %v9535_v42, %v18803_v19  ;;  %v13774_v30 = vpop.f32.mrb[61].mxu1 }
 0x8f8   : > { %v9538_v46 = vpop.f32.mrb[62].mxu1 }
 0x8f9   : > { %v9603_v39 = vadd.f32 %v9538_v46, %v18807_v57  ;;  %v13775_v58 = vpop.f32.mrb[63].mxu1  ;;  %v9723_v1 = vpop.f32.mrb[104].mxu0  ;;  %v18927_v0 = vadd.f32 %v9708_v21, %v9602_v29 }
 0x8fa   : > { %v13820_v17 = vpop.f32.mrb[105].mxu0 }
 0x8fb   : > { %v9726_v34 = vpop.f32.mrb[106].mxu0  ;;  %14001 = vmatmul.mubr.msk.bf16.vlgmr.msra.gmra.mrb[168].mxu1 %vm5705_vm7, %v10566_v52  ;;  %v18931_v36 = vadd.f32 %v9711_v35, %v9603_v39 }
 0x8fc   : > { %v13821_v12 = vpop.f32.mrb[107].mxu0  ;;  %14004 = vmatprep.mubr.msk.bf16.mxu1 %vm14167_vm2, %v19261_v31 }
 0x8fe   : > { %v9543_v19 = vpop.f32.mrb[64].mxu1 }
 0x8ff   : > { %v9604_v57 = vadd.f32 %v9543_v19, %v18820_v40  ;;  %v13778_v2 = vpop.f32.mrb[65].mxu1 }
 0x900   : > { %v9546_v51 = vpop.f32.mrb[66].mxu1 }
 0x901   : > { %v13779_v45 = vpop.f32.mrb[67].mxu1  ;;  %v9731_v24 = vpop.f32.mrb[108].mxu0  ;;  %v18937_v6 = vadd.f32 %v9716_v62, %v9604_v57 }
 0x902   : > { %v13824_v55 = vpop.f32.mrb[109].mxu0 }
 0x903   : > { %v9734_v37 = vpop.f32.mrb[110].mxu0  ;;  %14005 = vmatmul.mubr.msk.bf16.gmra.mrb[172].mxu1 %vm5705_vm7, %v10568_v23 }
 0x904   : > { %v13825_v43 = vpop.f32.mrb[111].mxu0  ;;  %14008 = vmatprep.mubr.msk.bf16.mxu1 %vm14167_vm2, %v19261_v31 }
 0x906   : > { %v9550_v61 = vpop.f32.mrb[68].mxu1 }
 0x907   : > { %v9605_v40 = vadd.f32 %v9550_v61, %v18834_v16  ;;  %v13782_v54 = vpop.f32.mrb[69].mxu1  ;;  %v10571_v16 = vrot.slane %v18799_v63, 1 }
 0x908   : > { %v9553_v44 = vpop.f32.mrb[70].mxu1 }
 0x909   : > { %v9606_v50 = vadd.f32 %v9553_v44, %v18840_v25  ;;  %v13783_v21 = vpop.f32.mrb[71].mxu1  ;;  %v9739_v26 = vpop.f32.mrb[112].mxu0  ;;  %v18946_v35 = vadd.f32 %v9723_v1, %v9605_v40  ;;  %v10572_v29 = vsel %vm1068_vm5, %v10569_v22, %v10571_v16 }
 0x90a   : > { %v13828_v48 = vpop.f32.mrb[113].mxu0 }
 0x90b   : > { %v9741_v10 = vpop.f32.mrb[114].mxu0  ;;  %14009 = vmatmul.mubr.msk.bf16.gmra.mrb[176].mxu1 %vm5705_vm7, %v10570_v33  ;;  %v18950_v5 = vadd.f32 %v9726_v34, %v9606_v50 }
 0x90c   : > { %v13829_v15 = vpop.f32.mrb[115].mxu0  ;;  %14012 = vmatprep.mubr.msk.bf16.mxu1 %vm14167_vm2, %v19261_v31 }
 0x90e   : > { %v9558_v14 = vpop.f32.mrb[72].mxu1 }
 0x90f   : > { %v9607_v25 = vadd.f32 %v9558_v14, %v18854_v60  ;;  %v13786_v59 = vpop.f32.mrb[73].mxu1  ;;  %v10573_v60 = vrot.slane %v18818_v53, 1  ;;  %v10575_v53 = vrot.slane %v18838_v38, 1  ;;  %v10577_v38 = vrot.slane %v18851_v9, 1 }
 0x910   : > { %v9561_v62 = vpop.f32.mrb[74].mxu1  ;;  %v10579_v9 = vrot.slane %v18868_v11, 1 }
 0x911   : > { %v9608_v41 = vadd.f32 %v9561_v62, %v18860_v49  ;;  %v13787_v4 = vpop.f32.mrb[75].mxu1  ;;  %v9746_v13 = vpop.f32.mrb[116].mxu0  ;;  %v18957_v42 = vadd.f32 %v9731_v24, %v9607_v25  ;;  %v10574_v52 = vsel %vm1068_vm5, %v10571_v16, %v10573_v60  ;;  %v10578_v44 = vsel %vm1068_vm5, %v10575_v53, %v10577_v38 }
 0x912   : > { %v13832_v32 = vpop.f32.mrb[117].mxu0 }
 0x913   : > { %v9749_v30 = vpop.f32.mrb[118].mxu0  ;;  %14013 = vmatmul.mubr.msk.bf16.gmra.mrb[180].mxu1 %vm5705_vm7, %v10572_v29  ;;  %v18961_v46 = vadd.f32 %v9734_v37, %v9608_v41  ;;  %v10576_v37 = vsel %vm1068_vm5, %v10573_v60, %v10575_v53 }
 0x914   : > { %v13833_v56 = vpop.f32.mrb[119].mxu0  ;;  %14016 = vmatprep.mubr.msk.bf16.mxu1 %vm14167_vm2, %v19261_v31 }
 0x916   : > { %v9566_v63 = vpop.f32.mrb[76].mxu1 }
 0x917   : > { %v13790_v49 = vpop.f32.mrb[77].mxu1 }
 0x918   : > { %v9568_v39 = vpop.f32.mrb[78].mxu1 }
 0x919   : > { %v9609_v58 = vadd.f32 %v9568_v39, %v18876_v18  ;;  %v13791_v1 = vpop.f32.mrb[79].mxu1  ;;  %v9754_v17 = vpop.f32.mrb[120].mxu0 }
 0x91a   : > { %v13836_v34 = vpop.f32.mrb[121].mxu0 }
 0x91b   : > { %14017 = vmatmul.mubr.msk.bf16.gmra.mrb[184].mxu1 %vm5705_vm7, %v10574_v52  ;;  %v9756_v12 = vpop.f32.mrb[122].mxu0  ;;  %v18969_v19 = vadd.f32 %v9741_v10, %v9609_v58 }
 0x91c   : > { %14020 = vmatprep.mubr.msk.bf16.mxu1 %vm14167_vm2, %v19261_v31  ;;  %v13837_v28 = vpop.f32.mrb[123].mxu0 }
 0x91e   : > { %v9573_v57 = vpop.f32.mrb[80].mxu1 }
 0x91f   : > { %v9610_v2 = vadd.f32 %v9573_v57, %v18885_v3  ;;  %v13794_v18 = vpop.f32.mrb[81].mxu1 }
 0x920   : > { %v9576_v51 = vpop.f32.mrb[82].mxu1 }
 0x921   : > { %v9611_v45 = vadd.f32 %v9576_v51, %v18890_v7  ;;  %v13795_v24 = vpop.f32.mrb[83].mxu1  ;;  %v9761_v55 = vpop.f32.mrb[124].mxu0  ;;  %v18976_v23 = vadd.f32 %v9746_v13, %v9610_v2 }
 0x922   : > { %v13840_v43 = vpop.f32.mrb[125].mxu0 }
 0x923   : > { %14021 = vmatmul.mubr.msk.bf16.gmra.mrb[188].mxu1 %vm5705_vm7, %v10576_v37  ;;  %v9764_v61 = vpop.f32.mrb[126].mxu0  ;;  %v18980_v22 = vadd.f32 %v9749_v30, %v9611_v45 }
 0x924   : > { %14024 = vmatprep.mubr.msk.bf16.mxu1 %vm14167_vm2, %v19261_v31  ;;  %v13841_v3 = vpop.f32.mrb[127].mxu0 }
 0x926   : > { %v9581_v40 = vpop.f32.mrb[84].mxu1 }
 0x927   : > { %v13798_v7 = vpop.f32.mrb[85].mxu1 }
 0x928   : > { %v9583_v54 = vpop.f32.mrb[86].mxu1 }
 0x929   : > { %v9612_v50 = vadd.f32 %v9583_v54, %v18901_v20  ;;  %v13799_v21 = vpop.f32.mrb[87].mxu1  ;;  %v9769_v26 = vpop.f32.mrb[128].mxu0  ;;  %v10580_v20 = vsel %vm1068_vm5, %v10577_v38, %v10579_v9 }
 0x92a   : > { %v13844_v48 = vpop.f32.mrb[129].mxu0 }
 0x92b   : > { %14025 = vmatmul.mubr.msk.bf16.gmra.mrb[192].mxu1 %vm5705_vm7, %v10578_v44  ;;  %v9772_v33 = vpop.f32.mrb[130].mxu0  ;;  %v18988_v10 = vadd.f32 %v9756_v12, %v9612_v50 }
 0x92c   : > { %v13845_v15 = vpop.f32.mrb[131].mxu0  ;;  %14028 = vmatprep.mubr.msk.bf16.mxu1 %vm14167_vm2, %v19261_v31 }
 0x92e   : > { %v9588_v14 = vpop.f32.mrb[88].mxu1 }
 0x92f   : > { %v9613_v16 = vadd.f32 %v9588_v14, %v18908_v47  ;;  %v13802_v25 = vpop.f32.mrb[89].mxu1 }
 0x930   : > { %v9591_v59 = vpop.f32.mrb[90].mxu1 }
 0x931   : > { %v9614_v62 = vadd.f32 %v9591_v59, %v18912_v8  ;;  %v13803_v41 = vpop.f32.mrb[91].mxu1  ;;  %v10090_v4 = vpop.f32.mrb[132].mxu0  ;;  %v18996_v13 = vadd.f32 %v9761_v55, %v9613_v16 }
 0x932   : > { %v13888_v32 = vpop.f32.mrb[133].mxu0 }
 0x933   : > { %v10093_v29 = vpop.f32.mrb[134].mxu0  ;;  %14029 = vmatmul.mubr.msk.bf16.gmra.mrb[196].mxu1 %vm5705_vm7, %v10580_v20  ;;  %v18999_v30 = vadd.f32 %v9764_v61, %v9614_v62 }
 0x934   : > { %v13889_v11 = vpop.f32.mrb[135].mxu0  ;;  %14032 = vmatprep.mubr.msk.bf16.mxu1 %vm14167_vm2, %v19261_v31 }
 0x936   : > { %v9596_v47 = vpop.f32.mrb[92].mxu1 }
 0x937   : > { %v9615_v56 = vadd.f32 %v9596_v47, %v18917_v27  ;;  %v13806_v63 = vpop.f32.mrb[93].mxu1 }
 0x938   : > { %v9599_v60 = vpop.f32.mrb[94].mxu1 }
 0x939   : > { %v13807_v8 = vpop.f32.mrb[95].mxu1  ;;  %v10098_v49 = vpop.f32.mrb[136].mxu0  ;;  %v19004_v39 = vadd.f32 %v9769_v26, %v9615_v56 }
 0x93a   : > { %v13892_v58 = vpop.f32.mrb[137].mxu0 }
 0x93b   : > { %v10101_v1 = vpop.f32.mrb[138].mxu0  ;;  %14033 = vmatmul.mubr.msk.bf16.gmra.mrb[200].mxu1 %vm5705_vm7, %v10579_v9 }
 0x93c   : > { %v13893_v17 = vpop.f32.mrb[139].mxu0 }
 0x93e   : > { %v9917_v52 = vpop.f32.mrb[96].mxu1 }
 0x93f   : > { %v9984_v34 = vadd.f32 %v9917_v52, %v18927_v0  ;;  %v13850_v12 = vpop.f32.mrb[97].mxu1 }
 0x940   : > { %v9920_v28 = vpop.f32.mrb[98].mxu1 }
 0x941   : > { %v9985_v31 = vadd.f32 %v9920_v28, %v18931_v36  ;;  %v13851_v57 = vpop.f32.mrb[99].mxu1  ;;  %v10105_v27 = vpop.f32.mrb[140].mxu0  ;;  %v19009_v53 = vadd.f32 %v10090_v4, %v9984_v34 }
 0x942   : > { %v13896_v2 = vpop.f32.mrb[141].mxu0 }
 0x943   : > { %v10108_v18 = vpop.f32.mrb[142].mxu0  ;;  %v19011_v51 = vadd.f32 %v10093_v29, %v9985_v31 }
 0x944   : > { %v13897_v45 = vpop.f32.mrb[143].mxu0 }
 0x946   : > { %v9925_v24 = vpop.f32.mrb[100].mxu1 }
 0x947   : > { %v9986_v55 = vadd.f32 %v9925_v24, %v18937_v6  ;;  %v13854_v37 = vpop.f32.mrb[101].mxu1 }
 0x948   : > { %v9928_v43 = vpop.f32.mrb[102].mxu1 }
 0x949   : > { %v13855_v61 = vpop.f32.mrb[103].mxu1  ;;  %v10113_v0 = vpop.f32.mrb[144].mxu0  ;;  %v19014_v38 = vadd.f32 %v10098_v49, %v9986_v55 }
 0x94a   : > { %v13900_v3 = vpop.f32.mrb[145].mxu0 }
 0x94b   : > { %v10116_v36 = vpop.f32.mrb[146].mxu0 }
 0x94c   : > { %v13901_v40 = vpop.f32.mrb[147].mxu0 }
 0x94e   : > { %v9932_v7 = vpop.f32.mrb[104].mxu1 }
 0x94f   : > { %v9987_v54 = vadd.f32 %v9932_v7, %v18946_v35  ;;  %v13858_v44 = vpop.f32.mrb[105].mxu1 }
 0x950   : > { %v9935_v50 = vpop.f32.mrb[106].mxu1 }
 0x951   : > { %v9988_v21 = vadd.f32 %v9935_v50, %v18950_v5  ;;  %v13859_v26 = vpop.f32.mrb[107].mxu1  ;;  %v10121_v48 = vpop.f32.mrb[148].mxu0  ;;  %v19018_v33 = vadd.f32 %v10105_v27, %v9987_v54 }
 0x952   : > { %v13904_v6 = vpop.f32.mrb[149].mxu0 }
 0x953   : > { %v10123_v15 = vpop.f32.mrb[150].mxu0  ;;  %v19020_v9 = vadd.f32 %v10108_v18, %v9988_v21 }
 0x954   : > { %v13905_v14 = vpop.f32.mrb[151].mxu0 }
 0x956   : > { %v9940_v16 = vpop.f32.mrb[108].mxu1 }
 0x957   : > { %v9989_v25 = vadd.f32 %v9940_v16, %v18957_v42  ;;  %v13862_v59 = vpop.f32.mrb[109].mxu1 }
 0x958   : > { %v9943_v20 = vpop.f32.mrb[110].mxu1 }
 0x959   : > { %v9990_v35 = vadd.f32 %v9943_v20, %v18961_v46  ;;  %v13863_v62 = vpop.f32.mrb[111].mxu1  ;;  %v10128_v41 = vpop.f32.mrb[152].mxu0  ;;  %v19024_v4 = vadd.f32 %v10113_v0, %v9989_v25 }
 0x95a   : > { %v13908_v5 = vpop.f32.mrb[153].mxu0 }
 0x95b   : > { %v10131_v32 = vpop.f32.mrb[154].mxu0  ;;  %v19026_v29 = vadd.f32 %v10116_v36, %v9990_v35 }
 0x95c   : > { %v13909_v11 = vpop.f32.mrb[155].mxu0 }
 0x95e   : > { %v9948_v47 = vpop.f32.mrb[112].mxu1 }
 0x95f   : > { %v13866_v56 = vpop.f32.mrb[113].mxu1 }
 0x960   : > { %v9950_v63 = vpop.f32.mrb[114].mxu1 }
 0x961   : > { %v9991_v60 = vadd.f32 %v9950_v63, %v18969_v19  ;;  %v13867_v8 = vpop.f32.mrb[115].mxu1  ;;  %v10136_v42 = vpop.f32.mrb[156].mxu0 }
 0x962   : > { %v13912_v49 = vpop.f32.mrb[157].mxu0 }
 0x963   : > { %v10138_v58 = vpop.f32.mrb[158].mxu0  ;;  %v19029_v1 = vadd.f32 %v10123_v15, %v9991_v60 }
 0x964   : > { %v13913_v46 = vpop.f32.mrb[159].mxu0 }
 0x966   : > { %v9955_v17 = vpop.f32.mrb[116].mxu1 }
 0x967   : > { %v9992_v52 = vadd.f32 %v9955_v17, %v18976_v23  ;;  %v13870_v34 = vpop.f32.mrb[117].mxu1 }
 0x968   : > { %v9958_v12 = vpop.f32.mrb[118].mxu1 }
 0x969   : > { %v9993_v28 = vadd.f32 %v9958_v12, %v18980_v22  ;;  %v13871_v31 = vpop.f32.mrb[119].mxu1  ;;  %v10143_v57 = vpop.f32.mrb[160].mxu0  ;;  %v19033_v27 = vadd.f32 %v10128_v41, %v9992_v52 }
 0x96a   : > { %v13916_v2 = vpop.f32.mrb[161].mxu0 }
 0x96b   : > { %v10146_v19 = vpop.f32.mrb[162].mxu0  ;;  %v19035_v18 = vadd.f32 %v10131_v32, %v9993_v28 }
 0x96c   : > { %v13917_v45 = vpop.f32.mrb[163].mxu0 }
 0x96e   : > { %v9963_v24 = vpop.f32.mrb[120].mxu1 }
 0x96f   : > { %v13874_v55 = vpop.f32.mrb[121].mxu1 }
 0x970   : > { %v9965_v37 = vpop.f32.mrb[122].mxu1 }
 0x971   : > { %v9994_v43 = vadd.f32 %v9965_v37, %v18988_v10  ;;  %v13875_v61 = vpop.f32.mrb[123].mxu1  ;;  %v10151_v23 = vpop.f32.mrb[164].mxu0 }
 0x972   : > { %v13920_v0 = vpop.f32.mrb[165].mxu0 }
 0x973   : > { %v10154_v3 = vpop.f32.mrb[166].mxu0  ;;  %v19038_v36 = vadd.f32 %v10138_v58, %v9994_v43 }
 0x974   : > { %v13921_v22 = vpop.f32.mrb[167].mxu0 }
 0x976   : > { %v9970_v40 = vpop.f32.mrb[124].mxu1 }
 0x977   : > { %v9995_v7 = vadd.f32 %v9970_v40, %v18996_v13  ;;  %v13878_v54 = vpop.f32.mrb[125].mxu1 }
 0x978   : > { %v9973_v44 = vpop.f32.mrb[126].mxu1 }
 0x979   : > { %v9996_v50 = vadd.f32 %v9973_v44, %v18999_v30  ;;  %v13879_v21 = vpop.f32.mrb[127].mxu1  ;;  %v10472_v26 = vpop.f32.mrb[168].mxu0  ;;  %v19042_v48 = vadd.f32 %v10143_v57, %v9995_v7 }
 0x97a   : > { %v13964_v6 = vpop.f32.mrb[169].mxu0 }
 0x97b   : > { %v10475_v10 = vpop.f32.mrb[170].mxu0  ;;  %v19044_v15 = vadd.f32 %v10146_v19, %v9996_v50 }
 0x97c   : > { %v13965_v14 = vpop.f32.mrb[171].mxu0 }
 0x97e   : > { %v9978_v16 = vpop.f32.mrb[128].mxu1 }
 0x97f   : > { %v9997_v25 = vadd.f32 %v9978_v16, %v19004_v39  ;;  %v13882_v59 = vpop.f32.mrb[129].mxu1 }
 0x980   : > { %v9981_v20 = vpop.f32.mrb[130].mxu1 }
 0x981   : > { %v13883_v35 = vpop.f32.mrb[131].mxu1  ;;  %v10480_v13 = vpop.f32.mrb[172].mxu0  ;;  %v19047_v62 = vadd.f32 %v10151_v23, %v9997_v25 }
 0x982   : > { %v13968_v41 = vpop.f32.mrb[173].mxu0 }
 0x983   : > { %v10483_v30 = vpop.f32.mrb[174].mxu0 }
 0x984   : > { %v13969_v5 = vpop.f32.mrb[175].mxu0 }
 0x986   : > { %v10263_v32 = vpop.f32.mrb[132].mxu1 }
 0x987   : > { %v10330_v11 = vadd.f32 %v10263_v32, %v19009_v53  ;;  %v13926_v47 = vpop.f32.mrb[133].mxu1 }
 0x988   : > { %v10266_v56 = vpop.f32.mrb[134].mxu1 }
 0x989   : > { %v10331_v63 = vadd.f32 %v10266_v56, %v19011_v51  ;;  %v13927_v60 = vpop.f32.mrb[135].mxu1  ;;  %v10487_v8 = vpop.f32.mrb[176].mxu0  ;;  %v19051_v42 = vadd.f32 %v10472_v26, %v10330_v11 }
 0x98a   : > { %v13972_v39 = vpop.f32.mrb[177].mxu0 }
 0x98b   : > { %v10490_v49 = vpop.f32.mrb[178].mxu0  ;;  %v19053_v58 = vadd.f32 %v10475_v10, %v10331_v63 }
 0x98c   : > { %v13973_v46 = vpop.f32.mrb[179].mxu0 }
 0x98e   : > { %v10271_v17 = vpop.f32.mrb[136].mxu1 }
 0x98f   : > { %v10332_v52 = vadd.f32 %v10271_v17, %v19014_v38  ;;  %v13930_v34 = vpop.f32.mrb[137].mxu1 }
 0x990   : > { %v10274_v12 = vpop.f32.mrb[138].mxu1 }
 0x991   : > { %v13931_v28 = vpop.f32.mrb[139].mxu1  ;;  %v10495_v53 = vpop.f32.mrb[180].mxu0  ;;  %v19056_v31 = vadd.f32 %v10480_v13, %v10332_v52 }
 0x992   : > { %v13976_v57 = vpop.f32.mrb[181].mxu0 }
 0x993   : > { %v10498_v51 = vpop.f32.mrb[182].mxu0 }
 0x994   : > { %v13977_v2 = vpop.f32.mrb[183].mxu0 }
 0x996   : > { %v10278_v19 = vpop.f32.mrb[140].mxu1 }
 0x997   : > { %v10333_v45 = vadd.f32 %v10278_v19, %v19018_v33  ;;  %v13934_v24 = vpop.f32.mrb[141].mxu1 }
 0x998   : > { %v10281_v55 = vpop.f32.mrb[142].mxu1 }
 0x999   : > { %v10334_v37 = vadd.f32 %v10281_v55, %v19020_v9  ;;  %v13935_v43 = vpop.f32.mrb[143].mxu1  ;;  %v10503_v61 = vpop.f32.mrb[184].mxu0  ;;  %v19060_v23 = vadd.f32 %v10487_v8, %v10333_v45 }
 0x99a   : > { %v13980_v38 = vpop.f32.mrb[185].mxu0 }
 0x99b   : > { %v10505_v0 = vpop.f32.mrb[186].mxu0  ;;  %v19062_v3 = vadd.f32 %v10490_v49, %v10334_v37 }
 0x99c   : > { %v13981_v22 = vpop.f32.mrb[187].mxu0 }
 0x99e   : > { %v10286_v40 = vpop.f32.mrb[144].mxu1 }
 0x99f   : > { %v10335_v7 = vadd.f32 %v10286_v40, %v19024_v4  ;;  %v13938_v54 = vpop.f32.mrb[145].mxu1 }
 0x9a0   : > { %v10289_v44 = vpop.f32.mrb[146].mxu1 }
 0x9a1   : > { %v10336_v33 = vadd.f32 %v10289_v44, %v19026_v29  ;;  %v13939_v50 = vpop.f32.mrb[147].mxu1  ;;  %v10510_v21 = vpop.f32.mrb[188].mxu0  ;;  %v19066_v26 = vadd.f32 %v10495_v53, %v10335_v7 }
 0x9a2   : > { %v13984_v9 = vpop.f32.mrb[189].mxu0 }
 0x9a3   : > { %v10513_v6 = vpop.f32.mrb[190].mxu0  ;;  %v19068_v10 = vadd.f32 %v10498_v51, %v10336_v33 }
 0x9a4   : > { %v13985_v14 = vpop.f32.mrb[191].mxu0 }
 0x9a6   : > { %v10294_v16 = vpop.f32.mrb[148].mxu1 }
 0x9a7   : > { %v13942_v25 = vpop.f32.mrb[149].mxu1 }
 0x9a8   : > { %v10296_v59 = vpop.f32.mrb[150].mxu1 }
 0x9a9   : > { %v10337_v20 = vadd.f32 %v10296_v59, %v19029_v1  ;;  %v13943_v35 = vpop.f32.mrb[151].mxu1  ;;  %v10518_v4 = vpop.f32.mrb[192].mxu0 }
 0x9aa   : > { %v13988_v13 = vpop.f32.mrb[193].mxu0 }
 0x9ab   : > { %v10520_v41 = vpop.f32.mrb[194].mxu0  ;;  %v19071_v30 = vadd.f32 %v10505_v0, %v10337_v20 }
 0x9ac   : > { %v13989_v29 = vpop.f32.mrb[195].mxu0 }
 0x9ae   : > { %v10301_v5 = vpop.f32.mrb[152].mxu1 }
 0x9af   : > { %v10338_v32 = vadd.f32 %v10301_v5, %v19033_v27  ;;  %v13946_v11 = vpop.f32.mrb[153].mxu1 }
 0x9b0   : > { %v10304_v47 = vpop.f32.mrb[154].mxu1 }
 0x9b1   : > { %v10339_v56 = vadd.f32 %v10304_v47, %v19035_v18  ;;  %v13947_v63 = vpop.f32.mrb[155].mxu1  ;;  %v10525_v60 = vpop.f32.mrb[196].mxu0  ;;  %v19075_v8 = vadd.f32 %v10510_v21, %v10338_v32 }
 0x9b2   : > { %v13992_v39 = vpop.f32.mrb[197].mxu0 }
 0x9b3   : > { %v10528_v1 = vpop.f32.mrb[198].mxu0  ;;  %v19077_v49 = vadd.f32 %v10513_v6, %v10339_v56 }
 0x9b4   : > { %v13993_v46 = vpop.f32.mrb[199].mxu0 }
 0x9b6   : > { %v10309_v17 = vpop.f32.mrb[156].mxu1 }
 0x9b7   : > { %v13950_v52 = vpop.f32.mrb[157].mxu1 }
 0x9b8   : > { %v10311_v34 = vpop.f32.mrb[158].mxu1 }
 0x9b9   : > { %v10340_v12 = vadd.f32 %v10311_v34, %v19038_v36  ;;  %v13951_v28 = vpop.f32.mrb[159].mxu1  ;;  %v10533_v27 = vpop.f32.mrb[200].mxu0 }
 0x9ba   : > { %v13996_v53 = vpop.f32.mrb[201].mxu0 }
 0x9bb   : > { %v19080_v57 = vadd.f32 %v10520_v41, %v10340_v12  ;;  %v10536_v18 = vpop.f32.mrb[202].mxu0 }
 0x9bc   : > { %v13997_v51 = vpop.f32.mrb[203].mxu0 }
 0x9be   : > { %v10316_v2 = vpop.f32.mrb[160].mxu1 }
 0x9bf   : > { %v10341_v19 = vadd.f32 %v10316_v2, %v19042_v48  ;;  %v13954_v45 = vpop.f32.mrb[161].mxu1  ;;  %v19095_v48 = vld [vmem:[%s19225_s4] ss:$0 sm:$0xff] }
 0x9c0   : > { %v10319_v24 = vpop.f32.mrb[162].mxu1 }
 0x9c1   : > { %v10342_v55 = vadd.f32 %v10319_v24, %v19044_v15  ;;  %v19084_v37 = vadd.f32 %v10525_v60, %v10341_v19  ;;  %v13955_v43 = vpop.f32.mrb[163].mxu1 }
 0x9c3   : > { %v19086_v36 = vadd.f32 %v10528_v1, %v10342_v55 }
 0x9c6   : > { %v10324_v61 = vpop.f32.mrb[164].mxu1 }
 0x9c7   : > { %v10343_v38 = vadd.f32 %v10324_v61, %v19047_v62  ;;  %v13958_v0 = vpop.f32.mrb[165].mxu1 }
 0x9c8   : > { %v10327_v22 = vpop.f32.mrb[166].mxu1 }
 0x9c9   : > { %v19089_v40 = vadd.f32 %v10533_v27, %v10343_v38  ;;  %v13959_v7 = vpop.f32.mrb[167].mxu1 }
 0x9ce   : > { %v10645_v15 = vpop.f32.mrb[168].mxu1 }
 0x9cf   : > { %v10712_v54 = vadd.f32 %v10645_v15, %v19051_v42  ;;  %v14002_v44 = vpop.f32.mrb[169].mxu1 }
 0x9d0   : > { %v10648_v33 = vpop.f32.mrb[170].mxu1 }
 0x9d1   : > { %v10732_v62 = vadd.f32 %v19095_v48, %v10712_v54  ;;  %v10713_v50 = vadd.f32 %v10648_v33, %v19053_v58  ;;  %v14003_v21 = vpop.f32.mrb[171].mxu1 }
 0x9d3   : > { %v10746_v9 = vmax.f32 %v10732_v62, 0.0  ;;  %v10733_v6 = vadd.f32 %v19095_v48, %v10713_v50 }
 0x9d5   : > { %10760 = vst.msk [vmem:[%s19103_s13] sm:$0xf] %vm5733_vm8, %v10746_v9  ;;  %v10747_v42 = vmax.f32 %v10733_v6, 0.0 }
 0x9d6   : > { %11418 = vst.msk [vmem:[%s19103_s13 - $0x2] sm:$0xc0] %vm5735_vm9, %v10746_v9  ;;  %v10653_v14 = vpop.f32.mrb[172].mxu1 }
 0x9d7   : > { %11419 = vst.msk [vmem:[%s19103_s13 + $0x6] sm:$0x3] %vm5737_vm10, %v10747_v42  ;;  %v10714_v58 = vadd.f32 %v10653_v14, %v19056_v31  ;;  %v14006_v16 = vpop.f32.mrb[173].mxu1 }
 0x9d8   : > { %11420 = vst.msk [vmem:[%s19103_s13 + $0x4] sm:$0xf0] %vm5739_vm11, %v10747_v42  ;;  %v10656_v25 = vpop.f32.mrb[174].mxu1 }
 0x9d9   : > { %v10734_v59 = vadd.f32 %v19095_v48, %v10714_v58  ;;  %v14007_v20 = vpop.f32.mrb[175].mxu1 }
 0x9db   : > { %v10748_v35 = vmax.f32 %v10734_v59, 0.0 }
 0x9dd   : > { %11421 = vst.msk [vmem:[%s19103_s13 + $0xa] sm:$0x3c] %vm5741_vm12, %v10748_v35 }
 0x9de   : > { %v10660_v4 = vpop.f32.mrb[176].mxu1 }
 0x9df   : > { %v10715_v13 = vadd.f32 %v10660_v4, %v19060_v23  ;;  %v14010_v41 = vpop.f32.mrb[177].mxu1 }
 0x9e0   : > { %v10663_v29 = vpop.f32.mrb[178].mxu1 }
 0x9e1   : > { %v10735_v5 = vadd.f32 %v19095_v48, %v10715_v13  ;;  %v10716_v32 = vadd.f32 %v10663_v29, %v19062_v3  ;;  %v14011_v31 = vpop.f32.mrb[179].mxu1 }
 0x9e3   : > { %v10749_v11 = vmax.f32 %v10735_v5, 0.0  ;;  %v10736_v47 = vadd.f32 %v19095_v48, %v10716_v32 }
 0x9e5   : > { %11422 = vst.msk [vmem:[%s19103_s13 + $0xc] sm:$0xf0] %vm5739_vm11, %v10749_v11  ;;  %v10750_v56 = vmax.f32 %v10736_v47, 0.0 }
 0x9e6   : > { %v10668_v63 = vpop.f32.mrb[180].mxu1 }
 0x9e7   : > { %11423 = vst.msk [vmem:[%s19103_s13 + $0x12] sm:$0x3c] %vm5741_vm12, %v10750_v56  ;;  %v10717_v23 = vadd.f32 %v10668_v63, %v19066_v26  ;;  %v14014_v60 = vpop.f32.mrb[181].mxu1 }
 0x9e8   : > { %v10671_v39 = vpop.f32.mrb[182].mxu1 }
 0x9e9   : > { %v10737_v1 = vadd.f32 %v19095_v48, %v10717_v23  ;;  %v10718_v3 = vadd.f32 %v10671_v39, %v19068_v10  ;;  %v14015_v46 = vpop.f32.mrb[183].mxu1 }
 0x9eb   : > { %v10751_v17 = vmax.f32 %v10737_v1, 0.0  ;;  %v10738_v52 = vadd.f32 %v19095_v48, %v10718_v3 }
 0x9ed   : > { %11424 = vst.msk [vmem:[%s19103_s13 + $0x18] sm:$0xf] %vm5733_vm8, %v10751_v17  ;;  %v10752_v34 = vmax.f32 %v10738_v52, 0.0 }
 0x9ee   : > { %11425 = vst.msk [vmem:[%s19103_s13 + $0x16] sm:$0xc0] %vm5735_vm9, %v10751_v17  ;;  %v10676_v12 = vpop.f32.mrb[184].mxu1 }
 0x9ef   : > { %11426 = vst.msk [vmem:[%s19103_s13 + $0x1e] sm:$0x3] %vm5737_vm10, %v10752_v34  ;;  %v14018_v26 = vpop.f32.mrb[185].mxu1 }
 0x9f0   : > { %v10678_v28 = vpop.f32.mrb[186].mxu1 }
 0x9f1   : > { %v10719_v27 = vadd.f32 %v10678_v28, %v19071_v30  ;;  %v14019_v10 = vpop.f32.mrb[187].mxu1 }
 0x9f3   : > { %v10739_v53 = vadd.f32 %v19095_v48, %v10719_v27 }
 0x9f5   : > { %v10753_v18 = vmax.f32 %v10739_v53, 0.0 }
 0x9f6   : > { %v10683_v51 = vpop.f32.mrb[188].mxu1 }
 0x9f7   : > { %11427 = vst.msk [vmem:[%s19103_s13 + $0x20] sm:$0xf] %vm5733_vm8, %v10753_v18  ;;  %v10720_v2 = vadd.f32 %v10683_v51, %v19075_v8  ;;  %v14022_v19 = vpop.f32.mrb[189].mxu1 }
 0x9f8   : > { %11428 = vst.msk [vmem:[%s19103_s13 + $0x1e] sm:$0xc0] %vm5735_vm9, %v10753_v18  ;;  %v10686_v45 = vpop.f32.mrb[190].mxu1 }
 0x9f9   : > { %v10740_v24 = vadd.f32 %v19095_v48, %v10720_v2  ;;  %v10721_v55 = vadd.f32 %v10686_v45, %v19077_v49  ;;  %v14023_v30 = vpop.f32.mrb[191].mxu1 }
 0x9fb   : > { %v10754_v43 = vmax.f32 %v10740_v24, 0.0  ;;  %v10741_v61 = vadd.f32 %v19095_v48, %v10721_v55 }
 0x9fd   : > { %11429 = vst.msk [vmem:[%s19103_s13 + $0x26] sm:$0x3] %vm5737_vm10, %v10754_v43  ;;  %v10755_v38 = vmax.f32 %v10741_v61, 0.0 }
 0x9fe   : > { %11430 = vst.msk [vmem:[%s19103_s13 + $0x24] sm:$0xf0] %vm5739_vm11, %v10754_v43  ;;  %v10691_v0 = vpop.f32.mrb[192].mxu1 }
 0x9ff   : > { %11431 = vst.msk [vmem:[%s19103_s13 + $0x2a] sm:$0x3c] %vm5741_vm12, %v10755_v38  ;;  %v14026_v8 = vpop.f32.mrb[193].mxu1 }
 0xa00   : > { %v10693_v22 = vpop.f32.mrb[194].mxu1 }
 0xa01   : > { %v10722_v7 = vadd.f32 %v10693_v22, %v19080_v57  ;;  %v14027_v15 = vpop.f32.mrb[195].mxu1 }
 0xa03   : > { %v10742_v49 = vadd.f32 %v19095_v48, %v10722_v7 }
 0xa05   : > { %v10756_v54 = vmax.f32 %v10742_v49, 0.0 }
 0xa06   : > { %v10698_v44 = vpop.f32.mrb[196].mxu1 }
 0xa07   : > { %11432 = vst.msk [vmem:[%s19103_s13 + $0x2c] sm:$0xf0] %vm5739_vm11, %v10756_v54  ;;  %v10723_v33 = vadd.f32 %v10698_v44, %v19084_v37  ;;  %v14030_v62 = vpop.f32.mrb[197].mxu1 }
 0xa08   : > { %v10701_v50 = vpop.f32.mrb[198].mxu1 }
 0xa09   : > { %v10743_v21 = vadd.f32 %v19095_v48, %v10723_v33  ;;  %v10724_v9 = vadd.f32 %v10701_v50, %v19086_v36  ;;  %v14031_v57 = vpop.f32.mrb[199].mxu1 }
 0xa0b   : > { %v10757_v6 = vmax.f32 %v10743_v21, 0.0  ;;  %v10744_v42 = vadd.f32 %v19095_v48, %v10724_v9 }
 0xa0d   : > { %11433 = vst.msk [vmem:[%s19103_s13 + $0x32] sm:$0x3c] %vm5741_vm12, %v10757_v6  ;;  %v10758_v14 = vmax.f32 %v10744_v42, 0.0 }
 0xa0e   : > { %v10706_v58 = vpop.f32.mrb[200].mxu1 }
 0xa0f   : > { %11434 = vst.msk [vmem:[%s19103_s13 + $0x38] sm:$0xf] %vm5733_vm8, %v10758_v14  ;;  %v10725_v37 = vadd.f32 %v10706_v58, %v19089_v40  ;;  %v14034_v16 = vpop.f32.mrb[201].mxu1 }
 0xa10   : > { %11435 = vst.msk [vmem:[%s19103_s13 + $0x36] sm:$0xc0] %vm5735_vm9, %v10758_v14  ;;  %v10709_v36 = vpop.f32.mrb[202].mxu1 }
 0xa11   : > { %v10745_v25 = vadd.f32 %v19095_v48, %v10725_v37  ;;  %v14035_v59 = vpop.f32.mrb[203].mxu1 }
 0xa13   : > { %v10759_v20 = vmax.f32 %v10745_v25, 0.0 }
 0xa15   : > { %11436 = vst.msk [vmem:[%s19103_s13 + $0x3e] sm:$0x3] %vm5737_vm10, %v10759_v20 }
 0xa16   : > { %14115 = shalt.err (!%p14112_p3)
}
 0xa17   : > { %s14116_s7 = scalar_lea.hbm %s19172_s23, 1024  ;;  %s14120_s10 = scalar_lea.hbm %s19226_s5, 2048 }
 0xa18   : > { %p14117_p4 = scmp.ne.s32.totalorder %s19172_s23, %s14116_s7  ;;  %p14121_p9 = scmp.lt.u32.totalorder %s19172_s23, %s19226_s5 }
 0xa19   : > { %p14122_p10 = scmp.lt.u32.totalorder %s14120_s10, %s14116_s7  ;;  %p14124_p12 = scmp.lt.u32.totalorder %s14116_s7, %s19172_s23 }
 0xa1a   : > { %p14118_p7 = pnand %p14117_p4, %p14240_p5 }
 0xa1b   : > { %p14123_p11 = por %p14122_p10, %p14121_p9 }
 0xa1c   : > { %p14119_p8 = pneg %p14118_p7 }
 0xa1d   : > { %p14125_p13 = por %p14124_p12, %p14123_p11 }
 0xa1f   : > { %p14126_p0 = pnand %p14125_p13, %p14119_p8 }
 0xa21   : > { %14129 = shalt.err (!%p14126_p0)
}
 0xa22   : > { %s14170_s13 = smov 64   ;;  %s14171_s14 = smov 4  }
 0xa23   : > { %14036 = dma.vmem_to_hbm [thread:$0]  (%p14240_p5), %s19174_s15, 1024, %s19172_s23, %s19180_s22, %s14170_s13, %s14170_s13, %s14171_s14  }
 0xa24 PF: > { %p14042_p1 = scmp.ge.s32.totalorder %s14164_s21, 2  ;;  %s10824_s16 = sand.u32 1, %s14152_s18  }
 0xa25   : > { %s10825_s17 = scalar_lea.sflag [#allocation5], %s10824_s16 }
 0xa26   : > { %p14039_p2 = pnand %p14042_p1, %p14244_p6 }
 0xa28   : > { %14147 = dma.done.wait (!%p14039_p2), %s10825_s17, 1024  }
 0xa29   : > { %14149 = vsyncadd (!%p14039_p2), %s10825_s17, 4294966272  ;;  %p15_p3 = scmp.ge.s32.totalorder %s14227_s24, 4   ;;  %s19277_s18 = smov %s14156_s19 }
 0xa2a   : > { %s19278_s19 = smov %s14160_s20  ;;  %s19279_s20 = smov %s14238_s27 }
 0xa2b   : > { %s19280_s21 = smov %s14227_s24  ;;  %17 = sbr.rel (!%p15_p3) target bundleno = 3 (0x3), region = 142 }
 0xa32   :  { %10830 = vsyncpa [#allocation5], 1 }
 0xa33   :  { %10832 = vsyncpa [#allocation5 + $0x1], 1 }

</bundles_post_ra>
